<compile_context>
chip_gen: v7x
topology: tpu7x:2x2x1
jax: 0.10.0
libtpu: 0.0.40
codegen_flags: <defaults>
</compile_context>

<pallas_src>
from collections import namedtuple

import numpy as np
import jax
import jax.numpy as jnp
from jax.experimental import pallas as pl
from jax.experimental.pallas import tpu as pltpu

# ----------------------------------------------------------------------------
# Network configuration (small MobileNetV3 — first 4 inverted-residual blocks)
# ----------------------------------------------------------------------------
IRConf = namedtuple("IRConf", "in_c kernel exp_c out_c use_se use_hs stride dilation")

SETTINGS = [
    IRConf(16, 3, 16, 16, True, False, 2, 1),
    IRConf(16, 3, 72, 24, False, False, 2, 1),
    IRConf(24, 3, 88, 24, False, False, 1, 1),   # stride 1, in==out -> residual
    IRConf(24, 5, 96, 40, True, True, 2, 1),
]
LAST_CHANNEL = 128
NUM_CLASSES = 10
BN_EPS = 1e-3


def _make_divisible(v, divisor=8, min_value=None):
    if min_value is None:
        min_value = divisor
    new_v = max(min_value, int(v + divisor / 2) // divisor * divisor)
    if new_v < 0.9 * v:
        new_v += divisor
    return new_v


# ----------------------------------------------------------------------------
# In-kernel activation helpers (f32 elementwise everywhere — v5e-safe)
# ----------------------------------------------------------------------------
def _relu(y):
    return jnp.maximum(y, 0.0)


def _hardswish(y):
    return y * (jnp.clip(y + 3.0, 0.0, 6.0) * (1.0 / 6.0))


def _hardsigmoid(y):
    return jnp.clip(y + 3.0, 0.0, 6.0) * (1.0 / 6.0)


_ACT = {"relu": _relu, "hardswish": _hardswish, "none": lambda y: y}


def _out_len(L, k, stride, pad, dil):
    # Matches torch.nn.Conv1d: floor((L + 2p - d(k-1) - 1)/s) + 1
    return (L + 2 * pad - dil * (k - 1) - 1) // stride + 1


# ----------------------------------------------------------------------------
# HOST-side static matrices (numpy, built once; no iota work inside the kernel)
# ----------------------------------------------------------------------------
def _tap_concat_np(L, Lout, k, stride, pad, dil, N):
    """(N*L, k*N*Lout) 0/1 gather matrix.

    Column t*(N*Lout) + n*Lout + j picks input position j*stride - pad + t*dil of
    sample n (out-of-range taps stay zero => zero padding; samples never mix)."""
    T = np.zeros((N * L, k * N * Lout), np.float32)
    for t in range(k):
        for n in range(N):
            for j in range(Lout):
                src = j * stride - pad + t * dil
                if 0 <= src < L:
                    T[n * L + src, t * (N * Lout) + n * Lout + j] = 1.0
    return T


def _pool_np(N, L):
    """(N*L, N): column n averages the L lanes of sample n."""
    P = np.zeros((N * L, N), np.float32)
    for n in range(N):
        P[n * L:(n + 1) * L, n] = 1.0 / L
    return P


def _expand_np(N, L):
    """(N, N*L): row n broadcasts a per-sample scalar over the L lanes of sample n."""
    E = np.zeros((N, N * L), np.float32)
    for n in range(N):
        E[n, n * L:(n + 1) * L] = 1.0
    return E


# ----------------------------------------------------------------------------
# Slab packer: stacks 2-D blocks row-wise (row offsets 8-aligned) into one slab.
# Index (name -> (row0, rows, cols)) is pure-Python metadata used for static
# ref-window slicing inside the kernel.
# ----------------------------------------------------------------------------
class _Packer:
    def __init__(self):
        self.items = []
        self.index = {}
        self.rows = 0
        self.maxc = 0

    def add(self, name, arr):
        r, c = int(arr.shape[0]), int(arr.shape[1])
        self.index[name] = (self.rows, r, c)
        self.items.append((name, arr, r, c))
        self.rows += ((r + 7) // 8) * 8
        self.maxc = max(self.maxc, c)

    def _width(self):
        return ((self.maxc + 127) // 128) * 128

    def finalize_np(self):
        slab = np.zeros((self.rows, self._width()), np.float32)
        for name, arr, r, c in self.items:
            r0 = self.index[name][0]
            slab[r0:r0 + r, :c] = arr
        return slab

    def finalize_jnp(self):
        slab = jnp.zeros((self.rows, self._width()), jnp.float32)
        for name, arr, r, c in self.items:
            r0 = self.index[name][0]
            slab = slab.at[r0:r0 + r, :c].set(arr.astype(jnp.float32))
        return slab


def _build_static(N, L0):
    """Static matrix slab + per-layer geometry (kernel size k, lane width N*Lout)."""
    mp = _Packer()
    seq = {}
    L = L0
    Lout = _out_len(L, 3, 2, 1, 1)
    mp.add("tap_stem", _tap_concat_np(L, Lout, 3, 2, 1, 1, N))
    seq["tap_stem"] = (3, N * Lout)
    L = Lout
    for i, cnf in enumerate(SETTINGS):
        stride = 1 if cnf.dilation > 1 else cnf.stride
        pad = (cnf.kernel - 1) // 2 * cnf.dilation
        Lout = _out_len(L, cnf.kernel, stride, pad, cnf.dilation)
        mp.add(f"tap{i}", _tap_concat_np(L, Lout, cnf.kernel, stride, pad,
                                         cnf.dilation, N))
        seq[f"tap{i}"] = (cnf.kernel, N * Lout)
        L = Lout
        if cnf.use_se:
            mp.add(f"pool{i}", _pool_np(N, L))
            mp.add(f"gate{i}", _expand_np(N, L))
    mp.add("pool_head", _pool_np(N, L))
    return mp, seq


def _pack_weights(params):
    """Fold BN (eval mode) and pack every [W | b] pair into one slab."""
    wp = _Packer()

    def add_conv(name, p):
        scale = p["gamma"] / jnp.sqrt(p["var"] + BN_EPS)
        bias = p["beta"] - p["mean"] * scale
        w = p["w"] * scale[:, None, None]
        co = w.shape[0]
        wp.add(name, jnp.concatenate([w.reshape(co, -1), bias.reshape(co, 1)], axis=1))

    add_conv("stem", params["stem"])
    for i, (cnf, bp) in enumerate(zip(SETTINGS, params["blocks"])):
        if cnf.exp_c != cnf.in_c:
            add_conv(f"exp{i}", bp["expand"])
        add_conv(f"dw{i}", bp["dw"])
        if cnf.use_se:
            se = bp["se"]
            wp.add(f"se1_{i}", jnp.concatenate([se["w1"], se["b1"]], axis=1))
            wp.add(f"se2_{i}", jnp.concatenate([se["w2"], se["b2"]], axis=1))
        add_conv(f"proj{i}", bp["project"])
    add_conv("last", params["lastconv"])
    cl = params["classifier"]
    wp.add("fc1", jnp.concatenate([cl["w1"], cl["b1"].reshape(-1, 1)], axis=1))
    wp.add("fc2", jnp.concatenate([cl["w2"], cl["b2"].reshape(-1, 1)], axis=1))
    return wp


# ----------------------------------------------------------------------------
# The single fused kernel
# ----------------------------------------------------------------------------
def _build_kernel(widx, midx, seq, settings, N):
    def kernel(x_ref, w_ref, m_ref, out_ref):
        def wb(name):                       # -> (weight, bias) via one static window
            r0, r, c = widx[name]
            blk = w_ref[r0:r0 + r, 0:c]
            return blk[:, :c - 1], blk[:, c - 1:c]

        def mat(name):                      # static window into the constants slab
            r0, r, c = midx[name]
            return m_ref[r0:r0 + r, 0:c]

        def mm(a, b):
            return jnp.dot(a, b, preferred_element_type=jnp.float32)

        def pw(h, name, act):
            # 1x1 conv + folded BN + act: one (Co,Cin)x(Cin,N*L) MXU matmul.
            w, b = wb(name)
            return _ACT[act](mm(w, h) + b)

        def dw(h, wname, tname, act):
            # Depthwise (or Cin==1 stem) conv, all k taps in ONE matmul, then a
            # k-term per-channel weighted reduction on the VPU.
            k, M = seq[tname]
            w, b = wb(wname)                # w: (C, k), b: (C, 1)
            taps = mm(h, mat(tname))        # (C or 1, k*M)
            acc = w[:, 0:1] * taps[:, 0:M]
            for t in range(1, k):
                acc = acc + w[:, t:t + 1] * taps[:, t * M:(t + 1) * M]
            return _ACT[act](acc + b)

        def se(h, i):
            # Squeeze-Excitation: avgpool -> fc1+ReLU -> fc2+Hardsigmoid -> rescale.
            w1, b1 = wb(f"se1_{i}")
            w2, b2 = wb(f"se2_{i}")
            s = mm(h, mat(f"pool{i}"))              # (C, N)
            a = _relu(mm(w1, s) + b1)               # (Cs, N)
            g = _hardsigmoid(mm(w2, a) + b2)        # (C, N)
            return h * mm(g, mat(f"gate{i}"))       # gate broadcast back over lanes

        # --- stem: Conv1d(1, C0, k=3, s=2, p=1) + BN + Hardswish ---
        x = x_ref[...]                              # (1, N*L0)
        h = dw(x, "stem", "tap_stem", "hardswish")

        # --- inverted residual blocks ---
        for i, cnf in enumerate(settings):
            inp = h
            act = "hardswish" if cnf.use_hs else "relu"
            if cnf.exp_c != cnf.in_c:
                h = pw(h, f"exp{i}", act)
            h = dw(h, f"dw{i}", f"tap{i}", act)
            if cnf.use_se:
                h = se(h, i)
            h = pw(h, f"proj{i}", "none")
            if cnf.stride == 1 and cnf.in_c == cnf.out_c:
                h = h + inp

        # --- last 1x1 conv + BN + Hardswish ---
        h = pw(h, "last", "hardswish")

        # --- head: avgpool -> Linear -> Hardswish -> (Dropout = identity) -> Linear
        s = mm(h, mat("pool_head"))                 # (C_last, N)
        w1, b1 = wb("fc1")
        z = _hardswish(mm(w1, s) + b1)              # (LAST_CHANNEL, N)
        w2, b2 = wb("fc2")
        out_ref[...] = mm(w2, z) + b2               # (NUM_CLASSES, N)

    return kernel


# ----------------------------------------------------------------------------
# Wrapper
# ----------------------------------------------------------------------------
def mobilenetv3_forward(params, x):
    N, c_in, L0 = x.shape
    assert c_in == 1, "stem is Conv1d(1, C0, ...)"

    mp, seq = _build_static(N, L0)                  # host numpy -> constants
    mslab = jnp.asarray(mp.finalize_np())
    wp = _pack_weights(params)
    wslab = wp.finalize_jnp()
    x2d = x.reshape(1, N * L0)                      # lane-dense (Cin=1, N*L0)

    kernel = _build_kernel(wp.index, mp.index, seq, SETTINGS, N)
    vmem = pltpu.MemorySpace.VMEM
    nbytes = int(4 * (x2d.size + wslab.size + mslab.size + NUM_CLASSES * N))

    out_t = pl.pallas_call(
        kernel,
        out_shape=jax.ShapeDtypeStruct((NUM_CLASSES, N), jnp.float32),
        in_specs=[pl.BlockSpec(memory_space=vmem)] * 3,
        out_specs=pl.BlockSpec(memory_space=vmem),
        compiler_params=pltpu.CompilerParams(vmem_limit_bytes=32 * 1024 * 1024),
        cost_estimate=pl.CostEstimate(flops=20_000_000, transcendentals=0,
                                      bytes_accessed=nbytes),
    )(x2d, wslab, mslab)
    return out_t.T                                  # (N, NUM_CLASSES)


# ----------------------------------------------------------------------------
# Deterministic parameter initialization (matches the module __init__ shapes)
# ----------------------------------------------------------------------------
def init_params(key):
    keys = iter(jax.random.split(key, 64))

    def conv(co, ci_per_group, k):
        std = (2.0 / (co * k)) ** 0.5  # kaiming_normal_, mode='fan_out'
        return {
            "w": std * jax.random.normal(next(keys), (co, ci_per_group, k), jnp.float32),
            "gamma": jnp.ones((co,), jnp.float32),
            "beta": jnp.zeros((co,), jnp.float32),
            "mean": jnp.zeros((co,), jnp.float32),
            "var": jnp.ones((co,), jnp.float32),
        }

    params = {"stem": conv(SETTINGS[0].in_c, 1, 3)}
    blocks = []
    for cnf in SETTINGS:
        b = {}
        if cnf.exp_c != cnf.in_c:
            b["expand"] = conv(cnf.exp_c, cnf.in_c, 1)
        b["dw"] = conv(cnf.exp_c, 1, cnf.kernel)
        if cnf.use_se:
            cs = _make_divisible(cnf.exp_c // 4, 8)
            b["se"] = {
                "w1": ((2.0 / cs) ** 0.5)
                * jax.random.normal(next(keys), (cs, cnf.exp_c), jnp.float32),
                "b1": jnp.zeros((cs, 1), jnp.float32),
                "w2": ((2.0 / cnf.exp_c) ** 0.5)
                * jax.random.normal(next(keys), (cnf.exp_c, cs), jnp.float32),
                "b2": jnp.zeros((cnf.exp_c, 1), jnp.float32),
            }
        b["project"] = conv(cnf.out_c, cnf.exp_c, 1)
        blocks.append(b)
    params["blocks"] = blocks

    last_in = SETTINGS[-1].out_c
    last_out = 6 * last_in
    params["lastconv"] = conv(last_out, last_in, 1)
    params["classifier"] = {
        "w1": 0.01 * jax.random.normal(next(keys), (LAST_CHANNEL, last_out), jnp.float32),
        "b1": jnp.zeros((LAST_CHANNEL,), jnp.float32),
        "w2": 0.01 * jax.random.normal(next(keys), (NUM_CLASSES, LAST_CHANNEL), jnp.float32),
        "b2": jnp.zeros((NUM_CLASSES,), jnp.float32),
    }
    return params


# ----------------------------------------------------------------------------
if __name__ == "__main__":
    key = jax.random.PRNGKey(0)
    pkey, xkey = jax.random.split(key)
    params = init_params(pkey)
    # input: (N=8, C_in=1, L=64) — Conv1d(1, ...) stem; N=8 keeps lanes dense deep down.
    x = jax.random.normal(xkey, (8, 1, 64), jnp.float32)
    out = jax.jit(mobilenetv3_forward)(params, x)
    jax.block_until_ready(out)
    assert out.shape == (8, NUM_CLASSES) and out.dtype == jnp.float32
    assert bool(jnp.all(jnp.isfinite(out)))
    print("KERNEL_OK")
</pallas_src>

<mosaic_0001>
module attributes {stable_mosaic.version = 11 : i64} {
  func.func @kernel(%arg0: memref<1x512xf32, #tpu.memory_space<vmem>>, %arg1: memref<1176x256xf32, #tpu.memory_space<vmem>>, %arg2: memref<1232x768xf32, #tpu.memory_space<vmem>>, %arg3: memref<10x8xf32, #tpu.memory_space<vmem>>) attributes {dimension_semantics = [], scalar_prefetch = 0 : i64, scratch_operands = 0 : i64, tpu.core_type = #tpu.core_type<tc>} {
    %c0 = arith.constant 0 : index
    %c0_0 = arith.constant 0 : index
    %0 = vector.load %arg0[%c0, %c0_0] : memref<1x512xf32, #tpu.memory_space<vmem>>, vector<1x512xf32>
    %c0_1 = arith.constant 0 : index
    %c0_2 = arith.constant 0 : index
    %1 = vector.load %arg1[%c0_1, %c0_2] : memref<1176x256xf32, #tpu.memory_space<vmem>>, vector<16x4xf32>
    %2 = vector.extract_strided_slice %1 {offsets = [0, 0], sizes = [16, 3], strides = [1, 1]} : vector<16x4xf32> to vector<16x3xf32>
    %3 = vector.extract_strided_slice %1 {offsets = [0, 3], sizes = [16, 1], strides = [1, 1]} : vector<16x4xf32> to vector<16x1xf32>
    %c0_3 = arith.constant 0 : index
    %c0_4 = arith.constant 0 : index
    %4 = vector.load %arg2[%c0_3, %c0_4] : memref<1232x768xf32, #tpu.memory_space<vmem>>, vector<512x768xf32>
    %cst = arith.constant dense<0.000000e+00> : vector<1x768xf32>
    %5 = tpu.matmul %0, %4, %cst {dimension_numbers = #tpu.dot_dimension_numbers<[1], [0], [0], [1], [0, 0, 1, 1], [], []>} : vector<1x512xf32>, vector<512x768xf32>, vector<1x768xf32> -> vector<1x768xf32>
    %6 = vector.extract_strided_slice %2 {offsets = [0, 0], sizes = [16, 1], strides = [1, 1]} : vector<16x3xf32> to vector<16x1xf32>
    %7 = vector.extract_strided_slice %5 {offsets = [0, 0], sizes = [1, 256], strides = [1, 1]} : vector<1x768xf32> to vector<1x256xf32>
    %8 = vector.broadcast %6 : vector<16x1xf32> to vector<16x256xf32>
    %9 = vector.broadcast %7 : vector<1x256xf32> to vector<16x256xf32>
    %10 = arith.mulf %8, %9 : vector<16x256xf32>
    %11 = vector.extract_strided_slice %2 {offsets = [0, 1], sizes = [16, 1], strides = [1, 1]} : vector<16x3xf32> to vector<16x1xf32>
    %12 = vector.extract_strided_slice %5 {offsets = [0, 256], sizes = [1, 256], strides = [1, 1]} : vector<1x768xf32> to vector<1x256xf32>
    %13 = vector.broadcast %11 : vector<16x1xf32> to vector<16x256xf32>
    %14 = vector.broadcast %12 : vector<1x256xf32> to vector<16x256xf32>
    %15 = arith.mulf %13, %14 : vector<16x256xf32>
    %16 = arith.addf %10, %15 : vector<16x256xf32>
    %17 = vector.extract_strided_slice %2 {offsets = [0, 2], sizes = [16, 1], strides = [1, 1]} : vector<16x3xf32> to vector<16x1xf32>
    %18 = vector.extract_strided_slice %5 {offsets = [0, 512], sizes = [1, 256], strides = [1, 1]} : vector<1x768xf32> to vector<1x256xf32>
    %19 = vector.broadcast %17 : vector<16x1xf32> to vector<16x256xf32>
    %20 = vector.broadcast %18 : vector<1x256xf32> to vector<16x256xf32>
    %21 = arith.mulf %19, %20 : vector<16x256xf32>
    %22 = arith.addf %16, %21 : vector<16x256xf32>
    %23 = vector.broadcast %3 : vector<16x1xf32> to vector<16x256xf32>
    %24 = arith.addf %22, %23 : vector<16x256xf32>
    %cst_5 = arith.constant 3.000000e+00 : f32
    %25 = vector.broadcast %cst_5 : f32 to vector<16x256xf32>
    %26 = arith.addf %24, %25 : vector<16x256xf32>
    %cst_6 = arith.constant 0.000000e+00 : f32
    %cst_7 = arith.constant 6.000000e+00 : f32
    %27 = vector.broadcast %cst_6 : f32 to vector<16x256xf32>
    %28 = arith.maximumf %27, %26 : vector<16x256xf32>
    %29 = vector.broadcast %cst_7 : f32 to vector<16x256xf32>
    %30 = arith.minimumf %29, %28 : vector<16x256xf32>
    %cst_8 = arith.constant 0.166666672 : f32
    %31 = vector.broadcast %cst_8 : f32 to vector<16x256xf32>
    %32 = arith.mulf %30, %31 : vector<16x256xf32>
    %33 = arith.mulf %24, %32 : vector<16x256xf32>
    %c16 = arith.constant 16 : index
    %c0_9 = arith.constant 0 : index
    %34 = vector.load %arg1[%c16, %c0_9] : memref<1176x256xf32, #tpu.memory_space<vmem>>, vector<16x4xf32>
    %35 = vector.extract_strided_slice %34 {offsets = [0, 0], sizes = [16, 3], strides = [1, 1]} : vector<16x4xf32> to vector<16x3xf32>
    %36 = vector.extract_strided_slice %34 {offsets = [0, 3], sizes = [16, 1], strides = [1, 1]} : vector<16x4xf32> to vector<16x1xf32>
    %c512 = arith.constant 512 : index
    %c0_10 = arith.constant 0 : index
    %37 = vector.load %arg2[%c512, %c0_10] : memref<1232x768xf32, #tpu.memory_space<vmem>>, vector<256x384xf32>
    %cst_11 = arith.constant dense<0.000000e+00> : vector<16x384xf32>
    %38 = tpu.matmul %33, %37, %cst_11 {dimension_numbers = #tpu.dot_dimension_numbers<[1], [0], [0], [1], [0, 0, 1, 1], [], []>} : vector<16x256xf32>, vector<256x384xf32>, vector<16x384xf32> -> vector<16x384xf32>
    %39 = vector.extract_strided_slice %35 {offsets = [0, 0], sizes = [16, 1], strides = [1, 1]} : vector<16x3xf32> to vector<16x1xf32>
    %40 = vector.extract_strided_slice %38 {offsets = [0, 0], sizes = [16, 128], strides = [1, 1]} : vector<16x384xf32> to vector<16x128xf32>
    %41 = vector.broadcast %39 : vector<16x1xf32> to vector<16x128xf32>
    %42 = arith.mulf %41, %40 : vector<16x128xf32>
    %43 = vector.extract_strided_slice %35 {offsets = [0, 1], sizes = [16, 1], strides = [1, 1]} : vector<16x3xf32> to vector<16x1xf32>
    %44 = vector.extract_strided_slice %38 {offsets = [0, 128], sizes = [16, 128], strides = [1, 1]} : vector<16x384xf32> to vector<16x128xf32>
    %45 = vector.broadcast %43 : vector<16x1xf32> to vector<16x128xf32>
    %46 = arith.mulf %45, %44 : vector<16x128xf32>
    %47 = arith.addf %42, %46 : vector<16x128xf32>
    %48 = vector.extract_strided_slice %35 {offsets = [0, 2], sizes = [16, 1], strides = [1, 1]} : vector<16x3xf32> to vector<16x1xf32>
    %49 = vector.extract_strided_slice %38 {offsets = [0, 256], sizes = [16, 128], strides = [1, 1]} : vector<16x384xf32> to vector<16x128xf32>
    %50 = vector.broadcast %48 : vector<16x1xf32> to vector<16x128xf32>
    %51 = arith.mulf %50, %49 : vector<16x128xf32>
    %52 = arith.addf %47, %51 : vector<16x128xf32>
    %53 = vector.broadcast %36 : vector<16x1xf32> to vector<16x128xf32>
    %54 = arith.addf %52, %53 : vector<16x128xf32>
    %cst_12 = arith.constant 0.000000e+00 : f32
    %55 = vector.broadcast %cst_12 : f32 to vector<16x128xf32>
    %56 = arith.maximumf %54, %55 : vector<16x128xf32>
    %c32 = arith.constant 32 : index
    %c0_13 = arith.constant 0 : index
    %57 = vector.load %arg1[%c32, %c0_13] : memref<1176x256xf32, #tpu.memory_space<vmem>>, vector<8x17xf32>
    %58 = vector.extract_strided_slice %57 {offsets = [0, 0], sizes = [8, 16], strides = [1, 1]} : vector<8x17xf32> to vector<8x16xf32>
    %59 = vector.extract_strided_slice %57 {offsets = [0, 16], sizes = [8, 1], strides = [1, 1]} : vector<8x17xf32> to vector<8x1xf32>
    %c40 = arith.constant 40 : index
    %c0_14 = arith.constant 0 : index
    %60 = vector.load %arg1[%c40, %c0_14] : memref<1176x256xf32, #tpu.memory_space<vmem>>, vector<16x9xf32>
    %61 = vector.extract_strided_slice %60 {offsets = [0, 0], sizes = [16, 8], strides = [1, 1]} : vector<16x9xf32> to vector<16x8xf32>
    %62 = vector.extract_strided_slice %60 {offsets = [0, 8], sizes = [16, 1], strides = [1, 1]} : vector<16x9xf32> to vector<16x1xf32>
    %c768 = arith.constant 768 : index
    %c0_15 = arith.constant 0 : index
    %63 = vector.load %arg2[%c768, %c0_15] : memref<1232x768xf32, #tpu.memory_space<vmem>>, vector<128x8xf32>
    %cst_16 = arith.constant dense<0.000000e+00> : vector<16x8xf32>
    %64 = tpu.matmul %56, %63, %cst_16 {dimension_numbers = #tpu.dot_dimension_numbers<[1], [0], [0], [1], [0, 0, 1, 1], [], []>} : vector<16x128xf32>, vector<128x8xf32>, vector<16x8xf32> -> vector<16x8xf32>
    %cst_17 = arith.constant dense<0.000000e+00> : vector<8x8xf32>
    %65 = tpu.matmul %58, %64, %cst_17 {dimension_numbers = #tpu.dot_dimension_numbers<[1], [0], [0], [1], [0, 0, 1, 1], [], []>} : vector<8x16xf32>, vector<16x8xf32>, vector<8x8xf32> -> vector<8x8xf32>
    %66 = vector.broadcast %59 : vector<8x1xf32> to vector<8x8xf32>
    %67 = arith.addf %65, %66 : vector<8x8xf32>
    %cst_18 = arith.constant 0.000000e+00 : f32
    %68 = vector.broadcast %cst_18 : f32 to vector<8x8xf32>
    %69 = arith.maximumf %67, %68 : vector<8x8xf32>
    %cst_19 = arith.constant dense<0.000000e+00> : vector<16x8xf32>
    %70 = tpu.matmul %61, %69, %cst_19 {dimension_numbers = #tpu.dot_dimension_numbers<[1], [0], [0], [1], [0, 0, 1, 1], [], []>} : vector<16x8xf32>, vector<8x8xf32>, vector<16x8xf32> -> vector<16x8xf32>
    %71 = vector.broadcast %62 : vector<16x1xf32> to vector<16x8xf32>
    %72 = arith.addf %70, %71 : vector<16x8xf32>
    %cst_20 = arith.constant 3.000000e+00 : f32
    %73 = vector.broadcast %cst_20 : f32 to vector<16x8xf32>
    %74 = arith.addf %72, %73 : vector<16x8xf32>
    %cst_21 = arith.constant 0.000000e+00 : f32
    %cst_22 = arith.constant 6.000000e+00 : f32
    %75 = vector.broadcast %cst_21 : f32 to vector<16x8xf32>
    %76 = arith.maximumf %75, %74 : vector<16x8xf32>
    %77 = vector.broadcast %cst_22 : f32 to vector<16x8xf32>
    %78 = arith.minimumf %77, %76 : vector<16x8xf32>
    %cst_23 = arith.constant 0.166666672 : f32
    %79 = vector.broadcast %cst_23 : f32 to vector<16x8xf32>
    %80 = arith.mulf %78, %79 : vector<16x8xf32>
    %c896 = arith.constant 896 : index
    %c0_24 = arith.constant 0 : index
    %81 = vector.load %arg2[%c896, %c0_24] : memref<1232x768xf32, #tpu.memory_space<vmem>>, vector<8x128xf32>
    %cst_25 = arith.constant dense<0.000000e+00> : vector<16x128xf32>
    %82 = tpu.matmul %80, %81, %cst_25 {dimension_numbers = #tpu.dot_dimension_numbers<[1], [0], [0], [1], [0, 0, 1, 1], [], []>} : vector<16x8xf32>, vector<8x128xf32>, vector<16x128xf32> -> vector<16x128xf32>
    %83 = arith.mulf %56, %82 : vector<16x128xf32>
    %c56 = arith.constant 56 : index
    %c0_26 = arith.constant 0 : index
    %84 = vector.load %arg1[%c56, %c0_26] : memref<1176x256xf32, #tpu.memory_space<vmem>>, vector<16x17xf32>
    %85 = vector.extract_strided_slice %84 {offsets = [0, 0], sizes = [16, 16], strides = [1, 1]} : vector<16x17xf32> to vector<16x16xf32>
    %86 = vector.extract_strided_slice %84 {offsets = [0, 16], sizes = [16, 1], strides = [1, 1]} : vector<16x17xf32> to vector<16x1xf32>
    %cst_27 = arith.constant dense<0.000000e+00> : vector<16x128xf32>
    %87 = tpu.matmul %85, %83, %cst_27 {dimension_numbers = #tpu.dot_dimension_numbers<[1], [0], [0], [1], [0, 0, 1, 1], [], []>} : vector<16x16xf32>, vector<16x128xf32>, vector<16x128xf32> -> vector<16x128xf32>
    %88 = vector.broadcast %86 : vector<16x1xf32> to vector<16x128xf32>
    %89 = arith.addf %87, %88 : vector<16x128xf32>
    %c72 = arith.constant 72 : index
    %c0_28 = arith.constant 0 : index
    %90 = vector.load %arg1[%c72, %c0_28] : memref<1176x256xf32, #tpu.memory_space<vmem>>, vector<72x17xf32>
    %91 = vector.extract_strided_slice %90 {offsets = [0, 0], sizes = [72, 16], strides = [1, 1]} : vector<72x17xf32> to vector<72x16xf32>
    %92 = vector.extract_strided_slice %90 {offsets = [0, 16], sizes = [72, 1], strides = [1, 1]} : vector<72x17xf32> to vector<72x1xf32>
    %cst_29 = arith.constant dense<0.000000e+00> : vector<72x128xf32>
    %93 = tpu.matmul %91, %89, %cst_29 {dimension_numbers = #tpu.dot_dimension_numbers<[1], [0], [0], [1], [0, 0, 1, 1], [], []>} : vector<72x16xf32>, vector<16x128xf32>, vector<72x128xf32> -> vector<72x128xf32>
    %94 = vector.broadcast %92 : vector<72x1xf32> to vector<72x128xf32>
    %95 = arith.addf %93, %94 : vector<72x128xf32>
    %cst_30 = arith.constant 0.000000e+00 : f32
    %96 = vector.broadcast %cst_30 : f32 to vector<72x128xf32>
    %97 = arith.maximumf %95, %96 : vector<72x128xf32>
    %c144 = arith.constant 144 : index
    %c0_31 = arith.constant 0 : index
    %98 = vector.load %arg1[%c144, %c0_31] : memref<1176x256xf32, #tpu.memory_space<vmem>>, vector<72x4xf32>
    %99 = vector.extract_strided_slice %98 {offsets = [0, 0], sizes = [72, 3], strides = [1, 1]} : vector<72x4xf32> to vector<72x3xf32>
    %100 = vector.extract_strided_slice %98 {offsets = [0, 3], sizes = [72, 1], strides = [1, 1]} : vector<72x4xf32> to vector<72x1xf32>
    %c904 = arith.constant 904 : index
    %c0_32 = arith.constant 0 : index
    %101 = vector.load %arg2[%c904, %c0_32] : memref<1232x768xf32, #tpu.memory_space<vmem>>, vector<128x192xf32>
    %cst_33 = arith.constant dense<0.000000e+00> : vector<72x192xf32>
    %102 = tpu.matmul %97, %101, %cst_33 {dimension_numbers = #tpu.dot_dimension_numbers<[1], [0], [0], [1], [0, 0, 1, 1], [], []>} : vector<72x128xf32>, vector<128x192xf32>, vector<72x192xf32> -> vector<72x192xf32>
    %103 = vector.extract_strided_slice %99 {offsets = [0, 0], sizes = [72, 1], strides = [1, 1]} : vector<72x3xf32> to vector<72x1xf32>
    %104 = vector.extract_strided_slice %102 {offsets = [0, 0], sizes = [72, 64], strides = [1, 1]} : vector<72x192xf32> to vector<72x64xf32>
    %105 = vector.broadcast %103 : vector<72x1xf32> to vector<72x64xf32>
    %106 = arith.mulf %105, %104 : vector<72x64xf32>
    %107 = vector.extract_strided_slice %99 {offsets = [0, 1], sizes = [72, 1], strides = [1, 1]} : vector<72x3xf32> to vector<72x1xf32>
    %108 = vector.extract_strided_slice %102 {offsets = [0, 64], sizes = [72, 64], strides = [1, 1]} : vector<72x192xf32> to vector<72x64xf32>
    %109 = vector.broadcast %107 : vector<72x1xf32> to vector<72x64xf32>
    %110 = arith.mulf %109, %108 : vector<72x64xf32>
    %111 = arith.addf %106, %110 : vector<72x64xf32>
    %112 = vector.extract_strided_slice %99 {offsets = [0, 2], sizes = [72, 1], strides = [1, 1]} : vector<72x3xf32> to vector<72x1xf32>
    %113 = vector.extract_strided_slice %102 {offsets = [0, 128], sizes = [72, 64], strides = [1, 1]} : vector<72x192xf32> to vector<72x64xf32>
    %114 = vector.broadcast %112 : vector<72x1xf32> to vector<72x64xf32>
    %115 = arith.mulf %114, %113 : vector<72x64xf32>
    %116 = arith.addf %111, %115 : vector<72x64xf32>
    %117 = vector.broadcast %100 : vector<72x1xf32> to vector<72x64xf32>
    %118 = arith.addf %116, %117 : vector<72x64xf32>
    %cst_34 = arith.constant 0.000000e+00 : f32
    %119 = vector.broadcast %cst_34 : f32 to vector<72x64xf32>
    %120 = arith.maximumf %118, %119 : vector<72x64xf32>
    %c216 = arith.constant 216 : index
    %c0_35 = arith.constant 0 : index
    %121 = vector.load %arg1[%c216, %c0_35] : memref<1176x256xf32, #tpu.memory_space<vmem>>, vector<24x73xf32>
    %122 = vector.extract_strided_slice %121 {offsets = [0, 0], sizes = [24, 72], strides = [1, 1]} : vector<24x73xf32> to vector<24x72xf32>
    %123 = vector.extract_strided_slice %121 {offsets = [0, 72], sizes = [24, 1], strides = [1, 1]} : vector<24x73xf32> to vector<24x1xf32>
    %cst_36 = arith.constant dense<0.000000e+00> : vector<24x64xf32>
    %124 = tpu.matmul %122, %120, %cst_36 {dimension_numbers = #tpu.dot_dimension_numbers<[1], [0], [0], [1], [0, 0, 1, 1], [], []>} : vector<24x72xf32>, vector<72x64xf32>, vector<24x64xf32> -> vector<24x64xf32>
    %125 = vector.broadcast %123 : vector<24x1xf32> to vector<24x64xf32>
    %126 = arith.addf %124, %125 : vector<24x64xf32>
    %c240 = arith.constant 240 : index
    %c0_37 = arith.constant 0 : index
    %127 = vector.load %arg1[%c240, %c0_37] : memref<1176x256xf32, #tpu.memory_space<vmem>>, vector<88x25xf32>
    %128 = vector.extract_strided_slice %127 {offsets = [0, 0], sizes = [88, 24], strides = [1, 1]} : vector<88x25xf32> to vector<88x24xf32>
    %129 = vector.extract_strided_slice %127 {offsets = [0, 24], sizes = [88, 1], strides = [1, 1]} : vector<88x25xf32> to vector<88x1xf32>
    %cst_38 = arith.constant dense<0.000000e+00> : vector<88x64xf32>
    %130 = tpu.matmul %128, %126, %cst_38 {dimension_numbers = #tpu.dot_dimension_numbers<[1], [0], [0], [1], [0, 0, 1, 1], [], []>} : vector<88x24xf32>, vector<24x64xf32>, vector<88x64xf32> -> vector<88x64xf32>
    %131 = vector.broadcast %129 : vector<88x1xf32> to vector<88x64xf32>
    %132 = arith.addf %130, %131 : vector<88x64xf32>
    %cst_39 = arith.constant 0.000000e+00 : f32
    %133 = vector.broadcast %cst_39 : f32 to vector<88x64xf32>
    %134 = arith.maximumf %132, %133 : vector<88x64xf32>
    %c328 = arith.constant 328 : index
    %c0_40 = arith.constant 0 : index
    %135 = vector.load %arg1[%c328, %c0_40] : memref<1176x256xf32, #tpu.memory_space<vmem>>, vector<88x4xf32>
    %136 = vector.extract_strided_slice %135 {offsets = [0, 0], sizes = [88, 3], strides = [1, 1]} : vector<88x4xf32> to vector<88x3xf32>
    %137 = vector.extract_strided_slice %135 {offsets = [0, 3], sizes = [88, 1], strides = [1, 1]} : vector<88x4xf32> to vector<88x1xf32>
    %c1032 = arith.constant 1032 : index
    %c0_41 = arith.constant 0 : index
    %138 = vector.load %arg2[%c1032, %c0_41] : memref<1232x768xf32, #tpu.memory_space<vmem>>, vector<64x192xf32>
    %cst_42 = arith.constant dense<0.000000e+00> : vector<88x192xf32>
    %139 = tpu.matmul %134, %138, %cst_42 {dimension_numbers = #tpu.dot_dimension_numbers<[1], [0], [0], [1], [0, 0, 1, 1], [], []>} : vector<88x64xf32>, vector<64x192xf32>, vector<88x192xf32> -> vector<88x192xf32>
    %140 = vector.extract_strided_slice %136 {offsets = [0, 0], sizes = [88, 1], strides = [1, 1]} : vector<88x3xf32> to vector<88x1xf32>
    %141 = vector.extract_strided_slice %139 {offsets = [0, 0], sizes = [88, 64], strides = [1, 1]} : vector<88x192xf32> to vector<88x64xf32>
    %142 = vector.broadcast %140 : vector<88x1xf32> to vector<88x64xf32>
    %143 = arith.mulf %142, %141 : vector<88x64xf32>
    %144 = vector.extract_strided_slice %136 {offsets = [0, 1], sizes = [88, 1], strides = [1, 1]} : vector<88x3xf32> to vector<88x1xf32>
    %145 = vector.extract_strided_slice %139 {offsets = [0, 64], sizes = [88, 64], strides = [1, 1]} : vector<88x192xf32> to vector<88x64xf32>
    %146 = vector.broadcast %144 : vector<88x1xf32> to vector<88x64xf32>
    %147 = arith.mulf %146, %145 : vector<88x64xf32>
    %148 = arith.addf %143, %147 : vector<88x64xf32>
    %149 = vector.extract_strided_slice %136 {offsets = [0, 2], sizes = [88, 1], strides = [1, 1]} : vector<88x3xf32> to vector<88x1xf32>
    %150 = vector.extract_strided_slice %139 {offsets = [0, 128], sizes = [88, 64], strides = [1, 1]} : vector<88x192xf32> to vector<88x64xf32>
    %151 = vector.broadcast %149 : vector<88x1xf32> to vector<88x64xf32>
    %152 = arith.mulf %151, %150 : vector<88x64xf32>
    %153 = arith.addf %148, %152 : vector<88x64xf32>
    %154 = vector.broadcast %137 : vector<88x1xf32> to vector<88x64xf32>
    %155 = arith.addf %153, %154 : vector<88x64xf32>
    %cst_43 = arith.constant 0.000000e+00 : f32
    %156 = vector.broadcast %cst_43 : f32 to vector<88x64xf32>
    %157 = arith.maximumf %155, %156 : vector<88x64xf32>
    %c416 = arith.constant 416 : index
    %c0_44 = arith.constant 0 : index
    %158 = vector.load %arg1[%c416, %c0_44] : memref<1176x256xf32, #tpu.memory_space<vmem>>, vector<24x89xf32>
    %159 = vector.extract_strided_slice %158 {offsets = [0, 0], sizes = [24, 88], strides = [1, 1]} : vector<24x89xf32> to vector<24x88xf32>
    %160 = vector.extract_strided_slice %158 {offsets = [0, 88], sizes = [24, 1], strides = [1, 1]} : vector<24x89xf32> to vector<24x1xf32>
    %cst_45 = arith.constant dense<0.000000e+00> : vector<24x64xf32>
    %161 = tpu.matmul %159, %157, %cst_45 {dimension_numbers = #tpu.dot_dimension_numbers<[1], [0], [0], [1], [0, 0, 1, 1], [], []>} : vector<24x88xf32>, vector<88x64xf32>, vector<24x64xf32> -> vector<24x64xf32>
    %162 = vector.broadcast %160 : vector<24x1xf32> to vector<24x64xf32>
    %163 = arith.addf %161, %162 : vector<24x64xf32>
    %164 = arith.addf %163, %126 : vector<24x64xf32>
    %c440 = arith.constant 440 : index
    %c0_46 = arith.constant 0 : index
    %165 = vector.load %arg1[%c440, %c0_46] : memref<1176x256xf32, #tpu.memory_space<vmem>>, vector<96x25xf32>
    %166 = vector.extract_strided_slice %165 {offsets = [0, 0], sizes = [96, 24], strides = [1, 1]} : vector<96x25xf32> to vector<96x24xf32>
    %167 = vector.extract_strided_slice %165 {offsets = [0, 24], sizes = [96, 1], strides = [1, 1]} : vector<96x25xf32> to vector<96x1xf32>
    %cst_47 = arith.constant dense<0.000000e+00> : vector<96x64xf32>
    %168 = tpu.matmul %166, %164, %cst_47 {dimension_numbers = #tpu.dot_dimension_numbers<[1], [0], [0], [1], [0, 0, 1, 1], [], []>} : vector<96x24xf32>, vector<24x64xf32>, vector<96x64xf32> -> vector<96x64xf32>
    %169 = vector.broadcast %167 : vector<96x1xf32> to vector<96x64xf32>
    %170 = arith.addf %168, %169 : vector<96x64xf32>
    %cst_48 = arith.constant 3.000000e+00 : f32
    %171 = vector.broadcast %cst_48 : f32 to vector<96x64xf32>
    %172 = arith.addf %170, %171 : vector<96x64xf32>
    %cst_49 = arith.constant 0.000000e+00 : f32
    %cst_50 = arith.constant 6.000000e+00 : f32
    %173 = vector.broadcast %cst_49 : f32 to vector<96x64xf32>
    %174 = arith.maximumf %173, %172 : vector<96x64xf32>
    %175 = vector.broadcast %cst_50 : f32 to vector<96x64xf32>
    %176 = arith.minimumf %175, %174 : vector<96x64xf32>
    %cst_51 = arith.constant 0.166666672 : f32
    %177 = vector.broadcast %cst_51 : f32 to vector<96x64xf32>
    %178 = arith.mulf %176, %177 : vector<96x64xf32>
    %179 = arith.mulf %170, %178 : vector<96x64xf32>
    %c536 = arith.constant 536 : index
    %c0_52 = arith.constant 0 : index
    %180 = vector.load %arg1[%c536, %c0_52] : memref<1176x256xf32, #tpu.memory_space<vmem>>, vector<96x6xf32>
    %181 = vector.extract_strided_slice %180 {offsets = [0, 0], sizes = [96, 5], strides = [1, 1]} : vector<96x6xf32> to vector<96x5xf32>
    %182 = vector.extract_strided_slice %180 {offsets = [0, 5], sizes = [96, 1], strides = [1, 1]} : vector<96x6xf32> to vector<96x1xf32>
    %c1096 = arith.constant 1096 : index
    %c0_53 = arith.constant 0 : index
    %183 = vector.load %arg2[%c1096, %c0_53] : memref<1232x768xf32, #tpu.memory_space<vmem>>, vector<64x160xf32>
    %cst_54 = arith.constant dense<0.000000e+00> : vector<96x160xf32>
    %184 = tpu.matmul %179, %183, %cst_54 {dimension_numbers = #tpu.dot_dimension_numbers<[1], [0], [0], [1], [0, 0, 1, 1], [], []>} : vector<96x64xf32>, vector<64x160xf32>, vector<96x160xf32> -> vector<96x160xf32>
    %185 = vector.extract_strided_slice %181 {offsets = [0, 0], sizes = [96, 1], strides = [1, 1]} : vector<96x5xf32> to vector<96x1xf32>
    %186 = vector.extract_strided_slice %184 {offsets = [0, 0], sizes = [96, 32], strides = [1, 1]} : vector<96x160xf32> to vector<96x32xf32>
    %187 = vector.broadcast %185 : vector<96x1xf32> to vector<96x32xf32>
    %188 = arith.mulf %187, %186 : vector<96x32xf32>
    %189 = vector.extract_strided_slice %181 {offsets = [0, 1], sizes = [96, 1], strides = [1, 1]} : vector<96x5xf32> to vector<96x1xf32>
    %190 = vector.extract_strided_slice %184 {offsets = [0, 32], sizes = [96, 32], strides = [1, 1]} : vector<96x160xf32> to vector<96x32xf32>
    %191 = vector.broadcast %189 : vector<96x1xf32> to vector<96x32xf32>
    %192 = arith.mulf %191, %190 : vector<96x32xf32>
    %193 = arith.addf %188, %192 : vector<96x32xf32>
    %194 = vector.extract_strided_slice %181 {offsets = [0, 2], sizes = [96, 1], strides = [1, 1]} : vector<96x5xf32> to vector<96x1xf32>
    %195 = vector.extract_strided_slice %184 {offsets = [0, 64], sizes = [96, 32], strides = [1, 1]} : vector<96x160xf32> to vector<96x32xf32>
    %196 = vector.broadcast %194 : vector<96x1xf32> to vector<96x32xf32>
    %197 = arith.mulf %196, %195 : vector<96x32xf32>
    %198 = arith.addf %193, %197 : vector<96x32xf32>
    %199 = vector.extract_strided_slice %181 {offsets = [0, 3], sizes = [96, 1], strides = [1, 1]} : vector<96x5xf32> to vector<96x1xf32>
    %200 = vector.extract_strided_slice %184 {offsets = [0, 96], sizes = [96, 32], strides = [1, 1]} : vector<96x160xf32> to vector<96x32xf32>
    %201 = vector.broadcast %199 : vector<96x1xf32> to vector<96x32xf32>
    %202 = arith.mulf %201, %200 : vector<96x32xf32>
    %203 = arith.addf %198, %202 : vector<96x32xf32>
    %204 = vector.extract_strided_slice %181 {offsets = [0, 4], sizes = [96, 1], strides = [1, 1]} : vector<96x5xf32> to vector<96x1xf32>
    %205 = vector.extract_strided_slice %184 {offsets = [0, 128], sizes = [96, 32], strides = [1, 1]} : vector<96x160xf32> to vector<96x32xf32>
    %206 = vector.broadcast %204 : vector<96x1xf32> to vector<96x32xf32>
    %207 = arith.mulf %206, %205 : vector<96x32xf32>
    %208 = arith.addf %203, %207 : vector<96x32xf32>
    %209 = vector.broadcast %182 : vector<96x1xf32> to vector<96x32xf32>
    %210 = arith.addf %208, %209 : vector<96x32xf32>
    %cst_55 = arith.constant 3.000000e+00 : f32
    %211 = vector.broadcast %cst_55 : f32 to vector<96x32xf32>
    %212 = arith.addf %210, %211 : vector<96x32xf32>
    %cst_56 = arith.constant 0.000000e+00 : f32
    %cst_57 = arith.constant 6.000000e+00 : f32
    %213 = vector.broadcast %cst_56 : f32 to vector<96x32xf32>
    %214 = arith.maximumf %213, %212 : vector<96x32xf32>
    %215 = vector.broadcast %cst_57 : f32 to vector<96x32xf32>
    %216 = arith.minimumf %215, %214 : vector<96x32xf32>
    %cst_58 = arith.constant 0.166666672 : f32
    %217 = vector.broadcast %cst_58 : f32 to vector<96x32xf32>
    %218 = arith.mulf %216, %217 : vector<96x32xf32>
    %219 = arith.mulf %210, %218 : vector<96x32xf32>
    %c632 = arith.constant 632 : index
    %c0_59 = arith.constant 0 : index
    %220 = vector.load %arg1[%c632, %c0_59] : memref<1176x256xf32, #tpu.memory_space<vmem>>, vector<24x97xf32>
    %221 = vector.extract_strided_slice %220 {offsets = [0, 0], sizes = [24, 96], strides = [1, 1]} : vector<24x97xf32> to vector<24x96xf32>
    %222 = vector.extract_strided_slice %220 {offsets = [0, 96], sizes = [24, 1], strides = [1, 1]} : vector<24x97xf32> to vector<24x1xf32>
    %c656 = arith.constant 656 : index
    %c0_60 = arith.constant 0 : index
    %223 = vector.load %arg1[%c656, %c0_60] : memref<1176x256xf32, #tpu.memory_space<vmem>>, vector<96x25xf32>
    %224 = vector.extract_strided_slice %223 {offsets = [0, 0], sizes = [96, 24], strides = [1, 1]} : vector<96x25xf32> to vector<96x24xf32>
    %225 = vector.extract_strided_slice %223 {offsets = [0, 24], sizes = [96, 1], strides = [1, 1]} : vector<96x25xf32> to vector<96x1xf32>
    %c1160 = arith.constant 1160 : index
    %c0_61 = arith.constant 0 : index
    %226 = vector.load %arg2[%c1160, %c0_61] : memref<1232x768xf32, #tpu.memory_space<vmem>>, vector<32x8xf32>
    %cst_62 = arith.constant dense<0.000000e+00> : vector<96x8xf32>
    %227 = tpu.matmul %219, %226, %cst_62 {dimension_numbers = #tpu.dot_dimension_numbers<[1], [0], [0], [1], [0, 0, 1, 1], [], []>} : vector<96x32xf32>, vector<32x8xf32>, vector<96x8xf32> -> vector<96x8xf32>
    %cst_63 = arith.constant dense<0.000000e+00> : vector<24x8xf32>
    %228 = tpu.matmul %221, %227, %cst_63 {dimension_numbers = #tpu.dot_dimension_numbers<[1], [0], [0], [1], [0, 0, 1, 1], [], []>} : vector<24x96xf32>, vector<96x8xf32>, vector<24x8xf32> -> vector<24x8xf32>
    %229 = vector.broadcast %222 : vector<24x1xf32> to vector<24x8xf32>
    %230 = arith.addf %228, %229 : vector<24x8xf32>
    %cst_64 = arith.constant 0.000000e+00 : f32
    %231 = vector.broadcast %cst_64 : f32 to vector<24x8xf32>
    %232 = arith.maximumf %230, %231 : vector<24x8xf32>
    %cst_65 = arith.constant dense<0.000000e+00> : vector<96x8xf32>
    %233 = tpu.matmul %224, %232, %cst_65 {dimension_numbers = #tpu.dot_dimension_numbers<[1], [0], [0], [1], [0, 0, 1, 1], [], []>} : vector<96x24xf32>, vector<24x8xf32>, vector<96x8xf32> -> vector<96x8xf32>
    %234 = vector.broadcast %225 : vector<96x1xf32> to vector<96x8xf32>
    %235 = arith.addf %233, %234 : vector<96x8xf32>
    %cst_66 = arith.constant 3.000000e+00 : f32
    %236 = vector.broadcast %cst_66 : f32 to vector<96x8xf32>
    %237 = arith.addf %235, %236 : vector<96x8xf32>
    %cst_67 = arith.constant 0.000000e+00 : f32
    %cst_68 = arith.constant 6.000000e+00 : f32
    %238 = vector.broadcast %cst_67 : f32 to vector<96x8xf32>
    %239 = arith.maximumf %238, %237 : vector<96x8xf32>
    %240 = vector.broadcast %cst_68 : f32 to vector<96x8xf32>
    %241 = arith.minimumf %240, %239 : vector<96x8xf32>
    %cst_69 = arith.constant 0.166666672 : f32
    %242 = vector.broadcast %cst_69 : f32 to vector<96x8xf32>
    %243 = arith.mulf %241, %242 : vector<96x8xf32>
    %c1192 = arith.constant 1192 : index
    %c0_70 = arith.constant 0 : index
    %244 = vector.load %arg2[%c1192, %c0_70] : memref<1232x768xf32, #tpu.memory_space<vmem>>, vector<8x32xf32>
    %cst_71 = arith.constant dense<0.000000e+00> : vector<96x32xf32>
    %245 = tpu.matmul %243, %244, %cst_71 {dimension_numbers = #tpu.dot_dimension_numbers<[1], [0], [0], [1], [0, 0, 1, 1], [], []>} : vector<96x8xf32>, vector<8x32xf32>, vector<96x32xf32> -> vector<96x32xf32>
    %246 = arith.mulf %219, %245 : vector<96x32xf32>
    %c752 = arith.constant 752 : index
    %c0_72 = arith.constant 0 : index
    %247 = vector.load %arg1[%c752, %c0_72] : memref<1176x256xf32, #tpu.memory_space<vmem>>, vector<40x97xf32>
    %248 = vector.extract_strided_slice %247 {offsets = [0, 0], sizes = [40, 96], strides = [1, 1]} : vector<40x97xf32> to vector<40x96xf32>
    %249 = vector.extract_strided_slice %247 {offsets = [0, 96], sizes = [40, 1], strides = [1, 1]} : vector<40x97xf32> to vector<40x1xf32>
    %cst_73 = arith.constant dense<0.000000e+00> : vector<40x32xf32>
    %250 = tpu.matmul %248, %246, %cst_73 {dimension_numbers = #tpu.dot_dimension_numbers<[1], [0], [0], [1], [0, 0, 1, 1], [], []>} : vector<40x96xf32>, vector<96x32xf32>, vector<40x32xf32> -> vector<40x32xf32>
    %251 = vector.broadcast %249 : vector<40x1xf32> to vector<40x32xf32>
    %252 = arith.addf %250, %251 : vector<40x32xf32>
    %c792 = arith.constant 792 : index
    %c0_74 = arith.constant 0 : index
    %253 = vector.load %arg1[%c792, %c0_74] : memref<1176x256xf32, #tpu.memory_space<vmem>>, vector<240x41xf32>
    %254 = vector.extract_strided_slice %253 {offsets = [0, 0], sizes = [240, 40], strides = [1, 1]} : vector<240x41xf32> to vector<240x40xf32>
    %255 = vector.extract_strided_slice %253 {offsets = [0, 40], sizes = [240, 1], strides = [1, 1]} : vector<240x41xf32> to vector<240x1xf32>
    %cst_75 = arith.constant dense<0.000000e+00> : vector<240x32xf32>
    %256 = tpu.matmul %254, %252, %cst_75 {dimension_numbers = #tpu.dot_dimension_numbers<[1], [0], [0], [1], [0, 0, 1, 1], [], []>} : vector<240x40xf32>, vector<40x32xf32>, vector<240x32xf32> -> vector<240x32xf32>
    %257 = vector.broadcast %255 : vector<240x1xf32> to vector<240x32xf32>
    %258 = arith.addf %256, %257 : vector<240x32xf32>
    %cst_76 = arith.constant 3.000000e+00 : f32
    %259 = vector.broadcast %cst_76 : f32 to vector<240x32xf32>
    %260 = arith.addf %258, %259 : vector<240x32xf32>
    %cst_77 = arith.constant 0.000000e+00 : f32
    %cst_78 = arith.constant 6.000000e+00 : f32
    %261 = vector.broadcast %cst_77 : f32 to vector<240x32xf32>
    %262 = arith.maximumf %261, %260 : vector<240x32xf32>
    %263 = vector.broadcast %cst_78 : f32 to vector<240x32xf32>
    %264 = arith.minimumf %263, %262 : vector<240x32xf32>
    %cst_79 = arith.constant 0.166666672 : f32
    %265 = vector.broadcast %cst_79 : f32 to vector<240x32xf32>
    %266 = arith.mulf %264, %265 : vector<240x32xf32>
    %267 = arith.mulf %258, %266 : vector<240x32xf32>
    %c1200 = arith.constant 1200 : index
    %c0_80 = arith.constant 0 : index
    %268 = vector.load %arg2[%c1200, %c0_80] : memref<1232x768xf32, #tpu.memory_space<vmem>>, vector<32x8xf32>
    %cst_81 = arith.constant dense<0.000000e+00> : vector<240x8xf32>
    %269 = tpu.matmul %267, %268, %cst_81 {dimension_numbers = #tpu.dot_dimension_numbers<[1], [0], [0], [1], [0, 0, 1, 1], [], []>} : vector<240x32xf32>, vector<32x8xf32>, vector<240x8xf32> -> vector<240x8xf32>
    %c1032_82 = arith.constant 1032 : index
    %c0_83 = arith.constant 0 : index
    %270 = vector.load %arg1[%c1032_82, %c0_83] : memref<1176x256xf32, #tpu.memory_space<vmem>>, vector<128x241xf32>
    %271 = vector.extract_strided_slice %270 {offsets = [0, 0], sizes = [128, 240], strides = [1, 1]} : vector<128x241xf32> to vector<128x240xf32>
    %272 = vector.extract_strided_slice %270 {offsets = [0, 240], sizes = [128, 1], strides = [1, 1]} : vector<128x241xf32> to vector<128x1xf32>
    %cst_84 = arith.constant dense<0.000000e+00> : vector<128x8xf32>
    %273 = tpu.matmul %271, %269, %cst_84 {dimension_numbers = #tpu.dot_dimension_numbers<[1], [0], [0], [1], [0, 0, 1, 1], [], []>} : vector<128x240xf32>, vector<240x8xf32>, vector<128x8xf32> -> vector<128x8xf32>
    %274 = vector.broadcast %272 : vector<128x1xf32> to vector<128x8xf32>
    %275 = arith.addf %273, %274 : vector<128x8xf32>
    %cst_85 = arith.constant 3.000000e+00 : f32
    %276 = vector.broadcast %cst_85 : f32 to vector<128x8xf32>
    %277 = arith.addf %275, %276 : vector<128x8xf32>
    %cst_86 = arith.constant 0.000000e+00 : f32
    %cst_87 = arith.constant 6.000000e+00 : f32
    %278 = vector.broadcast %cst_86 : f32 to vector<128x8xf32>
    %279 = arith.maximumf %278, %277 : vector<128x8xf32>
    %280 = vector.broadcast %cst_87 : f32 to vector<128x8xf32>
    %281 = arith.minimumf %280, %279 : vector<128x8xf32>
    %cst_88 = arith.constant 0.166666672 : f32
    %282 = vector.broadcast %cst_88 : f32 to vector<128x8xf32>
    %283 = arith.mulf %281, %282 : vector<128x8xf32>
    %284 = arith.mulf %275, %283 : vector<128x8xf32>
    %c1160_89 = arith.constant 1160 : index
    %c0_90 = arith.constant 0 : index
    %285 = vector.load %arg1[%c1160_89, %c0_90] : memref<1176x256xf32, #tpu.memory_space<vmem>>, vector<10x129xf32>
    %286 = vector.extract_strided_slice %285 {offsets = [0, 0], sizes = [10, 128], strides = [1, 1]} : vector<10x129xf32> to vector<10x128xf32>
    %287 = vector.extract_strided_slice %285 {offsets = [0, 128], sizes = [10, 1], strides = [1, 1]} : vector<10x129xf32> to vector<10x1xf32>
    %cst_91 = arith.constant dense<0.000000e+00> : vector<10x8xf32>
    %288 = tpu.matmul %286, %284, %cst_91 {dimension_numbers = #tpu.dot_dimension_numbers<[1], [0], [0], [1], [0, 0, 1, 1], [], []>} : vector<10x128xf32>, vector<128x8xf32>, vector<10x8xf32> -> vector<10x8xf32>
    %289 = vector.broadcast %287 : vector<10x1xf32> to vector<10x8xf32>
    %290 = arith.addf %288, %289 : vector<10x8xf32>
    %c0_92 = arith.constant 0 : index
    %c0_93 = arith.constant 0 : index
    %291 = vector.load %arg3[%c0_92, %c0_93] : memref<10x8xf32, #tpu.memory_space<vmem>>, vector<10x8xf32>
    tpu.vector_store %arg3[%c0_92, %c0_93], %290 {strides = array<i32>} : memref<10x8xf32, #tpu.memory_space<vmem>>, vector<10x8xf32>,
    return
  }
}

</mosaic_0001>

<bundles_post_ra>
// kernel: mobilenetv3_forward.1
= control target key start
LH: loop header
LB: loop body
LE: loop exit
PB: predicated region body
PF: predicated region fallthrough
CT: control target
= control target key end

     0   :  { %vm8446_vm0 = vmmov 0   ;;  %vm1347_vm1 = vcmask 130048   ;;  %vm1431_vm2 = vcmask 64512   ;;  %s8450_s13 = smov 64   ;;  %vm2315_vm3 = vcmask 588800   ;;  %s8456_s20 = smov 32   ;;  %s12234_s2 = inlined_call_operand.vmem [shape: f32[1232,768], index: 2, kind: input, shape index: {}]   ;;  %s12235_s0 = inlined_call_operand.vmem [shape: f32[1,512], index: 0, kind: input, shape index: {}]   ;;  %s12236_s1 = inlined_call_operand.vmem [shape: f32[1176,256], index: 1, kind: input, shape index: {}]   ;;  %s12237_s3 = inlined_call_operand.vmem [shape: f32[10,8], index: 3, kind: output, shape index: {}]  }
   0x1   :  { %v18_v0 = vld [vmem:[%s12234_s2 + $0x8] sm:$0xff]  ;;  %v24_v1 = vld [vmem:[%s12234_s2 + $0x38] sm:$0xff]  ;;  %v17_v5 = vld [vmem:[%s12234_s2] sm:$0xff]  ;;  %vm2468_vm4 = vcmask 195584   ;;  %vm2649_vm5 = vcmask 523264   ;;  %vm3140_vm6 = vcmask 719872  }
   0x2   :  { %v20_v2 = vld [vmem:[%s12234_s2 + $0x18] sm:$0xff]  ;;  %v7546_v3 = vpack.c.bf16 %v24_v1, %v18_v0  ;;  %v26_v4 = vld [vmem:[%s12234_s2 + $0x48] sm:$0xff]  ;;  %v23_v6 = vld [vmem:[%s12234_s2 + $0x30] sm:$0xff]  ;;  %s8457_s21 = smov 96   ;;  %vm4355_vm7 = vcmask 261120   ;;  %vm4532_vm8 = vcmask 785408  }
   0x3   :  { %v7674_v7 = vpack.c.bf16 %v26_v4, %v20_v2  ;;  %v7548_v8 = vpack.c.bf16 %v23_v6, %v17_v5  ;;  %v19_v9 = vld [vmem:[%s12234_s2 + $0x10] sm:$0xff]  ;;  %v25_v10 = vld [vmem:[%s12234_s2 + $0x40] sm:$0xff]  ;;  %v30_v11 = vld [vmem:[%s12234_s2 + $0x68] sm:$0xff]  ;;  %vm5363_vm9 = vcmask 326656   ;;  %vm6210_vm10 = vcmask 916480  }
   0x4   :  { %7547 = vmatprep.subr.bf16.mxu0 %v7546_v3  ;;  %v7676_v12 = vpack.c.bf16 %v25_v10, %v19_v9  ;;  %v36_v13 = vld [vmem:[%s12234_s2 + $0x98] sm:$0xff]  ;;  %v38_v15 = vld [vmem:[%s12234_s2 + $0xa8] sm:$0xff]  ;;  %v29_v18 = vld [vmem:[%s12234_s2 + $0x60] sm:$0xff]  ;;  %vm6558_vm11 = vcmask 58368  }
   0x5   :  { %v32_v14 = vld [vmem:[%s12234_s2 + $0x78] sm:$0xff]  ;;  %7675 = vmatprep.subr.bf16.mxu1 %v7674_v7  ;;  %7549 = vmatpush1.bf16.msra.mxu0 %v7548_v8  ;;  %v7550_v16 = vpack.c.bf16 %v36_v13, %v30_v11  ;;  %v35_v19 = vld [vmem:[%s12234_s2 + $0x90] sm:$0xff]  ;;  %v37_v22 = vld [vmem:[%s12234_s2 + $0xa0] sm:$0xff] }
   0x6   :  { %v7678_v17 = vpack.c.bf16 %v38_v15, %v32_v14  ;;  %v31_v20 = vld [vmem:[%s12234_s2 + $0x70] sm:$0xff]  ;;  %7677 = vmatpush1.bf16.msra.mxu1 %v7676_v12  ;;  %v7552_v21 = vpack.c.bf16 %v35_v19, %v29_v18  ;;  %v42_v23 = vld [vmem:[%s12234_s2 + $0xc8] sm:$0xff]  ;;  %v48_v24 = vld [vmem:[%s12234_s2 + $0xf8] sm:$0xff] }
   0x7   :  { %7551 = vmatprep.subr.bf16.mxu0 %v7550_v16  ;;  %v7680_v25 = vpack.c.bf16 %v37_v22, %v31_v20  ;;  %v7554_v26 = vpack.c.bf16 %v48_v24, %v42_v23  ;;  %v44_v27 = vld [vmem:[%s12234_s2 + $0xd8] sm:$0xff]  ;;  %v50_v28 = vld [vmem:[%s12234_s2 + $0x108] sm:$0xff]  ;;  %v41_v29 = vld [vmem:[%s12234_s2 + $0xc0] sm:$0xff] }
   0x8   :  { %7679 = vmatprep.subr.bf16.mxu1 %v7678_v17  ;;  %v7682_v30 = vpack.c.bf16 %v50_v28, %v44_v27  ;;  %v47_v31 = vld [vmem:[%s12234_s2 + $0xf0] sm:$0xff]  ;;  %v49_v33 = vld [vmem:[%s12234_s2 + $0x100] sm:$0xff]  ;;  %v54_v35 = vld [vmem:[%s12234_s2 + $0x128] sm:$0xff] }
   0x9   :  { %v43_v32 = vld [vmem:[%s12234_s2 + $0xd0] sm:$0xff]  ;;  %7553 = vmatpush1.bf16.msra.mxu0 %v7552_v21  ;;  %v7556_v34 = vpack.c.bf16 %v47_v31, %v41_v29  ;;  %v60_v36 = vld [vmem:[%s12234_s2 + $0x158] sm:$0xff]  ;;  %v62_v40 = vld [vmem:[%s12234_s2 + $0x168] sm:$0xff] }
   0xa   :  { %v56_v37 = vld [vmem:[%s12234_s2 + $0x138] sm:$0xff]  ;;  %7681 = vmatpush1.bf16.msra.mxu1 %v7680_v25  ;;  %7555 = vmatprep.subr.bf16.mxu0 %v7554_v26  ;;  %v7684_v38 = vpack.c.bf16 %v49_v33, %v43_v32  ;;  %v7558_v39 = vpack.c.bf16 %v60_v36, %v54_v35  ;;  %v53_v41 = vld [vmem:[%s12234_s2 + $0x120] sm:$0xff]  ;;  %v59_v42 = vld [vmem:[%s12234_s2 + $0x150] sm:$0xff] }
   0xb   :  { %7683 = vmatprep.subr.bf16.mxu1 %v7682_v30  ;;  %v7686_v43 = vpack.c.bf16 %v62_v40, %v56_v37  ;;  %v55_v44 = vld [vmem:[%s12234_s2 + $0x130] sm:$0xff]  ;;  %v61_v45 = vld [vmem:[%s12234_s2 + $0x160] sm:$0xff]  ;;  %v66_v46 = vld [vmem:[%s12234_s2 + $0x188] sm:$0xff]  ;;  %v7560_v50 = vpack.c.bf16 %v59_v42, %v53_v41 }
   0xc   :  { %v72_v47 = vld [vmem:[%s12234_s2 + $0x1b8] sm:$0xff]  ;;  %v74_v49 = vld [vmem:[%s12234_s2 + $0x1c8] sm:$0xff]  ;;  %v7688_v51 = vpack.c.bf16 %v61_v45, %v55_v44  ;;  %v65_v53 = vld [vmem:[%s12234_s2 + $0x180] sm:$0xff] }
   0xd   :  { %v68_v48 = vld [vmem:[%s12234_s2 + $0x198] sm:$0xff]  ;;  %7557 = vmatpush1.bf16.msra.mxu0 %v7556_v34  ;;  %v7562_v52 = vpack.c.bf16 %v72_v47, %v66_v46  ;;  %v71_v54 = vld [vmem:[%s12234_s2 + $0x1b0] sm:$0xff]  ;;  %v73_v57 = vld [vmem:[%s12234_s2 + $0x1c0] sm:$0xff]  ;;  %v402_v46 = vlaneseq }
   0xe   :  { %7685 = vmatpush1.bf16.msra.mxu1 %v7684_v38  ;;  %7559 = vmatprep.subr.bf16.mxu0 %v7558_v39  ;;  %v67_v55 = vld [vmem:[%s12234_s2 + $0x190] sm:$0xff]  ;;  %v7690_v56 = vpack.c.bf16 %v74_v49, %v68_v48  ;;  %v78_v58 = vld [vmem:[%s12234_s2 + $0x1e8] sm:$0xff]  ;;  %v84_v59 = vld [vmem:[%s12234_s2 + $0x218] sm:$0xff]  ;;  %v7564_v62 = vpack.c.bf16 %v71_v54, %v65_v53 }
   0xf   :  { %7687 = vmatprep.subr.bf16.mxu1 %v7686_v43  ;;  %v80_v60 = vld [vmem:[%s12234_s2 + $0x1f8] sm:$0xff]  ;;  %v86_v61 = vld [vmem:[%s12234_s2 + $0x228] sm:$0xff]  ;;  %v7692_v63 = vpack.c.bf16 %v73_v57, %v67_v55  ;;  %v7566_v0 = vpack.c.bf16 %v84_v59, %v78_v58  ;;  %v77_v1 = vld [vmem:[%s12234_s2 + $0x1e0] sm:$0xff]  ;;  %v8733_v59 = vshrl.u32 %v402_v46, 7 }
  0x10   :  { %v83_v2 = vld [vmem:[%s12234_s2 + $0x210] sm:$0xff]  ;;  %v7694_v4 = vpack.c.bf16 %v86_v61, %v80_v60  ;;  %v85_v5 = vld [vmem:[%s12234_s2 + $0x220] sm:$0xff]  ;;  %v90_v6 = vld [vmem:[%s12234_s2 + $0x248] sm:$0xff] }
  0x11   :  { %7561 = vmatpush1.bf16.msra.mxu0 %v7560_v50  ;;  %v79_v3 = vld [vmem:[%s12234_s2 + $0x1f0] sm:$0xff]  ;;  %v96_v7 = vld [vmem:[%s12234_s2 + $0x278] sm:$0xff]  ;;  %v98_v9 = vld [vmem:[%s12234_s2 + $0x288] sm:$0xff]  ;;  %v7568_v10 = vpack.c.bf16 %v83_v2, %v77_v1 }
  0x12   :  { %7689 = vmatpush1.bf16.msra.mxu1 %v7688_v51  ;;  %7563 = vmatprep.subr.bf16.mxu0 %v7562_v52  ;;  %v92_v8 = vld [vmem:[%s12234_s2 + $0x258] sm:$0xff]  ;;  %v7696_v11 = vpack.c.bf16 %v85_v5, %v79_v3  ;;  %v7570_v12 = vpack.c.bf16 %v96_v7, %v90_v6  ;;  %v89_v13 = vld [vmem:[%s12234_s2 + $0x240] sm:$0xff]  ;;  %v95_v14 = vld [vmem:[%s12234_s2 + $0x270] sm:$0xff] }
  0x13   :  { %7691 = vmatprep.subr.bf16.mxu1 %v7690_v56  ;;  %v91_v15 = vld [vmem:[%s12234_s2 + $0x250] sm:$0xff]  ;;  %v7698_v16 = vpack.c.bf16 %v98_v9, %v92_v8  ;;  %v97_v17 = vld [vmem:[%s12234_s2 + $0x280] sm:$0xff]  ;;  %v102_v18 = vld [vmem:[%s12234_s2 + $0x2a8] sm:$0xff]  ;;  %v7572_v22 = vpack.c.bf16 %v95_v14, %v89_v13  ;;  %v408_v8 = vsub.s32 1, %v8733_v59 }
  0x14   :  { %v108_v19 = vld [vmem:[%s12234_s2 + $0x2d8] sm:$0xff]  ;;  %v110_v21 = vld [vmem:[%s12234_s2 + $0x2e8] sm:$0xff]  ;;  %v7700_v23 = vpack.c.bf16 %v97_v17, %v91_v15  ;;  %v101_v25 = vld [vmem:[%s12234_s2 + $0x2a0] sm:$0xff] }
  0x15   :  { %7565 = vmatpush1.bf16.msra.mxu0 %v7564_v62  ;;  %v104_v20 = vld [vmem:[%s12234_s2 + $0x2b8] sm:$0xff]  ;;  %v7574_v24 = vpack.c.bf16 %v108_v19, %v102_v18  ;;  %v107_v26 = vld [vmem:[%s12234_s2 + $0x2d0] sm:$0xff]  ;;  %v109_v29 = vld [vmem:[%s12234_s2 + $0x2e0] sm:$0xff] }
  0x16   :  { %7693 = vmatpush1.bf16.msra.mxu1 %v7692_v63  ;;  %7567 = vmatprep.subr.bf16.mxu0 %v7566_v0  ;;  %v103_v27 = vld [vmem:[%s12234_s2 + $0x2b0] sm:$0xff]  ;;  %v7702_v28 = vpack.c.bf16 %v110_v21, %v104_v20  ;;  %v114_v30 = vld [vmem:[%s12234_s2 + $0x308] sm:$0xff]  ;;  %v120_v31 = vld [vmem:[%s12234_s2 + $0x338] sm:$0xff]  ;;  %v7576_v34 = vpack.c.bf16 %v107_v26, %v101_v25 }
  0x17   :  { %7695 = vmatprep.subr.bf16.mxu1 %v7694_v4  ;;  %v116_v32 = vld [vmem:[%s12234_s2 + $0x318] sm:$0xff]  ;;  %v122_v33 = vld [vmem:[%s12234_s2 + $0x348] sm:$0xff]  ;;  %v7704_v35 = vpack.c.bf16 %v109_v29, %v103_v27  ;;  %v7578_v36 = vpack.c.bf16 %v120_v31, %v114_v30  ;;  %v113_v37 = vld [vmem:[%s12234_s2 + $0x300] sm:$0xff] }
  0x18   :  { %v119_v38 = vld [vmem:[%s12234_s2 + $0x330] sm:$0xff]  ;;  %v7706_v40 = vpack.c.bf16 %v122_v33, %v116_v32  ;;  %v121_v41 = vld [vmem:[%s12234_s2 + $0x340] sm:$0xff]  ;;  %v126_v42 = vld [vmem:[%s12234_s2 + $0x368] sm:$0xff] }
  0x19   :  { %7569 = vmatpush1.bf16.msra.mxu0 %v7568_v10  ;;  %v115_v39 = vld [vmem:[%s12234_s2 + $0x310] sm:$0xff]  ;;  %v132_v43 = vld [vmem:[%s12234_s2 + $0x398] sm:$0xff]  ;;  %v134_v45 = vld [vmem:[%s12234_s2 + $0x3a8] sm:$0xff]  ;;  %v7580_v47 = vpack.c.bf16 %v119_v38, %v113_v37 }
  0x1a   :  { %7697 = vmatpush1.bf16.msra.mxu1 %v7696_v11  ;;  %7571 = vmatprep.subr.bf16.mxu0 %v7570_v12  ;;  %v128_v44 = vld [vmem:[%s12234_s2 + $0x378] sm:$0xff]  ;;  %v7708_v48 = vpack.c.bf16 %v121_v41, %v115_v39  ;;  %v7582_v49 = vpack.c.bf16 %v132_v43, %v126_v42  ;;  %v125_v50 = vld [vmem:[%s12234_s2 + $0x360] sm:$0xff]  ;;  %v131_v51 = vld [vmem:[%s12234_s2 + $0x390] sm:$0xff]  ;;  %v412_v11 = vsub.s32 2, %v8733_v59 }
  0x1b   :  { %7699 = vmatprep.subr.bf16.mxu1 %v7698_v16  ;;  %v127_v52 = vld [vmem:[%s12234_s2 + $0x370] sm:$0xff]  ;;  %v7710_v53 = vpack.c.bf16 %v134_v45, %v128_v44  ;;  %v133_v54 = vld [vmem:[%s12234_s2 + $0x3a0] sm:$0xff]  ;;  %v138_v55 = vld [vmem:[%s12234_s2 + $0x3c8] sm:$0xff]  ;;  %v7584_v60 = vpack.c.bf16 %v131_v51, %v125_v50 }
  0x1c   :  { %v144_v56 = vld [vmem:[%s12234_s2 + $0x3f8] sm:$0xff]  ;;  %v146_v58 = vld [vmem:[%s12234_s2 + $0x408] sm:$0xff]  ;;  %v7712_v61 = vpack.c.bf16 %v133_v54, %v127_v52  ;;  %v137_v63 = vld [vmem:[%s12234_s2 + $0x3c0] sm:$0xff] }
  0x1d   :  { %7573 = vmatpush1.bf16.msra.mxu0 %v7572_v22  ;;  %v140_v57 = vld [vmem:[%s12234_s2 + $0x3d8] sm:$0xff]  ;;  %v7586_v62 = vpack.c.bf16 %v144_v56, %v138_v55  ;;  %v143_v0 = vld [vmem:[%s12234_s2 + $0x3f0] sm:$0xff]  ;;  %v145_v3 = vld [vmem:[%s12234_s2 + $0x400] sm:$0xff] }
  0x1e   :  { %7701 = vmatpush1.bf16.msra.mxu1 %v7700_v23  ;;  %7575 = vmatprep.subr.bf16.mxu0 %v7574_v24  ;;  %v139_v1 = vld [vmem:[%s12234_s2 + $0x3d0] sm:$0xff]  ;;  %v7714_v2 = vpack.c.bf16 %v146_v58, %v140_v57  ;;  %v150_v4 = vld [vmem:[%s12234_s2 + $0x428] sm:$0xff]  ;;  %v156_v5 = vld [vmem:[%s12234_s2 + $0x458] sm:$0xff]  ;;  %v7588_v9 = vpack.c.bf16 %v143_v0, %v137_v63 }
  0x1f   :  { %7703 = vmatprep.subr.bf16.mxu1 %v7702_v28  ;;  %v152_v6 = vld [vmem:[%s12234_s2 + $0x438] sm:$0xff]  ;;  %v158_v7 = vld [vmem:[%s12234_s2 + $0x468] sm:$0xff]  ;;  %v149_v10 = vld [vmem:[%s12234_s2 + $0x420] sm:$0xff]  ;;  %v7716_v12 = vpack.c.bf16 %v145_v3, %v139_v1  ;;  %v7590_v13 = vpack.c.bf16 %v156_v5, %v150_v4 }
  0x20   :  { %v155_v14 = vld [vmem:[%s12234_s2 + $0x450] sm:$0xff]  ;;  %v157_v16 = vld [vmem:[%s12234_s2 + $0x460] sm:$0xff]  ;;  %v7718_v17 = vpack.c.bf16 %v158_v7, %v152_v6  ;;  %v162_v18 = vld [vmem:[%s12234_s2 + $0x488] sm:$0xff] }
  0x21   :  { %7577 = vmatpush1.bf16.msra.mxu0 %v7576_v34  ;;  %v151_v15 = vld [vmem:[%s12234_s2 + $0x430] sm:$0xff]  ;;  %v168_v19 = vld [vmem:[%s12234_s2 + $0x4b8] sm:$0xff]  ;;  %v8782_v20 = vld [vmem:[%s12235_s0] sm:$0xf]  ;;  %v7592_v24 = vpack.c.bf16 %v155_v14, %v149_v10 }
  0x22   :  { %7705 = vmatpush1.bf16.msra.mxu1 %v7704_v35  ;;  %7579 = vmatprep.subr.bf16.mxu0 %v7578_v36  ;;  %v164_v21 = vld [vmem:[%s12234_s2 + $0x498] sm:$0xff]  ;;  %v170_v22 = vld [vmem:[%s12234_s2 + $0x4c8] sm:$0xff]  ;;  %v8791_v23 = vrot.slane %v8782_v20, %v408_v8  ;;  %v8794_v25 = vrot.slane %v8782_v20, %v412_v11  ;;  %v7720_v26 = vpack.c.bf16 %v157_v16, %v151_v15  ;;  %v161_v28 = vld [vmem:[%s12234_s2 + $0x480] sm:$0xff]  ;;  %v8889_v8 = vsub.s32 0, %v8733_v59 }
  0x23   :  { %7707 = vmatprep.subr.bf16.mxu1 %v7706_v40  ;;  %v7594_v27 = vpack.c.bf16 %v168_v19, %v162_v18  ;;  %v167_v29 = vld [vmem:[%s12234_s2 + $0x4b0] sm:$0xff]  ;;  %v7722_v31 = vpack.c.bf16 %v170_v22, %v164_v21  ;;  %v169_v32 = vld [vmem:[%s12234_s2 + $0x4c0] sm:$0xff]  ;;  %v174_v33 = vld [vmem:[%s12234_s2 + $0x4e8] sm:$0xff]  ;;  %v416_v22 = vsub.s32 3, %v8733_v59 }
  0x24   :  { %v163_v30 = vld [vmem:[%s12234_s2 + $0x490] sm:$0xff]  ;;  %v180_v34 = vld [vmem:[%s12234_s2 + $0x518] sm:$0xff]  ;;  %486 = vmatprep.mubr.f32.mxu0 %v8791_v23  ;;  %v182_v36 = vld [vmem:[%s12234_s2 + $0x528] sm:$0xff]  ;;  %628 = vmatprep.mubr.f32.mxu1 %v8791_v23  ;;  %v7596_v37 = vpack.c.bf16 %v167_v29, %v161_v28 }
  0x25   :  { %7581 = vmatpush1.bf16.msra.mxu0 %v7580_v47  ;;  %v176_v35 = vld [vmem:[%s12234_s2 + $0x4f8] sm:$0xff]  ;;  %v7724_v38 = vpack.c.bf16 %v169_v32, %v163_v30  ;;  %v7598_v39 = vpack.c.bf16 %v180_v34, %v174_v33  ;;  %v173_v40 = vld [vmem:[%s12234_s2 + $0x4e0] sm:$0xff]  ;;  %v179_v41 = vld [vmem:[%s12234_s2 + $0x510] sm:$0xff] }
  0x26   :  { %7709 = vmatpush1.bf16.msra.mxu1 %v7708_v48  ;;  %7583 = vmatprep.subr.bf16.mxu0 %v7582_v49  ;;  %v175_v42 = vld [vmem:[%s12234_s2 + $0x4f0] sm:$0xff]  ;;  %v7726_v43 = vpack.c.bf16 %v182_v36, %v176_v35  ;;  %v181_v44 = vld [vmem:[%s12234_s2 + $0x520] sm:$0xff]  ;;  %v186_v45 = vld [vmem:[%s12234_s2 + $0x548] sm:$0xff]  ;;  %v7600_v49 = vpack.c.bf16 %v179_v41, %v173_v40 }
  0x27   :  { %7711 = vmatprep.subr.bf16.mxu1 %v7710_v53  ;;  %v192_v46 = vld [vmem:[%s12234_s2 + $0x578] sm:$0xff]  ;;  %v194_v48 = vld [vmem:[%s12234_s2 + $0x588] sm:$0xff]  ;;  %v7728_v50 = vpack.c.bf16 %v181_v44, %v175_v42  ;;  %v185_v52 = vld [vmem:[%s12234_s2 + $0x540] sm:$0xff] }
  0x28   :  { %v188_v47 = vld [vmem:[%s12234_s2 + $0x558] sm:$0xff]  ;;  %v7602_v51 = vpack.c.bf16 %v192_v46, %v186_v45  ;;  %v191_v53 = vld [vmem:[%s12234_s2 + $0x570] sm:$0xff]  ;;  %v193_v56 = vld [vmem:[%s12234_s2 + $0x580] sm:$0xff] }
  0x29   :  { %7585 = vmatpush1.bf16.msra.mxu0 %v7584_v60  ;;  %v187_v54 = vld [vmem:[%s12234_s2 + $0x550] sm:$0xff]  ;;  %v7730_v55 = vpack.c.bf16 %v194_v48, %v188_v47  ;;  %v198_v57 = vld [vmem:[%s12234_s2 + $0x5a8] sm:$0xff]  ;;  %v204_v58 = vld [vmem:[%s12234_s2 + $0x5d8] sm:$0xff] }
  0x2a   :  { %7713 = vmatpush1.bf16.msra.mxu1 %v7712_v61  ;;  %7587 = vmatprep.subr.bf16.mxu0 %v7586_v62  ;;  %v200_v60 = vld [vmem:[%s12234_s2 + $0x5b8] sm:$0xff]  ;;  %v206_v61 = vld [vmem:[%s12234_s2 + $0x5e8] sm:$0xff]  ;;  %v7604_v62 = vpack.c.bf16 %v191_v53, %v185_v52  ;;  %v7732_v63 = vpack.c.bf16 %v193_v56, %v187_v54  ;;  %v7606_v0 = vpack.c.bf16 %v204_v58, %v198_v57  ;;  %v197_v1 = vld [vmem:[%s12234_s2 + $0x5a0] sm:$0xff] }
  0x2b   :  { %7715 = vmatprep.subr.bf16.mxu1 %v7714_v2  ;;  %v203_v2 = vld [vmem:[%s12234_s2 + $0x5d0] sm:$0xff]  ;;  %v7734_v4 = vpack.c.bf16 %v206_v61, %v200_v60  ;;  %v205_v5 = vld [vmem:[%s12234_s2 + $0x5e0] sm:$0xff]  ;;  %v210_v6 = vld [vmem:[%s12234_s2 + $0x608] sm:$0xff] }
  0x2c   :  { %v199_v3 = vld [vmem:[%s12234_s2 + $0x5b0] sm:$0xff]  ;;  %v216_v7 = vld [vmem:[%s12234_s2 + $0x638] sm:$0xff]  ;;  %v218_v10 = vld [vmem:[%s12234_s2 + $0x648] sm:$0xff]  ;;  %v7608_v11 = vpack.c.bf16 %v203_v2, %v197_v1 }
  0x2d   :  { %7589 = vmatpush1.bf16.msra.mxu0 %v7588_v9  ;;  %v212_v9 = vld [vmem:[%s12234_s2 + $0x618] sm:$0xff]  ;;  %v209_v14 = vld [vmem:[%s12234_s2 + $0x600] sm:$0xff]  ;;  %v215_v15 = vld [vmem:[%s12234_s2 + $0x630] sm:$0xff] }
  0x2e   :  { %7717 = vmatpush1.bf16.msra.mxu1 %v7716_v12  ;;  %7591 = vmatprep.subr.bf16.mxu0 %v7590_v13  ;;  %v7736_v12 = vpack.c.bf16 %v205_v5, %v199_v3  ;;  %v7610_v13 = vpack.c.bf16 %v216_v7, %v210_v6  ;;  %v211_v16 = vld [vmem:[%s12234_s2 + $0x610] sm:$0xff]  ;;  %v217_v18 = vld [vmem:[%s12234_s2 + $0x640] sm:$0xff]  ;;  %v222_v19 = vld [vmem:[%s12234_s2 + $0x668] sm:$0xff]  ;;  %v7612_v28 = vpack.c.bf16 %v215_v15, %v209_v14  ;;  %v12242_v14 = vmov 0  }
  0x2f   :  { %7719 = vmatprep.subr.bf16.mxu1 %v7718_v17  ;;  %v7738_v17 = vpack.c.bf16 %v218_v10, %v212_v9  ;;  %v228_v21 = vld [vmem:[%s12234_s2 + $0x698] sm:$0xff]  ;;  %v7740_v29 = vpack.c.bf16 %v217_v18, %v211_v16  ;;  %v221_v59 = vld [vmem:[%s12234_s2 + $0x660] sm:$0xff]  ;;  %v223_v32 = vld [vmem:[%s12234_s2 + $0x670] sm:$0xff]  ;;  %8333 = vset.pattern.permute.xlu0 %v12242_v14 }
  0x30   :  { %v7614_v30 = vpack.c.bf16 %v228_v21, %v222_v19  ;;  %v229_v34 = vld [vmem:[%s12234_s2 + $0x6a0] sm:$0xff]  ;;  %v234_v35 = vld [vmem:[%s12234_s2 + $0x6c8] sm:$0xff]  ;;  %v240_v36 = vld [vmem:[%s12234_s2 + $0x6f8] sm:$0xff] }
  0x31   :  { %7593 = vmatpush1.bf16.msra.mxu0 %v7592_v24  ;;  %v8918_v24 = vrot.slane %v8782_v20, %v8889_v8  ;;  %v7744_v41 = vpack.c.bf16 %v229_v34, %v223_v32  ;;  %v7618_v42 = vpack.c.bf16 %v240_v36, %v234_v35  ;;  %v235_v44 = vld [vmem:[%s12234_s2 + $0x6d0] sm:$0xff]  ;;  %v241_v46 = vld [vmem:[%s12234_s2 + $0x700] sm:$0xff]  ;;  %v246_v47 = vld [vmem:[%s12234_s2 + $0x728] sm:$0xff] }
  0x32   :  { %7721 = vmatpush1.bf16.msra.mxu1 %v7720_v26  ;;  %7595 = vmatprep.subr.bf16.mxu0 %v7594_v27  ;;  %v224_v26 = vld [vmem:[%s12234_s2 + $0x678] sm:$0xff]  ;;  %v230_v27 = vld [vmem:[%s12234_s2 + $0x6a8] sm:$0xff]  ;;  %v7748_v52 = vpack.c.bf16 %v241_v46, %v235_v44  ;;  %v245_v54 = vld [vmem:[%s12234_s2 + $0x720] sm:$0xff] }
  0x33   :  { %7723 = vmatprep.subr.bf16.mxu1 %v7722_v31  ;;  %v227_v31 = vld [vmem:[%s12234_s2 + $0x690] sm:$0xff]  ;;  %v7742_v33 = vpack.c.bf16 %v230_v27, %v224_v26  ;;  %v252_v48 = vld [vmem:[%s12234_s2 + $0x758] sm:$0xff]  ;;  %v253_v58 = vld [vmem:[%s12234_s2 + $0x760] sm:$0xff] }
  0x34   :  { %v7616_v40 = vpack.c.bf16 %v227_v31, %v221_v59  ;;  %v7622_v53 = vpack.c.bf16 %v252_v48, %v246_v47  ;;  %v247_v56 = vld [vmem:[%s12234_s2 + $0x730] sm:$0xff]  ;;  %v258_v60 = vld [vmem:[%s12234_s2 + $0x788] sm:$0xff]  ;;  %v264_v61 = vld [vmem:[%s12234_s2 + $0x7b8] sm:$0xff] }
  0x35   :  { %7597 = vmatpush1.bf16.msra.mxu0 %v7596_v37  ;;  %v8945_v37 = vrot.slane %v8782_v20, %v416_v22  ;;  %v233_v20 = vld [vmem:[%s12234_s2 + $0x6c0] sm:$0xff]  ;;  %v7752_v1 = vpack.c.bf16 %v253_v58, %v247_v56  ;;  %v7626_v2 = vpack.c.bf16 %v264_v61, %v258_v60  ;;  %v259_v5 = vld [vmem:[%s12234_s2 + $0x790] sm:$0xff]  ;;  %v270_v9 = vld [vmem:[%s12234_s2 + $0x7e8] sm:$0xff] }
  0x36   :  { %7725 = vmatpush1.bf16.msra.mxu1 %v7724_v38  ;;  %7599 = vmatprep.subr.bf16.mxu0 %v7598_v39  ;;  %v236_v38 = vld [vmem:[%s12234_s2 + $0x6d8] sm:$0xff]  ;;  %v242_v39 = vld [vmem:[%s12234_s2 + $0x708] sm:$0xff]  ;;  %v257_v3 = vld [vmem:[%s12234_s2 + $0x780] sm:$0xff] }
  0x37   :  { %7727 = vmatprep.subr.bf16.mxu1 %v7726_v43  ;;  %v239_v43 = vld [vmem:[%s12234_s2 + $0x6f0] sm:$0xff]  ;;  %v7746_v45 = vpack.c.bf16 %v242_v39, %v236_v38  ;;  %v265_v7 = vld [vmem:[%s12234_s2 + $0x7c0] sm:$0xff]  ;;  %v276_v10 = vld [vmem:[%s12234_s2 + $0x818] sm:$0xff] }
  0x38   :  { %v7756_v16 = vpack.c.bf16 %v265_v7, %v259_v5  ;;  %v269_v18 = vld [vmem:[%s12234_s2 + $0x7e0] sm:$0xff]  ;;  %v275_v19 = vld [vmem:[%s12234_s2 + $0x810] sm:$0xff]  ;;  %v282_v27 = vld [vmem:[%s12234_s2 + $0x848] sm:$0xff] }
  0x39   :  { %7601 = vmatpush1.bf16.msra.mxu0 %v7600_v49  ;;  %v248_v49 = vld [vmem:[%s12234_s2 + $0x738] sm:$0xff]  ;;  %v271_v21 = vld [vmem:[%s12234_s2 + $0x7f0] sm:$0xff]  ;;  %v277_v26 = vld [vmem:[%s12234_s2 + $0x820] sm:$0xff]  ;;  %v7632_v59 = vpack.c.bf16 %v275_v19, %v269_v18 }
  0x3a   :  { %7729 = vmatpush1.bf16.msra.mxu1 %v7728_v50  ;;  %7603 = vmatprep.subr.bf16.mxu0 %v7602_v51  ;;  %v254_v50 = vld [vmem:[%s12234_s2 + $0x768] sm:$0xff]  ;;  %v7620_v51 = vpack.c.bf16 %v239_v43, %v233_v20  ;;  %v7760_v31 = vpack.c.bf16 %v277_v26, %v271_v21  ;;  %v287_v34 = vld [vmem:[%s12234_s2 + $0x870] sm:$0xff]  ;;  %v289_v38 = vld [vmem:[%s12234_s2 + $0x880] sm:$0xff] }
  0x3b   :  { %7731 = vmatprep.subr.bf16.mxu1 %v7730_v55  ;;  %v251_v55 = vld [vmem:[%s12234_s2 + $0x750] sm:$0xff]  ;;  %v7750_v57 = vpack.c.bf16 %v254_v50, %v248_v49  ;;  %v294_v39 = vld [vmem:[%s12234_s2 + $0x8a8] sm:$0xff]  ;;  %v301_v49 = vld [vmem:[%s12234_s2 + $0x8e0] sm:$0xff] }
  0x3c   :  { %v283_v35 = vld [vmem:[%s12234_s2 + $0x850] sm:$0xff]  ;;  %v306_v50 = vld [vmem:[%s12234_s2 + $0x908] sm:$0xff] }
  0x3d   :  { %7605 = vmatpush1.bf16.msra.mxu0 %v7604_v62  ;;  %v260_v62 = vld [vmem:[%s12234_s2 + $0x798] sm:$0xff]  ;;  %v7764_v43 = vpack.c.bf16 %v289_v38, %v283_v35  ;;  %v299_v46 = vld [vmem:[%s12234_s2 + $0x8d0] sm:$0xff] }
  0x3e   :  { %7733 = vmatpush1.bf16.msra.mxu1 %v7732_v63  ;;  %7607 = vmatprep.subr.bf16.mxu0 %v7606_v0  ;;  %v266_v63 = vld [vmem:[%s12234_s2 + $0x7c8] sm:$0xff]  ;;  %v7624_v0 = vpack.c.bf16 %v251_v55, %v245_v54  ;;  %v295_v47 = vld [vmem:[%s12234_s2 + $0x8b0] sm:$0xff] }
  0x3f   :  { %7735 = vmatprep.subr.bf16.mxu1 %v7734_v4  ;;  %v263_v4 = vld [vmem:[%s12234_s2 + $0x7b0] sm:$0xff]  ;;  %v7754_v6 = vpack.c.bf16 %v266_v63, %v260_v62  ;;  %v7768_v55 = vpack.c.bf16 %v301_v49, %v295_v47  ;;  %v313_v62 = vld [vmem:[%s12234_s2 + $0x940] sm:$0xff]  ;;  %v318_v63 = vld [vmem:[%s12234_s2 + $0x968] sm:$0xff] }
  0x40   :  { %v7628_v15 = vpack.c.bf16 %v263_v4, %v257_v3  ;;  %v311_v58 = vld [vmem:[%s12234_s2 + $0x930] sm:$0xff] }
  0x41   :  { %7609 = vmatpush1.bf16.msra.mxu0 %v7608_v11  ;;  %v12240_v11 = vmov 2   ;;  %v307_v60 = vld [vmem:[%s12234_s2 + $0x910] sm:$0xff] }
  0x42   :  { %7737 = vmatpush1.bf16.msra.mxu1 %v7736_v12  ;;  %7611 = vmatprep.subr.bf16.mxu0 %v7610_v13  ;;  %v272_v12 = vld [vmem:[%s12234_s2 + $0x7f8] sm:$0xff]  ;;  %v278_v13 = vld [vmem:[%s12234_s2 + $0x828] sm:$0xff]  ;;  %v7772_v4 = vpack.c.bf16 %v313_v62, %v307_v60  ;;  %v323_v7 = vld [vmem:[%s12234_s2 + $0x990] sm:$0xff] }
  0x43   :  { %7739 = vmatprep.subr.bf16.mxu1 %v7738_v17  ;;  %8335 = vset.pattern.permute.xlu1 %v12240_v11  ;;  %v7630_v17 = vpack.c.bf16 %v276_v10, %v270_v9  ;;  %v7758_v22 = vpack.c.bf16 %v278_v13, %v272_v12  ;;  %v319_v9 = vld [vmem:[%s12234_s2 + $0x970] sm:$0xff]  ;;  %v325_v12 = vld [vmem:[%s12234_s2 + $0x9a0] sm:$0xff]  ;;  %v330_v13 = vld [vmem:[%s12234_s2 + $0x9c8] sm:$0xff] }
  0x44   :  { %487 = vmatmul.mubr.f32.vlgmr.msra.gmra.mrb[0].mxu0 %v8918_v24  ;;  %v7776_v19 = vpack.c.bf16 %v325_v12, %v319_v9  ;;  %v335_v26 = vld [vmem:[%s12234_s2 + $0x9f0] sm:$0xff]  ;;  %v365_v62 = vld [vmem:[%s12234_s2 + $0xae0] sm:$0xff]  ;;  %v12238_v9 = vmov 3  }
  0x45   :  { %7613 = vmatpush1.bf16.msra.mxu0 %v7612_v28  ;;  %629 = vmatmul.mubr.f32.vlgmr.msra.gmra.mrb[0].mxu1 %v8918_v24  ;;  %v288_v28 = vld [vmem:[%s12234_s2 + $0x878] sm:$0xff]  ;;  %v347_v38 = vld [vmem:[%s12234_s2 + $0xa50] sm:$0xff] }
  0x46   :  { %7741 = vmatpush1.bf16.msra.mxu1 %v7740_v29  ;;  %7615 = vmatprep.subr.bf16.mxu0 %v7614_v30  ;;  %v284_v29 = vld [vmem:[%s12234_s2 + $0x858] sm:$0xff]  ;;  %v290_v30 = vld [vmem:[%s12234_s2 + $0x888] sm:$0xff]  ;;  %v7634_v32 = vpack.c.bf16 %v288_v28, %v282_v27  ;;  %v331_v27 = vld [vmem:[%s12234_s2 + $0x9d0] sm:$0xff] }
  0x47   :  { %7743 = vmatprep.subr.bf16.mxu1 %v7742_v33  ;;  %557 = vmatprep.mubr.f32.mxu0 %v8945_v37  ;;  %v281_v33 = vld [vmem:[%s12234_s2 + $0x840] sm:$0xff]  ;;  %v7762_v36 = vpack.c.bf16 %v290_v30, %v284_v29  ;;  %v342_v30 = vld [vmem:[%s12234_s2 + $0xa28] sm:$0xff]  ;;  %v359_v49 = vld [vmem:[%s12234_s2 + $0xab0] sm:$0xff] }
  0x48   :  { %699 = vmatprep.mubr.f32.mxu1 %v8945_v37  ;;  %v7636_v20 = vpack.c.bf16 %v287_v34, %v281_v33  ;;  %v337_v29 = vld [vmem:[%s12234_s2 + $0xa00] sm:$0xff] }
  0x49   :  { %7617 = vmatpush1.bf16.msra.mxu0 %v7616_v40  ;;  %v300_v40 = vld [vmem:[%s12234_s2 + $0x8d8] sm:$0xff]  ;;  %v7780_v34 = vpack.c.bf16 %v337_v29, %v331_v27  ;;  %v12246_v27 = vmov 1   ;;  %v16_v29 = vld [vmem:[%s12236_s1 + $0x10] sm:$0xff] }
  0x4a   :  { %7745 = vmatpush1.bf16.msra.mxu1 %v7744_v41  ;;  %7619 = vmatprep.subr.bf16.mxu0 %v7618_v42  ;;  %v296_v41 = vld [vmem:[%s12234_s2 + $0x8b8] sm:$0xff]  ;;  %v302_v42 = vld [vmem:[%s12234_s2 + $0x8e8] sm:$0xff]  ;;  %v7638_v44 = vpack.c.bf16 %v300_v40, %v294_v39  ;;  %v343_v39 = vld [vmem:[%s12234_s2 + $0xa30] sm:$0xff] }
  0x4b   :  { %7747 = vmatprep.subr.bf16.mxu1 %v7746_v45  ;;  %v293_v45 = vld [vmem:[%s12234_s2 + $0x8a0] sm:$0xff]  ;;  %v7766_v48 = vpack.c.bf16 %v302_v42, %v296_v41  ;;  %v354_v42 = vld [vmem:[%s12234_s2 + $0xa88] sm:$0xff] }
  0x4c   :  { %v7640_v54 = vpack.c.bf16 %v299_v46, %v293_v45  ;;  %v349_v41 = vld [vmem:[%s12234_s2 + $0xa60] sm:$0xff] }
  0x4d   :  { %7621 = vmatpush1.bf16.msra.mxu0 %v7620_v51  ;;  %v312_v51 = vld [vmem:[%s12234_s2 + $0x938] sm:$0xff]  ;;  %v7784_v46 = vpack.c.bf16 %v349_v41, %v343_v39 }
  0x4e   :  { %7749 = vmatpush1.bf16.msra.mxu1 %v7748_v52  ;;  %7623 = vmatprep.subr.bf16.mxu0 %v7622_v53  ;;  %v308_v52 = vld [vmem:[%s12234_s2 + $0x918] sm:$0xff]  ;;  %v314_v53 = vld [vmem:[%s12234_s2 + $0x948] sm:$0xff]  ;;  %v7642_v56 = vpack.c.bf16 %v312_v51, %v306_v50  ;;  %v355_v50 = vld [vmem:[%s12234_s2 + $0xa90] sm:$0xff] }
  0x4f   :  { %7751 = vmatprep.subr.bf16.mxu1 %v7750_v57  ;;  %v305_v57 = vld [vmem:[%s12234_s2 + $0x900] sm:$0xff]  ;;  %v7770_v61 = vpack.c.bf16 %v314_v53, %v308_v52  ;;  %v366_v53 = vld [vmem:[%s12234_s2 + $0xae8] sm:$0xff] }
  0x50   :  { %v7644_v3 = vpack.c.bf16 %v311_v58, %v305_v57  ;;  %v361_v52 = vld [vmem:[%s12234_s2 + $0xac0] sm:$0xff] }
  0x51   :  { %7625 = vmatpush1.bf16.msra.mxu0 %v7624_v0  ;;  %v324_v0 = vld [vmem:[%s12234_s2 + $0x998] sm:$0xff]  ;;  %v15_v57 = vld [vmem:[%s12236_s1] sm:$0xff]  ;;  %v7788_v60 = vpack.c.bf16 %v361_v52, %v355_v50 }
  0x52   :  { %7753 = vmatpush1.bf16.msra.mxu1 %v7752_v1  ;;  %7627 = vmatprep.subr.bf16.mxu0 %v7626_v2  ;;  %v320_v1 = vld [vmem:[%s12234_s2 + $0x978] sm:$0xff]  ;;  %v326_v2 = vld [vmem:[%s12234_s2 + $0x9a8] sm:$0xff]  ;;  %v7646_v5 = vpack.c.bf16 %v324_v0, %v318_v63  ;;  %v371_v63 = vld [vmem:[%s12234_s2 + $0xb10] sm:$0xff] }
  0x53   :  { %7755 = vmatprep.subr.bf16.mxu1 %v7754_v6  ;;  %v317_v6 = vld [vmem:[%s12234_s2 + $0x960] sm:$0xff]  ;;  %v7774_v10 = vpack.c.bf16 %v326_v2, %v320_v1  ;;  %895 = vperm.xlu1 %8335, %v15_v57   ;;  %v367_v0 = vld [vmem:[%s12234_s2 + $0xaf0] sm:$0xff]  ;;  %v52_v50 = vld [vmem:[%s12234_s2 + $0x118] sm:$0xff] }
  0x54   :  { %v7648_v18 = vpack.c.bf16 %v323_v7, %v317_v6  ;;  %v373_v2 = vld [vmem:[%s12234_s2 + $0xb20] sm:$0xff]  ;;  %850 = vperm.xlu0 %8333, %v15_v57   ;;  %v386_v6 = vld [vmem:[%s12234_s2 + $0xb88] sm:$0xff]  ;;  %v7664_v7 = vpack.c.bf16 %v371_v63, %v365_v62  ;;  %v76_v62 = vld [vmem:[%s12234_s2 + $0x1d8] sm:$0xff] }
  0x55   :  { %7629 = vmatpush1.bf16.msra.mxu0 %v7628_v15  ;;  %v336_v15 = vld [vmem:[%s12234_s2 + $0x9f8] sm:$0xff] }
  0x56   :  { %7757 = vmatpush1.bf16.msra.mxu1 %v7756_v16  ;;  %7631 = vmatprep.subr.bf16.mxu0 %v7630_v17  ;;  %v332_v16 = vld [vmem:[%s12234_s2 + $0x9d8] sm:$0xff]  ;;  %v338_v17 = vld [vmem:[%s12234_s2 + $0xa08] sm:$0xff]  ;;  %v7650_v21 = vpack.c.bf16 %v336_v15, %v330_v13  ;;  %v377_v13 = vld [vmem:[%s12234_s2 + $0xb40] sm:$0xff] }
  0x57   :  { %7759 = vmatprep.subr.bf16.mxu1 %v7758_v22  ;;  %v329_v22 = vld [vmem:[%s12234_s2 + $0x9c0] sm:$0xff]  ;;  %v7778_v28 = vpack.c.bf16 %v338_v17, %v332_v16  ;;  %8336 = vset.pattern.permute.xlu1 %v12238_v9  ;;  %v383_v15 = vld [vmem:[%s12234_s2 + $0xb70] sm:$0xff] }
  0x58   :  { %v7652_v33 = vpack.c.bf16 %v335_v26, %v329_v22  ;;  %v379_v16 = vld [vmem:[%s12234_s2 + $0xb50] sm:$0xff]  ;;  %919 = vperm.xlu1 %8336, %v15_v57   ;;  %v392_v22 = vld [vmem:[%s12234_s2 + $0xbb8] sm:$0xff]  ;;  %v398_v26 = vld [vmem:[%s12234_s2 + $0xbe8] sm:$0xff]  ;;  %8334 = vset.pattern.permute.xlu0 %v12246_v27 }
  0x59   :  { %7633 = vmatpush1.bf16.msra.mxu0 %v7632_v59  ;;  %v348_v59 = vld [vmem:[%s12234_s2 + $0xa58] sm:$0xff]  ;;  %871 = vperm.xlu0 %8334, %v15_v57  }
  0x5a   :  { %7761 = vmatpush1.bf16.msra.mxu1 %v7760_v31  ;;  %7635 = vmatprep.subr.bf16.mxu0 %v7634_v32  ;;  %v344_v31 = vld [vmem:[%s12234_s2 + $0xa38] sm:$0xff]  ;;  %v350_v32 = vld [vmem:[%s12234_s2 + $0xa68] sm:$0xff]  ;;  %v7654_v35 = vpack.c.bf16 %v348_v59, %v342_v30 }
  0x5b   :  { %7763 = vmatprep.subr.bf16.mxu1 %v7762_v36  ;;  %v341_v36 = vld [vmem:[%s12234_s2 + $0xa20] sm:$0xff]  ;;  %v7782_v40 = vpack.c.bf16 %v350_v32, %v344_v31  ;;  %v395_v32 = vld [vmem:[%s12234_s2 + $0xbd0] sm:$0xff] }
  0x5c   :  { %v7656_v45 = vpack.c.bf16 %v347_v38, %v341_v36  ;;  %v389_v31 = vld [vmem:[%s12234_s2 + $0xba0] sm:$0xff]  ;;  %v22_v36 = vld [vmem:[%s12234_s2 + $0x28] sm:$0xff]  ;;  %v28_v38 = vld [vmem:[%s12234_s2 + $0x58] sm:$0xff]  ;;  %8337 = vset.pattern.permute.xlu1 %v12242_v14 }
  0x5d   :  { %7637 = vmatpush1.bf16.msra.mxu0 %v7636_v20  ;;  %v360_v20 = vld [vmem:[%s12234_s2 + $0xab8] sm:$0xff]  ;;  %855 = vperm.xlu1 %8337, %v16_v29   ;;  %v7672_v39 = vpack.c.bf16 %v395_v32, %v389_v31  ;;  %v7802_v41 = vpack.c.bf16 %v28_v38, %v22_v36 }
  0x5e   :  { %7765 = vmatpush1.bf16.msra.mxu1 %v7764_v43  ;;  %7639 = vmatprep.subr.bf16.mxu0 %v7638_v44  ;;  %v356_v43 = vld [vmem:[%s12234_s2 + $0xa98] sm:$0xff]  ;;  %v362_v44 = vld [vmem:[%s12234_s2 + $0xac8] sm:$0xff]  ;;  %v7658_v47 = vpack.c.bf16 %v360_v20, %v354_v42  ;;  %v21_v42 = vld [vmem:[%s12234_s2 + $0x20] sm:$0xff] }
  0x5f   :  { %7767 = vmatprep.subr.bf16.mxu1 %v7766_v48  ;;  %v353_v48 = vld [vmem:[%s12234_s2 + $0xa80] sm:$0xff]  ;;  %v7786_v51 = vpack.c.bf16 %v362_v44, %v356_v43  ;;  %875 = vperm.xlu0 %8334, %v16_v29   ;;  %v27_v20 = vld [vmem:[%s12234_s2 + $0x50] sm:$0xff]  ;;  %v34_v43 = vld [vmem:[%s12234_s2 + $0x88] sm:$0xff] }
  0x60   :  { %v7660_v58 = vpack.c.bf16 %v359_v49, %v353_v48  ;;  %v40_v44 = vld [vmem:[%s12234_s2 + $0xb8] sm:$0xff]  ;;  %v39_v48 = vld [vmem:[%s12234_s2 + $0xb0] sm:$0xff]  ;;  %v46_v49 = vld [vmem:[%s12234_s2 + $0xe8] sm:$0xff] }
  0x61   :  { %7641 = vmatpush1.bf16.msra.mxu0 %v7640_v54  ;;  %v372_v54 = vld [vmem:[%s12234_s2 + $0xb18] sm:$0xff]  ;;  %8338 = vset.pattern.permute.xlu1 %v12240_v11  ;;  %v7810_v52 = vpack.c.bf16 %v52_v50, %v46_v49 }
  0x62   :  { %7769 = vmatpush1.bf16.msra.mxu1 %v7768_v55  ;;  %7643 = vmatprep.subr.bf16.mxu0 %v7642_v56  ;;  %v368_v55 = vld [vmem:[%s12234_s2 + $0xaf8] sm:$0xff]  ;;  %v374_v56 = vld [vmem:[%s12234_s2 + $0xb28] sm:$0xff] }
  0x63   :  { %7771 = vmatprep.subr.bf16.mxu1 %v7770_v61  ;;  %v7662_v61 = vpack.c.bf16 %v372_v54, %v366_v53  ;;  %v7790_v1 = vpack.c.bf16 %v374_v56, %v368_v55  ;;  %899 = vperm.xlu1 %8338, %v16_v29   ;;  %v45_v53 = vld [vmem:[%s12234_s2 + $0xe0] sm:$0xff]  ;;  %v51_v54 = vld [vmem:[%s12234_s2 + $0x110] sm:$0xff]  ;;  %v58_v55 = vld [vmem:[%s12234_s2 + $0x148] sm:$0xff] }
  0x64   :  { %8339 = vset.pattern.permute.xlu0 %v12238_v9  ;;  %v64_v56 = vld [vmem:[%s12234_s2 + $0x178] sm:$0xff]  ;;  %v7812_v57 = vpack.c.bf16 %v51_v54, %v45_v53  ;;  %v166_v53 = vld [vmem:[%s12234_s2 + $0x4a8] sm:$0xff] }
  0x65   :  { %7645 = vmatpush1.bf16.msra.mxu0 %v7644_v3  ;;  %v378_v3 = vld [vmem:[%s12234_s2 + $0xb48] sm:$0xff]  ;;  %923 = vperm.xlu0 %8339, %v16_v29   ;;  %v111_v29 = vld [vmem:[%s12234_s2 + $0x2f0] sm:$0xff]  ;;  %v136_v36 = vld [vmem:[%s12234_s2 + $0x3b8] sm:$0xff] }
  0x66   :  { %7773 = vmatpush1.bf16.msra.mxu1 %v7772_v4  ;;  %7647 = vmatprep.subr.bf16.mxu0 %v7646_v5  ;;  %v384_v4 = vld [vmem:[%s12234_s2 + $0xb78] sm:$0xff] }
  0x67   :  { %7775 = vmatprep.subr.bf16.mxu1 %v7774_v10  ;;  %v380_v5 = vld [vmem:[%s12234_s2 + $0xb58] sm:$0xff]  ;;  %v7792_v10 = vpack.c.bf16 %v373_v2, %v367_v0  ;;  %v7666_v12 = vpack.c.bf16 %v384_v4, %v378_v3  ;;  %8340 = vset.pattern.permute.xlu1 %v12242_v14  ;;  %v75_v2 = vld [vmem:[%s12234_s2 + $0x1d0] sm:$0xff]  ;;  %v82_v3 = vld [vmem:[%s12234_s2 + $0x208] sm:$0xff] }
  0x68   :  { %v7794_v17 = vpack.c.bf16 %v386_v6, %v380_v5  ;;  %v88_v4 = vld [vmem:[%s12234_s2 + $0x238] sm:$0xff] }
  0x69   :  { %7649 = vmatpush1.bf16.msra.mxu0 %v7648_v18  ;;  %v385_v18 = vld [vmem:[%s12234_s2 + $0xb80] sm:$0xff]  ;;  %8342 = vset.pattern.permute.xlu0 %v12242_v14  ;;  %v7822_v6 = vpack.c.bf16 %v88_v4, %v82_v3  ;;  %v172_v54 = vld [vmem:[%s12234_s2 + $0x4d8] sm:$0xff] }
  0x6a   :  { %7777 = vmatpush1.bf16.msra.mxu1 %v7776_v19  ;;  %7651 = vmatprep.subr.bf16.mxu0 %v7650_v21  ;;  %v390_v19 = vld [vmem:[%s12234_s2 + $0xba8] sm:$0xff]  ;;  %v396_v21 = vld [vmem:[%s12234_s2 + $0xbd8] sm:$0xff]  ;;  %v7796_v30 = vpack.c.bf16 %v385_v18, %v379_v16  ;;  %v99_v18 = vld [vmem:[%s12234_s2 + $0x290] sm:$0xff] }
  0x6b   :  { %7779 = vmatprep.subr.bf16.mxu1 %v7778_v28  ;;  %v7668_v28 = vpack.c.bf16 %v383_v15, %v377_v13  ;;  %v7670_v59 = vpack.c.bf16 %v396_v21, %v390_v19  ;;  %v100_v13 = vld [vmem:[%s12234_s2 + $0x298] sm:$0xff]  ;;  %v106_v19 = vld [vmem:[%s12234_s2 + $0x2c8] sm:$0xff] }
  0x6c   :  { %v112_v21 = vld [vmem:[%s12234_s2 + $0x2f8] sm:$0xff] }
  0x6d   :  { %7653 = vmatpush1.bf16.msra.mxu0 %v7652_v33  ;;  %v391_v33 = vld [vmem:[%s12234_s2 + $0xbb0] sm:$0xff] }
  0x6e   :  { %7781 = vmatpush1.bf16.msra.mxu1 %v7780_v34  ;;  %7655 = vmatprep.subr.bf16.mxu0 %v7654_v35  ;;  %v7798_v34 = vpack.c.bf16 %v398_v26, %v392_v22  ;;  %v397_v35 = vld [vmem:[%s12234_s2 + $0xbe0] sm:$0xff]  ;;  %v7830_v26 = vpack.c.bf16 %v112_v21, %v106_v19 }
  0x6f   :  { %7783 = vmatprep.subr.bf16.mxu1 %v7782_v40  ;;  %v7800_v40 = vpack.c.bf16 %v397_v35, %v391_v33  ;;  %v117_v33 = vld [vmem:[%s12234_s2 + $0x320] sm:$0xff]  ;;  %v130_v35 = vld [vmem:[%s12234_s2 + $0x388] sm:$0xff] }
  0x71   :  { %7657 = vmatpush1.bf16.msra.mxu0 %v7656_v45  ;;  %v7804_v45 = vpack.c.bf16 %v27_v20, %v21_v42  ;;  %v142_v42 = vld [vmem:[%s12234_s2 + $0x3e8] sm:$0xff]  ;;  %v148_v20 = vld [vmem:[%s12234_s2 + $0x418] sm:$0xff] }
  0x72   :  { %7785 = vmatpush1.bf16.msra.mxu1 %v7784_v46  ;;  %7659 = vmatprep.subr.bf16.mxu0 %v7658_v47  ;;  %v7806_v46 = vpack.c.bf16 %v40_v44, %v34_v43  ;;  %v33_v47 = vld [vmem:[%s12234_s2 + $0x80] sm:$0xff]  ;;  %v7842_v44 = vpack.c.bf16 %v148_v20, %v142_v42  ;;  %v255_v20 = vld [vmem:[%s12234_s2 + $0x770] sm:$0xff] }
  0x73   :  { %7787 = vmatprep.subr.bf16.mxu1 %v7786_v51  ;;  %v7808_v51 = vpack.c.bf16 %v39_v48, %v33_v47  ;;  %v154_v47 = vld [vmem:[%s12234_s2 + $0x448] sm:$0xff]  ;;  %v160_v48 = vld [vmem:[%s12234_s2 + $0x478] sm:$0xff]  ;;  %v249_v42 = vld [vmem:[%s12234_s2 + $0x740] sm:$0xff] }
  0x74   :  { %v7846_v50 = vpack.c.bf16 %v160_v48, %v154_v47  ;;  %v261_v47 = vld [vmem:[%s12234_s2 + $0x7a0] sm:$0xff]  ;;  %v267_v48 = vld [vmem:[%s12234_s2 + $0x7d0] sm:$0xff] }
  0x75   :  { %7661 = vmatpush1.bf16.msra.mxu0 %v7660_v58  ;;  %v7814_v58 = vpack.c.bf16 %v64_v56, %v58_v55  ;;  %v7850_v56 = vpack.c.bf16 %v172_v54, %v166_v53  ;;  %v273_v53 = vld [vmem:[%s12234_s2 + $0x800] sm:$0xff]  ;;  %v279_v54 = vld [vmem:[%s12234_s2 + $0x830] sm:$0xff] }
  0x76   :  { %7789 = vmatpush1.bf16.msra.mxu1 %v7788_v60  ;;  %7663 = vmatprep.subr.bf16.mxu0 %v7662_v61  ;;  %v63_v60 = vld [vmem:[%s12234_s2 + $0x170] sm:$0xff]  ;;  %v70_v61 = vld [vmem:[%s12234_s2 + $0x1a8] sm:$0xff] }
  0x77   :  { %7791 = vmatprep.subr.bf16.mxu1 %v7790_v1  ;;  %v7818_v0 = vpack.c.bf16 %v76_v62, %v70_v61  ;;  %v69_v1 = vld [vmem:[%s12234_s2 + $0x1a0] sm:$0xff] }
  0x78   :  { %v7820_v5 = vpack.c.bf16 %v75_v2, %v69_v1  ;;  %v190_v1 = vld [vmem:[%s12234_s2 + $0x568] sm:$0xff]  ;;  %v196_v2 = vld [vmem:[%s12234_s2 + $0x598] sm:$0xff] }
  0x79   :  { %7665 = vmatpush1.bf16.msra.mxu0 %v7664_v7  ;;  %v81_v7 = vld [vmem:[%s12234_s2 + $0x200] sm:$0xff]  ;;  %v7858_v4 = vpack.c.bf16 %v196_v2, %v190_v1  ;;  %v303_v2 = vld [vmem:[%s12234_s2 + $0x8f0] sm:$0xff] }
  0x7a   :  { %7793 = vmatpush1.bf16.msra.mxu1 %v7792_v10  ;;  %7667 = vmatprep.subr.bf16.mxu0 %v7666_v12  ;;  %v87_v10 = vld [vmem:[%s12234_s2 + $0x230] sm:$0xff]  ;;  %v94_v12 = vld [vmem:[%s12234_s2 + $0x268] sm:$0xff]  ;;  %v297_v1 = vld [vmem:[%s12234_s2 + $0x8c0] sm:$0xff] }
  0x7b   :  { %7795 = vmatprep.subr.bf16.mxu1 %v7794_v17  ;;  %v7824_v15 = vpack.c.bf16 %v87_v10, %v81_v7  ;;  %v7826_v16 = vpack.c.bf16 %v100_v13, %v94_v12  ;;  %v93_v17 = vld [vmem:[%s12234_s2 + $0x260] sm:$0xff]  ;;  %v202_v7 = vld [vmem:[%s12234_s2 + $0x5c8] sm:$0xff]  ;;  %v208_v10 = vld [vmem:[%s12234_s2 + $0x5f8] sm:$0xff] }
  0x7c   :  { %v7828_v22 = vpack.c.bf16 %v99_v18, %v93_v17  ;;  %v7862_v13 = vpack.c.bf16 %v208_v10, %v202_v7  ;;  %v214_v17 = vld [vmem:[%s12234_s2 + $0x628] sm:$0xff]  ;;  %v220_v18 = vld [vmem:[%s12234_s2 + $0x658] sm:$0xff]  ;;  %v315_v7 = vld [vmem:[%s12234_s2 + $0x950] sm:$0xff] }
  0x7d   :  { %7669 = vmatpush1.bf16.msra.mxu0 %v7668_v28  ;;  %v105_v28 = vld [vmem:[%s12234_s2 + $0x2c0] sm:$0xff]  ;;  %v7866_v21 = vpack.c.bf16 %v220_v18, %v214_v17  ;;  %v322_v10 = vld [vmem:[%s12234_s2 + $0x988] sm:$0xff] }
  0x7e   :  { %7797 = vmatpush1.bf16.msra.mxu1 %v7796_v30  ;;  %7671 = vmatprep.subr.bf16.mxu0 %v7670_v59  ;;  %v118_v30 = vld [vmem:[%s12234_s2 + $0x328] sm:$0xff]  ;;  %v124_v59 = vld [vmem:[%s12234_s2 + $0x358] sm:$0xff]  ;;  %v7832_v31 = vpack.c.bf16 %v111_v29, %v105_v28  ;;  %v952_v17 = vld [vmem:[%s12234_s2 + $0xc00] sm:$0xff] }
  0x7f   :  { %7799 = vmatprep.subr.bf16.mxu1 %v7798_v34  ;;  %v7834_v32 = vpack.c.bf16 %v124_v59, %v118_v30  ;;  %v123_v34 = vld [vmem:[%s12234_s2 + $0x350] sm:$0xff]  ;;  %v226_v28 = vld [vmem:[%s12234_s2 + $0x688] sm:$0xff]  ;;  %v232_v29 = vld [vmem:[%s12234_s2 + $0x6b8] sm:$0xff] }
  0x80   :  { %v7836_v38 = vpack.c.bf16 %v123_v34, %v117_v33  ;;  %v7870_v59 = vpack.c.bf16 %v232_v29, %v226_v28  ;;  %v238_v33 = vld [vmem:[%s12234_s2 + $0x6e8] sm:$0xff]  ;;  %v244_v34 = vld [vmem:[%s12234_s2 + $0x718] sm:$0xff]  ;;  %v958_v29 = vld [vmem:[%s12234_s2 + $0xc60] sm:$0xff] }
  0x81   :  { %7673 = vmatpush1.bf16.msra.mxu0 %v7672_v39  ;;  %v7838_v39 = vpack.c.bf16 %v136_v36, %v130_v35  ;;  %v7874_v36 = vpack.c.bf16 %v244_v34, %v238_v33  ;;  %v321_v34 = vld [vmem:[%s12234_s2 + $0x980] sm:$0xff] }
  0x82   :  { %7801 = vmatpush1.bf16.msra.mxu1 %v7800_v40  ;;  %7803 = vmatprep.subr.bf16.mxu0 %v7802_v41  ;;  %v129_v40 = vld [vmem:[%s12234_s2 + $0x380] sm:$0xff]  ;;  %v135_v41 = vld [vmem:[%s12234_s2 + $0x3b0] sm:$0xff] }
  0x83   :  { %v7840_v43 = vpack.c.bf16 %v135_v41, %v129_v40  ;;  %v250_v40 = vld [vmem:[%s12234_s2 + $0x748] sm:$0xff] }
  0x84   :  { %558 = vmatmul.mubr.f32.vlgmr.msra.gmra.mrb[0].mxu0 %v8794_v25 }
  0x85   :  { %700 = vmatmul.mubr.f32.vlgmr.msra.gmra.mrb[0].mxu1 %v8794_v25  ;;  %7805 = vmatpush1.bf16.msra.mxu0 %v7804_v45  ;;  %v141_v45 = vld [vmem:[%s12234_s2 + $0x3e0] sm:$0xff] }
  0x86   :  { %7807 = vmatprep.subr.bf16.mxu0 %v7806_v46  ;;  %770 = vmatprep.mubr.f32.mxu0 %v8791_v23  ;;  %v57_v23 = vld [vmem:[%s12234_s2 + $0x140] sm:$0xff]  ;;  %v147_v46 = vld [vmem:[%s12234_s2 + $0x410] sm:$0xff] }
  0x87   :  { %v7816_v63 = vpack.c.bf16 %v63_v60, %v57_v23  ;;  %v7844_v49 = vpack.c.bf16 %v147_v46, %v141_v45  ;;  %v178_v23 = vld [vmem:[%s12234_s2 + $0x508] sm:$0xff]  ;;  %v184_v60 = vld [vmem:[%s12234_s2 + $0x538] sm:$0xff]  ;;  %v7880_v45 = vpack.c.bf16 %v255_v20, %v249_v42 }
  0x88   :  { %v7854_v62 = vpack.c.bf16 %v184_v60, %v178_v23  ;;  %v285_v23 = vld [vmem:[%s12234_s2 + $0x860] sm:$0xff]  ;;  %v291_v60 = vld [vmem:[%s12234_s2 + $0x890] sm:$0xff]  ;;  %v974_v42 = vld [vmem:[%s12234_s2 + $0xd58] sm:$0xff] }
  0x89   :  { %7809 = vmatpush1.bf16.msra.mxu0 %v7808_v51  ;;  %v153_v51 = vld [vmem:[%s12234_s2 + $0x440] sm:$0xff] }
  0x8a   :  { %7811 = vmatprep.subr.bf16.mxu0 %v7810_v52  ;;  %v159_v52 = vld [vmem:[%s12234_s2 + $0x470] sm:$0xff] }
  0x8b   :  { %v7848_v55 = vpack.c.bf16 %v159_v52, %v153_v51  ;;  %v7884_v51 = vpack.c.bf16 %v267_v48, %v261_v47  ;;  %v352_v48 = vld [vmem:[%s12234_s2 + $0xa78] sm:$0xff] }
  0x8d   :  { %7813 = vmatpush1.bf16.msra.mxu0 %v7812_v57  ;;  %v165_v57 = vld [vmem:[%s12234_s2 + $0x4a0] sm:$0xff] }
  0x8e   :  { %7815 = vmatprep.subr.bf16.mxu0 %v7814_v58  ;;  %v171_v58 = vld [vmem:[%s12234_s2 + $0x4d0] sm:$0xff] }
  0x8f   :  { %v7852_v61 = vpack.c.bf16 %v171_v58, %v165_v57  ;;  %v7888_v57 = vpack.c.bf16 %v279_v54, %v273_v53  ;;  %v980_v53 = vld [vmem:[%s12234_s2 + $0xdb8] sm:$0xff] }
  0x91   :  { %7817 = vmatpush1.bf16.msra.mxu0 %v7816_v63  ;;  %v177_v63 = vld [vmem:[%s12234_s2 + $0x500] sm:$0xff] }
  0x92   :  { %7819 = vmatprep.subr.bf16.mxu0 %v7818_v0  ;;  %v183_v0 = vld [vmem:[%s12234_s2 + $0x530] sm:$0xff] }
  0x93   :  { %v7856_v3 = vpack.c.bf16 %v183_v0, %v177_v63  ;;  %v7892_v63 = vpack.c.bf16 %v291_v60, %v285_v23  ;;  %v364_v60 = vld [vmem:[%s12234_s2 + $0xad8] sm:$0xff] }
  0x95   :  { %7821 = vmatpush1.bf16.msra.mxu0 %v7820_v5  ;;  %v189_v5 = vld [vmem:[%s12234_s2 + $0x560] sm:$0xff] }
  0x96   :  { %7823 = vmatprep.subr.bf16.mxu0 %v7822_v6  ;;  %v195_v6 = vld [vmem:[%s12234_s2 + $0x590] sm:$0xff] }
  0x97   :  { %v7860_v12 = vpack.c.bf16 %v195_v6, %v189_v5  ;;  %v309_v5 = vld [vmem:[%s12234_s2 + $0x920] sm:$0xff]  ;;  %v7896_v6 = vpack.c.bf16 %v303_v2, %v297_v1  ;;  %v986_v1 = vld [vmem:[%s12234_s2 + $0xe18] sm:$0xff] }
  0x99   :  { %7825 = vmatpush1.bf16.msra.mxu0 %v7824_v15  ;;  %v201_v15 = vld [vmem:[%s12234_s2 + $0x5c0] sm:$0xff] }
  0x9a   :  { %7827 = vmatprep.subr.bf16.mxu0 %v7826_v16  ;;  %v207_v16 = vld [vmem:[%s12234_s2 + $0x5f0] sm:$0xff] }
  0x9b   :  { %v7864_v19 = vpack.c.bf16 %v207_v16, %v201_v15  ;;  %v953_v15 = vld [vmem:[%s12234_s2 + $0xc08] sm:$0xff]  ;;  %v956_v16 = vld [vmem:[%s12234_s2 + $0xc38] sm:$0xff] }
  0x9c   :  { %v7930_v18 = vpack.c.bf16 %v956_v16, %v953_v15  ;;  %v985_v15 = vld [vmem:[%s12234_s2 + $0xe10] sm:$0xff]  ;;  %v989_v16 = vld [vmem:[%s12234_s2 + $0xe48] sm:$0xff] }
  0x9d   :  { %7829 = vmatpush1.bf16.msra.mxu0 %v7828_v22  ;;  %v213_v22 = vld [vmem:[%s12234_s2 + $0x620] sm:$0xff] }
  0x9e   :  { %7831 = vmatprep.subr.bf16.mxu0 %v7830_v26  ;;  %v219_v26 = vld [vmem:[%s12234_s2 + $0x650] sm:$0xff]  ;;  %7931 = vmatprep.subr.bf16.mxu1 %v7930_v18 }
  0x9f   :  { %v7868_v30 = vpack.c.bf16 %v219_v26, %v213_v22  ;;  %v962_v22 = vld [vmem:[%s12234_s2 + $0xc98] sm:$0xff] }
  0xa1   :  { %7833 = vmatpush1.bf16.msra.mxu0 %v7832_v31  ;;  %v225_v31 = vld [vmem:[%s12234_s2 + $0x680] sm:$0xff] }
  0xa2   :  { %7835 = vmatprep.subr.bf16.mxu0 %v7834_v32  ;;  %v231_v32 = vld [vmem:[%s12234_s2 + $0x6b0] sm:$0xff] }
  0xa3   :  { %v7872_v35 = vpack.c.bf16 %v231_v32, %v225_v31  ;;  %v7900_v31 = vpack.c.bf16 %v315_v7, %v309_v5  ;;  %v968_v32 = vld [vmem:[%s12234_s2 + $0xcf8] sm:$0xff]  ;;  %v363_v5 = vld [vmem:[%s12234_s2 + $0xad0] sm:$0xff] }
  0xa5   :  { %7837 = vmatpush1.bf16.msra.mxu0 %v7836_v38  ;;  %v237_v38 = vld [vmem:[%s12234_s2 + $0x6e0] sm:$0xff] }
  0xa6   :  { %7839 = vmatprep.subr.bf16.mxu0 %v7838_v39  ;;  %v243_v39 = vld [vmem:[%s12234_s2 + $0x710] sm:$0xff] }
  0xa9   :  { %7841 = vmatpush1.bf16.msra.mxu0 %v7840_v43  ;;  %v262_v43 = vld [vmem:[%s12234_s2 + $0x7a8] sm:$0xff] }
  0xaa   :  { %7843 = vmatprep.subr.bf16.mxu0 %v7842_v44  ;;  %v268_v44 = vld [vmem:[%s12234_s2 + $0x7d8] sm:$0xff] }
  0xab   :  { %v7882_v46 = vpack.c.bf16 %v268_v44, %v262_v43  ;;  %v333_v44 = vld [vmem:[%s12234_s2 + $0x9e0] sm:$0xff] }
  0xad   :  { %7845 = vmatpush1.bf16.msra.mxu0 %v7844_v49  ;;  %v274_v49 = vld [vmem:[%s12234_s2 + $0x808] sm:$0xff] }
  0xae   :  { %7847 = vmatprep.subr.bf16.mxu0 %v7846_v50  ;;  %v280_v50 = vld [vmem:[%s12234_s2 + $0x838] sm:$0xff] }
  0xaf   :  { %v7886_v52 = vpack.c.bf16 %v280_v50, %v274_v49  ;;  %v970_v50 = vld [vmem:[%s12234_s2 + $0xd20] sm:$0xff] }
  0xb1   :  { %7849 = vmatpush1.bf16.msra.mxu0 %v7848_v55  ;;  %v286_v55 = vld [vmem:[%s12234_s2 + $0x868] sm:$0xff] }
  0xb2   :  { %7851 = vmatprep.subr.bf16.mxu0 %v7850_v56  ;;  %v292_v56 = vld [vmem:[%s12234_s2 + $0x898] sm:$0xff] }
  0xb3   :  { %v7890_v58 = vpack.c.bf16 %v292_v56, %v286_v55  ;;  %v345_v56 = vld [vmem:[%s12234_s2 + $0xa40] sm:$0xff] }
  0xb5   :  { %7853 = vmatpush1.bf16.msra.mxu0 %v7852_v61  ;;  %v298_v61 = vld [vmem:[%s12234_s2 + $0x8c8] sm:$0xff] }
  0xb6   :  { %7855 = vmatprep.subr.bf16.mxu0 %v7854_v62  ;;  %v304_v62 = vld [vmem:[%s12234_s2 + $0x8f8] sm:$0xff] }
  0xb7   :  { %v7894_v0 = vpack.c.bf16 %v304_v62, %v298_v61  ;;  %v976_v62 = vld [vmem:[%s12234_s2 + $0xd80] sm:$0xff] }
  0xb9   :  { %7857 = vmatpush1.bf16.msra.mxu0 %v7856_v3  ;;  %v310_v3 = vld [vmem:[%s12234_s2 + $0x928] sm:$0xff] }
  0xba   :  { %7859 = vmatprep.subr.bf16.mxu0 %v7858_v4  ;;  %v316_v4 = vld [vmem:[%s12234_s2 + $0x958] sm:$0xff] }
  0xbd   :  { %7861 = vmatpush1.bf16.msra.mxu0 %v7860_v12  ;;  %v328_v12 = vld [vmem:[%s12234_s2 + $0x9b8] sm:$0xff] }
  0xbe   :  { %7863 = vmatprep.subr.bf16.mxu0 %v7862_v13  ;;  %v7898_v13 = vpack.c.bf16 %v316_v4, %v310_v3  ;;  %v7902_v33 = vpack.c.bf16 %v328_v12, %v322_v10  ;;  %v357_v4 = vld [vmem:[%s12234_s2 + $0xaa0] sm:$0xff]  ;;  %v376_v10 = vld [vmem:[%s12234_s2 + $0xb38] sm:$0xff] }
  0xbf   :  { %v7916_v18 = vpack.c.bf16 %v363_v5, %v357_v4 }
  0xc1   :  { %7865 = vmatpush1.bf16.msra.mxu0 %v7864_v19  ;;  %v955_v19 = vld [vmem:[%s12234_s2 + $0xc30] sm:$0xff] }
  0xc2   :  { %7867 = vmatprep.subr.bf16.mxu0 %v7866_v21  ;;  %v959_v21 = vld [vmem:[%s12234_s2 + $0xc68] sm:$0xff]  ;;  %v7932_v26 = vpack.c.bf16 %v955_v19, %v952_v17  ;;  %v992_v17 = vld [vmem:[%s12234_s2 + $0xe78] sm:$0xff] }
  0xc3   :  { %v7934_v28 = vpack.c.bf16 %v962_v22, %v959_v21  ;;  %v369_v21 = vld [vmem:[%s12234_s2 + $0xb00] sm:$0xff]  ;;  %v375_v22 = vld [vmem:[%s12234_s2 + $0xb30] sm:$0xff] }
  0xc4   :  { %771 = vmatmul.mubr.f32.vlgmr.msra.gmra.mrb[2].mxu0 %v8918_v24  ;;  %v256_v24 = vld [vmem:[%s12234_s2 + $0x778] sm:$0xff]  ;;  %7933 = vmatpush1.bf16.msra.mxu1 %v7932_v26  ;;  %v382_v26 = vld [vmem:[%s12234_s2 + $0xb68] sm:$0xff] }
  0xc5   :  { %7869 = vmatpush1.bf16.msra.mxu0 %v7868_v30  ;;  %841 = vmatprep.mubr.f32.mxu0 %v8945_v37  ;;  %v7876_v37 = vpack.c.bf16 %v243_v39, %v237_v38  ;;  %v7878_v41 = vpack.c.bf16 %v256_v24, %v250_v40  ;;  %v961_v30 = vld [vmem:[%s12234_s2 + $0xc90] sm:$0xff]  ;;  %v340_v39 = vld [vmem:[%s12234_s2 + $0xa18] sm:$0xff]  ;;  %v964_v24 = vld [vmem:[%s12234_s2 + $0xcc0] sm:$0xff] }
  0xc6   :  { %7871 = vmatprep.subr.bf16.mxu0 %v7870_v59  ;;  %v965_v59 = vld [vmem:[%s12234_s2 + $0xcc8] sm:$0xff]  ;;  %v7936_v38 = vpack.c.bf16 %v961_v30, %v958_v29  ;;  %7935 = vmatprep.subr.bf16.mxu1 %v7934_v28  ;;  %v388_v29 = vld [vmem:[%s12234_s2 + $0xb98] sm:$0xff]  ;;  %v7954_v30 = vpack.c.bf16 %v992_v17, %v989_v16 }
  0xc7   :  { %v7938_v40 = vpack.c.bf16 %v968_v32, %v965_v59  ;;  %v988_v59 = vld [vmem:[%s12234_s2 + $0xe40] sm:$0xff]  ;;  %v995_v32 = vld [vmem:[%s12234_s2 + $0xea8] sm:$0xff] }
  0xc8   :  { %7937 = vmatpush1.bf16.msra.mxu1 %v7936_v38  ;;  %v387_v38 = vld [vmem:[%s12234_s2 + $0xb90] sm:$0xff] }
  0xc9   :  { %7873 = vmatpush1.bf16.msra.mxu0 %v7872_v35  ;;  %v327_v35 = vld [vmem:[%s12234_s2 + $0x9b0] sm:$0xff]  ;;  %7939 = vmatprep.subr.bf16.mxu1 %v7938_v40 }
  0xca   :  { %7875 = vmatprep.subr.bf16.mxu0 %v7874_v36  ;;  %v334_v36 = vld [vmem:[%s12234_s2 + $0x9e8] sm:$0xff]  ;;  %v7904_v20 = vpack.c.bf16 %v327_v35, %v321_v34  ;;  %v7920_v34 = vpack.c.bf16 %v375_v22, %v369_v21  ;;  %v7922_v35 = vpack.c.bf16 %v388_v29, %v382_v26 }
  0xcb   :  { %v7906_v43 = vpack.c.bf16 %v340_v39, %v334_v36  ;;  %v381_v36 = vld [vmem:[%s12234_s2 + $0xb60] sm:$0xff]  ;;  %v394_v39 = vld [vmem:[%s12234_s2 + $0xbc8] sm:$0xff] }
  0xcc   :  { %v1025_v29 = vld [vmem:[%s12234_s2 + $0x1088] sm:$0xff] }
  0xcd   :  { %7877 = vmatpush1.bf16.msra.mxu0 %v7876_v37  ;;  %v967_v37 = vld [vmem:[%s12234_s2 + $0xcf0] sm:$0xff] }
  0xce   :  { %7879 = vmatprep.subr.bf16.mxu0 %v7878_v41  ;;  %v971_v41 = vld [vmem:[%s12234_s2 + $0xd28] sm:$0xff]  ;;  %v7940_v47 = vpack.c.bf16 %v967_v37, %v964_v24  ;;  %v400_v24 = vld [vmem:[%s12234_s2 + $0xbf8] sm:$0xff] }
  0xcf   :  { %v7942_v49 = vpack.c.bf16 %v974_v42, %v971_v41  ;;  %v994_v41 = vld [vmem:[%s12234_s2 + $0xea0] sm:$0xff]  ;;  %v997_v42 = vld [vmem:[%s12234_s2 + $0xed0] sm:$0xff] }
  0xd0   :  { %7941 = vmatpush1.bf16.msra.mxu1 %v7940_v47  ;;  %v399_v47 = vld [vmem:[%s12234_s2 + $0xbf0] sm:$0xff] }
  0xd1   :  { %7881 = vmatpush1.bf16.msra.mxu0 %v7880_v45  ;;  %v339_v45 = vld [vmem:[%s12234_s2 + $0xa10] sm:$0xff]  ;;  %7943 = vmatprep.subr.bf16.mxu1 %v7942_v49 }
  0xd2   :  { %7883 = vmatprep.subr.bf16.mxu0 %v7882_v46  ;;  %v346_v46 = vld [vmem:[%s12234_s2 + $0xa48] sm:$0xff]  ;;  %v7908_v54 = vpack.c.bf16 %v339_v45, %v333_v44  ;;  %v7924_v44 = vpack.c.bf16 %v387_v38, %v381_v36  ;;  %v7926_v45 = vpack.c.bf16 %v400_v24, %v394_v39 }
  0xd3   :  { %v7910_v55 = vpack.c.bf16 %v352_v48, %v346_v46  ;;  %v393_v46 = vld [vmem:[%s12234_s2 + $0xbc0] sm:$0xff]  ;;  %v7960_v48 = vpack.c.bf16 %v997_v42, %v994_v41 }
  0xd5   :  { %7885 = vmatpush1.bf16.msra.mxu0 %v7884_v51  ;;  %v973_v51 = vld [vmem:[%s12234_s2 + $0xd50] sm:$0xff] }
  0xd6   :  { %7887 = vmatprep.subr.bf16.mxu0 %v7886_v52  ;;  %v977_v52 = vld [vmem:[%s12234_s2 + $0xd88] sm:$0xff]  ;;  %v7944_v23 = vpack.c.bf16 %v973_v51, %v970_v50  ;;  %v1000_v50 = vld [vmem:[%s12234_s2 + $0xf00] sm:$0xff]  ;;  %v1003_v51 = vld [vmem:[%s12234_s2 + $0xf30] sm:$0xff] }
  0xd7   :  { %v7946_v61 = vpack.c.bf16 %v980_v53, %v977_v52  ;;  %v1007_v52 = vld [vmem:[%s12234_s2 + $0xf68] sm:$0xff]  ;;  %v1010_v53 = vld [vmem:[%s12234_s2 + $0xf98] sm:$0xff] }
  0xd8   :  { %7945 = vmatpush1.bf16.msra.mxu1 %v7944_v23  ;;  %v1013_v23 = vld [vmem:[%s12234_s2 + $0xfc8] sm:$0xff] }
  0xd9   :  { %7889 = vmatpush1.bf16.msra.mxu0 %v7888_v57  ;;  %v351_v57 = vld [vmem:[%s12234_s2 + $0xa70] sm:$0xff]  ;;  %7947 = vmatprep.subr.bf16.mxu1 %v7946_v61 }
  0xda   :  { %7891 = vmatprep.subr.bf16.mxu0 %v7890_v58  ;;  %v358_v58 = vld [vmem:[%s12234_s2 + $0xaa8] sm:$0xff]  ;;  %v7912_v2 = vpack.c.bf16 %v351_v57, %v345_v56  ;;  %v7966_v56 = vpack.c.bf16 %v1010_v53, %v1007_v52  ;;  %v1006_v57 = vld [vmem:[%s12234_s2 + $0xf60] sm:$0xff]  ;;  %v1040_v52 = vld [vmem:[%s12234_s2 + $0x1178] sm:$0xff] }
  0xdb   :  { %v7914_v3 = vpack.c.bf16 %v364_v60, %v358_v58  ;;  %v1009_v58 = vld [vmem:[%s12234_s2 + $0xf90] sm:$0xff]  ;;  %v1016_v60 = vld [vmem:[%s12234_s2 + $0xff8] sm:$0xff] }
  0xdc   :  { %v7968_v61 = vpack.c.bf16 %v1009_v58, %v1006_v57  ;;  %v1043_v57 = vld [vmem:[%s12234_s2 + $0x11a8] sm:$0xff]  ;;  %v1046_v58 = vld [vmem:[%s12234_s2 + $0x11d8] sm:$0xff] }
  0xdd   :  { %7893 = vmatpush1.bf16.msra.mxu0 %v7892_v63  ;;  %v979_v63 = vld [vmem:[%s12234_s2 + $0xdb0] sm:$0xff] }
  0xde   :  { %7895 = vmatprep.subr.bf16.mxu0 %v7894_v0  ;;  %v983_v0 = vld [vmem:[%s12234_s2 + $0xde8] sm:$0xff]  ;;  %v7948_v7 = vpack.c.bf16 %v979_v63, %v976_v62  ;;  %v7970_v62 = vpack.c.bf16 %v1016_v60, %v1013_v23  ;;  %v1012_v63 = vld [vmem:[%s12234_s2 + $0xfc0] sm:$0xff]  ;;  %v7990_v60 = vpack.c.bf16 %v1046_v58, %v1043_v57  ;;  %v966_v58 = vld [vmem:[%s12234_s2 + $0xcd0] sm:$0xff] }
  0xdf   :  { %v7950_v12 = vpack.c.bf16 %v986_v1, %v983_v0  ;;  %v1015_v0 = vld [vmem:[%s12234_s2 + $0xff0] sm:$0xff]  ;;  %v1042_v23 = vld [vmem:[%s12234_s2 + $0x11a0] sm:$0xff] }
  0xe0   :  { %7949 = vmatpush1.bf16.msra.mxu1 %v7948_v7  ;;  %v7972_v1 = vpack.c.bf16 %v1015_v0, %v1012_v63  ;;  %v1022_v7 = vld [vmem:[%s12234_s2 + $0x1058] sm:$0xff]  ;;  %v1002_v63 = vld [vmem:[%s12234_s2 + $0xf10] sm:$0xff]  ;;  %v1005_v0 = vld [vmem:[%s12234_s2 + $0xf40] sm:$0xff] }
  0xe1   :  { %7897 = vmatpush1.bf16.msra.mxu0 %v7896_v6  ;;  %v370_v6 = vld [vmem:[%s12234_s2 + $0xb08] sm:$0xff]  ;;  %7951 = vmatprep.subr.bf16.mxu1 %v7950_v12  ;;  %v1018_v12 = vld [vmem:[%s12234_s2 + $0x1020] sm:$0xff] }
  0xe2   :  { %7899 = vmatprep.subr.bf16.mxu0 %v7898_v13  ;;  %v982_v13 = vld [vmem:[%s12234_s2 + $0xde0] sm:$0xff]  ;;  %v7918_v19 = vpack.c.bf16 %v376_v10, %v370_v6  ;;  %v1019_v6 = vld [vmem:[%s12234_s2 + $0x1028] sm:$0xff] }
  0xe3   :  { %v7952_v28 = vpack.c.bf16 %v985_v15, %v982_v13  ;;  %v1021_v13 = vld [vmem:[%s12234_s2 + $0x1050] sm:$0xff] }
  0xe4   :  { %v7976_v17 = vpack.c.bf16 %v1021_v13, %v1018_v12 }
  0xe5   :  { %7901 = vmatpush1.bf16.msra.mxu0 %v7900_v31  ;;  %v991_v31 = vld [vmem:[%s12234_s2 + $0xe70] sm:$0xff]  ;;  %7953 = vmatpush1.bf16.msra.mxu1 %v7952_v28 }
  0xe6   :  { %7903 = vmatprep.subr.bf16.mxu0 %v7902_v33  ;;  %v998_v33 = vld [vmem:[%s12234_s2 + $0xed8] sm:$0xff]  ;;  %v7956_v40 = vpack.c.bf16 %v991_v31, %v988_v59  ;;  %7955 = vmatprep.subr.bf16.mxu1 %v7954_v30 }
  0xe7   :  { %v7958_v37 = vpack.c.bf16 %v998_v33, %v995_v32  ;;  %v1028_v30 = vld [vmem:[%s12234_s2 + $0x10b8] sm:$0xff] }
  0xe8   :  { %v7978_v33 = vpack.c.bf16 %v1028_v30, %v1025_v29 }
  0xe9   :  { %7905 = vmatpush1.bf16.msra.mxu0 %v7904_v20  ;;  %v1001_v20 = vld [vmem:[%s12234_s2 + $0xf08] sm:$0xff]  ;;  %7957 = vmatpush1.bf16.msra.mxu1 %v7956_v40 }
  0xea   :  { %7907 = vmatprep.subr.bf16.mxu0 %v7906_v43  ;;  %v1004_v43 = vld [vmem:[%s12234_s2 + $0xf38] sm:$0xff]  ;;  %7959 = vmatprep.subr.bf16.mxu1 %v7958_v37 }
  0xeb   :  { %v7962_v49 = vpack.c.bf16 %v1004_v43, %v1001_v20  ;;  %v1031_v43 = vld [vmem:[%s12234_s2 + $0x10e8] sm:$0xff] }
  0xed   :  { %7909 = vmatpush1.bf16.msra.mxu0 %v7908_v54  ;;  %v7928_v54 = vpack.c.bf16 %v399_v47, %v393_v46  ;;  %7961 = vmatpush1.bf16.msra.mxu1 %v7960_v48  ;;  %v1030_v48 = vld [vmem:[%s12234_s2 + $0x10e0] sm:$0xff] }
  0xee   :  { %7911 = vmatprep.subr.bf16.mxu0 %v7910_v55  ;;  %v7964_v55 = vpack.c.bf16 %v1003_v51, %v1000_v50  ;;  %7963 = vmatprep.subr.bf16.mxu1 %v7962_v49  ;;  %v1033_v49 = vld [vmem:[%s12234_s2 + $0x1110] sm:$0xff]  ;;  %v1037_v51 = vld [vmem:[%s12234_s2 + $0x1148] sm:$0xff] }
  0xef   :  { %v7984_v50 = vpack.c.bf16 %v1033_v49, %v1030_v48  ;;  %v7986_v53 = vpack.c.bf16 %v1040_v52, %v1037_v51  ;;  %v963_v51 = vld [vmem:[%s12234_s2 + $0xca0] sm:$0xff] }
  0xf1   :  { %7913 = vmatpush1.bf16.msra.mxu0 %v7912_v2  ;;  %7965 = vmatpush1.bf16.msra.mxu1 %v7964_v55  ;;  %v9818_v2 = vpop.permute.xlu1 %895  ;;  %v1039_v55 = vld [vmem:[%s12234_s2 + $0x1170] sm:$0xff] }
  0xf2   :  { %7915 = vmatprep.subr.bf16.mxu0 %v7914_v3  ;;  %7967 = vmatprep.subr.bf16.mxu1 %v7966_v56  ;;  %v851_v3 = vpop.permute.xlu0 %850 }
  0xf5   :  { %7917 = vmatpush1.bf16.msra.mxu0 %v7916_v18  ;;  %7969 = vmatpush1.bf16.msra.mxu1 %v7968_v61  ;;  %v9820_v4 = vpop.permute.xlu1 %919  ;;  %v1045_v61 = vld [vmem:[%s12234_s2 + $0x11d0] sm:$0xff] }
  0xf6   :  { %7919 = vmatprep.subr.bf16.mxu0 %v7918_v19  ;;  %7971 = vmatprep.subr.bf16.mxu1 %v7970_v62  ;;  %v872_v5 = vpop.permute.xlu0 %871  ;;  %v7992_v62 = vpack.c.bf16 %v1045_v61, %v1042_v23  ;;  %v969_v23 = vld [vmem:[%s12234_s2 + $0xd00] sm:$0xff] }
  0xf7   :  { %v1023_v61 = vld [vmem:[%s12234_s2 + $0x1060] sm:$0xff] }
  0xf9   :  { %7921 = vmatpush1.bf16.msra.mxu0 %v7920_v34  ;;  %7973 = vmatpush1.bf16.msra.mxu1 %v7972_v1  ;;  %v856_v10 = vpop.permute.xlu1 %855  ;;  %v1024_v34 = vld [vmem:[%s12234_s2 + $0x1080] sm:$0xff]  ;;  %v7994_v1 = vpack.c.bf16 %v1005_v0, %v1002_v63  ;;  %v972_v0 = vld [vmem:[%s12234_s2 + $0xd30] sm:$0xff] }
  0xfa   :  { %7923 = vmatprep.subr.bf16.mxu0 %v7922_v35  ;;  %v876_v16 = vpop.permute.xlu0 %875  ;;  %v1027_v35 = vld [vmem:[%s12234_s2 + $0x10b0] sm:$0xff] }
  0xfb   :  { %v7980_v41 = vpack.c.bf16 %v1027_v35, %v1024_v34 }
  0xfd   :  { %7925 = vmatpush1.bf16.msra.mxu0 %v7924_v44  ;;  %v1034_v44 = vld [vmem:[%s12234_s2 + $0x1118] sm:$0xff] }
  0xfe   :  { %7927 = vmatprep.subr.bf16.mxu0 %v7926_v45  ;;  %v7982_v47 = vpack.c.bf16 %v1034_v44, %v1031_v43  ;;  %v1008_v43 = vld [vmem:[%s12234_s2 + $0xf70] sm:$0xff]  ;;  %v1011_v44 = vld [vmem:[%s12234_s2 + $0xfa0] sm:$0xff] }
  0xff   :  { %v7998_v48 = vpack.c.bf16 %v1011_v44, %v1008_v43  ;;  %v1259_v43 = vld [vmem:[%s12234_s2 + $0x1380] sm:$0xff]  ;;  %v1260_v44 = vld [vmem:[%s12234_s2 + $0x13b0] sm:$0xff] }
 0x101   :  { %7929 = vmatpush1.bf16.msra.mxu0 %v7928_v54  ;;  %v1036_v54 = vld [vmem:[%s12234_s2 + $0x1140] sm:$0xff] }
 0x102   :  { %v7988_v56 = vpack.c.bf16 %v1039_v55, %v1036_v54  ;;  %v1017_v54 = vld [vmem:[%s12234_s2 + $0x1000] sm:$0xff] }
 0x104   :  { %842 = vmatmul.mubr.f32.vlgmr.msra.gmra.mrb[2].mxu0 %v8794_v25  ;;  %v7974_v25 = vpack.c.bf16 %v1022_v7, %v1019_v6  ;;  %v900_v7 = vpop.permute.xlu1 %899 }
 0x106   :  { %7975 = vmatprep.subr.bf16.mxu1 %v7974_v25 }
 0x107   :  { %7977 = vmatpush1.bf16.msra.mxu1 %v7976_v17 }
 0x108   :  { %7979 = vmatprep.subr.bf16.mxu1 %v7978_v33 }
 0x10b   :  { %7981 = vmatpush1.bf16.msra.mxu1 %v7980_v41 }
 0x10c   :  { %7983 = vmatprep.subr.bf16.mxu1 %v7982_v47 }
 0x10f   :  { %7985 = vmatpush1.bf16.msra.mxu1 %v7984_v50  ;;  %v960_v50 = vld [vmem:[%s12234_s2 + $0xc70] sm:$0xff] }
 0x110   :  { %7987 = vmatprep.subr.bf16.mxu1 %v7986_v53  ;;  %v1014_v53 = vld [vmem:[%s12234_s2 + $0xfd0] sm:$0xff]  ;;  %v8000_v55 = vpack.c.bf16 %v963_v51, %v960_v50 }
 0x111   :  { %v8002_v57 = vpack.c.bf16 %v1017_v54, %v1014_v53  ;;  %v1264_v50 = vld [vmem:[%s12234_s2 + $0x1470] sm:$0xff] }
 0x112   :  { %v1266_v53 = vld [vmem:[%s12234_s2 + $0x14d0] sm:$0xff] }
 0x113   :  { %7989 = vmatpush1.bf16.msra.mxu1 %v7988_v56 }
 0x114   :  { %7991 = vmatprep.subr.bf16.mxu1 %v7990_v60  ;;  %v1020_v60 = vld [vmem:[%s12234_s2 + $0x1030] sm:$0xff] }
 0x115   :  { %v8006_v63 = vpack.c.bf16 %v1023_v61, %v1020_v60 }
 0x117   :  { %7993 = vmatpush1.bf16.msra.mxu1 %v7992_v62  ;;  %v8004_v62 = vpack.c.bf16 %v969_v23, %v966_v58 }
 0x118   :  { %7995 = vmatprep.subr.bf16.mxu1 %v7994_v1  ;;  %v975_v1 = vld [vmem:[%s12234_s2 + $0xd60] sm:$0xff] }
 0x157   :  { %v559_v15 = vpop.f32.mrb[0].mxu0 }
 0x158   :  { %v861_v18 = vrot.slane %v559_v15, %v8889_v8  ;;  %v701_v19 = vpop.f32.mrb[0].mxu1  ;;  %v561_v21 = vpop.f32.mrb[1].mxu0 }
 0x159   :  { %v881_v22 = vrot.slane %v701_v19, %v8889_v8  ;;  %v865_v26 = vrot.slane %v561_v21, %v8889_v8  ;;  %v703_v28 = vpop.f32.mrb[1].mxu1 }
 0x15a   :  { %v866_v59 = vmul.f32 %v861_v18, %v851_v3  ;;  %v885_v31 = vrot.slane %v703_v28, %v8889_v8  ;;  %v868_v32 = vmul.f32 %v861_v18, %v856_v10  ;;  %v924_v18 = vpop.permute.xlu0 %923 }
 0x15b   :  { %v886_v36 = vmul.f32 %v881_v22, %v872_v5  ;;  %v867_v38 = vmul.f32 %v865_v26, %v851_v3  ;;  %v869_v39 = vmul.f32 %v865_v26, %v856_v10  ;;  %v888_v40 = vmul.f32 %v881_v22, %v876_v16  ;;  %v950_v3 = vld [vmem:[%s12236_s1 + $0x20] sm:$0xff] }
 0x15c   :  { %v887_v24 = vmul.f32 %v885_v31, %v872_v5  ;;  %v889_v37 = vmul.f32 %v885_v31, %v876_v16  ;;  %v951_v5 = vld [vmem:[%s12236_s1 + $0x30] sm:$0xff]  ;;  %1202 = vperm.xlu1 %8340, %v950_v3  }
 0x15d   :  { %v890_v42 = vadd.f32 %v886_v36, %v866_v59  ;;  %v892_v20 = vadd.f32 %v888_v40, %v868_v32  ;;  %1207 = vperm.xlu0 %8342, %v951_v5  }
 0x15e   :  { %v891_v45 = vadd.f32 %v887_v24, %v867_v38  ;;  %v893_v46 = vadd.f32 %v889_v37, %v869_v39  ;;  %v954_v37 = vld [vmem:[%s12234_s2 + $0xc10] sm:$0xff] }
 0x160   :  { %8341 = vset.pattern.permute.xlu1 %v12246_v27 }
 0x161   :  { %8344 = vset.pattern.permute.xlu0 %v12240_v11  ;;  %1213 = vperm.xlu1 %8341, %v950_v3  }
 0x162   :  { %1229 = vperm.xlu0 %8344, %v951_v5  }
 0x165   :  { %1217 = vperm.xlu1 %8341, %v951_v5  }
 0x169   :  { %8343 = vset.pattern.permute.xlu1 %v12240_v11 }
 0x16a   :  { %1225 = vperm.xlu1 %8343, %v950_v3  }
 0x16e   :  { %8345 = vset.pattern.permute.xlu1 %v12238_v9 }
 0x16f   :  { %1237 = vperm.xlu1 %8345, %v950_v3   ;;  %v1026_v3 = vld [vmem:[%s12234_s2 + $0x1090] sm:$0xff] }
 0x173   :  { %1241 = vperm.xlu1 %8345, %v951_v5   ;;  %v1029_v5 = vld [vmem:[%s12234_s2 + $0x10c0] sm:$0xff] }
 0x1d7   :  { %v843_v6 = vpop.f32.mrb[2].mxu0 }
 0x1d8   :  { %v905_v10 = vrot.slane %v843_v6, %v8889_v8  ;;  %v845_v25 = vpop.f32.mrb[3].mxu0  ;;  %v8008_v6 = vpack.c.bf16 %v975_v1, %v972_v0 }
 0x1d9   :  { %v909_v12 = vrot.slane %v845_v25, %v8889_v8  ;;  %v981_v25 = vld [vmem:[%s12234_s2 + $0xdc0] sm:$0xff] }
 0x1da   :  { %v910_v13 = vmul.f32 %v905_v10, %v9818_v2  ;;  %v912_v15 = vmul.f32 %v905_v10, %v900_v7  ;;  %v978_v10 = vld [vmem:[%s12234_s2 + $0xd90] sm:$0xff] }
 0x1db   :  { %v911_v16 = vmul.f32 %v909_v12, %v9818_v2  ;;  %v913_v17 = vmul.f32 %v909_v12, %v900_v7  ;;  %v8010_v7 = vpack.c.bf16 %v1029_v5, %v1026_v3  ;;  %v1032_v12 = vld [vmem:[%s12234_s2 + $0x10f0] sm:$0xff] }
 0x1dc   :  { %v914_v19 = vadd.f32 %v910_v13, %v890_v42  ;;  %v916_v21 = vadd.f32 %v912_v15, %v892_v20  ;;  %v1035_v13 = vld [vmem:[%s12234_s2 + $0x1120] sm:$0xff]  ;;  %v8012_v15 = vpack.c.bf16 %v981_v25, %v978_v10  ;;  %v1208_v61 = vpop.permute.xlu0 %1207 }
 0x1dd   :  { %v915_v22 = vadd.f32 %v911_v16, %v891_v45  ;;  %v917_v26 = vadd.f32 %v913_v17, %v893_v46  ;;  %v8014_v16 = vpack.c.bf16 %v1035_v13, %v1032_v12  ;;  %v984_v17 = vld [vmem:[%s12234_s2 + $0xdf0] sm:$0xff] }
 0x1de   :  { %v926_v28 = vadd.f32 %v9820_v4, %v914_v19  ;;  %v928_v29 = vadd.f32 %v924_v18, %v916_v21  ;;  %v1038_v19 = vld [vmem:[%s12234_s2 + $0x1150] sm:$0xff]  ;;  %v1041_v21 = vld [vmem:[%s12234_s2 + $0x1180] sm:$0xff] }
 0x1df   :  { %v929_v30 = vadd.f32 %v924_v18, %v917_v26  ;;  %v927_v59 = vadd.f32 %v9820_v4, %v915_v22  ;;  %v957_v4 = vld [vmem:[%s12234_s2 + $0xc40] sm:$0xff]  ;;  %v8018_v26 = vpack.c.bf16 %v1041_v21, %v1038_v19 }
 0x1e0   :  { %v930_v31 = vadd.f32 3.0, %v926_v28  ;;  %v932_v32 = vadd.f32 3.0, %v928_v29  ;;  %v7996_v46 = vpack.c.bf16 %v957_v4, %v954_v37  ;;  %v987_v18 = vld [vmem:[%s12234_s2 + $0xe20] sm:$0xff]  ;;  %v1256_v37 = vld [vmem:[%s12234_s2 + $0x12f0] sm:$0xff] }
 0x1e1   :  { %v933_v8 = vadd.f32 3.0, %v929_v30  ;;  %v931_v33 = vadd.f32 3.0, %v927_v59  ;;  %v8016_v22 = vpack.c.bf16 %v987_v18, %v984_v17  ;;  %v1230_v18 = vpop.permute.xlu0 %1229 }
 0x1e2   :  { %v934_v34 = vmax.f32 %v930_v31, 0.0  ;;  %v936_v35 = vmax.f32 %v932_v32, 0.0 }
 0x1e3   :  { %v937_v36 = vmax.f32 %v933_v8, 0.0  ;;  %v935_v2 = vmax.f32 %v931_v33, 0.0  ;;  %v996_v8 = vld [vmem:[%s12234_s2 + $0xeb0] sm:$0xff]  ;;  %v999_v33 = vld [vmem:[%s12234_s2 + $0xee0] sm:$0xff] }
 0x1e4   :  { %v938_v38 = vmin.f32 %v934_v34, 6.0  ;;  %v940_v41 = vmin.f32 %v936_v35, 6.0  ;;  %v8024_v34 = vpack.c.bf16 %v999_v33, %v996_v8  ;;  %v1251_v35 = vld [vmem:[%s12234_s2 + $0x1200] sm:$0xff]  ;;  %v12248_v8 = vmov 0.0  }
 0x1e5   :  { %v939_v39 = vmin.f32 %v935_v2, 6.0  ;;  %v941_v40 = vmin.f32 %v937_v36, 6.0  ;;  %v1252_v36 = vld [vmem:[%s12234_s2 + $0x1230] sm:$0xff]  ;;  %v1253_v2 = vld [vmem:[%s12234_s2 + $0x1260] sm:$0xff]  ;;  %7089 = vmatprep.mubr.msk.f32.mxu0 %vm8446_vm0, %v12248_v8 }
 0x1e6   :  { %v942_v24 = vmul.f32 0.16666667, %v938_v38  ;;  %v944_v49 = vmul.f32 0.16666667, %v940_v41  ;;  %v8026_v38 = vpack.c.bf16 %v1252_v36, %v1251_v35  ;;  %v1257_v41 = vld [vmem:[%s12234_s2 + $0x1320] sm:$0xff]  ;;  %v1603_v35 = vld [vmem:[%s12236_s1 + $0x70] sm:$0xff] }
 0x1e7   :  { %v943_v42 = vmul.f32 0.16666667, %v939_v39  ;;  %v945_v20 = vmul.f32 0.16666667, %v941_v40  ;;  %v1254_v39 = vld [vmem:[%s12234_s2 + $0x1290] sm:$0xff]  ;;  %v1248_v33 = vld [vmem:[%s12236_s1 + $0x40] sm:$0xff] }
 0x1e8   :  { %v9920_v47 = vmul.f32 %v942_v24, %v926_v28  ;;  %v948_v56 = vmul.f32 %v944_v49, %v928_v29  ;;  %v990_v28 = vld [vmem:[%s12234_s2 + $0xe50] sm:$0xff]  ;;  %v993_v29 = vld [vmem:[%s12234_s2 + $0xe80] sm:$0xff]  ;;  %v8030_v40 = vpack.c.bf16 %v1254_v39, %v1253_v2 }
 0x1e9   :  { %v947_v45 = vmul.f32 %v943_v42, %v927_v59  ;;  %v949_v52 = vmul.f32 %v945_v20, %v929_v30  ;;  %v1044_v30 = vld [vmem:[%s12234_s2 + $0x11b0] sm:$0xff]  ;;  %v1047_v59 = vld [vmem:[%s12234_s2 + $0x11e0] sm:$0xff]  ;;  %v8020_v31 = vpack.c.bf16 %v993_v29, %v990_v28 }
 0x1ea   :  { %v8022_v32 = vpack.c.bf16 %v1047_v59, %v1044_v30  ;;  %v1255_v24 = vld [vmem:[%s12234_s2 + $0x12c0] sm:$0xff]  ;;  %v1258_v42 = vld [vmem:[%s12234_s2 + $0x1350] sm:$0xff] }
 0x1eb   :  { %1112 = vmatprep.mubr.f32.mxu1 %v947_v45  ;;  %v8034_v4 = vpack.c.bf16 %v1256_v37, %v1255_v24  ;;  %v8038_v20 = vpack.c.bf16 %v1258_v42, %v1257_v41  ;;  %v1263_v49 = vld [vmem:[%s12234_s2 + $0x1440] sm:$0xff]  ;;  %v10072_v36 = vld [vmem:[%s12236_s1 + $0x90] sm:$0xff]  ;;  %v8449_v42 = vmov 8  }
 0x1ec   :  { %1113 = vmatmul.mubr.f32.vlgmr.msra.gmra.mrb[2].mxu1 %v9920_v47  ;;  %v8050_v51 = vpack.c.bf16 %v1264_v50, %v1263_v49  ;;  %v10078_v2 = vld [vmem:[%s12236_s1 + $0xb0] sm:$0xff]  ;;  %8347 = vset.pattern.permute.xlu1 %v8449_v42 }
 0x1ed   :  { %7997 = vmatpush3.bf16.msra.mxu1 %v7996_v46  ;;  %1118 = vmatprep.mubr.f32.mxu1 %v949_v52  ;;  %v1261_v46 = vld [vmem:[%s12234_s2 + $0x13e0] sm:$0xff]  ;;  %v10090_v39 = vld [vmem:[%s12236_s1 + $0xf0] sm:$0xff] }
 0x1ee   :  { %7999 = vmatprep.subr.bf16.mxu1 %v7998_v48  ;;  %v1249_v41 = vld [vmem:[%s12236_s1 + $0x50] sm:$0xff] }
 0x1ef   :  { %1423 = vperm.xlu1 %8347, %v1249_v41   ;;  %v1906_v42 = vld [vmem:[%s12234_s2 + $0x1650] sm:$0xff] }
 0x1f0   :  { %1119 = vmatmul.mubr.f32.gmra.mrb[4].mxu1 %v948_v56 }
 0x1f1   :  { %8001 = vmatpush3.bf16.msra.mxu1 %v8000_v55  ;;  %1189 = vmatprep.mubr.f32.mxu1 %v947_v45  ;;  %v8042_v45 = vpack.c.bf16 %v1260_v44, %v1259_v43  ;;  %v1203_v55 = vpop.permute.xlu1 %1202 }
 0x1f2   :  { %8003 = vmatprep.subr.bf16.mxu1 %v8002_v57 }
 0x1f5   :  { %8005 = vmatpush3.bf16.msra.mxu1 %v8004_v62 }
 0x1f6   :  { %8007 = vmatprep.subr.bf16.mxu1 %v8006_v63 }
 0x1f9   :  { %8009 = vmatpush3.bf16.msra.mxu1 %v8008_v6 }
 0x1fa   :  { %8011 = vmatprep.subr.bf16.mxu1 %v8010_v7 }
 0x1fd   :  { %8013 = vmatpush3.bf16.msra.mxu1 %v8012_v15 }
 0x1fe   :  { %8015 = vmatprep.subr.bf16.mxu1 %v8014_v16 }
 0x201   :  { %8017 = vmatpush3.bf16.msra.mxu1 %v8016_v22 }
 0x202   :  { %8019 = vmatprep.subr.bf16.mxu1 %v8018_v26 }
 0x205   :  { %8021 = vmatpush3.bf16.msra.mxu1 %v8020_v31 }
 0x206   :  { %8023 = vmatprep.subr.bf16.mxu1 %v8022_v32  ;;  %v12250_v32 = vmov 0.0|0.0  }
 0x207   :  { %8058 = vmatprep.subr.bf16.mxu0 %v12250_v32 }
 0x209   :  { %8025 = vmatpush3.bf16.msra.mxu1 %v8024_v34  ;;  %v8448_v34 = vmov 16  }
 0x20a   :  { %8027 = vmatprep.subr.bf16.mxu1 %v8026_v38  ;;  %8346 = vset.pattern.permute.xlu0 %v8448_v34 }
 0x20b   :  { %1344 = vperm.xlu0 %8346, %v1248_v33  }
 0x20c   :  { %1190 = vmatmul.mubr.f32.vlgmr.msra.gmra.mrb[6].mxu1 %v9920_v47  ;;  %v1262_v47 = vld [vmem:[%s12234_s2 + $0x1410] sm:$0xff] }
 0x20d   :  { %1194 = vmatprep.mubr.f32.mxu1 %v949_v52  ;;  %8029 = vmatpush3.bf16.msra.mxu1 %v8026_v38  ;;  %v8046_v48 = vpack.c.bf16 %v1262_v47, %v1261_v46  ;;  %v1265_v52 = vld [vmem:[%s12234_s2 + $0x14a0] sm:$0xff]  ;;  %v10084_v38 = vld [vmem:[%s12236_s1 + $0xd0] sm:$0xff] }
 0x20e   :  { %8031 = vmatprep.subr.bf16.mxu1 %v8030_v40  ;;  %v8054_v54 = vpack.c.bf16 %v1266_v53, %v1265_v52 }
 0x20f   :  { %1607 = vperm.xlu0 %8346, %v1603_v35  }
 0x210   :  { %1195 = vmatmul.mubr.f32.gmra.mrb[8].mxu1 %v948_v56  ;;  %v1214_v56 = vpop.permute.xlu1 %1213 }
 0x211   :  { %8033 = vmatpush3.bf16.msra.mxu1 %v8030_v40  ;;  %v10096_v40 = vld [vmem:[%s12236_s1 + $0x110] sm:$0xff] }
 0x212   :  { %8035 = vmatprep.subr.bf16.mxu1 %v8034_v4 }
 0x213   :  { %1705 = vperm.xlu0 %8346, %v10072_v36  }
 0x214   :  { %v1218_v62 = vpop.permute.xlu1 %1217 }
 0x215   :  { %8037 = vmatpush3.bf16.msra.mxu1 %v8034_v4 }
 0x216   :  { %8039 = vmatprep.subr.bf16.mxu1 %v8038_v20 }
 0x217   :  { %1715 = vperm.xlu0 %8346, %v10078_v2  }
 0x218   :  { %v1226_v7 = vpop.permute.xlu1 %1225 }
 0x219   :  { %8041 = vmatpush3.bf16.msra.mxu1 %v8038_v20  ;;  %v1250_v20 = vld [vmem:[%s12236_s1 + $0x60] sm:$0xff] }
 0x21a   :  { %8043 = vmatprep.subr.bf16.mxu1 %v8042_v45  ;;  %1428 = vperm.xlu1 %8347, %v1250_v20  }
 0x21b   :  { %1725 = vperm.xlu0 %8346, %v10084_v38  }
 0x21c   :  { %v1238_v15 = vpop.permute.xlu1 %1237 }
 0x21d   :  { %8045 = vmatpush3.bf16.msra.mxu1 %v8042_v45 }
 0x21e   :  { %8047 = vmatprep.subr.bf16.mxu1 %v8046_v48  ;;  %8348 = vset.pattern.permute.xlu1 %v8448_v34  ;;  %v1902_v34 = vld [vmem:[%s12234_s2 + $0x15f0] sm:$0xff] }
 0x21f   :  { %1735 = vperm.xlu0 %8346, %v10090_v39  }
 0x220   :  { %v1242_v30 = vpop.permute.xlu1 %1241 }
 0x221   :  { %8049 = vmatpush3.bf16.msra.mxu1 %v8046_v48  ;;  %v1519_v48 = vld [vmem:[%s12234_s2 + $0x1500] sm:$0xff] }
 0x222   :  { %8051 = vmatprep.subr.bf16.mxu1 %v8050_v51 }
 0x223   :  { %1745 = vperm.xlu0 %8346, %v10096_v40  }
 0x225   :  { %8053 = vmatpush3.bf16.msra.mxu1 %v8050_v51 }
 0x226   :  { %8055 = vmatprep.subr.bf16.mxu1 %v8054_v54 }
 0x227   :  { %8350 = vset.pattern.permute.xlu0 %v12246_v27 }
 0x229   :  { %8057 = vmatpush3.bf16.msra.mxu1 %v8054_v54 }
 0x26e   :  { %v1424_v49 = vpop.permute.xlu1 %1423 }
 0x28a   :  { %v1345_v43 = vpop.permute.xlu0 %1344 }
 0x299   :  { %v1429_v50 = vpop.permute.xlu1 %1428 }
 0x2bf   :  { %v1114_v57 = vpop.f32.mrb[2].mxu1 }
 0x2c0   :  { %v1210_v58 = vmul.f32 %v1203_v55, %v1114_v57  ;;  %v1116_v23 = vpop.f32.mrb[3].mxu1 }
 0x2c1   :  { %v1220_v60 = vmul.f32 %v1214_v56, %v1116_v23 }
 0x2c3   :  { %v1222_v63 = vadd.f32 %v1220_v60, %v1210_v58  ;;  %v1120_v0 = vpop.f32.mrb[4].mxu1 }
 0x2c4   :  { %v1211_v1 = vmul.f32 %v1208_v61, %v1120_v0  ;;  %v1122_v3 = vpop.f32.mrb[5].mxu1  ;;  %v10124_v0 = vld [vmem:[%s12236_s1 + $0xa0] sm:$0xff] }
 0x2c5   :  { %v1221_v5 = vmul.f32 %v1218_v62, %v1122_v3  ;;  %v10136_v3 = vld [vmem:[%s12236_s1 + $0xe0] sm:$0xff] }
 0x2c7   :  { %v1223_v6 = vadd.f32 %v1221_v5, %v1211_v1  ;;  %v10130_v1 = vld [vmem:[%s12236_s1 + $0xc0] sm:$0xff] }
 0x2c8   :  { %v10142_v5 = vld [vmem:[%s12236_s1 + $0x100] sm:$0xff] }
 0x2df   :  { %v6784_v10 = vpop.f32.mrb[6].mxu1 }
 0x2e0   :  { %v6785_v25 = vpop.f32.mrb[7].mxu1 }
 0x2e1   :  { %v6786_v12 = vadd.f32 %v6785_v25, %v6784_v10 }
 0x2e3   :  { %v1232_v13 = vmul.f32 %v6786_v12, %v1226_v7  ;;  %v6787_v16 = vpop.f32.mrb[8].mxu1 }
 0x2e4   :  { %v6788_v17 = vpop.f32.mrb[9].mxu1 }
 0x2e5   :  { %v1234_v19 = vadd.f32 %v1232_v13, %v1222_v63  ;;  %v6789_v21 = vadd.f32 %v6788_v17, %v6787_v16  ;;  %v1604_v63 = vld [vmem:[%s12236_s1 + $0x80] sm:$0xff]  ;;  %v1895_v13 = vld [vmem:[%s12234_s2 + $0x1538] sm:$0xff]  ;;  %v1894_v16 = vld [vmem:[%s12234_s2 + $0x1530] sm:$0xff] }
 0x2e6   :  { %1612 = vperm.xlu1 %8348, %v1604_v63  }
 0x2e7   :  { %v10050_v22 = vadd.f32 %v1238_v15, %v1234_v19  ;;  %v1233_v26 = vmul.f32 %v6789_v21, %v1230_v18  ;;  %v1897_v15 = vld [vmem:[%s12234_s2 + $0x1568] sm:$0xff]  ;;  %v1896_v18 = vld [vmem:[%s12234_s2 + $0x1560] sm:$0xff]  ;;  %v1899_v19 = vld [vmem:[%s12234_s2 + $0x1598] sm:$0xff] }
 0x2e8   :  { %v8068_v17 = vpack.c.bf16 %v1897_v15, %v1895_v13  ;;  %v1901_v21 = vld [vmem:[%s12234_s2 + $0x15c8] sm:$0xff]  ;;  %v1889_v13 = vld [vmem:[%s12236_s1 + $0x160] sm:$0xff]  ;;  %v1888_v15 = vld [vmem:[%s12236_s1 + $0x150] sm:$0xff] }
 0x2e9   :  { %v1246_v28 = vmax.f32 %v10050_v22, 0.0  ;;  %v1235_v29 = vadd.f32 %v1233_v26, %v1223_v6  ;;  %v8070_v22 = vpack.c.bf16 %v1896_v18, %v1894_v16  ;;  %v8072_v26 = vpack.c.bf16 %v1901_v21, %v1899_v19  ;;  %v1891_v16 = vld [vmem:[%s12236_s1 + $0x180] sm:$0xff]  ;;  %v1892_v19 = vld [vmem:[%s12236_s1 + $0x190] sm:$0xff] }
 0x2ea   :  { %1710 = vperm.xlu1 %8348, %v10124_v0   ;;  %v10309_v18 = vld [vmem:[%s12236_s1 + $0x1a0] sm:$0xff] }
 0x2eb   :  { %v10053_v59 = vadd.f32 %v1242_v30, %v1235_v29  ;;  %7082 = vmatprep.mubr.f32.mxu1 %v1246_v28  ;;  %v1900_v29 = vld [vmem:[%s12234_s2 + $0x15c0] sm:$0xff]  ;;  %v1903_v30 = vld [vmem:[%s12234_s2 + $0x15f8] sm:$0xff] }
 0x2ed   :  { %v1247_v31 = vmax.f32 %v10053_v59, 0.0  ;;  %v1905_v59 = vld [vmem:[%s12234_s2 + $0x1628] sm:$0xff] }
 0x2ee   :  { %1720 = vperm.xlu1 %8348, %v10130_v1  }
 0x2ef   :  { %7083 = vmatmul.mubr.f32.vlgmr.msra.gmra.mrb[10].mxu1 %v1247_v31 }
 0x2f0   :  { %7094 = vmatprep.mubr.msk.f32.mxu1 %vm1431_vm2, %v1249_v41 }
 0x2f2   :  { %1730 = vperm.xlu1 %8348, %v10136_v3  }
 0x2f6   :  { %1740 = vperm.xlu1 %8348, %v10142_v5  }
 0x2fa   :  { %8349 = vset.pattern.permute.xlu1 %v12246_v27 }
 0x3c2   :  { %v7084_v24 = vpop.f32.mrb[10].mxu1 }
 0x3c3   :  { %v1333_v37 = vpop.f32.mrb[11].mxu1 }
 0x3c4   :  { %v8059_v4 = vpack.c.bf16 %v7084_v24, %v1333_v37  ;;  %v1907_v24 = vld [vmem:[%s12234_s2 + $0x1658] sm:$0xff]  ;;  %v1909_v37 = vld [vmem:[%s12234_s2 + $0x1688] sm:$0xff] }
 0x3c5   :  { %v8080_v41 = vpack.c.bf16 %v1909_v37, %v1907_v24 }
 0x3c6   :  { %8060 = vmatpush3.bf16.msra.mxu0 %v8059_v4 }
 0x3c7   :  { %7097 = vmatprep.subr.mxu0 %v1519_v48 }
 0x3c9   :  { %7090 = vmatmul.mubr.msk.f32.vlgmr.msra.gmra.mrb[4].mxu0 %vm1347_vm1, %v1248_v33  ;;  %v8076_v33 = vpack.c.bf16 %v1905_v59, %v1903_v30 }
 0x3ca   :  { %7098 = vmatpush3.msra.mxu0 %v1519_v48  ;;  %v1912_v48 = vld [vmem:[%s12234_s2 + $0x16e0] sm:$0xff] }
 0x3cb   :  { %8065 = vmatprep.subr.bf16.mxu0 %v12250_v32 }
 0x49c   :  { %v1416_v44 = vpop.f32.mrb[4].mxu0 }
 0x49d   :  { %v1417_v45 = vadd.f32 %v1416_v44, %v1345_v43  ;;  %v7091_v46 = vpop.f32.mrb[5].mxu0  ;;  %v1911_v43 = vld [vmem:[%s12234_s2 + $0x16b8] sm:$0xff]  ;;  %v1913_v44 = vld [vmem:[%s12234_s2 + $0x16e8] sm:$0xff] }
 0x49e   :  { %v8084_v46 = vpack.c.bf16 %v1913_v44, %v1911_v43 }
 0x49f   :  { %v1420_v47 = vmax.f32 %v1417_v45, 0.0 }
 0x4a1   :  { %7092 = vmatprep.subr.mxu1 %v1420_v47 }
 0x4a2   :  { %7093 = vmatpush3.msra.mxu1 %v1420_v47  ;;  %v1910_v47 = vld [vmem:[%s12234_s2 + $0x16b0] sm:$0xff] }
 0x4a3   :  { %7095 = vmatmul.mubr.msk.f32.vlgmr.msra.gmra.mrb[12].mxu1 %vm1431_vm2, %v1250_v20  ;;  %v1908_v20 = vld [vmem:[%s12234_s2 + $0x1680] sm:$0xff] }
 0x4a4   :  { %7106 = vmatprep.mubr.msk.f32.mxu1 %vm1347_vm1, %v1603_v35  ;;  %v1904_v35 = vld [vmem:[%s12234_s2 + $0x1620] sm:$0xff]  ;;  %v8082_v45 = vpack.c.bf16 %v1908_v20, %v1906_v42 }
 0x4a5   :  { %v8078_v4 = vpack.c.bf16 %v1904_v35, %v1902_v34 }
 0x576   :  { %v7096_v51 = vpop.f32.mrb[12].mxu1 }
 0x577   :  { %v1508_v52 = vadd.f32 %v7096_v51, %v1429_v50  ;;  %v1502_v53 = vpop.f32.mrb[13].mxu1  ;;  %v1917_v50 = vld [vmem:[%s12234_s2 + $0x1748] sm:$0xff]  ;;  %v8086_v51 = vpack.c.bf16 %v1912_v48, %v1910_v47 }
 0x578   :  { %v1503_v54 = vadd.f32 %v1502_v53, %v1424_v49  ;;  %v1915_v49 = vld [vmem:[%s12234_s2 + $0x1718] sm:$0xff]  ;;  %v1914_v53 = vld [vmem:[%s12234_s2 + $0x1710] sm:$0xff] }
 0x579   :  { %v1512_v55 = vadd.f32 3.0, %v1508_v52  ;;  %v8088_v52 = vpack.c.bf16 %v1917_v50, %v1915_v49 }
 0x57a   :  { %v1511_v56 = vadd.f32 3.0, %v1503_v54  ;;  %v1916_v54 = vld [vmem:[%s12234_s2 + $0x1740] sm:$0xff] }
 0x57b   :  { %v1514_v57 = vmax.f32 %v1512_v55, 0.0  ;;  %v1919_v55 = vld [vmem:[%s12234_s2 + $0x1778] sm:$0xff] }
 0x57c   :  { %v1513_v58 = vmax.f32 %v1511_v56, 0.0  ;;  %v1921_v56 = vld [vmem:[%s12234_s2 + $0x17a8] sm:$0xff] }
 0x57d   :  { %v1516_v23 = vmin.f32 %v1514_v57, 6.0  ;;  %v8090_v57 = vpack.c.bf16 %v1916_v54, %v1914_v53 }
 0x57e   :  { %v1515_v60 = vmin.f32 %v1513_v58, 6.0  ;;  %v8092_v58 = vpack.c.bf16 %v1921_v56, %v1919_v55 }
 0x57f   :  { %v1518_v62 = vmul.f32 0.16666667, %v1516_v23  ;;  %v1918_v23 = vld [vmem:[%s12234_s2 + $0x1770] sm:$0xff] }
 0x580   :  { %v1517_v61 = vmul.f32 0.16666667, %v1515_v60  ;;  %v1920_v60 = vld [vmem:[%s12234_s2 + $0x17a0] sm:$0xff] }
 0x582   :  { %7099 = vmatprep.mubr.msk.f32.mxu0 %vm1431_vm2, %v1517_v61  ;;  %v8094_v61 = vpack.c.bf16 %v1920_v60, %v1918_v23 }
 0x583   :  { %7100 = vmatmul.mubr.msk.f32.vlgmr.msra.gmra.mrb[6].mxu0 %vm1431_vm2, %v1518_v62  ;;  %v1613_v62 = vpop.permute.xlu1 %1612 }
 0x584   :  { %7113 = vmatprep.mubr.msk.f32.mxu0 %vm8446_vm0, %v12248_v8 }
 0x587   :  { %v1711_v30 = vpop.permute.xlu1 %1710 }
 0x58b   :  { %v1721_v42 = vpop.permute.xlu1 %1720 }
 0x656   :  { %v7101_v6 = vpop.f32.mrb[6].mxu0 }
 0x657   :  { %v1602_v7 = vmul.f32 %v7101_v6, %v1247_v31  ;;  %v1592_v10 = vpop.f32.mrb[7].mxu0  ;;  %v1608_v6 = vpop.permute.xlu0 %1607 }
 0x658   :  { %v1601_v25 = vmul.f32 %v1592_v10, %v1246_v28  ;;  %v1898_v28 = vld [vmem:[%s12234_s2 + $0x1590] sm:$0xff] }
 0x659   :  { %v8074_v31 = vpack.c.bf16 %v1900_v29, %v1898_v28 }
 0x65a   :  { %v8061_v12 = vpack.c.bf16 %v1602_v7, %v1601_v25 }
 0x65b   :  { %v1706_v21 = vpop.permute.xlu0 %1705 }
 0x65c   :  { %8062 = vmatprep.subr.bf16.mxu1 %v8061_v12 }
 0x65d   :  { %8064 = vmatpush3.bf16.msra.mxu1 %v8061_v12 }
 0x65e   :  { %8069 = vmatprep.subr.bf16.mxu1 %v8068_v17  ;;  %v1890_v17 = vld [vmem:[%s12236_s1 + $0x170] sm:$0xff] }
 0x65f   :  { %v1716_v35 = vpop.permute.xlu0 %1715 }
 0x660   :  { %7107 = vmatmul.mubr.msk.f32.vlgmr.msra.gmra.mrb[14].mxu1 %vm1347_vm1, %v1604_v63 }
 0x661   :  { %1990 = vmatprep.mubr.f32.mxu1 %v12248_v8  ;;  %8071 = vmatpush1.bf16.msra.mxu1 %v8070_v22 }
 0x662   :  { %8073 = vmatprep.subr.bf16.mxu1 %v8072_v26 }
 0x665   :  { %8075 = vmatpush1.bf16.msra.mxu1 %v8074_v31 }
 0x666   :  { %8077 = vmatprep.subr.bf16.mxu1 %v8076_v33 }
 0x669   :  { %8079 = vmatpush1.bf16.msra.mxu1 %v8078_v4 }
 0x66a   :  { %8081 = vmatprep.subr.bf16.mxu1 %v8080_v41 }
 0x66d   :  { %8083 = vmatpush1.bf16.msra.mxu1 %v8082_v45 }
 0x66e   :  { %8085 = vmatprep.subr.bf16.mxu1 %v8084_v46  ;;  %v1726_v46 = vpop.permute.xlu0 %1725 }
 0x671   :  { %8087 = vmatpush1.bf16.msra.mxu1 %v8086_v51  ;;  %v1731_v51 = vpop.permute.xlu1 %1730 }
 0x672   :  { %8089 = vmatprep.subr.bf16.mxu1 %v8088_v52  ;;  %v1736_v56 = vpop.permute.xlu0 %1735 }
 0x675   :  { %8091 = vmatpush1.bf16.msra.mxu1 %v8090_v57 }
 0x676   :  { %8093 = vmatprep.subr.bf16.mxu1 %v8092_v58 }
 0x679   :  { %8095 = vmatpush1.bf16.msra.mxu1 %v8094_v61  ;;  %v1741_v61 = vpop.permute.xlu1 %1740 }
 0x733   :  { %v7108_v63 = vpop.f32.mrb[14].mxu1 }
 0x734   :  { %v1691_v7 = vadd.f32 %v7108_v63, %v1613_v62  ;;  %v1685_v10 = vpop.f32.mrb[15].mxu1 }
 0x735   :  { %v1686_v25 = vadd.f32 %v1685_v10, %v1608_v6  ;;  %v1746_v10 = vpop.permute.xlu0 %1745 }
 0x737   :  { %v8066_v12 = vpack.c.bf16 %v1691_v7, %v1686_v25 }
 0x739   :  { %8067 = vmatpush3.bf16.msra.mxu0 %v8066_v12 }
 0x73a   :  { %8100 = vmatprep.subr.bf16.mxu0 %v12250_v32 }
 0x73c   :  { %7114 = vmatmul.mubr.msk.f32.vlgmr.msra.gmra.mrb[8].mxu0 %vm1347_vm1, %v10072_v36  ;;  %v1923_v36 = vld [vmem:[%s12234_s2 + $0x17d8] sm:$0xff] }
 0x73d   :  { %7116 = vmatprep.mubr.msk.f32.mxu0 %vm8446_vm0, %v12248_v8 }
 0x740   :  { %7117 = vmatmul.mubr.msk.f32.gmra.mrb[10].mxu0 %vm1347_vm1, %v10124_v0 }
 0x741   :  { %7119 = vmatprep.mubr.msk.f32.mxu0 %vm8446_vm0, %v12248_v8 }
 0x744   :  { %7120 = vmatmul.mubr.msk.f32.gmra.mrb[12].mxu0 %vm1347_vm1, %v10078_v2  ;;  %v1925_v2 = vld [vmem:[%s12234_s2 + $0x1808] sm:$0xff] }
 0x745   :  { %7122 = vmatprep.mubr.msk.f32.mxu0 %vm8446_vm0, %v12248_v8 }
 0x748   :  { %7123 = vmatmul.mubr.msk.f32.gmra.mrb[14].mxu0 %vm1347_vm1, %v10130_v1  ;;  %v1885_v1 = vld [vmem:[%s12236_s1 + $0x120] sm:$0xff] }
 0x749   :  { %7125 = vmatprep.mubr.msk.f32.mxu0 %vm8446_vm0, %v12248_v8  ;;  %2100 = vperm.xlu1 %8349, %v1885_v1  }
 0x74c   :  { %7126 = vmatmul.mubr.msk.f32.gmra.mrb[16].mxu0 %vm1347_vm1, %v10084_v38  ;;  %v8096_v38 = vpack.c.bf16 %v1925_v2, %v1923_v36 }
 0x74d   :  { %7128 = vmatprep.mubr.msk.f32.mxu0 %vm8446_vm0, %v12248_v8 }
 0x74e   :  { %8097 = vmatprep.subr.bf16.mxu1 %v8096_v38 }
 0x750   :  { %7129 = vmatmul.mubr.msk.f32.gmra.mrb[18].mxu0 %vm1347_vm1, %v10136_v3  ;;  %v1886_v3 = vld [vmem:[%s12236_s1 + $0x130] sm:$0xff] }
 0x751   :  { %7131 = vmatprep.mubr.msk.f32.mxu0 %vm8446_vm0, %v12248_v8  ;;  %2104 = vperm.xlu0 %8350, %v1886_v3  }
 0x754   :  { %7132 = vmatmul.mubr.msk.f32.gmra.mrb[20].mxu0 %vm1347_vm1, %v10090_v39  ;;  %v1922_v39 = vld [vmem:[%s12234_s2 + $0x17d0] sm:$0xff] }
 0x755   :  { %7134 = vmatprep.mubr.msk.f32.mxu0 %vm8446_vm0, %v12248_v8  ;;  %2116 = vperm.xlu0 %8350, %v1889_v13  }
 0x758   :  { %7135 = vmatmul.mubr.msk.f32.gmra.mrb[22].mxu0 %vm1347_vm1, %v10142_v5  ;;  %v1887_v5 = vld [vmem:[%s12236_s1 + $0x140] sm:$0xff] }
 0x759   :  { %7137 = vmatprep.mubr.msk.f32.mxu0 %vm8446_vm0, %v12248_v8  ;;  %2108 = vperm.xlu1 %8349, %v1887_v5  }
 0x75a   :  { %2124 = vperm.xlu0 %8350, %v1891_v16  }
 0x75c   :  { %7138 = vmatmul.mubr.msk.f32.gmra.mrb[24].mxu0 %vm1347_vm1, %v10096_v40  ;;  %v1924_v40 = vld [vmem:[%s12234_s2 + $0x1800] sm:$0xff] }
 0x75d   :  { %7158 = vmatprep.mubr.msk.f32.mxu0 %vm8446_vm0, %v12248_v8  ;;  %v8098_v0 = vpack.c.bf16 %v1924_v40, %v1922_v39  ;;  %2112 = vperm.xlu1 %8349, %v1888_v15  }
 0x75e   :  { %2132 = vperm.xlu0 %8350, %v10309_v18  }
 0x75f   :  { %8099 = vmatpush1.bf16.msra.mxu1 %v8098_v0 }
 0x761   :  { %2120 = vperm.xlu1 %8349, %v1890_v17  }
 0x762   :  { %8356 = vset.pattern.permute.xlu0 %v12238_v9 }
 0x763   :  { %2248 = vperm.xlu0 %8356, %v1886_v3  }
 0x765   :  { %2128 = vperm.xlu1 %8349, %v1892_v19  }
 0x767   :  { %2256 = vperm.xlu0 %8356, %v1888_v15  }
 0x769   :  { %8351 = vset.pattern.permute.xlu1 %v12242_v14 }
 0x76a   :  { %2047 = vperm.xlu1 %8351, %v1885_v1  }
 0x76b   :  { %2264 = vperm.xlu0 %8356, %v1890_v17  }
 0x76e   :  { %8352 = vset.pattern.permute.xlu1 %v12240_v11 }
 0x76f   :  { %2190 = vperm.xlu1 %8352, %v1885_v1   ;;  %8363 = vset.pattern.permute.xlu0 %v12242_v14 }
 0x770   :  { %2052 = vperm.xlu0 %8363, %v1886_v3  }
 0x773   :  { %2194 = vperm.xlu1 %8352, %v1886_v3  }
 0x774   :  { %2057 = vperm.xlu0 %8363, %v1887_v5  }
 0x777   :  { %8353 = vset.pattern.permute.xlu1 %v12242_v14 }
 0x778   :  { %2062 = vperm.xlu1 %8353, %v1888_v15   ;;  %2087 = vperm.xlu0 %8363, %v10309_v18  }
 0x77c   :  { %8354 = vset.pattern.permute.xlu1 %v12240_v11  ;;  %8364 = vset.pattern.permute.xlu0 %v12240_v11 }
 0x77d   :  { %2202 = vperm.xlu1 %8354, %v1888_v15   ;;  %2198 = vperm.xlu0 %8364, %v1887_v5  }
 0x781   :  { %8355 = vset.pattern.permute.xlu1 %v12238_v9  ;;  %2206 = vperm.xlu0 %8364, %v1889_v13  }
 0x782   :  { %2244 = vperm.xlu1 %8355, %v1885_v1  }
 0x785   :  { %2214 = vperm.xlu0 %8364, %v1891_v16  }
 0x786   :  { %8357 = vset.pattern.permute.xlu1 %v12242_v14 }
 0x787   :  { %2067 = vperm.xlu1 %8357, %v1889_v13  }
 0x78b   :  { %2072 = vperm.xlu1 %8357, %v1890_v17  }
 0x78f   :  { %8358 = vset.pattern.permute.xlu1 %v12240_v11 }
 0x790   :  { %2210 = vperm.xlu1 %8358, %v1890_v17  }
 0x794   :  { %8359 = vset.pattern.permute.xlu1 %v12238_v9 }
 0x795   :  { %2252 = vperm.xlu1 %8359, %v1887_v5  }
 0x799   :  { %8360 = vset.pattern.permute.xlu1 %v12242_v14 }
 0x79a   :  { %2077 = vperm.xlu1 %8360, %v1891_v16  }
 0x79e   :  { %2082 = vperm.xlu1 %8360, %v1892_v19  }
 0x7a2   :  { %8361 = vset.pattern.permute.xlu1 %v12240_v11 }
 0x7a3   :  { %2218 = vperm.xlu1 %8361, %v1892_v19  }
 0x7a7   :  { %8362 = vset.pattern.permute.xlu1 %v12238_v9 }
 0x7a8   :  { %2260 = vperm.xlu1 %8362, %v1889_v13  }
 0x7ac   :  { %2268 = vperm.xlu1 %8362, %v1891_v16  }
 0x7b0   :  { %2272 = vperm.xlu1 %8362, %v1892_v19  }
 0x7c8   :  { %v2101_v38 = vpop.permute.xlu1 %2100 }
 0x7d0   :  { %v2105_v1 = vpop.permute.xlu0 %2104 }
 0x7d8   :  { %v2109_v5 = vpop.permute.xlu1 %2108 }
 0x80f   :  { %v1832_v22 = vpop.f32.mrb[8].mxu0 }
 0x810   :  { %v1833_v26 = vadd.f32 %v1832_v22, %v1706_v21  ;;  %v7115_v28 = vpop.f32.mrb[9].mxu0  ;;  %v2113_v21 = vpop.permute.xlu1 %2112 }
 0x812   :  { %v1876_v29 = vmax.f32 %v1833_v26, 0.0 }
 0x813   :  { %v1837_v59 = vpop.f32.mrb[10].mxu0 }
 0x814   :  { %v1838_v31 = vadd.f32 %v1837_v59, %v1711_v30  ;;  %v7118_v33 = vpop.f32.mrb[11].mxu0  ;;  %1991 = vmatmul.mubr.f32.vlgmr.msra.gmra.mrb[16].mxu1 %v1876_v29  ;;  %v2117_v29 = vpop.permute.xlu0 %2116 }
 0x815   :  { %1996 = vmatprep.mubr.f32.mxu1 %v12248_v8  ;;  %v2121_v59 = vpop.permute.xlu1 %2120 }
 0x816   :  { %v1877_v34 = vmax.f32 %v1838_v31, 0.0 }
 0x817   :  { %v1842_v24 = vpop.f32.mrb[12].mxu0 }
 0x818   :  { %v1843_v37 = vadd.f32 %v1842_v24, %v1716_v35  ;;  %v7121_v4 = vpop.f32.mrb[13].mxu0  ;;  %1997 = vmatmul.mubr.f32.gmra.mrb[18].mxu1 %v1877_v34 }
 0x819   :  { %2002 = vmatprep.mubr.f32.mxu1 %v12248_v8  ;;  %v2125_v4 = vpop.permute.xlu0 %2124 }
 0x81a   :  { %v1878_v41 = vmax.f32 %v1843_v37, 0.0  ;;  %v2129_v37 = vpop.permute.xlu1 %2128 }
 0x81b   :  { %v1847_v20 = vpop.f32.mrb[14].mxu0 }
 0x81c   :  { %v1848_v43 = vadd.f32 %v1847_v20, %v1721_v42  ;;  %v7124_v44 = vpop.f32.mrb[15].mxu0  ;;  %2003 = vmatmul.mubr.f32.gmra.mrb[20].mxu1 %v1878_v41 }
 0x81d   :  { %2008 = vmatprep.mubr.f32.mxu1 %v12248_v8 }
 0x81e   :  { %v1879_v45 = vmax.f32 %v1848_v43, 0.0  ;;  %v2048_v44 = vpop.permute.xlu1 %2047 }
 0x81f   :  { %v1852_v47 = vpop.f32.mrb[16].mxu0 }
 0x820   :  { %v1853_v48 = vadd.f32 %v1852_v47, %v1726_v46  ;;  %v7127_v49 = vpop.f32.mrb[17].mxu0  ;;  %2009 = vmatmul.mubr.f32.gmra.mrb[22].mxu1 %v1879_v45  ;;  %v2133_v46 = vpop.permute.xlu0 %2132 }
 0x821   :  { %2014 = vmatprep.mubr.f32.mxu1 %v12248_v8 }
 0x822   :  { %v1880_v50 = vmax.f32 %v1853_v48, 0.0 }
 0x823   :  { %v1857_v52 = vpop.f32.mrb[18].mxu0 }
 0x824   :  { %v1858_v53 = vadd.f32 %v1857_v52, %v1731_v51  ;;  %v7130_v54 = vpop.f32.mrb[19].mxu0  ;;  %2015 = vmatmul.mubr.f32.gmra.mrb[24].mxu1 %v1880_v50  ;;  %v2191_v50 = vpop.permute.xlu1 %2190  ;;  %v10399_v52 = vld [vmem:[%s12236_s1 + $0x1b0] sm:$0xff] }
 0x825   :  { %2020 = vmatprep.mubr.f32.mxu1 %v12248_v8  ;;  %v8451_v54 = vmov 72  }
 0x826   :  { %v1881_v55 = vmax.f32 %v1858_v53, 0.0  ;;  %v10404_v53 = vld [vmem:[%s12236_s1 + $0x1c0] sm:$0xff]  ;;  %8366 = vset.pattern.permute.xlu1 %v8451_v54 }
 0x827   :  { %v1862_v57 = vpop.f32.mrb[20].mxu0 }
 0x828   :  { %v1863_v58 = vadd.f32 %v1862_v57, %v1736_v56  ;;  %v7133_v23 = vpop.f32.mrb[21].mxu0  ;;  %2021 = vmatmul.mubr.f32.gmra.mrb[26].mxu1 %v1881_v55  ;;  %v2195_v51 = vpop.permute.xlu1 %2194  ;;  %v10411_v55 = vld [vmem:[%s12236_s1 + $0x1d0] sm:$0xff] }
 0x829   :  { %2026 = vmatprep.mubr.f32.mxu1 %v12248_v8 }
 0x82a   :  { %v1882_v60 = vmax.f32 %v1863_v58, 0.0 }
 0x82b   :  { %v1867_v62 = vpop.f32.mrb[22].mxu0 }
 0x82c   :  { %v1868_v63 = vadd.f32 %v1867_v62, %v1741_v61  ;;  %v7136_v6 = vpop.f32.mrb[23].mxu0  ;;  %2027 = vmatmul.mubr.f32.gmra.mrb[28].mxu1 %v1882_v60  ;;  %v2063_v56 = vpop.permute.xlu1 %2062 }
 0x82d   :  { %2032 = vmatprep.mubr.f32.mxu1 %v12248_v8  ;;  %v2249_v60 = vpop.permute.xlu0 %2248 }
 0x82e   :  { %v1883_v7 = vmax.f32 %v1868_v63, 0.0 }
 0x82f   :  { %v1872_v25 = vpop.f32.mrb[24].mxu0 }
 0x830   :  { %v1873_v12 = vadd.f32 %v1872_v25, %v1746_v10  ;;  %2033 = vmatmul.mubr.f32.gmra.mrb[30].mxu1 %v1883_v7  ;;  %v7139_v36 = vpop.f32.mrb[25].mxu0  ;;  %v2203_v57 = vpop.permute.xlu1 %2202 }
 0x831   :  { %2038 = vmatprep.mubr.f32.mxu1 %v12248_v8  ;;  %v2257_v62 = vpop.permute.xlu0 %2256 }
 0x832   :  { %v1884_v2 = vmax.f32 %v1873_v12, 0.0 }
 0x834   :  { %2039 = vmatmul.mubr.f32.gmra.mrb[32].mxu1 %v1884_v2  ;;  %v2245_v58 = vpop.permute.xlu1 %2244 }
 0x835   :  { %2747 = vmatprep.mubr.f32.mxu1 %v12248_v8  ;;  %v2265_v6 = vpop.permute.xlu0 %2264 }
 0x838   :  { %v2068_v23 = vpop.permute.xlu1 %2067 }
 0x839   :  { %v2053_v10 = vpop.permute.xlu0 %2052 }
 0x83c   :  { %v2073_v61 = vpop.permute.xlu1 %2072 }
 0x83d   :  { %v2058_v12 = vpop.permute.xlu0 %2057 }
 0x840   :  { %v2211_v63 = vpop.permute.xlu1 %2210 }
 0x841   :  { %v10414_v2 = vpop.permute.xlu0 %2087 }
 0x844   :  { %v2253_v7 = vpop.permute.xlu1 %2252 }
 0x848   :  { %v2078_v25 = vpop.permute.xlu1 %2077 }
 0x84c   :  { %v2083_v36 = vpop.permute.xlu1 %2082 }
 0x8e7   :  { %v10339_v39 = vpop.f32.mrb[16].mxu1 }
 0x8e8   :  { %v2135_v40 = vmul.f32 %v2101_v38, %v10339_v39  ;;  %v10342_v0 = vpop.f32.mrb[17].mxu1  ;;  %v2219_v38 = vpop.permute.xlu1 %2218 }
 0x8ea   :  { %2153 = vrot.lane.b32.xlu0 %v2135_v40, %s8450_s13  ;;  %v2199_v40 = vpop.permute.xlu0 %2198 }
 0x8eb   :  { %v10345_v3 = vpop.f32.mrb[18].mxu1 }
 0x8ec   :  { %v2136_v13 = vmul.f32 %v2105_v1, %v10345_v3  ;;  %v10348_v15 = vpop.f32.mrb[19].mxu1  ;;  %v2261_v1 = vpop.permute.xlu1 %2260 }
 0x8ee   :  { %2155 = vrot.lane.b32.xlu1 %v2136_v13, %s8450_s13 }
 0x8ef   :  { %v10351_v16 = vpop.f32.mrb[20].mxu1 }
 0x8f0   :  { %v2137_v17 = vmul.f32 %v2109_v5, %v10351_v16  ;;  %v10354_v19 = vpop.f32.mrb[21].mxu1  ;;  %v2207_v5 = vpop.permute.xlu0 %2206 }
 0x8f1   :  { %v10416_v13 = vpop.permute.xlu1 %2268 }
 0x8f2   :  { %2157 = vrot.lane.b32.xlu0 %v2137_v17, %s8450_s13 }
 0x8f3   :  { %v10357_v22 = vpop.f32.mrb[22].mxu1 }
 0x8f4   :  { %v2138_v26 = vmul.f32 %v2113_v21, %v10357_v22  ;;  %v10360_v28 = vpop.f32.mrb[23].mxu1  ;;  %v2215_v17 = vpop.permute.xlu0 %2214  ;;  %v2090_v21 = vmul.f32 %v2048_v44, %v10339_v39  ;;  %v2227_v39 = vmul.f32 %v2199_v40, %v10354_v19  ;;  %v2093_v14 = vmul.f32 %v2063_v56, %v10357_v22 }
 0x8f6   :  { %2222 = vperm.xlu0 %8364, %v10309_v18   ;;  %2159 = vrot.lane.b32.xlu1 %v2138_v26, %s8450_s13  ;;  %v10419_v26 = vpop.permute.xlu1 %2272 }
 0x8f7   :  { %v10364_v30 = vpop.f32.mrb[24].mxu1 }
 0x8f8   :  { %v2139_v31 = vmul.f32 %v2117_v29, %v10364_v30  ;;  %v10367_v33 = vpop.f32.mrb[25].mxu1 }
 0x8fa   :  { %2161 = vrot.lane.b32.xlu1 %v2139_v31, %s8450_s13  ;;  %8365 = vset.pattern.permute.xlu0 %v12238_v9 }
 0x8fb   :  { %v10371_v34 = vpop.f32.mrb[26].mxu1  ;;  %2276 = vperm.xlu0 %8365, %v10309_v18  }
 0x8fc   :  { %v2140_v35 = vmul.f32 %v2121_v59, %v10371_v34  ;;  %v10375_v24 = vpop.f32.mrb[27].mxu1  ;;  %v2225_v59 = vmul.f32 %v2191_v50, %v10342_v0  ;;  %v2095_v56 = vmul.f32 %v2073_v61, %v10371_v34 }
 0x8fe   :  { %2163 = vrot.lane.b32.xlu1 %v2140_v35, %s8450_s13  ;;  %v2091_v35 = vmul.f32 %v2053_v10, %v10345_v3  ;;  %v2228_v10 = vmul.f32 %v2203_v57, %v10360_v28 }
 0x8ff   :  { %v10378_v41 = vpop.f32.mrb[28].mxu1  ;;  %8367 = vset.pattern.permute.xlu0 %v8451_v54 }
 0x900   :  { %v2141_v42 = vmul.f32 %v2125_v4, %v10378_v41  ;;  %v10381_v20 = vpop.f32.mrb[29].mxu1  ;;  %2307 = vperm.xlu0 %8367, %v10404_v53  }
 0x902   :  { %2165 = vrot.lane.b32.xlu1 %v2141_v42, %s8450_s13  ;;  %v2226_v42 = vmul.f32 %v2195_v51, %v10348_v15  ;;  %v2094_v51 = vmul.f32 %v2068_v23, %v10364_v30  ;;  %v2096_v23 = vmul.f32 %v2078_v25, %v10378_v41 }
 0x903   :  { %v10384_v43 = vpop.f32.mrb[30].mxu1 }
 0x904   :  { %v2142_v18 = vmul.f32 %v2129_v37, %v10384_v43  ;;  %v10387_v45 = vpop.f32.mrb[31].mxu1  ;;  %v2097_v61 = vmul.f32 %v2083_v36, %v10384_v43 }
 0x906   :  { %2167 = vrot.lane.b32.xlu1 %v2142_v18, %s8450_s13 }
 0x907   :  { %v10390_v47 = vpop.f32.mrb[32].mxu1 }
 0x908   :  { %v2143_v48 = vmul.f32 %v2133_v46, %v10390_v47  ;;  %v10393_v49 = vpop.f32.mrb[33].mxu1  ;;  %v2092_v46 = vmul.f32 %v2058_v12, %v10351_v16 }
 0x90a   :  { %2169 = vrot.lane.b32.xlu1 %v2143_v48, %s8450_s13 }
 0x90e   :  { %2302 = vperm.xlu1 %8366, %v10399_v52  }
 0x912   :  { %2312 = vperm.xlu1 %8366, %v10411_v55  }
 0x95c   :  { %v2154_v29 = vpop.permute.xlu0 %2153 }
 0x95d   :  { %v2180_v31 = vadd.f32 %v2154_v29, %v2090_v21 }
 0x95f   :  { %v2234_v37 = vadd.f32 %v2225_v59, %v2180_v31 }
 0x960   :  { %v2156_v4 = vpop.permute.xlu1 %2155 }
 0x961   :  { %v2181_v18 = vadd.f32 %v2156_v4, %v2091_v35  ;;  %v2279_v48 = vadd.f32 %v2245_v58, %v2234_v37 }
 0x963   :  { %v2235_v54 = vadd.f32 %v2226_v42, %v2181_v18  ;;  %v2288_v0 = vmax.f32 %v2279_v48, 0.0 }
 0x964   :  { %v2158_v9 = vpop.permute.xlu0 %2157 }
 0x965   :  { %v2280_v44 = vadd.f32 %v2249_v60, %v2235_v54  ;;  %v2182_v11 = vadd.f32 %v2158_v9, %v2092_v46  ;;  %v2229_v9 = vmul.f32 %v2207_v5, %v10367_v33  ;;  %v2231_v33 = vmul.f32 %v2215_v17, %v10381_v20 }
 0x967   :  { %v2289_v50 = vmax.f32 %v2280_v44, 0.0  ;;  %v2236_v21 = vadd.f32 %v2227_v39, %v2182_v11  ;;  %v2634_v39 = vld [vmem:[%s12234_s2 + $0x1838] sm:$0xff]  ;;  %v2636_v44 = vld [vmem:[%s12234_s2 + $0x1868] sm:$0xff] }
 0x968   :  { %v2160_v3 = vpop.permute.xlu1 %2159 }
 0x969   :  { %v2183_v29 = vadd.f32 %v2160_v3, %v2093_v14  ;;  %v8101_v15 = vpack.c.bf16 %v2289_v50, %v2288_v0  ;;  %v2281_v16 = vadd.f32 %v2253_v7, %v2236_v21  ;;  %v2230_v14 = vmul.f32 %v2211_v63, %v10375_v24  ;;  %v2633_v0 = vld [vmem:[%s12234_s2 + $0x1830] sm:$0xff]  ;;  %v2635_v21 = vld [vmem:[%s12234_s2 + $0x1860] sm:$0xff] }
 0x96a   :  { %v2232_v63 = vmul.f32 %v2219_v38, %v10387_v45  ;;  %v8115_v50 = vpack.c.bf16 %v2636_v44, %v2634_v39  ;;  %v8117_v3 = vpack.c.bf16 %v2635_v21, %v2633_v0 }
 0x96b   :  { %v2237_v58 = vadd.f32 %v2228_v10, %v2183_v29  ;;  %8102 = vmatpush3.bf16.msra.mxu0 %v8101_v15  ;;  %v2290_v11 = vmax.f32 %v2281_v16, 0.0  ;;  %v2407_v10 = vld [vmem:[%s12236_s1 + $0x230] sm:$0xff]  ;;  %v10511_v29 = vld [vmem:[%s12236_s1 + $0x260] sm:$0xff]  ;;  %v2638_v15 = vld [vmem:[%s12234_s2 + $0x1898] sm:$0xff] }
 0x96c   :  { %v2162_v12 = vpop.permute.xlu1 %2161  ;;  %8103 = vmatprep.subr.bf16.mxu0 %v12250_v32  ;;  %8116 = vmatprep.subr.bf16.mxu1 %v8115_v50  ;;  %v2637_v16 = vld [vmem:[%s12234_s2 + $0x1890] sm:$0xff] }
 0x96d   :  { %v2282_v19 = vadd.f32 %v2257_v62, %v2237_v58  ;;  %v2184_v22 = vadd.f32 %v2162_v12, %v2094_v51  ;;  %8118 = vmatpush1.bf16.msra.mxu1 %v8117_v3  ;;  %v2640_v51 = vld [vmem:[%s12234_s2 + $0x18c8] sm:$0xff]  ;;  %v2639_v12 = vld [vmem:[%s12234_s2 + $0x18c0] sm:$0xff] }
 0x96e   :  { %v8119_v58 = vpack.c.bf16 %v2640_v51, %v2638_v15 }
 0x96f   :  { %v2291_v60 = vmax.f32 %v2282_v19, 0.0  ;;  %v2238_v40 = vadd.f32 %v2229_v9, %v2184_v22  ;;  %v8121_v9 = vpack.c.bf16 %v2639_v12, %v2637_v16  ;;  %v2409_v19 = vld [vmem:[%s12236_s1 + $0x250] sm:$0xff]  ;;  %v2412_v22 = vld [vmem:[%s12236_s1 + $0x280] sm:$0xff] }
 0x970   :  { %v2164_v28 = vpop.permute.xlu1 %2163  ;;  %8120 = vmatprep.subr.bf16.mxu1 %v8119_v58 }
 0x971   :  { %v2185_v57 = vadd.f32 %v2164_v28, %v2095_v56  ;;  %v8104_v30 = vpack.c.bf16 %v2291_v60, %v2290_v11  ;;  %v2283_v7 = vadd.f32 %v2261_v1, %v2238_v40  ;;  %v2098_v1 = vmul.f32 %v10414_v2, %v10390_v47  ;;  %8122 = vmatpush1.bf16.msra.mxu1 %v8121_v9  ;;  %v2642_v56 = vld [vmem:[%s12234_s2 + $0x18f8] sm:$0xff]  ;;  %v2644_v11 = vld [vmem:[%s12234_s2 + $0x1928] sm:$0xff]  ;;  %v2641_v60 = vld [vmem:[%s12234_s2 + $0x18f0] sm:$0xff] }
 0x972   :  { %v12244_v2 = vmov 24   ;;  %v8123_v40 = vpack.c.bf16 %v2644_v11, %v2642_v56  ;;  %v2643_v28 = vld [vmem:[%s12234_s2 + $0x1920] sm:$0xff] }
 0x973   :  { %v2239_v59 = vadd.f32 %v2230_v14, %v2185_v57  ;;  %8105 = vmatpush3.bf16.msra.mxu0 %v8104_v30  ;;  %v2292_v5 = vmax.f32 %v2283_v7, 0.0  ;;  %8368 = vset.pattern.permute.xlu1 %v12244_v2  ;;  %v8125_v14 = vpack.c.bf16 %v2643_v28, %v2641_v60  ;;  %v2411_v57 = vld [vmem:[%s12236_s1 + $0x270] sm:$0xff] }
 0x974   :  { %v2166_v31 = vpop.permute.xlu1 %2165  ;;  %8106 = vmatprep.subr.bf16.mxu0 %v12250_v32  ;;  %8369 = vset.pattern.permute.xlu0 %v12244_v2 }
 0x975   :  { %v2284_v62 = vadd.f32 %v2265_v6, %v2239_v59  ;;  %v2186_v34 = vadd.f32 %v2166_v31, %v2096_v23  ;;  %v2223_v25 = vpop.permute.xlu0 %2222  ;;  %8124 = vmatprep.subr.bf16.mxu1 %v8123_v40 }
 0x976   :  { %v2233_v43 = vmul.f32 %v2223_v25, %v10393_v49  ;;  %v10458_v49 = vld [vmem:[%s12236_s1 + $0x1e0] sm:$0xff]  ;;  %8126 = vmatpush1.bf16.msra.mxu1 %v8125_v14  ;;  %v2645_v25 = vld [vmem:[%s12234_s2 + $0x1950] sm:$0xff] }
 0x977   :  { %v2293_v35 = vmax.f32 %v2284_v62, 0.0  ;;  %v2240_v37 = vadd.f32 %v2231_v33, %v2186_v34  ;;  %2415 = vperm.xlu1 %8368, %v10458_v49  }
 0x978   :  { %v2168_v24 = vpop.permute.xlu1 %2167 }
 0x979   :  { %v2187_v4 = vadd.f32 %v2168_v24, %v2097_v61  ;;  %v8107_v41 = vpack.c.bf16 %v2293_v35, %v2292_v5  ;;  %v2285_v42 = vadd.f32 %v10416_v13, %v2240_v37  ;;  %v10484_v13 = vld [vmem:[%s12236_s1 + $0x210] sm:$0xff] }
 0x97a   :  { %v2277_v17 = vpop.permute.xlu0 %2276 }
 0x97b   :  { %v2241_v18 = vadd.f32 %v2232_v63, %v2187_v4  ;;  %8108 = vmatpush3.bf16.msra.mxu0 %v8107_v41  ;;  %v2294_v45 = vmax.f32 %v2285_v42, 0.0  ;;  %v2646_v63 = vld [vmem:[%s12234_s2 + $0x1958] sm:$0xff]  ;;  %v2648_v4 = vld [vmem:[%s12234_s2 + $0x1988] sm:$0xff] }
 0x97c   :  { %v2170_v20 = vpop.permute.xlu1 %2169  ;;  %8109 = vmatprep.subr.bf16.mxu0 %v12250_v32  ;;  %v8127_v41 = vpack.c.bf16 %v2648_v4, %v2646_v63 }
 0x97d   :  { %v2286_v6 = vadd.f32 %v10419_v26, %v2241_v18  ;;  %v2188_v36 = vadd.f32 %v2170_v20, %v2098_v1  ;;  %v10489_v26 = vld [vmem:[%s12236_s1 + $0x240] sm:$0xff]  ;;  %v2622_v18 = vld [vmem:[%s12236_s1 + $0x290] sm:$0xff] }
 0x97e   :  { %v2647_v1 = vld [vmem:[%s12234_s2 + $0x1980] sm:$0xff]  ;;  %8128 = vmatprep.subr.bf16.mxu1 %v8127_v41  ;;  %v2624_v20 = vld [vmem:[%s12236_s1 + $0x2b0] sm:$0xff] }
 0x97f   :  { %v2295_v38 = vmax.f32 %v2286_v6, 0.0  ;;  %v2242_v46 = vadd.f32 %v2233_v43, %v2188_v36  ;;  %v2308_v59 = vpop.permute.xlu0 %2307  ;;  %v8129_v42 = vpack.c.bf16 %v2647_v1, %v2645_v25  ;;  %v2625_v43 = vld [vmem:[%s12236_s1 + $0x2c0] sm:$0xff] }
 0x980   :  { %v2627_v6 = vld [vmem:[%s12236_s1 + $0x2e0] sm:$0xff] }
 0x981   :  { %v2287_v48 = vadd.f32 %v2277_v17, %v2242_v46  ;;  %v8110_v54 = vpack.c.bf16 %v2295_v38, %v2294_v45  ;;  %8130 = vmatpush1.bf16.msra.mxu1 %v8129_v42  ;;  %v2629_v36 = vld [vmem:[%s12236_s1 + $0x300] sm:$0xff]  ;;  %v2626_v38 = vld [vmem:[%s12236_s1 + $0x2d0] sm:$0xff]  ;;  %v12269_v46 = vmov 0  }
 0x982   :  { %v10630_v17 = vld [vmem:[%s12236_s1 + $0x320] sm:$0xff] }
 0x983   :  { %8111 = vmatpush3.bf16.msra.mxu0 %v8110_v54  ;;  %v2296_v47 = vmax.f32 %v2287_v48, 0.0  ;;  %v2623_v45 = vld [vmem:[%s12236_s1 + $0x2a0] sm:$0xff]  ;;  %v2628_v48 = vld [vmem:[%s12236_s1 + $0x2f0] sm:$0xff]  ;;  %v12270_v54 = vmov 2  }
 0x984   :  { %7156 = vmatprep.subr.mxu0 %v12248_v8 }
 0x987   :  { %7157 = vmatpush3.msra.mxu0 %v2296_v47  ;;  %v2630_v47 = vld [vmem:[%s12236_s1 + $0x310] sm:$0xff] }
 0x988   :  { %7159 = vmatmul.mubr.msk.f32.vlgmr.msra.gmra.mrb[26].mxu0 %vm2315_vm3, %v10399_v52  ;;  %8112 = vmatprep.subr.bf16.mxu0 %v12250_v32  ;;  %v10463_v52 = vld [vmem:[%s12236_s1 + $0x1f0] sm:$0xff] }
 0x989   :  { %7161 = vmatprep.mubr.msk.f32.mxu0 %vm8446_vm0, %v12248_v8  ;;  %2420 = vperm.xlu0 %8369, %v10463_v52  }
 0x98c   :  { %7162 = vmatmul.mubr.msk.f32.gmra.mrb[28].mxu0 %vm2315_vm3, %v10404_v53  ;;  %v10472_v53 = vld [vmem:[%s12236_s1 + $0x200] sm:$0xff] }
 0x98d   :  { %7164 = vmatprep.mubr.msk.f32.mxu0 %vm8446_vm0, %v12248_v8  ;;  %2425 = vperm.xlu1 %8368, %v10472_v53   ;;  %v2303_v7 = vpop.permute.xlu1 %2302 }
 0x990   :  { %7165 = vmatmul.mubr.msk.f32.gmra.mrb[30].mxu0 %vm2315_vm3, %v10411_v55  ;;  %v10477_v55 = vld [vmem:[%s12236_s1 + $0x220] sm:$0xff] }
 0x991   :  { %7173 = vmatprep.mubr.msk.f32.mxu0 %vm8446_vm0, %v12248_v8  ;;  %2435 = vperm.xlu0 %8369, %v10477_v55   ;;  %v2313_v37 = vpop.permute.xlu1 %2312 }
 0x992   :  { %2430 = vperm.xlu1 %8368, %v10484_v13  }
 0x995   :  { %2445 = vperm.xlu0 %8369, %v10489_v26  }
 0x996   :  { %2440 = vperm.xlu1 %8368, %v2407_v10  }
 0x999   :  { %2455 = vperm.xlu0 %8369, %v10511_v29  }
 0x99a   :  { %2450 = vperm.xlu1 %8368, %v2409_v19  }
 0x99d   :  { %2465 = vperm.xlu0 %8369, %v2412_v22  }
 0x99e   :  { %2460 = vperm.xlu1 %8368, %v2411_v57  }
 0x9a1   :  { %8371 = vset.pattern.permute.xlu0 %v12246_v27 }
 0x9a2   :  { %8370 = vset.pattern.permute.xlu1 %v12246_v27  ;;  %2885 = vperm.xlu0 %8371, %v2623_v45  }
 0x9a3   :  { %2881 = vperm.xlu1 %8370, %v2622_v18  }
 0x9a6   :  { %2897 = vperm.xlu0 %8371, %v2626_v38  }
 0x9a7   :  { %2889 = vperm.xlu1 %8370, %v2624_v20  }
 0x9aa   :  { %2905 = vperm.xlu0 %8371, %v2628_v48  }
 0x9ab   :  { %2893 = vperm.xlu1 %8370, %v2625_v43  }
 0x9ae   :  { %2913 = vperm.xlu0 %8371, %v2630_v47  }
 0x9af   :  { %2901 = vperm.xlu1 %8370, %v2627_v6  }
 0x9b3   :  { %2909 = vperm.xlu1 %8370, %v2629_v36  }
 0x9b7   :  { %2917 = vperm.xlu1 %8370, %v10630_v17  }
 0x9bb   :  { %8372 = vset.pattern.permute.xlu1 %v12269_v46 }
 0x9bc   :  { %2816 = vperm.xlu1 %8372, %v2622_v18  }
 0x9c0   :  { %8373 = vset.pattern.permute.xlu1 %v12270_v54 }
 0x9c1   :  { %2991 = vperm.xlu1 %8373, %v2622_v18  }
 0x9c5   :  { %2995 = vperm.xlu1 %8373, %v2623_v45  }
 0x9c9   :  { %8374 = vset.pattern.permute.xlu1 %v12269_v46 }
 0x9ca   :  { %2831 = vperm.xlu1 %8374, %v2625_v43  }
 0x9ce   :  { %8375 = vset.pattern.permute.xlu1 %v12270_v54 }
 0x9cf   :  { %3003 = vperm.xlu1 %8375, %v2625_v43  }
 0xa08   :  { %v2421_v44 = vpop.permute.xlu0 %2420 }
 0xa10   :  { %v2436_v56 = vpop.permute.xlu0 %2435 }
 0xa5b   :  { %v2388_v30 = vpop.f32.mrb[26].mxu0 }
 0xa5c   :  { %v7160_v23 = vpop.f32.mrb[27].mxu0  ;;  %v10549_v33 = vadd.f32 %v2388_v30, %v2303_v7 }
 0xa5e   :  { %12266 = vst [vmem:[#allocation2_spill] sm:$0xff] %v10549_v33 }
 0xa5f   :  { %v2393_v31 = vpop.f32.mrb[28].mxu0 }
 0xa60   :  { %v10551_v62 = vadd.f32 %v2393_v31, %v2308_v59  ;;  %v7163_v34 = vpop.f32.mrb[29].mxu0  ;;  %v2446_v59 = vpop.permute.xlu0 %2445 }
 0xa62   :  { %12267 = vst [vmem:[#allocation3_spill] sm:$0xff] %v10551_v62  ;;  %v8113_v61 = vpack.c.bf16 %v10551_v62, %v10549_v33 }
 0xa63   :  { %v2398_v5 = vpop.f32.mrb[30].mxu0 }
 0xa64   :  { %8114 = vmatpush3.bf16.msra.mxu0 %v8113_v61  ;;  %v7166_v35 = vpop.f32.mrb[31].mxu0  ;;  %v10556_v24 = vadd.f32 %v2398_v5, %v2313_v37  ;;  %v2456_v25 = vpop.permute.xlu0 %2455 }
 0xa65   :  { %7171 = vmatprep.subr.mxu0 %v12248_v8 }
 0xa66   :  { %12268 = vst [vmem:[#allocation4_spill] sm:$0xff] %v10556_v24 }
 0xa68   :  { %7172 = vmatpush3.msra.mxu0 %v10556_v24 }
 0xa69   :  { %7174 = vmatmul.mubr.msk.f32.vlgmr.msra.gmra.mrb[32].mxu0 %vm2468_vm4, %v10458_v49  ;;  %8131 = vmatprep.subr.bf16.mxu0 %v12250_v32  ;;  %v10650_v49 = vld [vmem:[%s12236_s1 + $0x330] sm:$0xff] }
 0xa6a   :  { %7176 = vmatprep.mubr.msk.f32.mxu0 %vm8446_vm0, %v12248_v8  ;;  %2921 = vperm.xlu0 %8371, %v10650_v49  }
 0xa6d   :  { %7177 = vmatmul.mubr.msk.f32.gmra.mrb[34].mxu0 %vm2468_vm4, %v10463_v52  ;;  %v12271_v52 = vmov 3  }
 0xa6e   :  { %7179 = vmatprep.mubr.msk.f32.mxu0 %vm8446_vm0, %v12248_v8  ;;  %8377 = vset.pattern.permute.xlu0 %v12271_v52 }
 0xa6f   :  { %3061 = vperm.xlu0 %8377, %v2623_v45   ;;  %8376 = vset.pattern.permute.xlu1 %v12271_v52 }
 0xa70   :  { %3057 = vperm.xlu1 %8376, %v2622_v18  }
 0xa71   :  { %7180 = vmatmul.mubr.msk.f32.gmra.mrb[36].mxu0 %vm2468_vm4, %v10472_v53  ;;  %v2416_v53 = vpop.permute.xlu1 %2415 }
 0xa72   :  { %7182 = vmatprep.mubr.msk.f32.mxu0 %vm8446_vm0, %v12248_v8 }
 0xa73   :  { %3069 = vperm.xlu0 %8377, %v2625_v43  }
 0xa74   :  { %8378 = vset.pattern.permute.xlu1 %v12269_v46 }
 0xa75   :  { %7183 = vmatmul.mubr.msk.f32.gmra.mrb[38].mxu0 %vm2468_vm4, %v10484_v13  ;;  %2836 = vperm.xlu1 %8378, %v2626_v38   ;;  %v2426_v3 = vpop.permute.xlu1 %2425 }
 0xa76   :  { %7185 = vmatprep.mubr.msk.f32.mxu0 %vm8446_vm0, %v12248_v8 }
 0xa77   :  { %3077 = vperm.xlu0 %8377, %v2627_v6  }
 0xa79   :  { %7186 = vmatmul.mubr.msk.f32.gmra.mrb[40].mxu0 %vm2468_vm4, %v10477_v55  ;;  %2841 = vperm.xlu1 %8378, %v2627_v6   ;;  %v2431_v58 = vpop.permute.xlu1 %2430 }
 0xa7a   :  { %7188 = vmatprep.mubr.msk.f32.mxu0 %vm8446_vm0, %v12248_v8 }
 0xa7b   :  { %3085 = vperm.xlu0 %8377, %v2629_v36  }
 0xa7d   :  { %7189 = vmatmul.mubr.msk.f32.gmra.mrb[42].mxu0 %vm2468_vm4, %v2407_v10  ;;  %8379 = vset.pattern.permute.xlu1 %v12270_v54  ;;  %v2441_v14 = vpop.permute.xlu1 %2440 }
 0xa7e   :  { %7191 = vmatprep.mubr.msk.f32.mxu0 %vm8446_vm0, %v12248_v8  ;;  %3011 = vperm.xlu1 %8379, %v2627_v6  }
 0xa7f   :  { %8387 = vset.pattern.permute.xlu0 %v12269_v46 }
 0xa80   :  { %2821 = vperm.xlu0 %8387, %v2623_v45  }
 0xa81   :  { %7192 = vmatmul.mubr.msk.f32.gmra.mrb[44].mxu0 %vm2468_vm4, %v10489_v26  ;;  %v2451_v35 = vpop.permute.xlu1 %2450 }
 0xa82   :  { %7194 = vmatprep.mubr.msk.f32.mxu0 %vm8446_vm0, %v12248_v8  ;;  %8380 = vset.pattern.permute.xlu1 %v12271_v52 }
 0xa83   :  { %3065 = vperm.xlu1 %8380, %v2624_v20  }
 0xa84   :  { %2826 = vperm.xlu0 %8387, %v2624_v20  }
 0xa85   :  { %7195 = vmatmul.mubr.msk.f32.gmra.mrb[46].mxu0 %vm2468_vm4, %v2409_v19  ;;  %v2461_v43 = vpop.permute.xlu1 %2460 }
 0xa86   :  { %7197 = vmatprep.mubr.msk.f32.mxu0 %vm8446_vm0, %v12248_v8 }
 0xa87   :  { %8381 = vset.pattern.permute.xlu1 %v12269_v46 }
 0xa88   :  { %2866 = vperm.xlu0 %8387, %v10650_v49   ;;  %2846 = vperm.xlu1 %8381, %v2628_v48  }
 0xa89   :  { %7198 = vmatmul.mubr.msk.f32.gmra.mrb[48].mxu0 %vm2468_vm4, %v10511_v29 }
 0xa8a   :  { %7200 = vmatprep.mubr.msk.f32.mxu0 %vm8446_vm0, %v12248_v8 }
 0xa8c   :  { %8388 = vset.pattern.permute.xlu0 %v12270_v54  ;;  %2851 = vperm.xlu1 %8381, %v2629_v36  }
 0xa8d   :  { %7201 = vmatmul.mubr.msk.f32.gmra.mrb[50].mxu0 %vm2468_vm4, %v2411_v57  ;;  %2999 = vperm.xlu0 %8388, %v2624_v20  }
 0xa8e   :  { %7203 = vmatprep.mubr.msk.f32.mxu0 %vm8446_vm0, %v12248_v8 }
 0xa90   :  { %8382 = vset.pattern.permute.xlu1 %v12270_v54 }
 0xa91   :  { %7204 = vmatmul.mubr.msk.f32.gmra.mrb[52].mxu0 %vm2468_vm4, %v2412_v22  ;;  %3007 = vperm.xlu0 %8388, %v2626_v38  }
 0xa92   :  { %7228 = vmatprep.mubr.msk.f32.mxu0 %vm8446_vm0, %v12248_v8  ;;  %3019 = vperm.xlu1 %8382, %v2629_v36  }
 0xa95   :  { %3015 = vperm.xlu0 %8388, %v2628_v48  }
 0xa96   :  { %8383 = vset.pattern.permute.xlu1 %v12271_v52 }
 0xa97   :  { %3073 = vperm.xlu1 %8383, %v2626_v38   ;;  %v2466_v38 = vpop.permute.xlu0 %2465 }
 0xa99   :  { %3023 = vperm.xlu0 %8388, %v2630_v47  }
 0xa9b   :  { %8384 = vset.pattern.permute.xlu1 %v12269_v46 }
 0xa9c   :  { %2856 = vperm.xlu1 %8384, %v2630_v47  }
 0xaa0   :  { %2861 = vperm.xlu1 %8384, %v10630_v17  }
 0xaa4   :  { %8385 = vset.pattern.permute.xlu1 %v12270_v54 }
 0xaa5   :  { %3027 = vperm.xlu1 %8385, %v10630_v17  }
 0xaa9   :  { %8386 = vset.pattern.permute.xlu1 %v12271_v52 }
 0xaaa   :  { %3081 = vperm.xlu1 %8386, %v2628_v48  }
 0xaae   :  { %3089 = vperm.xlu1 %8386, %v2630_v47  }
 0xab2   :  { %3093 = vperm.xlu1 %8386, %v10630_v17  }
 0xb3c   :  { %v2557_v55 = vpop.f32.mrb[32].mxu0 }
 0xb3d   :  { %v2558_v13 = vadd.f32 %v2557_v55, %v2416_v53  ;;  %v7175_v26 = vpop.f32.mrb[33].mxu0 }
 0xb3f   :  { %v2611_v39 = vmax.f32 %v2558_v13, 0.0  ;;  %v2882_v13 = vpop.permute.xlu1 %2881 }
 0xb40   :  { %v2562_v0 = vpop.f32.mrb[34].mxu0 }
 0xb41   :  { %v2563_v50 = vadd.f32 %v2562_v0, %v2421_v44  ;;  %v7178_v21 = vpop.f32.mrb[35].mxu0  ;;  %6594 = vmatmul.mubr.msk.f32.vlgmr.msra.gmra.mrb[34].mxu1 %vm2649_vm5, %v2611_v39 }
 0xb42   :  { %2753 = vmatprep.mubr.f32.mxu1 %v12248_v8 }
 0xb43   :  { %v2612_v10 = vmax.f32 %v2563_v50, 0.0  ;;  %v2890_v26 = vpop.permute.xlu1 %2889 }
 0xb44   :  { %v2567_v29 = vpop.f32.mrb[36].mxu0 }
 0xb45   :  { %v2568_v15 = vadd.f32 %v2567_v29, %v2426_v3  ;;  %v7181_v51 = vpop.f32.mrb[37].mxu0  ;;  %6595 = vmatmul.mubr.msk.f32.gmra.mrb[36].mxu1 %vm2649_vm5, %v2612_v10 }
 0xb46   :  { %2759 = vmatprep.mubr.f32.mxu1 %v12248_v8 }
 0xb47   :  { %v2613_v16 = vmax.f32 %v2568_v15, 0.0  ;;  %v2894_v39 = vpop.permute.xlu1 %2893  ;;  %v2886_v15 = vpop.permute.xlu0 %2885 }
 0xb48   :  { %v2572_v12 = vpop.f32.mrb[38].mxu0 }
 0xb49   :  { %v2573_v9 = vadd.f32 %v2572_v12, %v2431_v58  ;;  %v7184_v19 = vpop.f32.mrb[39].mxu0  ;;  %6596 = vmatmul.mubr.msk.f32.gmra.mrb[38].mxu1 %vm2649_vm5, %v2613_v16 }
 0xb4a   :  { %2765 = vmatprep.mubr.f32.mxu1 %v12248_v8 }
 0xb4b   :  { %v2614_v22 = vmax.f32 %v2573_v9, 0.0  ;;  %v2902_v44 = vpop.permute.xlu1 %2901 }
 0xb4c   :  { %v2577_v11 = vpop.f32.mrb[40].mxu0 }
 0xb4d   :  { %v2578_v60 = vadd.f32 %v2577_v11, %v2436_v56  ;;  %v7187_v40 = vpop.f32.mrb[41].mxu0  ;;  %6597 = vmatmul.mubr.msk.f32.gmra.mrb[40].mxu1 %vm2649_vm5, %v2614_v22 }
 0xb4e   :  { %2771 = vmatprep.mubr.f32.mxu1 %v12248_v8 }
 0xb4f   :  { %v2615_v28 = vmax.f32 %v2578_v60, 0.0  ;;  %v2910_v0 = vpop.permute.xlu1 %2909 }
 0xb50   :  { %v2582_v57 = vpop.f32.mrb[42].mxu0 }
 0xb51   :  { %v2583_v30 = vadd.f32 %v2582_v57, %v2441_v14  ;;  %v7190_v23 = vpop.f32.mrb[43].mxu0  ;;  %6598 = vmatmul.mubr.msk.f32.gmra.mrb[42].mxu1 %vm2649_vm5, %v2615_v28  ;;  %v2898_v28 = vpop.permute.xlu0 %2897 }
 0xb52   :  { %2777 = vmatprep.mubr.f32.mxu1 %v12248_v8 }
 0xb53   :  { %v2616_v7 = vmax.f32 %v2583_v30, 0.0  ;;  %v2918_v50 = vpop.permute.xlu1 %2917 }
 0xb54   :  { %v2587_v31 = vpop.f32.mrb[44].mxu0 }
 0xb55   :  { %v2588_v34 = vadd.f32 %v2587_v31, %v2446_v59  ;;  %v7193_v61 = vpop.f32.mrb[45].mxu0  ;;  %6599 = vmatmul.mubr.msk.f32.gmra.mrb[44].mxu1 %vm2649_vm5, %v2616_v7 }
 0xb56   :  { %2783 = vmatprep.mubr.f32.mxu1 %v12248_v8 }
 0xb57   :  { %v2617_v5 = vmax.f32 %v2588_v34, 0.0  ;;  %v10698_v29 = vpop.permute.xlu1 %2816  ;;  %v2906_v34 = vpop.permute.xlu0 %2905 }
 0xb58   :  { %v2592_v37 = vpop.f32.mrb[46].mxu0 }
 0xb59   :  { %v2593_v63 = vadd.f32 %v2592_v37, %v2451_v35  ;;  %v7196_v4 = vpop.f32.mrb[47].mxu0  ;;  %6600 = vmatmul.mubr.msk.f32.gmra.mrb[46].mxu1 %vm2649_vm5, %v2617_v5 }
 0xb5a   :  { %2789 = vmatprep.mubr.f32.mxu1 %v12248_v8 }
 0xb5b   :  { %v2618_v41 = vmax.f32 %v2593_v63, 0.0  ;;  %v10709_v9 = vpop.permute.xlu1 %2991 }
 0xb5c   :  { %v2597_v1 = vpop.f32.mrb[48].mxu0 }
 0xb5d   :  { %v2598_v42 = vadd.f32 %v2597_v1, %v2456_v25  ;;  %v7199_v18 = vpop.f32.mrb[49].mxu0  ;;  %6601 = vmatmul.mubr.msk.f32.gmra.mrb[48].mxu1 %vm2649_vm5, %v2618_v41  ;;  %v2914_v25 = vpop.permute.xlu0 %2913 }
 0xb5e   :  { %2795 = vmatprep.mubr.f32.mxu1 %v12248_v8 }
 0xb5f   :  { %v2619_v20 = vmax.f32 %v2598_v42, 0.0  ;;  %v10720_v40 = vpop.permute.xlu1 %2995 }
 0xb60   :  { %v2602_v6 = vpop.f32.mrb[50].mxu0 }
 0xb61   :  { %v2603_v36 = vadd.f32 %v2602_v6, %v2461_v43  ;;  %v7202_v17 = vpop.f32.mrb[51].mxu0  ;;  %6602 = vmatmul.mubr.msk.f32.gmra.mrb[50].mxu1 %vm2649_vm5, %v2619_v20 }
 0xb62   :  { %2801 = vmatprep.mubr.f32.mxu1 %v12248_v8  ;;  %v2922_v17 = vpop.permute.xlu0 %2921 }
 0xb63   :  { %v2620_v45 = vmax.f32 %v2603_v36, 0.0  ;;  %v10731_v7 = vpop.permute.xlu1 %2831 }
 0xb64   :  { %v2607_v48 = vpop.f32.mrb[52].mxu0 }
 0xb65   :  { %v2608_v47 = vadd.f32 %v2607_v48, %v2466_v38  ;;  %6603 = vmatmul.mubr.msk.f32.gmra.mrb[52].mxu1 %vm2649_vm5, %v2620_v45  ;;  %v7205_v53 = vpop.f32.mrb[53].mxu0 }
 0xb66   :  { %2807 = vmatprep.mubr.f32.mxu1 %v12248_v8  ;;  %v10779_v53 = vld [vmem:[%s12236_s1 + $0x340] sm:$0xff] }
 0xb67   :  { %v2621_v55 = vmax.f32 %v2608_v47, 0.0  ;;  %v10743_v37 = vpop.permute.xlu1 %3003  ;;  %12273 = vst [vmem:[#allocation6_spill] sm:$0xff] %v10779_v53 }
 0xb69   :  { %6604 = vmatmul.mubr.msk.f32.gmra.mrb[54].mxu1 %vm2649_vm5, %v2621_v55  ;;  %v10784_v55 = vld [vmem:[%s12236_s1 + $0x350] sm:$0xff] }
 0xb6a   :  { %12274 = vst [vmem:[#allocation7_spill] sm:$0xff] %v10784_v55 }
 0xb6b   :  { %v3058_v42 = vpop.permute.xlu1 %3057 }
 0xb6f   :  { %v10765_v36 = vpop.permute.xlu1 %2836 }
 0xb73   :  { %v10774_v47 = vpop.permute.xlu1 %2841 }
 0xc14   :  { %v10693_v21 = vpop.f32.mrb[34].mxu1 }
 0xc15   :  { %v2924_v3 = vmul.f32 %v2882_v13, %v10693_v21  ;;  %v10696_v10 = vpop.f32.mrb[35].mxu1  ;;  %v8453_v13 = vmov 88   ;;  %v2869_v8 = vmul.f32 %v10698_v29, %v10693_v21 }
 0xc16   :  { %8390 = vset.pattern.permute.xlu1 %v8453_v13  ;;  %v3034_v46 = vmul.f32 %v10709_v9, %v10696_v10 }
 0xc17   :  { %2946 = vrot.lane.b32.xlu0 %v2924_v3, %s8450_s13 }
 0xc18   :  { %v10701_v51 = vpop.f32.mrb[36].mxu1 }
 0xc19   :  { %v2925_v16 = vmul.f32 %v2886_v15, %v10701_v51  ;;  %v10704_v58 = vpop.f32.mrb[37].mxu1 }
 0xc1a   :  { %v3035_v54 = vmul.f32 %v10720_v40, %v10704_v58 }
 0xc1b   :  { %2948 = vrot.lane.b32.xlu1 %v2925_v16, %s8450_s13 }
 0xc1c   :  { %v10707_v12 = vpop.f32.mrb[38].mxu1 }
 0xc1d   :  { %v2926_v19 = vmul.f32 %v2890_v26, %v10707_v12  ;;  %v10712_v22 = vpop.f32.mrb[39].mxu1  ;;  %v10786_v26 = vpop.permute.xlu1 %3011 }
 0xc1f   :  { %2950 = vrot.lane.b32.xlu0 %v2926_v19, %s8450_s13 }
 0xc20   :  { %v10715_v56 = vpop.f32.mrb[40].mxu1 }
 0xc21   :  { %v2927_v11 = vmul.f32 %v2894_v39, %v10715_v56  ;;  %v10718_v60 = vpop.f32.mrb[41].mxu1  ;;  %v10793_v39 = vld [vmem:[%s12236_s1 + $0x360] sm:$0xff] }
 0xc22   :  { %12275 = vst [vmem:[#allocation8_spill] sm:$0xff] %v10793_v39 }
 0xc23   :  { %2952 = vrot.lane.b32.xlu1 %v2927_v11, %s8450_s13 }
 0xc24   :  { %v10723_v14 = vpop.f32.mrb[42].mxu1 }
 0xc25   :  { %v2928_v57 = vmul.f32 %v2898_v28, %v10723_v14  ;;  %v10726_v30 = vpop.f32.mrb[43].mxu1 }
 0xc27   :  { %2954 = vrot.lane.b32.xlu0 %v2928_v57, %s8450_s13 }
 0xc28   :  { %v10729_v23 = vpop.f32.mrb[44].mxu1 }
 0xc29   :  { %v2929_v59 = vmul.f32 %v2902_v44, %v10729_v23  ;;  %v10734_v31 = vpop.f32.mrb[45].mxu1  ;;  %v3066_v44 = vpop.permute.xlu1 %3065  ;;  %v2874_v40 = vmul.f32 %v10774_v47, %v10729_v23 }
 0xc2b   :  { %3031 = vperm.xlu0 %8388, %v10650_v49   ;;  %2956 = vrot.lane.b32.xlu1 %v2929_v59, %s8450_s13 }
 0xc2c   :  { %v10738_v61 = vpop.f32.mrb[46].mxu1 }
 0xc2d   :  { %v2930_v5 = vmul.f32 %v2906_v34, %v10738_v61  ;;  %v10741_v35 = vpop.f32.mrb[47].mxu1 }
 0xc2f   :  { %2958 = vrot.lane.b32.xlu1 %v2930_v5, %s8450_s13  ;;  %8389 = vset.pattern.permute.xlu0 %v12271_v52 }
 0xc30   :  { %v10747_v63 = vpop.f32.mrb[48].mxu1  ;;  %3097 = vperm.xlu0 %8389, %v10650_v49  }
 0xc31   :  { %v2931_v4 = vmul.f32 %v2910_v0, %v10747_v63  ;;  %v10751_v41 = vpop.f32.mrb[49].mxu1  ;;  %v3062_v0 = vpop.permute.xlu0 %3061 }
 0xc33   :  { %2960 = vrot.lane.b32.xlu1 %v2931_v4, %s8450_s13 }
 0xc34   :  { %v10754_v1 = vpop.f32.mrb[50].mxu1  ;;  %8391 = vset.pattern.permute.xlu0 %v8453_v13 }
 0xc35   :  { %v2932_v18 = vmul.f32 %v2914_v25, %v10754_v1  ;;  %v10757_v20 = vpop.f32.mrb[51].mxu1  ;;  %3132 = vperm.xlu0 %8391, %v10784_v55   ;;  %v3070_v3 = vpop.permute.xlu0 %3069 }
 0xc37   :  { %2962 = vrot.lane.b32.xlu1 %v2932_v18, %s8450_s13 }
 0xc38   :  { %v10760_v43 = vpop.f32.mrb[52].mxu1 }
 0xc39   :  { %v2933_v49 = vmul.f32 %v2918_v50, %v10760_v43  ;;  %v10763_v6 = vpop.f32.mrb[53].mxu1  ;;  %8393 = vset.pattern.permute.xlu0 %v12244_v2  ;;  %v2847_v50 = vpop.permute.xlu1 %2846 }
 0xc3a   :  { %v10800_v16 = vpop.permute.xlu0 %3077 }
 0xc3b   :  { %2964 = vrot.lane.b32.xlu1 %v2933_v49, %s8450_s13 }
 0xc3c   :  { %v10768_v45 = vpop.f32.mrb[54].mxu1 }
 0xc3d   :  { %v2934_v38 = vmul.f32 %v2922_v17, %v10768_v45  ;;  %v10771_v48 = vpop.f32.mrb[55].mxu1  ;;  %v10798_v15 = vpop.permute.xlu1 %2851 }
 0xc3e   :  { %12272 = vst [vmem:[#allocation5_spill] sm:$0xff] %v10771_v48  ;;  %v10804_v11 = vpop.permute.xlu0 %3085 }
 0xc3f   :  { %2966 = vrot.lane.b32.xlu1 %v2934_v38, %s8450_s13 }
 0xc41   :  { %v10802_v19 = vpop.permute.xlu1 %3019 }
 0xc42   :  { %v2822_v57 = vpop.permute.xlu0 %2821 }
 0xc43   :  { %3127 = vperm.xlu1 %8390, %v10779_v53   ;;  %v2870_v62 = vmul.f32 %v2822_v57, %v10701_v51  ;;  %v3037_v51 = vmul.f32 %v10743_v37, %v10718_v60 }
 0xc45   :  { %v3074_v28 = vpop.permute.xlu1 %3073 }
 0xc46   :  { %v2827_v34 = vpop.permute.xlu0 %2826 }
 0xc47   :  { %3137 = vperm.xlu1 %8390, %v10793_v39   ;;  %v2871_v55 = vmul.f32 %v2827_v34, %v10707_v12  ;;  %v12278_v12 = vmov 0.0|0.0  }
 0xc49   :  { %v10806_v59 = vpop.permute.xlu1 %2856 }
 0xc4a   :  { %v10810_v4 = vpop.permute.xlu0 %2866  ;;  %v2877_v34 = vmul.f32 %v10806_v59, %v10754_v1 }
 0xc4b   :  { %8392 = vset.pattern.permute.xlu1 %v12244_v2 }
 0xc4d   :  { %v10808_v5 = vpop.permute.xlu1 %2861 }
 0xc4e   :  { %v3000_v18 = vpop.permute.xlu0 %2999 }
 0xc4f   :  { %v3036_v21 = vmul.f32 %v3000_v18, %v10712_v22 }
 0xc51   :  { %v10812_v25 = vpop.permute.xlu1 %3027 }
 0xc52   :  { %v3008_v17 = vpop.permute.xlu0 %3007  ;;  %v3043_v59 = vmul.f32 %v10812_v25, %v10763_v6 }
 0xc53   :  { %v3038_v9 = vmul.f32 %v3008_v17, %v10726_v30 }
 0xc55   :  { %v10814_v49 = vpop.permute.xlu1 %3081 }
 0xc56   :  { %v3016_v38 = vpop.permute.xlu0 %3015 }
 0xc59   :  { %v10816_v13 = vpop.permute.xlu1 %3089 }
 0xc5a   :  { %12276 = vst [vmem:[#allocation9_spill] sm:$0xff] %v10816_v13  ;;  %v10818_v2 = vpop.permute.xlu0 %3023 }
 0xc5d   :  { %v10820_v27 = vpop.permute.xlu1 %3093 }
 0xc5e   :  { %12277 = vst [vmem:[#allocation10_spill] sm:$0xff] %v10820_v27 }
 0xc89   :  { %v2947_v32 = vpop.permute.xlu0 %2946 }
 0xc8a   :  { %v2979_v24 = vadd.f32 %v2947_v32, %v2869_v8  ;;  %v2872_v32 = vmul.f32 %v10731_v7, %v10715_v56 }
 0xc8c   :  { %v3045_v33 = vadd.f32 %v3034_v46, %v2979_v24 }
 0xc8d   :  { %v2949_v52 = vpop.permute.xlu1 %2948 }
 0xc8e   :  { %v2980_v39 = vadd.f32 %v2949_v52, %v2870_v62  ;;  %v3100_v53 = vadd.f32 %v3058_v42, %v3045_v33  ;;  %v2873_v33 = vmul.f32 %v10765_v36, %v10723_v14  ;;  %v3039_v14 = vmul.f32 %v10786_v26, %v10734_v31 }
 0xc90   :  { %v3046_v27 = vadd.f32 %v3035_v54, %v2980_v39  ;;  %v3111_v8 = vmax.f32 %v3100_v53, 0.0  ;;  %v2875_v53 = vmul.f32 %v2847_v50, %v10738_v61  ;;  %v3041_v61 = vmul.f32 %v10802_v19, %v10751_v41 }
 0xc91   :  { %v2951_v48 = vpop.permute.xlu0 %2950  ;;  %v2878_v41 = vmul.f32 %v10808_v5, %v10760_v43  ;;  %v12280_v43 = vld [vmem:[#allocation5_spill] sm:$0xff] }
 0xc92   :  { %v3101_v29 = vadd.f32 %v3062_v0, %v3046_v27  ;;  %v2981_v13 = vadd.f32 %v2951_v48, %v2871_v55  ;;  %v2876_v0 = vmul.f32 %v10798_v15, %v10747_v63  ;;  %v3042_v63 = vmul.f32 %v10818_v2, %v10757_v20  ;;  %v12279_v2 = vld [vmem:[#allocation9_spill] sm:$0xff] }
 0xc94   :  { %v3112_v10 = vmax.f32 %v3101_v29, 0.0  ;;  %v3047_v24 = vadd.f32 %v3036_v21, %v2981_v13 }
 0xc95   :  { %v2953_v46 = vpop.permute.xlu1 %2952 }
 0xc96   :  { %v2982_v62 = vadd.f32 %v2953_v46, %v2872_v32  ;;  %v8132_v52 = vpack.c.bf16 %v3112_v10, %v3111_v8  ;;  %v3102_v54 = vadd.f32 %v3066_v44, %v3047_v24  ;;  %v3040_v44 = vmul.f32 %v3016_v38, %v10741_v35  ;;  %v12281_v10 = vld [vmem:[#allocation10_spill] sm:$0xff] }
 0xc97   :  { %v2879_v32 = vmul.f32 %v10810_v4, %v10768_v45  ;;  %v12282_v45 = vmov 0.0  }
 0xc98   :  { %v3048_v58 = vadd.f32 %v3037_v51, %v2982_v62  ;;  %8133 = vmatpush3.bf16.msra.mxu0 %v8132_v52  ;;  %v3113_v7 = vmax.f32 %v3102_v54, 0.0  ;;  %v12283_v54 = vld [vmem:[#allocation6_spill] sm:$0xff] }
 0xc99   :  { %v2955_v27 = vpop.permute.xlu0 %2954  ;;  %8134 = vmatprep.subr.bf16.mxu0 %v12278_v12 }
 0xc9a   :  { %v3103_v22 = vadd.f32 %v3070_v3, %v3048_v58  ;;  %v2983_v56 = vadd.f32 %v2955_v27, %v2873_v33  ;;  %v12284_v58 = vld [vmem:[#allocation7_spill] sm:$0xff]  ;;  %v12285_v27 = vld [vmem:[#allocation8_spill] sm:$0xff] }
 0xc9c   :  { %v3114_v60 = vmax.f32 %v3103_v22, 0.0  ;;  %v3049_v37 = vadd.f32 %v3038_v9, %v2983_v56  ;;  %v3230_v9 = vld [vmem:[%s12236_s1 + $0x370] sm:$0xff]  ;;  %v10883_v22 = vld [vmem:[%s12236_s1 + $0x380] sm:$0xff] }
 0xc9d   :  { %v2957_v42 = vpop.permute.xlu1 %2956  ;;  %7243 = vmatprep.mubr.msk.f32.mxu1 %vm2468_vm4, %v3230_v9  ;;  %3244 = vperm.xlu1 %8392, %v3230_v9   ;;  %v10889_v56 = vld [vmem:[%s12236_s1 + $0x390] sm:$0xff] }
 0xc9e   :  { %v2984_v36 = vadd.f32 %v2957_v42, %v2874_v40  ;;  %v8135_v48 = vpack.c.bf16 %v3114_v60, %v3113_v7  ;;  %v3104_v55 = vadd.f32 %v3074_v28, %v3049_v37  ;;  %3249 = vperm.xlu0 %8393, %v10883_v22   ;;  %v10895_v40 = vld [vmem:[%s12236_s1 + $0x3b0] sm:$0xff]  ;;  %v10901_v7 = vld [vmem:[%s12236_s1 + $0x3a0] sm:$0xff] }
 0xc9f   :  { %v10907_v60 = vld [vmem:[%s12236_s1 + $0x3d0] sm:$0xff]  ;;  %v10913_v37 = vld [vmem:[%s12236_s1 + $0x3c0] sm:$0xff] }
 0xca0   :  { %v3050_v39 = vadd.f32 %v3039_v14, %v2984_v36  ;;  %8136 = vmatpush3.bf16.msra.mxu0 %v8135_v48  ;;  %v3115_v3 = vmax.f32 %v3104_v55, 0.0  ;;  %v10919_v42 = vld [vmem:[%s12236_s1 + $0x3f0] sm:$0xff]  ;;  %v10925_v14 = vld [vmem:[%s12236_s1 + $0x3e0] sm:$0xff]  ;;  %v12286_v55 = vmov 1  }
 0xca1   :  { %v2959_v30 = vpop.permute.xlu1 %2958  ;;  %8137 = vmatprep.subr.bf16.mxu0 %v12278_v12  ;;  %3254 = vperm.xlu1 %8392, %v10889_v56   ;;  %v10931_v36 = vld [vmem:[%s12236_s1 + $0x410] sm:$0xff]  ;;  %v10937_v48 = vld [vmem:[%s12236_s1 + $0x400] sm:$0xff] }
 0xca2   :  { %v3105_v23 = vadd.f32 %v10800_v16, %v3050_v39  ;;  %v2985_v47 = vadd.f32 %v2959_v30, %v2875_v53  ;;  %3264 = vperm.xlu0 %8393, %v10895_v40   ;;  %v10943_v53 = vld [vmem:[%s12236_s1 + $0x430] sm:$0xff]  ;;  %v10949_v39 = vld [vmem:[%s12236_s1 + $0x420] sm:$0xff] }
 0xca3   :  { %v10956_v30 = vld [vmem:[%s12236_s1 + $0x440] sm:$0xff]  ;;  %v3535_v9 = vld [vmem:[%s12234_s2 + $0x1ad0] sm:$0xff] }
 0xca4   :  { %v3116_v31 = vmax.f32 %v3105_v23, 0.0  ;;  %v3051_v26 = vadd.f32 %v3040_v44, %v2985_v47  ;;  %v10961_v44 = vld [vmem:[%s12236_s1 + $0x460] sm:$0xff]  ;;  %v12287_v23 = vmov 2   ;;  %v10971_v47 = vld [vmem:[%s12236_s1 + $0x450] sm:$0xff] }
 0xca5   :  { %v2961_v57 = vpop.permute.xlu1 %2960  ;;  %3259 = vperm.xlu1 %8392, %v10901_v7  }
 0xca6   :  { %v2986_v50 = vadd.f32 %v2961_v57, %v2876_v0  ;;  %v8138_v28 = vpack.c.bf16 %v3116_v31, %v3115_v3  ;;  %v3106_v35 = vadd.f32 %v10814_v49, %v3051_v26  ;;  %3274 = vperm.xlu0 %8393, %v10907_v60   ;;  %v12288_v0 = vmov 3   ;;  %v10983_v3 = vld [vmem:[%s12236_s1 + $0x470] sm:$0xff] }
 0xca7   :  { %v10995_v31 = vld [vmem:[%s12236_s1 + $0x490] sm:$0xff] }
 0xca8   :  { %v3052_v18 = vadd.f32 %v3041_v61, %v2986_v50  ;;  %8139 = vmatpush3.bf16.msra.mxu0 %v8138_v28  ;;  %v3117_v19 = vmax.f32 %v3106_v35, 0.0 }
 0xca9   :  { %v2963_v16 = vpop.permute.xlu1 %2962  ;;  %8140 = vmatprep.subr.bf16.mxu0 %v12278_v12  ;;  %3269 = vperm.xlu1 %8392, %v10913_v37  }
 0xcaa   :  { %v3107_v15 = vadd.f32 %v10804_v11, %v3052_v18  ;;  %v2987_v17 = vadd.f32 %v2963_v16, %v2877_v34  ;;  %v3032_v29 = vpop.permute.xlu0 %3031  ;;  %3284 = vperm.xlu0 %8393, %v10919_v42   ;;  %v12289_v16 = vld [vmem:[#allocation2_spill] sm:$0xff] }
 0xcab   :  { %v3044_v5 = vmul.f32 %v3032_v29, %v12280_v43  ;;  %v3530_v43 = vld [vmem:[%s12234_s2 + $0x1a48] sm:$0xff] }
 0xcac   :  { %v3118_v38 = vmax.f32 %v3107_v15, 0.0  ;;  %v3053_v13 = vadd.f32 %v3042_v63, %v2987_v17  ;;  %v12290_v15 = vld [vmem:[#allocation3_spill] sm:$0xff] }
 0xcad   :  { %v2965_v1 = vpop.permute.xlu1 %2964  ;;  %3279 = vperm.xlu1 %8392, %v10925_v14  }
 0xcae   :  { %v2988_v49 = vadd.f32 %v2965_v1, %v2878_v41  ;;  %v8141_v21 = vpack.c.bf16 %v3118_v38, %v3117_v19  ;;  %v3108_v20 = vadd.f32 %v12279_v2, %v3053_v13  ;;  %3294 = vperm.xlu0 %8393, %v10931_v36   ;;  %v3525_v2 = vld [vmem:[%s12234_s2 + $0x19e0] sm:$0xff] }
 0xcaf   :  { %v3098_v51 = vpop.permute.xlu0 %3097 }
 0xcb0   :  { %v3054_v11 = vadd.f32 %v3043_v59, %v2988_v49  ;;  %8142 = vmatpush3.bf16.msra.mxu0 %v8141_v21  ;;  %v3119_v6 = vmax.f32 %v3108_v20, 0.0  ;;  %v3524_v59 = vld [vmem:[%s12234_s2 + $0x19b8] sm:$0xff]  ;;  %v3526_v49 = vld [vmem:[%s12234_s2 + $0x19e8] sm:$0xff]  ;;  %v12291_v21 = vld [vmem:[#allocation4_spill] sm:$0xff] }
 0xcb1   :  { %v2967_v8 = vpop.permute.xlu1 %2966  ;;  %8143 = vmatprep.subr.bf16.mxu0 %v12278_v12  ;;  %3289 = vperm.xlu1 %8392, %v10937_v48   ;;  %v8150_v20 = vpack.c.bf16 %v3526_v49, %v3524_v59 }
 0xcb2   :  { %v3109_v24 = vadd.f32 %v12281_v10, %v3054_v11  ;;  %v2989_v46 = vadd.f32 %v2967_v8, %v2879_v32  ;;  %8394 = vset.pattern.permute.xlu0 %v12286_v55  ;;  %v3523_v32 = vld [vmem:[%s12234_s2 + $0x19b0] sm:$0xff]  ;;  %v3528_v8 = vld [vmem:[%s12234_s2 + $0x1a18] sm:$0xff] }
 0xcb3   :  { %3785 = vperm.xlu0 %8394, %v10943_v53   ;;  %v8152_v11 = vpack.c.bf16 %v3525_v2, %v3523_v32  ;;  %v3527_v10 = vld [vmem:[%s12234_s2 + $0x1a10] sm:$0xff] }
 0xcb4   :  { %v3120_v25 = vmax.f32 %v3109_v24, 0.0  ;;  %v3055_v62 = vadd.f32 %v3044_v5, %v2989_v46  ;;  %v3133_v50 = vpop.permute.xlu0 %3132  ;;  %v8154_v5 = vpack.c.bf16 %v3530_v43, %v3528_v8  ;;  %v3529_v24 = vld [vmem:[%s12234_s2 + $0x1a40] sm:$0xff] }
 0xcb5   :  { %3299 = vperm.xlu1 %8392, %v10949_v39   ;;  %v8156_v46 = vpack.c.bf16 %v3529_v24, %v3527_v10 }
 0xcb6   :  { %v3110_v52 = vadd.f32 %v3098_v51, %v3055_v62  ;;  %v8144_v33 = vpack.c.bf16 %v3120_v25, %v3119_v6  ;;  %v3532_v51 = vld [vmem:[%s12234_s2 + $0x1a78] sm:$0xff]  ;;  %v3534_v6 = vld [vmem:[%s12234_s2 + $0x1aa8] sm:$0xff]  ;;  %v3531_v62 = vld [vmem:[%s12234_s2 + $0x1a70] sm:$0xff] }
 0xcb7   :  { %3797 = vperm.xlu0 %8394, %v10961_v44   ;;  %v8158_v25 = vpack.c.bf16 %v3534_v6, %v3532_v51 }
 0xcb8   :  { %8145 = vmatpush3.bf16.msra.mxu0 %v8144_v33  ;;  %v3121_v4 = vmax.f32 %v3110_v52, 0.0  ;;  %v3533_v52 = vld [vmem:[%s12234_s2 + $0x1aa0] sm:$0xff] }
 0xcb9   :  { %7226 = vmatprep.subr.mxu0 %v12282_v45  ;;  %8395 = vset.pattern.permute.xlu1 %v12286_v55  ;;  %v8160_v33 = vpack.c.bf16 %v3533_v52, %v3531_v62 }
 0xcba   :  { %3789 = vperm.xlu1 %8395, %v10956_v30  }
 0xcbc   :  { %7227 = vmatpush3.msra.mxu0 %v3121_v4  ;;  %v11066_v4 = vld [vmem:[%s12236_s1 + $0x480] sm:$0xff] }
 0xcbd   :  { %7229 = vmatmul.mubr.msk.f32.vlgmr.msra.gmra.mrb[54].mxu0 %vm3140_vm6, %v12283_v54  ;;  %v3536_v54 = vld [vmem:[%s12234_s2 + $0x1ad8] sm:$0xff]  ;;  %3805 = vperm.xlu0 %8394, %v11066_v4  }
 0xcbe   :  { %7231 = vmatprep.mubr.msk.f32.mxu0 %vm8446_vm0, %v12282_v45  ;;  %8396 = vset.pattern.permute.xlu1 %v12287_v23 }
 0xcbf   :  { %3905 = vperm.xlu1 %8396, %v10943_v53  }
 0xcc1   :  { %7232 = vmatmul.mubr.msk.f32.gmra.mrb[56].mxu0 %vm3140_vm6, %v12284_v58  ;;  %v3538_v58 = vld [vmem:[%s12234_s2 + $0x1b08] sm:$0xff] }
 0xcc2   :  { %7234 = vmatprep.mubr.msk.f32.mxu0 %vm8446_vm0, %v12282_v45  ;;  %v3128_v26 = vpop.permute.xlu1 %3127 }
 0xcc3   :  { %8397 = vset.pattern.permute.xlu1 %v12286_v55 }
 0xcc4   :  { %3793 = vperm.xlu1 %8397, %v10971_v47  }
 0xcc5   :  { %7235 = vmatmul.mubr.msk.f32.gmra.mrb[58].mxu0 %vm3140_vm6, %v12285_v27  ;;  %v8162_v27 = vpack.c.bf16 %v3538_v58, %v3536_v54 }
 0xcc6   :  { %v3138_v41 = vpop.permute.xlu1 %3137 }
 0xcc8   :  { %8398 = vset.pattern.permute.xlu1 %v12288_v0 }
 0xcc9   :  { %4025 = vperm.xlu1 %8398, %v10943_v53  }
 0xccd   :  { %4029 = vperm.xlu1 %8398, %v10956_v30  }
 0xcd1   :  { %8399 = vset.pattern.permute.xlu1 %v12287_v23 }
 0xcd2   :  { %3913 = vperm.xlu1 %8399, %v10971_v47  }
 0xcd6   :  { %8400 = vset.pattern.permute.xlu1 %v12286_v55 }
 0xcd7   :  { %3801 = vperm.xlu1 %8400, %v10983_v3  }
 0xcdb   :  { %8401 = vset.pattern.permute.xlu1 %v12288_v0 }
 0xcdc   :  { %4033 = vperm.xlu1 %8401, %v10971_v47  }
 0xce0   :  { %4037 = vperm.xlu1 %8401, %v10961_v44  }
 0xce4   :  { %8402 = vset.pattern.permute.xlu1 %v12287_v23 }
 0xce5   :  { %3921 = vperm.xlu1 %8402, %v10983_v3  }
 0xce9   :  { %8403 = vset.pattern.permute.xlu1 %v12286_v55 }
 0xcea   :  { %3809 = vperm.xlu1 %8403, %v10995_v31  }
 0xcee   :  { %8404 = vset.pattern.permute.xlu1 %v12288_v0 }
 0xcef   :  { %4041 = vperm.xlu1 %8404, %v10983_v3  }
 0xcf3   :  { %4045 = vperm.xlu1 %8404, %v11066_v4  }
 0xcf7   :  { %8405 = vset.pattern.permute.xlu1 %v12287_v23 }
 0xcf8   :  { %3929 = vperm.xlu1 %8405, %v10995_v31  }
 0xcfc   :  { %8406 = vset.pattern.permute.xlu1 %v12286_v55 }
 0xd90   :  { %v3213_v57 = vpop.f32.mrb[54].mxu0 }
 0xd91   :  { %v7230_v61 = vpop.f32.mrb[55].mxu0  ;;  %v3214_v28 = vadd.f32 %v3213_v57, %v3128_v26 }
 0xd93   :  { %v3227_v63 = vadd.f32 %v3214_v28, %v12289_v16 }
 0xd94   :  { %v3218_v34 = vpop.f32.mrb[56].mxu0 }
 0xd95   :  { %v3219_v35 = vadd.f32 %v3218_v34, %v3133_v50  ;;  %v7233_v18 = vpop.f32.mrb[57].mxu0 }
 0xd97   :  { %v3228_v17 = vadd.f32 %v3219_v35, %v12290_v15 }
 0xd98   :  { %v3223_v19 = vpop.f32.mrb[58].mxu0 }
 0xd99   :  { %v3224_v38 = vadd.f32 %v3223_v19, %v3138_v41  ;;  %v7236_v13 = vpop.f32.mrb[59].mxu0  ;;  %v8146_v1 = vpack.c.bf16 %v3228_v17, %v3227_v63 }
 0xd9b   :  { %v3229_v29 = vadd.f32 %v3224_v38, %v12291_v21  ;;  %8147 = vmatprep.subr.bf16.mxu1 %v8146_v1 }
 0xd9c   :  { %8149 = vmatpush3.bf16.msra.mxu1 %v8146_v1 }
 0xd9d   :  { %7241 = vmatprep.subr.mxu1 %v3229_v29 }
 0xda0   :  { %7242 = vmatpush3.msra.mxu1 %v3229_v29 }
 0xda1   :  { %7244 = vmatmul.mubr.msk.f32.vlgmr.msra.gmra.mrb[56].mxu1 %vm2468_vm4, %v10883_v22  ;;  %8151 = vmatprep.subr.bf16.mxu1 %v8150_v20  ;;  %v3537_v22 = vld [vmem:[%s12234_s2 + $0x1b00] sm:$0xff] }
 0xda2   :  { %7246 = vmatprep.mubr.msk.f32.mxu1 %vm2468_vm4, %v10889_v56  ;;  %8153 = vmatpush1.bf16.msra.mxu1 %v8152_v11  ;;  %v8164_v56 = vpack.c.bf16 %v3537_v22, %v3535_v9 }
 0xda3   :  { %8155 = vmatprep.subr.bf16.mxu1 %v8154_v5 }
 0xda5   :  { %7247 = vmatmul.mubr.msk.f32.gmra.mrb[58].mxu1 %vm2468_vm4, %v10901_v7  ;;  %v11096_v7 = vld [vmem:[%s12236_s1 + $0x4a0] sm:$0xff] }
 0xda6   :  { %7249 = vmatprep.mubr.msk.f32.mxu1 %vm2468_vm4, %v10895_v40  ;;  %8157 = vmatpush1.bf16.msra.mxu1 %v8156_v46  ;;  %v11088_v40 = vld [vmem:[%s12236_s1 + $0x4b0] sm:$0xff] }
 0xda7   :  { %8159 = vmatprep.subr.bf16.mxu1 %v8158_v25  ;;  %3817 = vperm.xlu1 %8406, %v11088_v40  }
 0xda8   :  { %3813 = vperm.xlu0 %8394, %v11096_v7  }
 0xda9   :  { %7250 = vmatmul.mubr.msk.f32.gmra.mrb[60].mxu1 %vm2468_vm4, %v10913_v37  ;;  %v11114_v37 = vld [vmem:[%s12236_s1 + $0x4c0] sm:$0xff] }
 0xdaa   :  { %7252 = vmatprep.mubr.msk.f32.mxu1 %vm2468_vm4, %v10907_v60  ;;  %8161 = vmatpush1.bf16.msra.mxu1 %v8160_v33  ;;  %v11105_v60 = vld [vmem:[%s12236_s1 + $0x4d0] sm:$0xff] }
 0xdab   :  { %8163 = vmatprep.subr.bf16.mxu1 %v8162_v27  ;;  %8407 = vset.pattern.permute.xlu1 %v12288_v0 }
 0xdac   :  { %4049 = vperm.xlu1 %8407, %v10995_v31   ;;  %3821 = vperm.xlu0 %8394, %v11114_v37  }
 0xdad   :  { %7253 = vmatmul.mubr.msk.f32.gmra.mrb[62].mxu1 %vm2468_vm4, %v10925_v14  ;;  %v12292_v14 = vmov 0  }
 0xdae   :  { %7255 = vmatprep.mubr.msk.f32.mxu1 %vm2468_vm4, %v10919_v42  ;;  %8165 = vmatpush1.bf16.msra.mxu1 %v8164_v56  ;;  %v11123_v42 = vld [vmem:[%s12236_s1 + $0x4e0] sm:$0xff] }
 0xdb0   :  { %4053 = vperm.xlu1 %8407, %v11096_v7   ;;  %3829 = vperm.xlu0 %8394, %v11123_v42  }
 0xdb1   :  { %7256 = vmatmul.mubr.msk.f32.gmra.mrb[64].mxu1 %vm2468_vm4, %v10937_v48  ;;  %v8455_v48 = vmov 5  }
 0xdb2   :  { %7258 = vmatprep.mubr.msk.f32.mxu1 %vm2468_vm4, %v10931_v36  ;;  %v8454_v36 = vmov 4  }
 0xdb4   :  { %8408 = vset.pattern.permute.xlu1 %v12287_v23  ;;  %8411 = vset.pattern.permute.xlu0 %v12287_v23 }
 0xdb5   :  { %7259 = vmatmul.mubr.msk.f32.gmra.mrb[66].mxu1 %vm2468_vm4, %v10949_v39  ;;  %3937 = vperm.xlu1 %8408, %v11088_v40   ;;  %v3250_v39 = vpop.permute.xlu0 %3249 }
 0xdb6   :  { %3639 = vmatprep.mubr.f32.mxu1 %v12282_v45  ;;  %3909 = vperm.xlu0 %8411, %v10956_v30  }
 0xdb9   :  { %8409 = vset.pattern.permute.xlu1 %v12286_v55  ;;  %v3265_v41 = vpop.permute.xlu0 %3264 }
 0xdba   :  { %3825 = vperm.xlu1 %8409, %v11105_v60   ;;  %3917 = vperm.xlu0 %8411, %v10961_v44  }
 0xdbd   :  { %v3275_v8 = vpop.permute.xlu0 %3274 }
 0xdbe   :  { %8410 = vset.pattern.permute.xlu1 %v12288_v0  ;;  %3925 = vperm.xlu0 %8411, %v11066_v4  }
 0xdbf   :  { %4057 = vperm.xlu1 %8410, %v11088_v40  }
 0xdc1   :  { %v3285_v56 = vpop.permute.xlu0 %3284 }
 0xdc2   :  { %3933 = vperm.xlu0 %8411, %v11096_v7  }
 0xdc3   :  { %4061 = vperm.xlu1 %8410, %v11114_v37  }
 0xdc6   :  { %3941 = vperm.xlu0 %8411, %v11114_v37  }
 0xdc7   :  { %8412 = vset.pattern.permute.xlu1 %v12287_v23 }
 0xdc8   :  { %3945 = vperm.xlu1 %8412, %v11105_v60  }
 0xdca   :  { %3949 = vperm.xlu0 %8411, %v11123_v42  }
 0xdcc   :  { %8413 = vset.pattern.permute.xlu1 %v12288_v0 }
 0xdcd   :  { %4065 = vperm.xlu1 %8413, %v11105_v60  }
 0xdce   :  { %8414 = vset.pattern.permute.xlu0 %v12292_v14 }
 0xdcf   :  { %3714 = vperm.xlu0 %8414, %v10943_v53  }
 0xdd1   :  { %4069 = vperm.xlu1 %8413, %v11123_v42  }
 0xdd3   :  { %3729 = vperm.xlu0 %8414, %v10961_v44  }
 0xdd5   :  { %8415 = vset.pattern.permute.xlu1 %v12292_v14 }
 0xdd6   :  { %3719 = vperm.xlu1 %8415, %v10956_v30  }
 0xdd7   :  { %3749 = vperm.xlu0 %8414, %v11096_v7  }
 0xdda   :  { %3724 = vperm.xlu1 %8415, %v10971_v47  }
 0xddb   :  { %3754 = vperm.xlu0 %8414, %v11088_v40  }
 0xdde   :  { %8416 = vset.pattern.permute.xlu1 %v8454_v36 }
 0xddf   :  { %4145 = vperm.xlu1 %8416, %v10943_v53   ;;  %3764 = vperm.xlu0 %8414, %v11105_v60  }
 0xde3   :  { %8417 = vset.pattern.permute.xlu1 %v12292_v14  ;;  %8424 = vset.pattern.permute.xlu0 %v8454_v36 }
 0xde4   :  { %3734 = vperm.xlu1 %8417, %v10983_v3   ;;  %4149 = vperm.xlu0 %8424, %v10956_v30  }
 0xde8   :  { %3739 = vperm.xlu1 %8417, %v11066_v4   ;;  %4153 = vperm.xlu0 %8424, %v10971_v47  }
 0xdec   :  { %8418 = vset.pattern.permute.xlu1 %v8455_v48  ;;  %4161 = vperm.xlu0 %8424, %v10983_v3  }
 0xded   :  { %4217 = vperm.xlu1 %8418, %v10943_v53   ;;  %v3245_v53 = vpop.permute.xlu1 %3244 }
 0xdf0   :  { %4165 = vperm.xlu0 %8424, %v11066_v4  }
 0xdf1   :  { %8419 = vset.pattern.permute.xlu1 %v8454_v36  ;;  %v3255_v55 = vpop.permute.xlu1 %3254 }
 0xdf2   :  { %4157 = vperm.xlu1 %8419, %v10961_v44  }
 0xdf4   :  { %4169 = vperm.xlu0 %8424, %v10995_v31  }
 0xdf5   :  { %v3260_v26 = vpop.permute.xlu1 %3259 }
 0xdf6   :  { %8420 = vset.pattern.permute.xlu1 %v12292_v14 }
 0xdf7   :  { %3744 = vperm.xlu1 %8420, %v10995_v31  }
 0xdf8   :  { %4173 = vperm.xlu0 %8424, %v11096_v7  }
 0xdf9   :  { %v3270_v59 = vpop.permute.xlu1 %3269 }
 0xdfb   :  { %8421 = vset.pattern.permute.xlu1 %v8455_v48 }
 0xdfc   :  { %4225 = vperm.xlu1 %8421, %v10971_v47   ;;  %4177 = vperm.xlu0 %8424, %v11088_v40  }
 0xdfd   :  { %v3280_v62 = vpop.permute.xlu1 %3279 }
 0xe00   :  { %4229 = vperm.xlu1 %8421, %v10961_v44   ;;  %4181 = vperm.xlu0 %8424, %v11114_v37  }
 0xe04   :  { %8422 = vset.pattern.permute.xlu1 %v12292_v14  ;;  %8427 = vset.pattern.permute.xlu0 %v8455_v48 }
 0xe05   :  { %3759 = vperm.xlu1 %8422, %v11114_v37   ;;  %4221 = vperm.xlu0 %8427, %v10956_v30  }
 0xe09   :  { %8423 = vset.pattern.permute.xlu1 %v8455_v48  ;;  %4249 = vperm.xlu0 %8427, %v11088_v40  }
 0xe0a   :  { %4233 = vperm.xlu1 %8423, %v10983_v3  }
 0xe0d   :  { %4253 = vperm.xlu0 %8427, %v11114_v37  }
 0xe0e   :  { %4237 = vperm.xlu1 %8423, %v11066_v4  }
 0xe11   :  { %4257 = vperm.xlu0 %8427, %v11105_v60  }
 0xe12   :  { %8425 = vset.pattern.permute.xlu1 %v12292_v14 }
 0xe13   :  { %3769 = vperm.xlu1 %8425, %v11123_v42  }
 0xe15   :  { %4261 = vperm.xlu0 %8427, %v11123_v42  }
 0xe17   :  { %8426 = vset.pattern.permute.xlu1 %v8455_v48 }
 0xe18   :  { %4241 = vperm.xlu1 %8426, %v10995_v31  }
 0xe1c   :  { %4245 = vperm.xlu1 %8426, %v11096_v7  }
 0xe20   :  { %8428 = vset.pattern.permute.xlu1 %v8454_v36 }
 0xe21   :  { %4185 = vperm.xlu1 %8428, %v11105_v60  }
 0xe25   :  { %4189 = vperm.xlu1 %8428, %v11123_v42  }
 0xe74   :  { %v7245_v44 = vpop.f32.mrb[56].mxu1 }
 0xe75   :  { %v3398_v23 = vadd.f32 %v7245_v44, %v3250_v39  ;;  %v3392_v47 = vpop.f32.mrb[57].mxu1 }
 0xe76   :  { %v3393_v0 = vadd.f32 %v3392_v47, %v3245_v53 }
 0xe77   :  { %v3452_v3 = vadd.f32 3.0, %v3398_v23 }
 0xe78   :  { %v3451_v57 = vadd.f32 3.0, %v3393_v0  ;;  %v7248_v61 = vpop.f32.mrb[58].mxu1 }
 0xe79   :  { %v3464_v50 = vmax.f32 %v3452_v3, 0.0  ;;  %v3408_v28 = vadd.f32 %v7248_v61, %v3260_v26  ;;  %v3402_v34 = vpop.f32.mrb[59].mxu1  ;;  %v3295_v3 = vpop.permute.xlu0 %3294 }
 0xe7a   :  { %v3463_v35 = vmax.f32 %v3451_v57, 0.0  ;;  %v3403_v18 = vadd.f32 %v3402_v34, %v3255_v55  ;;  %v3290_v55 = vpop.permute.xlu1 %3289 }
 0xe7b   :  { %v3476_v16 = vmin.f32 %v3464_v50, 6.0  ;;  %v3454_v63 = vadd.f32 3.0, %v3408_v28 }
 0xe7c   :  { %v3475_v15 = vmin.f32 %v3463_v35, 6.0  ;;  %v3453_v31 = vadd.f32 3.0, %v3403_v18  ;;  %v7251_v17 = vpop.f32.mrb[60].mxu1 }
 0xe7d   :  { %v3412_v19 = vpop.f32.mrb[61].mxu1  ;;  %v3488_v49 = vmul.f32 0.16666667, %v3476_v16  ;;  %v3466_v21 = vmax.f32 %v3454_v63, 0.0  ;;  %v3418_v30 = vadd.f32 %v7251_v17, %v3270_v59 }
 0xe7e   :  { %v3487_v38 = vmul.f32 0.16666667, %v3475_v15  ;;  %v3465_v13 = vmax.f32 %v3453_v31, 0.0  ;;  %v3413_v1 = vadd.f32 %v3412_v19, %v3265_v41  ;;  %v3300_v34 = vpop.permute.xlu1 %3299 }
 0xe7f   :  { %v3500_v43 = vmul.f32 %v3488_v49, %v3398_v23  ;;  %v3478_v5 = vmin.f32 %v3466_v21, 6.0  ;;  %v3456_v24 = vadd.f32 3.0, %v3418_v30 }
 0xe80   :  { %v3499_v29 = vmul.f32 %v3487_v38, %v3393_v0  ;;  %v3477_v32 = vmin.f32 %v3465_v13, 6.0  ;;  %v3455_v2 = vadd.f32 3.0, %v3413_v1  ;;  %v7254_v20 = vpop.f32.mrb[62].mxu1 }
 0xe81   :  { %v3422_v11 = vpop.f32.mrb[63].mxu1  ;;  %v3490_v52 = vmul.f32 0.16666667, %v3478_v5  ;;  %v3428_v33 = vadd.f32 %v7254_v20, %v3280_v62  ;;  %v3468_v54 = vmax.f32 %v3456_v24, 0.0 }
 0xe82   :  { %6620 = vmatmul.mubr.msk.f32.vlgmr.msra.gmra.mrb[68].mxu1 %vm2649_vm5, %v3499_v29  ;;  %v3489_v10 = vmul.f32 0.16666667, %v3477_v32  ;;  %v3467_v46 = vmax.f32 %v3455_v2, 0.0  ;;  %v3423_v51 = vadd.f32 %v3422_v11, %v3275_v8  ;;  %v3790_v8 = vpop.permute.xlu1 %3789 }
 0xe83   :  { %3645 = vmatprep.mubr.f32.mxu1 %v12282_v45  ;;  %v3502_v40 = vmul.f32 %v3490_v52, %v3408_v28  ;;  %v3458_v7 = vadd.f32 3.0, %v3428_v33  ;;  %v3480_v37 = vmin.f32 %v3468_v54, 6.0  ;;  %v3786_v54 = vpop.permute.xlu0 %3785 }
 0xe84   :  { %v7257_v6 = vpop.f32.mrb[64].mxu1  ;;  %v3501_v4 = vmul.f32 %v3489_v10, %v3403_v18  ;;  %v3479_v58 = vmin.f32 %v3467_v46, 6.0  ;;  %v3457_v27 = vadd.f32 3.0, %v3423_v51 }
 0xe85   :  { %v3432_v25 = vpop.f32.mrb[65].mxu1  ;;  %v3470_v39 = vmax.f32 %v3458_v7, 0.0  ;;  %v3438_v44 = vadd.f32 %v7257_v6, %v3290_v55  ;;  %v3492_v60 = vmul.f32 0.16666667, %v3480_v37 }
 0xe86   :  { %6621 = vmatmul.mubr.msk.f32.gmra.mrb[70].mxu1 %vm2649_vm5, %v3500_v43  ;;  %v3491_v36 = vmul.f32 0.16666667, %v3479_v58  ;;  %v3469_v48 = vmax.f32 %v3457_v27, 0.0  ;;  %v3433_v53 = vadd.f32 %v3432_v25, %v3285_v56  ;;  %v3906_v43 = vpop.permute.xlu1 %3905 }
 0xe87   :  { %3651 = vmatprep.mubr.f32.mxu1 %v12282_v45  ;;  %v3482_v26 = vmin.f32 %v3470_v39, 6.0  ;;  %v3460_v57 = vadd.f32 3.0, %v3438_v44  ;;  %v3504_v61 = vmul.f32 %v3492_v60, %v3418_v30  ;;  %v3798_v27 = vpop.permute.xlu0 %3797 }
 0xe88   :  { %v7260_v9 = vpop.f32.mrb[66].mxu1  ;;  %v3503_v23 = vmul.f32 %v3491_v36, %v3413_v1  ;;  %v3481_v47 = vmin.f32 %v3469_v48, 6.0  ;;  %v3459_v0 = vadd.f32 3.0, %v3433_v53 }
 0xe89   :  { %v3442_v22 = vpop.f32.mrb[67].mxu1  ;;  %v3494_v35 = vmul.f32 0.16666667, %v3482_v26  ;;  %v3472_v18 = vmax.f32 %v3460_v57, 0.0  ;;  %v3448_v15 = vadd.f32 %v7260_v9, %v3300_v34 }
 0xe8a   :  { %6622 = vmatmul.mubr.msk.f32.gmra.mrb[72].mxu1 %vm2649_vm5, %v3501_v4  ;;  %v3493_v42 = vmul.f32 0.16666667, %v3481_v47  ;;  %v3471_v50 = vmax.f32 %v3459_v0, 0.0  ;;  %v3443_v28 = vadd.f32 %v3442_v22, %v3295_v3  ;;  %v11205_v5 = vpop.permute.xlu1 %3793 }
 0xe8b   :  { %3657 = vmatprep.mubr.f32.mxu1 %v12282_v45  ;;  %v3506_v17 = vmul.f32 %v3494_v35, %v3428_v33  ;;  %v3484_v41 = vmin.f32 %v3472_v18, 6.0  ;;  %v3462_v38 = vadd.f32 3.0, %v3448_v15  ;;  %v11227_v22 = vpop.permute.xlu0 %3805 }
 0xe8c   :  { %v3505_v16 = vmul.f32 %v3493_v42, %v3423_v51  ;;  %v3483_v63 = vmin.f32 %v3471_v50, 6.0  ;;  %v3461_v31 = vadd.f32 3.0, %v3443_v28 }
 0xe8d   :  { %v3496_v1 = vmul.f32 0.16666667, %v3484_v41  ;;  %v3474_v49 = vmax.f32 %v3462_v38, 0.0 }
 0xe8e   :  { %6623 = vmatmul.mubr.msk.f32.gmra.mrb[74].mxu1 %vm2649_vm5, %v3502_v40  ;;  %v3495_v19 = vmul.f32 0.16666667, %v3483_v63  ;;  %v3473_v13 = vmax.f32 %v3461_v31, 0.0  ;;  %v4026_v10 = vpop.permute.xlu1 %4025  ;;  %v4352_v31 = vld [vmem:[%s12234_s2 + $0x1b60] sm:$0xff] }
 0xe8f   :  { %3663 = vmatprep.mubr.f32.mxu1 %v12282_v45  ;;  %v3508_v29 = vmul.f32 %v3496_v1, %v3438_v44  ;;  %v3486_v32 = vmin.f32 %v3474_v49, 6.0  ;;  %v11231_v40 = vpop.permute.xlu0 %3813  ;;  %v4353_v1 = vld [vmem:[%s12234_s2 + $0x1b90] sm:$0xff] }
 0xe90   :  { %v3507_v59 = vmul.f32 %v3495_v19, %v3433_v53  ;;  %v3485_v21 = vmin.f32 %v3473_v13, 6.0 }
 0xe91   :  { %v3498_v2 = vmul.f32 0.16666667, %v3486_v32 }
 0xe92   :  { %6624 = vmatmul.mubr.msk.f32.gmra.mrb[76].mxu1 %vm2649_vm5, %v3503_v23  ;;  %v3497_v30 = vmul.f32 0.16666667, %v3485_v21  ;;  %v4030_v24 = vpop.permute.xlu1 %4029 }
 0xe93   :  { %3669 = vmatprep.mubr.f32.mxu1 %v12282_v45  ;;  %v3510_v11 = vmul.f32 %v3498_v2, %v3448_v15  ;;  %v11235_v37 = vpop.permute.xlu0 %3821  ;;  %v4351_v15 = vld [vmem:[%s12234_s2 + $0x1b30] sm:$0xff] }
 0xe94   :  { %v3509_v20 = vmul.f32 %v3497_v30, %v3443_v28  ;;  %v8166_v41 = vpack.c.bf16 %v4352_v31, %v4351_v15 }
 0xe96   :  { %6625 = vmatmul.mubr.msk.f32.gmra.mrb[78].mxu1 %vm2649_vm5, %v3504_v61  ;;  %v11207_v46 = vpop.permute.xlu1 %3913  ;;  %8167 = vmatprep.subr.bf16.mxu0 %v8166_v41 }
 0xe97   :  { %3675 = vmatprep.mubr.f32.mxu1 %v12282_v45  ;;  %v11239_v48 = vpop.permute.xlu0 %3829  ;;  %8169 = vmatpush3.bf16.msra.mxu0 %v8166_v41 }
 0xe9a   :  { %6626 = vmatmul.mubr.msk.f32.gmra.mrb[80].mxu1 %vm2649_vm5, %v3505_v16  ;;  %v11209_v51 = vpop.permute.xlu1 %3801 }
 0xe9b   :  { %3681 = vmatprep.mubr.f32.mxu1 %v12282_v45  ;;  %v3910_v55 = vpop.permute.xlu0 %3909 }
 0xe9e   :  { %6627 = vmatmul.mubr.msk.f32.gmra.mrb[82].mxu1 %vm2649_vm5, %v3506_v17  ;;  %v11211_v6 = vpop.permute.xlu1 %4033 }
 0xe9f   :  { %3687 = vmatprep.mubr.f32.mxu1 %v12282_v45  ;;  %v11245_v44 = vpop.permute.xlu0 %3917 }
 0xea2   :  { %6628 = vmatmul.mubr.msk.f32.gmra.mrb[84].mxu1 %vm2649_vm5, %v3507_v59  ;;  %v11213_v25 = vpop.permute.xlu1 %4037  ;;  %v4354_v59 = vld [vmem:[%s12234_s2 + $0x1bc0] sm:$0xff] }
 0xea3   :  { %3693 = vmatprep.mubr.f32.mxu1 %v12282_v45  ;;  %v11249_v23 = vpop.permute.xlu0 %3925  ;;  %v8170_v21 = vpack.c.bf16 %v4354_v59, %v4353_v1 }
 0xea5   :  { %8171 = vmatprep.subr.bf16.mxu0 %v8170_v21 }
 0xea6   :  { %6629 = vmatmul.mubr.msk.f32.gmra.mrb[86].mxu1 %vm2649_vm5, %v3508_v29  ;;  %v11215_v62 = vpop.permute.xlu1 %3921  ;;  %8173 = vmatpush3.bf16.msra.mxu0 %v8170_v21 }
 0xea7   :  { %3699 = vmatprep.mubr.f32.mxu1 %v12282_v45  ;;  %v11253_v0 = vpop.permute.xlu0 %3933  ;;  %8174 = vmatprep.subr.bf16.mxu0 %v12278_v12 }
 0xeaa   :  { %6630 = vmatmul.mubr.msk.f32.gmra.mrb[88].mxu1 %vm2649_vm5, %v3509_v20  ;;  %v11217_v52 = vpop.permute.xlu1 %3809 }
 0xeab   :  { %3705 = vmatprep.mubr.f32.mxu1 %v12282_v45  ;;  %v11259_v57 = vpop.permute.xlu0 %3941 }
 0xeae   :  { %6631 = vmatmul.mubr.msk.f32.gmra.mrb[90].mxu1 %vm2649_vm5, %v3510_v11  ;;  %v11219_v33 = vpop.permute.xlu1 %4041 }
 0xeaf   :  { %v11275_v63 = vpop.permute.xlu0 %3949 }
 0xeb2   :  { %v11221_v4 = vpop.permute.xlu1 %4045 }
 0xeb3   :  { %v11301_v29 = vpop.permute.xlu0 %3714 }
 0xeb6   :  { %v11223_v58 = vpop.permute.xlu1 %3929 }
 0xeba   :  { %v11225_v9 = vpop.permute.xlu1 %3817 }
 0xebe   :  { %v11229_v56 = vpop.permute.xlu1 %4049 }
 0xec2   :  { %v11233_v7 = vpop.permute.xlu1 %4053 }
 0xec6   :  { %v11237_v36 = vpop.permute.xlu1 %3937 }
 0xeca   :  { %v11241_v53 = vpop.permute.xlu1 %3825 }
 0xece   :  { %v11243_v39 = vpop.permute.xlu1 %4057 }
 0xed2   :  { %v11247_v60 = vpop.permute.xlu1 %4061 }
 0xed6   :  { %v11251_v47 = vpop.permute.xlu1 %3945 }
 0xeda   :  { %v11255_v3 = vpop.permute.xlu1 %4065 }
 0xede   :  { %v11269_v34 = vpop.permute.xlu1 %4069 }
 0xee2   :  { %v11290_v13 = vpop.permute.xlu1 %3719 }
 0xee6   :  { %v11311_v11 = vpop.permute.xlu1 %3724 }
 0xf55   :  { %v11257_v26 = vpop.f32.mrb[68].mxu1 }
 0xf56   :  { %v3832_v61 = vmul.f32 %v3786_v54, %v11257_v26  ;;  %v4072_v42 = vmul.f32 %v4026_v10, %v11257_v26  ;;  %v11263_v50 = vpop.f32.mrb[69].mxu1  ;;  %v3952_v35 = vmul.f32 %v3906_v43, %v11257_v26 }
 0xf58   :  { %4096 = vrot.lane.b32.xlu1 %v4072_v42, %s8456_s20  ;;  %3856 = vrot.lane.b32.xlu0 %v3832_v61, %s8457_s21 }
 0xf59   :  { %v11267_v28 = vpop.f32.mrb[70].mxu1 }
 0xf5a   :  { %v3833_v18 = vmul.f32 %v3790_v8, %v11267_v28  ;;  %v11273_v16 = vpop.f32.mrb[71].mxu1  ;;  %v3953_v19 = vmul.f32 %v3910_v55, %v11267_v28  ;;  %v4073_v32 = vmul.f32 %v4030_v24, %v11267_v28  ;;  %v11320_v24 = vpop.permute.xlu0 %3729 }
 0xf5c   :  { %3976 = vrot.lane.b32.xlu0 %v3952_v35, %s8450_s13  ;;  %3858 = vrot.lane.b32.xlu1 %v3833_v18, %s8457_s21 }
 0xf5d   :  { %v11285_v17 = vpop.f32.mrb[72].mxu1 }
 0xf5e   :  { %v11288_v38 = vpop.f32.mrb[73].mxu1  ;;  %v3834_v8 = vmul.f32 %v11205_v5, %v11285_v17  ;;  %v11338_v42 = vpop.permute.xlu0 %3749  ;;  %v4074_v35 = vmul.f32 %v11211_v6, %v11285_v17 }
 0xf60   :  { %3978 = vrot.lane.b32.xlu1 %v3953_v19, %s8450_s13 }
 0xf61   :  { %v11299_v49 = vpop.f32.mrb[74].mxu1 }
 0xf62   :  { %v3835_v30 = vmul.f32 %v3798_v27, %v11299_v49  ;;  %v11305_v2 = vpop.f32.mrb[75].mxu1  ;;  %v3954_v27 = vmul.f32 %v11207_v46, %v11285_v17  ;;  %v3955_v31 = vmul.f32 %v11245_v44, %v11299_v49  ;;  %v11358_v19 = vpop.permute.xlu0 %3754  ;;  %v4075_v1 = vmul.f32 %v11213_v25, %v11299_v49 }
 0xf64   :  { %4098 = vrot.lane.b32.xlu1 %v4073_v32, %s8456_s20  ;;  %3862 = vrot.lane.b32.xlu0 %v3835_v30, %s8457_s21 }
 0xf65   :  { %v11309_v20 = vpop.f32.mrb[76].mxu1 }
 0xf66   :  { %v3836_v43 = vmul.f32 %v11209_v51, %v11309_v20  ;;  %v11317_v10 = vpop.f32.mrb[77].mxu1  ;;  %v11332_v51 = vpop.permute.xlu1 %4145  ;;  %v3956_v30 = vmul.f32 %v11215_v62, %v11309_v20 }
 0xf67   :  { %v11376_v32 = vpop.permute.xlu0 %3764 }
 0xf68   :  { %3860 = vrot.lane.b32.xlu1 %v3834_v8, %s8457_s21  ;;  %3864 = vrot.lane.b32.xlu0 %v3836_v43, %s8457_s21  ;;  %12293 = vst [vmem:[#allocation9_spill] sm:$0xff] %v11376_v32 }
 0xf69   :  { %v11324_v54 = vpop.f32.mrb[78].mxu1 }
 0xf6a   :  { %v3837_v5 = vmul.f32 %v11227_v22, %v11324_v54  ;;  %v11330_v55 = vpop.f32.mrb[79].mxu1  ;;  %v11350_v15 = vpop.permute.xlu1 %3734 }
 0xf6c   :  { %3980 = vrot.lane.b32.xlu1 %v3954_v27, %s8450_s13  ;;  %3866 = vrot.lane.b32.xlu0 %v3837_v5, %s8457_s21  ;;  %v4076_v27 = vmul.f32 %v11219_v33, %v11309_v20 }
 0xf6d   :  { %v11336_v61 = vpop.f32.mrb[80].mxu1 }
 0xf6e   :  { %v3838_v46 = vmul.f32 %v11217_v52, %v11336_v61  ;;  %v11344_v18 = vpop.f32.mrb[81].mxu1  ;;  %v4078_v41 = vmul.f32 %v11229_v56, %v11336_v61  ;;  %v11370_v21 = vpop.permute.xlu1 %3739 }
 0xf70   :  { %4100 = vrot.lane.b32.xlu1 %v4074_v35, %s8456_s20  ;;  %3868 = vrot.lane.b32.xlu0 %v3838_v46, %s8457_s21  ;;  %v11396_v35 = vpop.permute.xlu0 %4149  ;;  %v3957_v46 = vmul.f32 %v11249_v23, %v11324_v54 }
 0xf71   :  { %v11348_v22 = vpop.f32.mrb[82].mxu1 }
 0xf72   :  { %v11356_v6 = vpop.f32.mrb[83].mxu1  ;;  %v3839_v59 = vmul.f32 %v11231_v40, %v11348_v22  ;;  %v3959_v25 = vmul.f32 %v11253_v0, %v11348_v22  ;;  %v11388_v43 = vpop.permute.xlu1 %4217  ;;  %v4079_v5 = vmul.f32 %v11233_v7, %v11348_v22 }
 0xf74   :  { %3982 = vrot.lane.b32.xlu1 %v3955_v31, %s8450_s13  ;;  %4108 = vrot.lane.b32.xlu0 %v4078_v41, %s8456_s20  ;;  %v11412_v7 = vpop.permute.xlu0 %4153 }
 0xf75   :  { %v11362_v52 = vpop.f32.mrb[84].mxu1 }
 0xf76   :  { %v11368_v44 = vpop.f32.mrb[85].mxu1  ;;  %v11408_v41 = vpop.permute.xlu1 %4157 }
 0xf78   :  { %4102 = vrot.lane.b32.xlu1 %v4075_v1, %s8456_s20  ;;  %3870 = vrot.lane.b32.xlu0 %v3839_v59, %s8457_s21  ;;  %v4077_v1 = vmul.f32 %v11221_v4, %v11324_v54  ;;  %v11422_v23 = vpop.permute.xlu0 %4161  ;;  %v3840_v4 = vmul.f32 %v11225_v9, %v11362_v52 }
 0xf79   :  { %v11374_v56 = vpop.f32.mrb[86].mxu1 }
 0xf7a   :  { %v11382_v8 = vpop.f32.mrb[87].mxu1  ;;  %v3841_v9 = vmul.f32 %v11235_v37, %v11374_v56 }
 0xf7b   :  { %12294 = vst [vmem:[#allocation5_spill] sm:$0xff] %v11382_v8 }
 0xf7c   :  { %3984 = vrot.lane.b32.xlu1 %v3956_v30, %s8450_s13  ;;  %3990 = vrot.lane.b32.xlu0 %v3959_v25, %s8450_s13  ;;  %v3958_v30 = vmul.f32 %v11223_v58, %v11336_v61 }
 0xf7d   :  { %v11386_v40 = vpop.f32.mrb[88].mxu1 }
 0xf7e   :  { %12295 = vst [vmem:[#allocation10_spill] sm:$0xff] %v11386_v40  ;;  %v11394_v62 = vpop.f32.mrb[89].mxu1  ;;  %v3842_v31 = vmul.f32 %v11241_v53, %v11386_v40  ;;  %v11420_v53 = vpop.permute.xlu1 %3744  ;;  %v4082_v25 = vmul.f32 %v11255_v3, %v11386_v40  ;;  %v3962_v37 = vmul.f32 %v11251_v47, %v11386_v40 }
 0xf7f   :  { %12296 = vst [vmem:[#allocation6_spill] sm:$0xff] %v11394_v62  ;;  %v4192_v62 = vmul.f32 %v11332_v51, %v11263_v50 }
 0xf80   :  { %4104 = vrot.lane.b32.xlu1 %v4076_v27, %s8456_s20  ;;  %4110 = vrot.lane.b32.xlu0 %v4079_v5, %s8456_s20  ;;  %v11434_v27 = vpop.permute.xlu0 %4165  ;;  %v3960_v5 = vmul.f32 %v11237_v36, %v11362_v52  ;;  %v3961_v36 = vmul.f32 %v11259_v57, %v11374_v56 }
 0xf81   :  { %v11400_v0 = vpop.f32.mrb[90].mxu1 }
 0xf82   :  { %12297 = vst [vmem:[#allocation7_spill] sm:$0xff] %v11400_v0  ;;  %v11406_v33 = vpop.f32.mrb[91].mxu1  ;;  %v3843_v59 = vmul.f32 %v11239_v48, %v11400_v0  ;;  %v11432_v48 = vpop.permute.xlu1 %4225  ;;  %v3963_v57 = vmul.f32 %v11275_v63, %v11400_v0 }
 0xf83   :  { %12298 = vst [vmem:[#allocation8_spill] sm:$0xff] %v11406_v33 }
 0xf84   :  { %3986 = vrot.lane.b32.xlu1 %v3957_v46, %s8450_s13  ;;  %3876 = vrot.lane.b32.xlu0 %v3842_v31, %s8457_s21  ;;  %v11442_v3 = vpop.permute.xlu0 %4169  ;;  %v4080_v46 = vmul.f32 %v11243_v39, %v11362_v52  ;;  %v4081_v39 = vmul.f32 %v11247_v60, %v11374_v56  ;;  %v4083_v60 = vmul.f32 %v11269_v34, %v11400_v0 }
 0xf86   :  { %v11440_v58 = vpop.permute.xlu1 %4229 }
 0xf88   :  { %4106 = vrot.lane.b32.xlu1 %v4077_v1, %s8456_s20  ;;  %3878 = vrot.lane.b32.xlu0 %v3843_v59, %s8457_s21  ;;  %v11451_v1 = vpop.permute.xlu0 %4173 }
 0xf8a   :  { %v11449_v31 = vpop.permute.xlu1 %3759 }
 0xf8c   :  { %3988 = vrot.lane.b32.xlu1 %v3958_v30, %s8450_s13  ;;  %4116 = vrot.lane.b32.xlu0 %v4082_v25, %s8456_s20  ;;  %v11459_v30 = vpop.permute.xlu0 %4177 }
 0xf8e   :  { %v11457_v59 = vpop.permute.xlu1 %4233 }
 0xf90   :  { %3872 = vrot.lane.b32.xlu1 %v3840_v4, %s8457_s21  ;;  %v11468_v4 = vpop.permute.xlu0 %4181 }
 0xf91   :  { %12299 = vst [vmem:[#allocation2_spill] sm:$0xff] %v11468_v4 }
 0xf92   :  { %v11466_v25 = vpop.permute.xlu1 %4237 }
 0xf94   :  { %3992 = vrot.lane.b32.xlu1 %v3960_v5, %s8450_s13  ;;  %v4222_v5 = vpop.permute.xlu0 %4221 }
 0xf98   :  { %4112 = vrot.lane.b32.xlu1 %v4080_v46, %s8456_s20  ;;  %v11474_v46 = vpop.permute.xlu1 %3769  ;;  %v11479_v47 = vpop.permute.xlu0 %4249 }
 0xf99   :  { %12300 = vst [vmem:[#allocation3_spill] sm:$0xff] %v11474_v46 }
 0xf9c   :  { %3874 = vrot.lane.b32.xlu1 %v3841_v9, %s8457_s21  ;;  %v11481_v9 = vpop.permute.xlu1 %4241 }
 0xfa0   :  { %3994 = vrot.lane.b32.xlu1 %v3961_v36, %s8450_s13  ;;  %v11483_v36 = vpop.permute.xlu0 %4253 }
 0xfa1   :  { %12301 = vst [vmem:[#allocation4_spill] sm:$0xff] %v11483_v36 }
 0xfa4   :  { %4114 = vrot.lane.b32.xlu1 %v4081_v39, %s8456_s20  ;;  %v11485_v39 = vpop.permute.xlu1 %4245 }
 0xfa8   :  { %3996 = vrot.lane.b32.xlu1 %v3962_v37, %s8450_s13  ;;  %v11487_v37 = vpop.permute.xlu0 %4257  ;;  %v11489_v63 = vpop.permute.xlu1 %4185 }
 0xfa9   :  { %12302 = vst [vmem:[#allocation11_spill] sm:$0xff] %v11487_v37  ;;  %12303 = vst [vmem:[#allocation12_spill] sm:$0xff] %v11489_v63  ;;  %v3773_v37 = vmul.f32 %v11290_v13, %v11267_v28  ;;  %v3774_v13 = vmul.f32 %v11311_v11, %v11285_v17 }
 0xfac   :  { %3998 = vrot.lane.b32.xlu1 %v3963_v57, %s8450_s13  ;;  %v11491_v57 = vpop.permute.xlu0 %4261  ;;  %v11493_v14 = vpop.permute.xlu1 %4189 }
 0xfad   :  { %12304 = vst [vmem:[#allocation13_spill] sm:$0xff] %v11491_v57  ;;  %12305 = vst [vmem:[#allocation14_spill] sm:$0xff] %v11493_v14 }
 0xfb0   :  { %4118 = vrot.lane.b32.xlu1 %v4083_v60, %s8456_s20  ;;  %v3772_v60 = vmul.f32 %v11301_v29, %v11257_v26  ;;  %v4193_v26 = vmul.f32 %v11396_v35, %v11273_v16 }
 0xfca   :  { %v4097_v12 = vpop.permute.xlu1 %4096  ;;  %v3857_v34 = vpop.permute.xlu0 %3856 }
 0xfcb   :  { %v3892_v45 = vadd.f32 %v3857_v34, %v3772_v60 }
 0xfce   :  { %v3977_v33 = vpop.permute.xlu0 %3976  ;;  %v3859_v46 = vpop.permute.xlu1 %3858 }
 0xfcf   :  { %v4012_v0 = vadd.f32 %v3977_v33, %v3892_v45  ;;  %v3893_v32 = vadd.f32 %v3859_v46, %v3773_v37 }
 0xfd1   :  { %v4132_v36 = vadd.f32 %v4097_v12, %v4012_v0 }
 0xfd2   :  { %v3979_v63 = vpop.permute.xlu1 %3978 }
 0xfd3   :  { %v4204_v57 = vadd.f32 %v4192_v62, %v4132_v36  ;;  %v4013_v40 = vadd.f32 %v3979_v63, %v3893_v32 }
 0xfd5   :  { %v4264_v14 = vadd.f32 %v11388_v43, %v4204_v57  ;;  %v3775_v57 = vmul.f32 %v11320_v24, %v11299_v49  ;;  %v3776_v49 = vmul.f32 %v11350_v15, %v11309_v20  ;;  %v4196_v20 = vmul.f32 %v11422_v23, %v11317_v10 }
 0xfd6   :  { %v4099_v4 = vpop.permute.xlu1 %4098  ;;  %v3863_v8 = vpop.permute.xlu0 %3862 }
 0xfd7   :  { %v4276_v29 = vadd.f32 3.0, %v4264_v14  ;;  %v4133_v45 = vadd.f32 %v4099_v4, %v4013_v40 }
 0xfd9   :  { %v4288_v33 = vmax.f32 %v4276_v29, 0.0  ;;  %v4205_v34 = vadd.f32 %v4193_v26, %v4133_v45  ;;  %v3895_v29 = vadd.f32 %v3863_v8, %v3775_v57  ;;  %v3779_v8 = vmul.f32 %v11338_v42, %v11348_v22 }
 0xfda   :  { %v3861_v50 = vpop.permute.xlu1 %3860  ;;  %v3865_v12 = vpop.permute.xlu0 %3864  ;;  %v4199_v42 = vmul.f32 %v11451_v1, %v11356_v6 }
 0xfdb   :  { %v4300_v51 = vmin.f32 %v4288_v33, 6.0  ;;  %v4265_v0 = vadd.f32 %v4222_v5, %v4205_v34  ;;  %v3894_v36 = vadd.f32 %v3861_v50, %v3774_v13  ;;  %v4194_v5 = vmul.f32 %v11412_v7, %v11288_v38 }
 0xfdc   :  { %v4195_v7 = vmul.f32 %v11408_v41, %v11305_v2 }
 0xfdd   :  { %v4277_v28 = vadd.f32 3.0, %v4265_v0  ;;  %v4312_v62 = vmul.f32 0.16666667, %v4300_v51 }
 0xfde   :  { %v3981_v43 = vpop.permute.xlu1 %3980  ;;  %v3867_v32 = vpop.permute.xlu0 %3866 }
 0xfdf   :  { %v4289_v46 = vmax.f32 %v4277_v28, 0.0  ;;  %v11506_v37 = vmul.f32 %v4312_v62, %v4264_v14  ;;  %v4014_v40 = vadd.f32 %v3981_v43, %v3894_v36  ;;  %v3896_v62 = vadd.f32 %v3865_v12, %v3776_v49 }
 0xfe1   :  { %v4301_v16 = vmin.f32 %v4289_v46, 6.0  ;;  %7269 = vmatprep.mubr.msk.f32.mxu0 %vm4355_vm7, %v11506_v37 }
 0xfe2   :  { %v4101_v35 = vpop.permute.xlu1 %4100  ;;  %v3869_v4 = vpop.permute.xlu0 %3868 }
 0xfe3   :  { %v4313_v63 = vmul.f32 0.16666667, %v4301_v16  ;;  %v4134_v17 = vadd.f32 %v4101_v35, %v4014_v40 }
 0xfe5   :  { %v11512_v11 = vmul.f32 %v4313_v63, %v4265_v0  ;;  %v4206_v60 = vadd.f32 %v4194_v5, %v4134_v17 }
 0xfe6   :  { %v3983_v14 = vpop.permute.xlu1 %3982  ;;  %v4109_v26 = vpop.permute.xlu0 %4108 }
 0xfe7   :  { %v4266_v45 = vadd.f32 %v11432_v48, %v4206_v60  ;;  %7270 = vmatmul.mubr.msk.f32.vlgmr.msra.gmra.mrb[60].mxu0 %vm4355_vm7, %v11512_v11  ;;  %v4015_v34 = vadd.f32 %v3983_v14, %v3895_v29 }
 0xfe9   :  { %v4278_v33 = vadd.f32 3.0, %v4266_v45 }
 0xfea   :  { %v4103_v50 = vpop.permute.xlu1 %4102  ;;  %v3871_v38 = vpop.permute.xlu0 %3870 }
 0xfeb   :  { %v4290_v51 = vmax.f32 %v4278_v33, 0.0  ;;  %v4135_v0 = vadd.f32 %v4103_v50, %v4015_v34  ;;  %v3899_v36 = vadd.f32 %v3871_v38, %v3779_v8  ;;  %v4197_v33 = vmul.f32 %v11434_v27, %v11330_v55 }
 0xfec   :  { %v3778_v34 = vmul.f32 %v11420_v53, %v11336_v61  ;;  %v4198_v55 = vmul.f32 %v11442_v3, %v11344_v18 }
 0xfed   :  { %v4302_v24 = vmin.f32 %v4290_v51, 6.0  ;;  %v4207_v28 = vadd.f32 %v4195_v7, %v4135_v0 }
 0xfee   :  { %v3985_v48 = vpop.permute.xlu1 %3984  ;;  %v3991_v13 = vpop.permute.xlu0 %3990  ;;  %v3898_v50 = vadd.f32 %v3869_v4, %v3778_v34 }
 0xfef   :  { %v4314_v43 = vmul.f32 0.16666667, %v4302_v24  ;;  %v4267_v46 = vadd.f32 %v11440_v58, %v4207_v28  ;;  %v4016_v40 = vadd.f32 %v3985_v48, %v3896_v62  ;;  %v4019_v2 = vadd.f32 %v3991_v13, %v3899_v36 }
 0xff0   :  { %v3777_v58 = vmul.f32 %v11370_v21, %v11324_v54 }
 0xff1   :  { %v4279_v16 = vadd.f32 3.0, %v4267_v46  ;;  %v11526_v41 = vmul.f32 %v4314_v43, %v4266_v45 }
 0xff2   :  { %v4105_v15 = vpop.permute.xlu1 %4104  ;;  %v4111_v35 = vpop.permute.xlu0 %4110  ;;  %v3897_v14 = vadd.f32 %v3867_v32, %v3777_v58 }
 0xff3   :  { %v4291_v22 = vmax.f32 %v4279_v16, 0.0  ;;  %v4136_v5 = vadd.f32 %v4105_v15, %v4016_v40  ;;  %v4139_v12 = vadd.f32 %v4111_v35, %v4019_v2  ;;  %7272 = vmatprep.mubr.msk.f32.mxu0 %vm4355_vm7, %v11526_v41  ;;  %v4200_v2 = vmul.f32 %v11459_v30, %v11368_v44 }
 0xff4   :  { %v3781_v44 = vmul.f32 %v11449_v31, %v11374_v56 }
 0xff5   :  { %v4303_v63 = vmin.f32 %v4291_v22, 6.0  ;;  %v4208_v17 = vadd.f32 %v4196_v20, %v4136_v5  ;;  %v4211_v57 = vadd.f32 %v4199_v42, %v4139_v12 }
 0xff6   :  { %v3987_v60 = vpop.permute.xlu1 %3986  ;;  %v3877_v12 = vpop.permute.xlu0 %3876 }
 0xff7   :  { %v4315_v10 = vmul.f32 0.16666667, %v4303_v63  ;;  %v4268_v23 = vadd.f32 %v11457_v59, %v4208_v17  ;;  %v4017_v45 = vadd.f32 %v3987_v60, %v3897_v14  ;;  %v4271_v32 = vadd.f32 %v11485_v39, %v4211_v57 }
 0xff9   :  { %v4280_v29 = vadd.f32 3.0, %v4268_v23  ;;  %v11537_v6 = vmul.f32 %v4315_v10, %v4267_v46  ;;  %v4283_v24 = vadd.f32 3.0, %v4271_v32  ;;  %v12306_v10 = vld [vmem:[#allocation5_spill] sm:$0xff] }
 0xffa   :  { %v4107_v1 = vpop.permute.xlu1 %4106  ;;  %v3879_v60 = vpop.permute.xlu0 %3878 }
 0xffb   :  { %v4292_v54 = vmax.f32 %v4280_v29, 0.0  ;;  %v4137_v21 = vadd.f32 %v4107_v1, %v4017_v45  ;;  %7273 = vmatmul.mubr.msk.f32.gmra.mrb[62].mxu0 %vm4355_vm7, %v11537_v6  ;;  %v4295_v39 = vmax.f32 %v4283_v24, 0.0  ;;  %v12308_v45 = vld [vmem:[#allocation10_spill] sm:$0xff]  ;;  %v12309_v1 = vld [vmem:[#allocation9_spill] sm:$0xff]  ;;  %v12313_v24 = vld [vmem:[#allocation7_spill] sm:$0xff] }
 0xffd   :  { %v4304_v59 = vmin.f32 %v4292_v54, 6.0  ;;  %v4209_v38 = vadd.f32 %v4197_v33, %v4137_v21  ;;  %v4307_v46 = vmin.f32 %v4295_v39, 6.0  ;;  %v3782_v33 = vmul.f32 %v12309_v1, %v12308_v45 }
 0xffe   :  { %v3989_v7 = vpop.permute.xlu1 %3988 }
 0xfff   :  { %v4316_v51 = vmul.f32 0.16666667, %v4304_v59  ;;  %v4269_v0 = vadd.f32 %v11466_v25, %v4209_v38  ;;  %v4018_v49 = vadd.f32 %v3989_v7, %v3898_v50  ;;  %v3780_v25 = vmul.f32 %v11358_v19, %v11362_v52  ;;  %v12310_v50 = vld [vmem:[#allocation4_spill] sm:$0xff]  ;;  %v4117_v7 = vpop.permute.xlu0 %4116 }
0x1000   :  { %v3902_v34 = vadd.f32 %v3877_v12, %v3782_v33  ;;  %v12321_v33 = vmov 0.0|0.0  }
0x1001   :  { %v11549_v61 = vmul.f32 %v4316_v51, %v4268_v23  ;;  %v4281_v53 = vadd.f32 3.0, %v4269_v0  ;;  %v4138_v27 = vadd.f32 %v4109_v26, %v4018_v49  ;;  %v12307_v23 = vld [vmem:[#allocation2_spill] sm:$0xff] }
0x1002   :  { %v3873_v28 = vpop.permute.xlu1 %3872  ;;  %v4201_v29 = vmul.f32 %v12307_v23, %v12306_v10  ;;  %v12311_v51 = vld [vmem:[#allocation6_spill] sm:$0xff]  ;;  %v4338_v10 = vld [vmem:[%s12236_s1 + $0x510] sm:$0xff]  ;;  %v12320_v23 = vmov 24  }
0x1003   :  { %v4293_v8 = vmax.f32 %v4281_v53, 0.0  ;;  %v4210_v48 = vadd.f32 %v4198_v55, %v4138_v27  ;;  %7275 = vmatprep.mubr.msk.f32.mxu0 %vm4355_vm7, %v11549_v61  ;;  %v3900_v3 = vadd.f32 %v3873_v28, %v3780_v25  ;;  %v12314_v55 = vld [vmem:[#allocation3_spill] sm:$0xff] }
0x1004   :  { %v3783_v53 = vmul.f32 %v12314_v55, %v12313_v24  ;;  %v12315_v25 = vld [vmem:[#allocation11_spill] sm:$0xff] }
0x1005   :  { %v4305_v4 = vmin.f32 %v4293_v8, 6.0  ;;  %v4270_v13 = vadd.f32 %v11481_v9, %v4210_v48  ;;  %v4319_v9 = vmul.f32 0.16666667, %v4307_v46  ;;  %v12317_v46 = vld [vmem:[#allocation14_spill] sm:$0xff] }
0x1006   :  { %v3993_v62 = vpop.permute.xlu1 %3992  ;;  %v3903_v48 = vadd.f32 %v3879_v60, %v3783_v53  ;;  %v4337_v60 = vld [vmem:[%s12236_s1 + $0x500] sm:$0xff] }
0x1007   :  { %v4317_v43 = vmul.f32 0.16666667, %v4305_v4  ;;  %v4282_v18 = vadd.f32 3.0, %v4270_v13  ;;  %v4020_v16 = vadd.f32 %v3993_v62, %v3900_v3  ;;  %v11565_v5 = vmul.f32 %v4319_v9, %v4271_v32  ;;  %v12316_v3 = vld [vmem:[#allocation8_spill] sm:$0xff] }
0x1009   :  { %v11556_v36 = vmul.f32 %v4317_v43, %v4269_v0  ;;  %v4294_v26 = vmax.f32 %v4282_v18, 0.0  ;;  %v12312_v0 = vld [vmem:[#allocation12_spill] sm:$0xff] }
0x100a   :  { %v4113_v40 = vpop.permute.xlu1 %4112  ;;  %v4202_v49 = vmul.f32 %v12312_v0, %v12311_v51 }
0x100b   :  { %v4306_v20 = vmin.f32 %v4294_v26, 6.0  ;;  %v4140_v15 = vadd.f32 %v4113_v40, %v4020_v16  ;;  %7276 = vmatmul.mubr.msk.f32.gmra.mrb[64].mxu0 %vm4355_vm7, %v11556_v36  ;;  %v4203_v26 = vmul.f32 %v12317_v46, %v12316_v3  ;;  %v4350_v3 = vld [vmem:[%s12236_s1 + $0x5d0] sm:$0xff] }
0x100d   :  { %v4212_v19 = vadd.f32 %v4200_v2, %v4140_v15  ;;  %v4318_v52 = vmul.f32 0.16666667, %v4306_v20 }
0x100e   :  { %v3875_v35 = vpop.permute.xlu1 %3874 }
0x100f   :  { %v4272_v42 = vadd.f32 %v11479_v47, %v4212_v19  ;;  %v11563_v22 = vmul.f32 %v4318_v52, %v4270_v13  ;;  %v3901_v17 = vadd.f32 %v3875_v35, %v3781_v44  ;;  %v12318_v52 = vld [vmem:[#allocation13_spill] sm:$0xff] }
0x1011   :  { %v4284_v58 = vadd.f32 3.0, %v4272_v42  ;;  %7278 = vmatprep.mubr.msk.f32.mxu0 %vm4355_vm7, %v11563_v22 }
0x1012   :  { %7279 = vmatmul.mubr.msk.f32.gmra.mrb[66].mxu0 %vm4355_vm7, %v11565_v5  ;;  %v3995_v30 = vpop.permute.xlu1 %3994 }
0x1013   :  { %v4296_v63 = vmax.f32 %v4284_v58, 0.0  ;;  %v4021_v47 = vadd.f32 %v3995_v30, %v3901_v17 }
0x1015   :  { %v4308_v57 = vmin.f32 %v4296_v63, 6.0 }
0x1016   :  { %v4115_v14 = vpop.permute.xlu1 %4114 }
0x1017   :  { %v4320_v56 = vmul.f32 0.16666667, %v4308_v57  ;;  %v4141_v31 = vadd.f32 %v4115_v14, %v4021_v47  ;;  %v12319_v57 = vmov 0.0   ;;  %v4336_v47 = vld [vmem:[%s12236_s1 + $0x4f0] sm:$0xff]  ;;  %v8458_v14 = vmov 96  }
0x1018   :  { %8429 = vset.pattern.permute.xlu0 %v8458_v14  ;;  %8430 = vset.pattern.permute.xlu1 %v8458_v14 }
0x1019   :  { %v11577_v54 = vmul.f32 %v4320_v56, %v4272_v42  ;;  %v4213_v21 = vadd.f32 %v4201_v29, %v4141_v31  ;;  %4524 = vperm.xlu1 %8430, %v4337_v60   ;;  %4519 = vperm.xlu0 %8429, %v4336_v47  }
0x101a   :  { %v3997_v32 = vpop.permute.xlu1 %3996 }
0x101b   :  { %v4273_v59 = vadd.f32 %v12310_v50, %v4213_v21  ;;  %v4022_v38 = vadd.f32 %v3997_v32, %v3902_v34  ;;  %7281 = vmatprep.mubr.msk.f32.mxu0 %vm4355_vm7, %v11577_v54 }
0x101d   :  { %v4285_v27 = vadd.f32 3.0, %v4273_v59  ;;  %v4142_v28 = vadd.f32 %v4117_v7, %v4022_v38  ;;  %4529 = vperm.xlu1 %8430, %v4338_v10   ;;  %8431 = vset.pattern.permute.xlu0 %v12320_v23 }
0x101e   :  { %v3999_v8 = vpop.permute.xlu1 %3998 }
0x101f   :  { %v4297_v39 = vmax.f32 %v4285_v27, 0.0  ;;  %v4214_v4 = vadd.f32 %v4202_v49, %v4142_v28  ;;  %v4023_v43 = vadd.f32 %v3999_v8, %v3903_v48  ;;  %v4339_v27 = vld [vmem:[%s12236_s1 + $0x520] sm:$0xff]  ;;  %v4340_v28 = vld [vmem:[%s12236_s1 + $0x530] sm:$0xff] }
0x1020   :  { %7326 = vmatprep.mubr.msk.f32.mxu1 %vm2468_vm4, %v4339_v27  ;;  %4624 = vperm.xlu0 %8431, %v4339_v27   ;;  %v4341_v8 = vld [vmem:[%s12236_s1 + $0x540] sm:$0xff]  ;;  %v4342_v48 = vld [vmem:[%s12236_s1 + $0x550] sm:$0xff] }
0x1021   :  { %v4309_v13 = vmin.f32 %v4297_v39, 6.0  ;;  %v4274_v62 = vadd.f32 %v12315_v25, %v4214_v4  ;;  %8432 = vset.pattern.permute.xlu1 %v12320_v23  ;;  %v4343_v39 = vld [vmem:[%s12236_s1 + $0x560] sm:$0xff]  ;;  %v4344_v4 = vld [vmem:[%s12236_s1 + $0x570] sm:$0xff] }
0x1022   :  { %v4119_v18 = vpop.permute.xlu1 %4118  ;;  %4629 = vperm.xlu1 %8432, %v4340_v28   ;;  %v4346_v25 = vld [vmem:[%s12236_s1 + $0x590] sm:$0xff] }
0x1023   :  { %v4321_v16 = vmul.f32 0.16666667, %v4309_v13  ;;  %v4286_v40 = vadd.f32 3.0, %v4274_v62  ;;  %v4143_v2 = vadd.f32 %v4119_v18, %v4023_v43  ;;  %v4345_v13 = vld [vmem:[%s12236_s1 + $0x580] sm:$0xff]  ;;  %v4348_v43 = vld [vmem:[%s12236_s1 + $0x5b0] sm:$0xff] }
0x1024   :  { %4639 = vperm.xlu0 %8431, %v4342_v48   ;;  %v4349_v18 = vld [vmem:[%s12236_s1 + $0x5c0] sm:$0xff] }
0x1025   :  { %v11589_v20 = vmul.f32 %v4321_v16, %v4273_v59  ;;  %v4298_v15 = vmax.f32 %v4286_v40, 0.0  ;;  %v4215_v9 = vadd.f32 %v4203_v26, %v4143_v2 }
0x1026   :  { %4634 = vperm.xlu1 %8432, %v4341_v8  }
0x1027   :  { %v4310_v19 = vmin.f32 %v4298_v15, 6.0  ;;  %v4275_v35 = vadd.f32 %v12318_v52, %v4215_v9  ;;  %7282 = vmatmul.mubr.msk.f32.gmra.mrb[68].mxu0 %vm4355_vm7, %v11589_v20 }
0x1028   :  { %4649 = vperm.xlu0 %8431, %v4344_v4  }
0x1029   :  { %v4287_v42 = vadd.f32 3.0, %v4275_v35  ;;  %v4322_v12 = vmul.f32 0.16666667, %v4310_v19 }
0x102a   :  { %4644 = vperm.xlu1 %8432, %v4343_v39  }
0x102b   :  { %v4299_v58 = vmax.f32 %v4287_v42, 0.0  ;;  %v11594_v44 = vmul.f32 %v4322_v12, %v4274_v62  ;;  %v4347_v62 = vld [vmem:[%s12236_s1 + $0x5a0] sm:$0xff] }
0x102c   :  { %4659 = vperm.xlu0 %8431, %v4346_v25  }
0x102d   :  { %v4311_v30 = vmin.f32 %v4299_v58, 6.0  ;;  %7284 = vmatprep.mubr.msk.f32.mxu0 %vm4355_vm7, %v11594_v44 }
0x102e   :  { %4654 = vperm.xlu1 %8432, %v4345_v13  }
0x102f   :  { %v4323_v63 = vmul.f32 0.16666667, %v4311_v30 }
0x1030   :  { %4669 = vperm.xlu0 %8431, %v4348_v43  }
0x1031   :  { %v11598_v17 = vmul.f32 %v4323_v63, %v4275_v35 }
0x1032   :  { %4664 = vperm.xlu1 %8432, %v4347_v62  }
0x1033   :  { %7285 = vmatmul.mubr.msk.f32.gmra.mrb[70].mxu0 %vm4355_vm7, %v11598_v17 }
0x1034   :  { %7311 = vmatprep.mubr.msk.f32.mxu0 %vm8446_vm0, %v12319_v57  ;;  %4679 = vperm.xlu0 %8431, %v4350_v3  }
0x1036   :  { %4674 = vperm.xlu1 %8432, %v4349_v18  }
0x1038   :  { %8434 = vset.pattern.permute.xlu0 %v8458_v14 }
0x103a   :  { %8433 = vset.pattern.permute.xlu1 %v8458_v14 }
0x1098   :  { %v4520_v46 = vpop.permute.xlu0 %4519  ;;  %v4525_v40 = vpop.permute.xlu1 %4524 }
0x109c   :  { %v4530_v42 = vpop.permute.xlu1 %4529 }
0x109f   :  { %v4625_v14 = vpop.permute.xlu0 %4624 }
0x10a3   :  { %v4640_v23 = vpop.permute.xlu0 %4639 }
0x10ba   :  { %v7271_v29 = vpop.f32.mrb[60].mxu0 }
0x10bb   :  { %v4458_v45 = vpop.f32.mrb[61].mxu0 }
0x10bc   :  { %v8175_v1 = vpack.c.bf16 %v7271_v29, %v4458_v45 }
0x10be   :  { %8176 = vmatpush3.bf16.msra.mxu0 %v8175_v1 }
0x10bf   :  { %8177 = vmatprep.subr.bf16.mxu0 %v12321_v33 }
0x10ce   :  { %v7274_v56 = vpop.f32.mrb[62].mxu0 }
0x10cf   :  { %v4468_v31 = vpop.f32.mrb[63].mxu0 }
0x10d0   :  { %v8178_v34 = vpack.c.bf16 %v7274_v56, %v4468_v31 }
0x10d2   :  { %8179 = vmatpush3.bf16.msra.mxu0 %v8178_v34  ;;  %v4650_v34 = vpop.permute.xlu0 %4649 }
0x10d3   :  { %8180 = vmatprep.subr.bf16.mxu0 %v12321_v33 }
0x10de   :  { %v7277_v21 = vpop.f32.mrb[64].mxu0 }
0x10df   :  { %v4478_v32 = vpop.f32.mrb[65].mxu0 }
0x10e0   :  { %v8181_v50 = vpack.c.bf16 %v7277_v21, %v4478_v32 }
0x10e2   :  { %8182 = vmatpush3.bf16.msra.mxu0 %v8181_v50 }
0x10e3   :  { %8183 = vmatprep.subr.bf16.mxu0 %v12321_v33 }
0x10e5   :  { %v7280_v59 = vpop.f32.mrb[66].mxu0 }
0x10e6   :  { %v4488_v38 = vpop.f32.mrb[67].mxu0 }
0x10e7   :  { %v8184_v7 = vpack.c.bf16 %v7280_v59, %v4488_v38 }
0x10e9   :  { %8185 = vmatpush3.bf16.msra.mxu0 %v8184_v7 }
0x10ea   :  { %8186 = vmatprep.subr.bf16.mxu0 %v12321_v33 }
0x10fa   :  { %v7283_v51 = vpop.f32.mrb[68].mxu0 }
0x10fb   :  { %v4498_v0 = vpop.f32.mrb[69].mxu0 }
0x10fc   :  { %v8187_v49 = vpack.c.bf16 %v7283_v51, %v4498_v0 }
0x10fe   :  { %8188 = vmatpush3.bf16.msra.mxu0 %v8187_v49 }
0x10ff   :  { %8189 = vmatprep.subr.bf16.mxu0 %v12321_v33 }
0x1106   :  { %v7286_v24 = vpop.f32.mrb[70].mxu0 }
0x1107   :  { %v4508_v55 = vpop.f32.mrb[71].mxu0 }
0x1108   :  { %v8190_v53 = vpack.c.bf16 %v7286_v24, %v4508_v55 }
0x110a   :  { %8191 = vmatpush3.bf16.msra.mxu0 %v8190_v53 }
0x110d   :  { %7312 = vmatmul.mubr.msk.f32.vlgmr.msra.gmra.mrb[72].mxu0 %vm4532_vm8, %v4336_v47 }
0x110e   :  { %7314 = vmatprep.mubr.msk.f32.mxu0 %vm8446_vm0, %v12319_v57 }
0x1111   :  { %7315 = vmatmul.mubr.msk.f32.gmra.mrb[74].mxu0 %vm4532_vm8, %v4337_v60  ;;  %v4879_v60 = vld [vmem:[%s12234_s2 + $0x1bf0] sm:$0xff] }
0x1112   :  { %7317 = vmatprep.mubr.msk.f32.mxu0 %vm8446_vm0, %v12319_v57  ;;  %7344 = vmatprep.subr.mxu0 %v4879_v60 }
0x1113   :  { %7345 = vmatpush3.msra.mxu0 %v4879_v60 }
0x1115   :  { %7318 = vmatmul.mubr.msk.f32.gmra.mrb[76].mxu0 %vm4532_vm8, %v4338_v10  ;;  %v4630_v10 = vpop.permute.xlu1 %4629 }
0x1119   :  { %v4635_v29 = vpop.permute.xlu1 %4634 }
0x111d   :  { %v4645_v32 = vpop.permute.xlu1 %4644 }
0x11e0   :  { %v4605_v26 = vpop.f32.mrb[72].mxu0 }
0x11e1   :  { %v7313_v16 = vpop.f32.mrb[73].mxu0  ;;  %v4606_v2 = vadd.f32 %v4605_v26, %v4520_v46 }
0x11e3   :  { %v4619_v52 = vmax.f32 %v4606_v2, 0.0 }
0x11e4   :  { %v4610_v15 = vpop.f32.mrb[74].mxu0 }
0x11e5   :  { %v4611_v9 = vadd.f32 %v4610_v15, %v4525_v40  ;;  %v7316_v19 = vpop.f32.mrb[75].mxu0 }
0x11e7   :  { %v4620_v35 = vmax.f32 %v4611_v9, 0.0 }
0x11e8   :  { %v4615_v12 = vpop.f32.mrb[76].mxu0 }
0x11e9   :  { %v8192_v58 = vpack.c.bf16 %v4620_v35, %v4619_v52  ;;  %v4616_v30 = vadd.f32 %v4615_v12, %v4530_v42  ;;  %v7319_v63 = vpop.f32.mrb[77].mxu0 }
0x11eb   :  { %v4621_v47 = vmax.f32 %v4616_v30, 0.0  ;;  %8193 = vmatprep.subr.bf16.mxu1 %v8192_v58 }
0x11ec   :  { %8195 = vmatpush3.bf16.msra.mxu1 %v8192_v58 }
0x11ed   :  { %7324 = vmatprep.subr.mxu1 %v4621_v47 }
0x11f0   :  { %7325 = vmatpush3.msra.mxu1 %v4621_v47 }
0x11f1   :  { %7327 = vmatmul.mubr.msk.f32.vlgmr.msra.gmra.mrb[92].mxu1 %vm2468_vm4, %v4340_v28  ;;  %8196 = vmatprep.subr.bf16.mxu1 %v12321_v33 }
0x11f2   :  { %7329 = vmatprep.mubr.msk.f32.mxu1 %vm2468_vm4, %v4341_v8  ;;  %v4660_v8 = vpop.permute.xlu0 %4659 }
0x11f5   :  { %7330 = vmatmul.mubr.msk.f32.gmra.mrb[94].mxu1 %vm2468_vm4, %v4342_v48 }
0x11f6   :  { %7332 = vmatprep.mubr.msk.f32.mxu1 %vm2468_vm4, %v4343_v39  ;;  %v4670_v42 = vpop.permute.xlu0 %4669 }
0x11f9   :  { %7333 = vmatmul.mubr.msk.f32.gmra.mrb[96].mxu1 %vm2468_vm4, %v4344_v4 }
0x11fa   :  { %7335 = vmatprep.mubr.msk.f32.mxu1 %vm2468_vm4, %v4345_v13  ;;  %v4655_v13 = vpop.permute.xlu1 %4654 }
0x11fd   :  { %7336 = vmatmul.mubr.msk.f32.gmra.mrb[98].mxu1 %vm2468_vm4, %v4346_v25 }
0x11fe   :  { %7338 = vmatprep.mubr.msk.f32.mxu1 %vm2468_vm4, %v4347_v62  ;;  %v4665_v63 = vpop.permute.xlu1 %4664 }
0x1201   :  { %7339 = vmatmul.mubr.msk.f32.gmra.mrb[100].mxu1 %vm2468_vm4, %v4348_v43 }
0x1202   :  { %7341 = vmatprep.mubr.msk.f32.mxu1 %vm2468_vm4, %v4349_v18 }
0x1205   :  { %7342 = vmatmul.mubr.msk.f32.gmra.mrb[102].mxu1 %vm2468_vm4, %v4350_v3 }
0x1206   :  { %7388 = vmatprep.mubr.msk.f32.mxu1 %vm8446_vm0, %v12319_v57 }
0x12c4   :  { %v7328_v45 = vpop.f32.mrb[92].mxu1 }
0x12c5   :  { %v4778_v1 = vadd.f32 %v7328_v45, %v4630_v10  ;;  %v4772_v56 = vpop.f32.mrb[93].mxu1 }
0x12c6   :  { %v4773_v31 = vadd.f32 %v4772_v56, %v4625_v14 }
0x12c7   :  { %v4832_v21 = vadd.f32 3.0, %v4778_v1 }
0x12c8   :  { %v4831_v50 = vadd.f32 3.0, %v4773_v31  ;;  %v7331_v59 = vpop.f32.mrb[94].mxu1 }
0x12c9   :  { %v4844_v38 = vmax.f32 %v4832_v21, 0.0  ;;  %v4782_v7 = vpop.f32.mrb[95].mxu1  ;;  %v4788_v51 = vadd.f32 %v7331_v59, %v4640_v23 }
0x12ca   :  { %v4843_v0 = vmax.f32 %v4831_v50, 0.0  ;;  %v4783_v49 = vadd.f32 %v4782_v7, %v4635_v29 }
0x12cb   :  { %v4856_v24 = vmin.f32 %v4844_v38, 6.0  ;;  %v4834_v55 = vadd.f32 3.0, %v4788_v51  ;;  %v4680_v38 = vpop.permute.xlu0 %4679  ;;  %v4675_v51 = vpop.permute.xlu1 %4674 }
0x12cc   :  { %v4855_v53 = vmin.f32 %v4843_v0, 6.0  ;;  %v4833_v27 = vadd.f32 3.0, %v4783_v49  ;;  %v7334_v28 = vpop.f32.mrb[96].mxu1 }
0x12cd   :  { %v4846_v48 = vmax.f32 %v4834_v55, 0.0  ;;  %v4792_v39 = vpop.f32.mrb[97].mxu1  ;;  %v4798_v4 = vadd.f32 %v7334_v28, %v4650_v34  ;;  %v4868_v18 = vmul.f32 0.16666667, %v4856_v24 }
0x12ce   :  { %v4867_v25 = vmul.f32 0.16666667, %v4855_v53  ;;  %v4845_v62 = vmax.f32 %v4833_v27, 0.0  ;;  %v4793_v43 = vadd.f32 %v4792_v39, %v4645_v32 }
0x12cf   :  { %v4858_v3 = vmin.f32 %v4846_v48, 6.0  ;;  %v4836_v46 = vadd.f32 3.0, %v4798_v4 }
0x12d0   :  { %v4857_v26 = vmin.f32 %v4845_v62, 6.0  ;;  %v4835_v16 = vadd.f32 3.0, %v4793_v43  ;;  %v7337_v40 = vpop.f32.mrb[98].mxu1  ;;  %7346 = vmatprep.mubr.msk.f32.mxu0 %vm1431_vm2, %v4867_v25 }
0x12d1   :  { %v4848_v2 = vmax.f32 %v4836_v46, 0.0  ;;  %v4802_v15 = vpop.f32.mrb[99].mxu1  ;;  %7347 = vmatmul.mubr.msk.f32.vlgmr.msra.gmra.mrb[78].mxu0 %vm1431_vm2, %v4868_v18  ;;  %v4808_v9 = vadd.f32 %v7337_v40, %v4660_v8  ;;  %v4870_v12 = vmul.f32 0.16666667, %v4858_v3  ;;  %v5055_v40 = vld [vmem:[%s12236_s1 + $0x600] sm:$0xff] }
0x12d2   :  { %v4869_v19 = vmul.f32 0.16666667, %v4857_v26  ;;  %v4847_v52 = vmax.f32 %v4835_v16, 0.0  ;;  %v4803_v35 = vadd.f32 %v4802_v15, %v4655_v13  ;;  %v5053_v26 = vld [vmem:[%s12236_s1 + $0x5e0] sm:$0xff]  ;;  %v5054_v16 = vld [vmem:[%s12236_s1 + $0x5f0] sm:$0xff] }
0x12d3   :  { %v4860_v58 = vmin.f32 %v4848_v2, 6.0  ;;  %v4838_v30 = vadd.f32 3.0, %v4808_v9  ;;  %5060 = vperm.xlu1 %8433, %v5053_v26   ;;  %5065 = vperm.xlu0 %8434, %v5054_v16   ;;  %v5056_v2 = vld [vmem:[%s12236_s1 + $0x610] sm:$0xff]  ;;  %v5057_v15 = vld [vmem:[%s12236_s1 + $0x620] sm:$0xff] }
0x12d4   :  { %v4859_v47 = vmin.f32 %v4847_v52, 6.0  ;;  %v4837_v60 = vadd.f32 3.0, %v4803_v35  ;;  %v7340_v14 = vpop.f32.mrb[100].mxu1  ;;  %7349 = vmatprep.mubr.msk.f32.mxu0 %vm1431_vm2, %v4869_v19 }
0x12d5   :  { %v4850_v10 = vmax.f32 %v4838_v30, 0.0  ;;  %v4812_v23 = vpop.f32.mrb[101].mxu1  ;;  %7350 = vmatmul.mubr.msk.f32.gmra.mrb[80].mxu0 %vm1431_vm2, %v4870_v12  ;;  %v4818_v29 = vadd.f32 %v7340_v14, %v4670_v42  ;;  %v4872_v31 = vmul.f32 0.16666667, %v4860_v58 }
0x12d6   :  { %v4871_v45 = vmul.f32 0.16666667, %v4859_v47  ;;  %v4849_v1 = vmax.f32 %v4837_v60, 0.0  ;;  %v4813_v56 = vadd.f32 %v4812_v23, %v4665_v63 }
0x12d7   :  { %v4862_v34 = vmin.f32 %v4850_v10, 6.0  ;;  %v4840_v21 = vadd.f32 3.0, %v4818_v29  ;;  %5070 = vperm.xlu1 %8433, %v5055_v40   ;;  %5080 = vperm.xlu0 %8434, %v5057_v15  }
0x12d8   :  { %v4861_v32 = vmin.f32 %v4849_v1, 6.0  ;;  %v4839_v50 = vadd.f32 3.0, %v4813_v56  ;;  %v7343_v59 = vpop.f32.mrb[102].mxu1  ;;  %7352 = vmatprep.mubr.msk.f32.mxu0 %vm1431_vm2, %v4871_v45 }
0x12d9   :  { %v4852_v7 = vmax.f32 %v4840_v21, 0.0  ;;  %v4822_v0 = vpop.f32.mrb[103].mxu1  ;;  %7353 = vmatmul.mubr.msk.f32.gmra.mrb[82].mxu0 %vm1431_vm2, %v4872_v31  ;;  %v4828_v49 = vadd.f32 %v7343_v59, %v4680_v38  ;;  %v4874_v27 = vmul.f32 0.16666667, %v4862_v34  ;;  %v11772_v59 = vld [vmem:[%s12236_s1 + $0x690] sm:$0xff]  ;;  %v11779_v38 = vld [vmem:[%s12236_s1 + $0x680] sm:$0xff] }
0x12da   :  { %v4873_v24 = vmul.f32 0.16666667, %v4861_v32  ;;  %v4851_v55 = vmax.f32 %v4839_v50, 0.0  ;;  %v4823_v53 = vadd.f32 %v4822_v0, %v4675_v51  ;;  %v11767_v50 = vld [vmem:[%s12236_s1 + $0x660] sm:$0xff]  ;;  %v11796_v0 = vld [vmem:[%s12236_s1 + $0x6d0] sm:$0xff] }
0x12db   :  { %v4864_v28 = vmin.f32 %v4852_v7, 6.0  ;;  %v4842_v8 = vadd.f32 3.0, %v4828_v49  ;;  %5075 = vperm.xlu1 %8433, %v5056_v2   ;;  %v11784_v7 = vld [vmem:[%s12236_s1 + $0x6b0] sm:$0xff]  ;;  %v11791_v51 = vld [vmem:[%s12236_s1 + $0x6a0] sm:$0xff] }
0x12dc   :  { %v4863_v48 = vmin.f32 %v4851_v55, 6.0  ;;  %v4841_v39 = vadd.f32 3.0, %v4823_v53  ;;  %7355 = vmatprep.mubr.msk.f32.mxu0 %vm1431_vm2, %v4873_v24  ;;  %v11803_v49 = vld [vmem:[%s12236_s1 + $0x6c0] sm:$0xff]  ;;  %v11808_v24 = vld [vmem:[%s12236_s1 + $0x6f0] sm:$0xff] }
0x12dd   :  { %v4854_v4 = vmax.f32 %v4842_v8, 0.0  ;;  %7356 = vmatmul.mubr.msk.f32.gmra.mrb[84].mxu0 %vm1431_vm2, %v4874_v27  ;;  %v4876_v62 = vmul.f32 0.16666667, %v4864_v28  ;;  %v11815_v55 = vld [vmem:[%s12236_s1 + $0x6e0] sm:$0xff]  ;;  %v11820_v53 = vld [vmem:[%s12236_s1 + $0x710] sm:$0xff] }
0x12de   :  { %v4875_v13 = vmul.f32 0.16666667, %v4863_v48  ;;  %v4853_v25 = vmax.f32 %v4841_v39, 0.0  ;;  %v11827_v27 = vld [vmem:[%s12236_s1 + $0x700] sm:$0xff]  ;;  %v11832_v28 = vld [vmem:[%s12236_s1 + $0x730] sm:$0xff] }
0x12df   :  { %v4866_v43 = vmin.f32 %v4854_v4, 6.0  ;;  %v11839_v8 = vld [vmem:[%s12236_s1 + $0x720] sm:$0xff]  ;;  %v11844_v48 = vld [vmem:[%s12236_s1 + $0x750] sm:$0xff] }
0x12e0   :  { %v4865_v18 = vmin.f32 %v4853_v25, 6.0  ;;  %7358 = vmatprep.mubr.msk.f32.mxu0 %vm1431_vm2, %v4875_v13  ;;  %v11851_v39 = vld [vmem:[%s12236_s1 + $0x740] sm:$0xff]  ;;  %v11856_v4 = vld [vmem:[%s12236_s1 + $0x770] sm:$0xff] }
0x12e1   :  { %7359 = vmatmul.mubr.msk.f32.gmra.mrb[86].mxu0 %vm1431_vm2, %v4876_v62  ;;  %v4878_v46 = vmul.f32 0.16666667, %v4866_v43  ;;  %v11863_v13 = vld [vmem:[%s12236_s1 + $0x760] sm:$0xff]  ;;  %v11868_v25 = vld [vmem:[%s12236_s1 + $0x790] sm:$0xff] }
0x12e2   :  { %v4877_v3 = vmul.f32 0.16666667, %v4865_v18  ;;  %v11875_v62 = vld [vmem:[%s12236_s1 + $0x780] sm:$0xff]  ;;  %v11880_v43 = vld [vmem:[%s12236_s1 + $0x7b0] sm:$0xff] }
0x12e3   :  { %v11887_v18 = vld [vmem:[%s12236_s1 + $0x7a0] sm:$0xff] }
0x12e4   :  { %7361 = vmatprep.mubr.msk.f32.mxu0 %vm1431_vm2, %v4877_v3  ;;  %v11892_v3 = vld [vmem:[%s12236_s1 + $0x7d0] sm:$0xff] }
0x12e5   :  { %7362 = vmatmul.mubr.msk.f32.gmra.mrb[88].mxu0 %vm1431_vm2, %v4878_v46  ;;  %v5208_v46 = vld [vmem:[%s12236_s1 + $0x7c0] sm:$0xff] }
0x13a4   :  { %v7348_v9 = vpop.f32.mrb[78].mxu0 }
0x13a5   :  { %v5042_v19 = vmul.f32 %v7348_v9, %v11512_v11  ;;  %v4982_v52 = vpop.f32.mrb[79].mxu0 }
0x13a6   :  { %v5041_v35 = vmul.f32 %v4982_v52, %v11506_v37 }
0x13a8   :  { %v8197_v42 = vpack.c.bf16 %v5042_v19, %v5041_v35  ;;  %v7351_v12 = vpop.f32.mrb[80].mxu0  ;;  %v5066_v19 = vpop.permute.xlu0 %5065 }
0x13a9   :  { %v5044_v58 = vmul.f32 %v7351_v12, %v11537_v6  ;;  %v4992_v30 = vpop.f32.mrb[81].mxu0 }
0x13aa   :  { %v5043_v63 = vmul.f32 %v4992_v30, %v11526_v41  ;;  %8198 = vmatpush3.bf16.msra.mxu1 %v8197_v42 }
0x13ab   :  { %8199 = vmatprep.subr.bf16.mxu1 %v12321_v33 }
0x13ac   :  { %v8200_v47 = vpack.c.bf16 %v5044_v58, %v5043_v63  ;;  %v7354_v60 = vpop.f32.mrb[82].mxu0 }
0x13ad   :  { %v5046_v14 = vmul.f32 %v7354_v60, %v11556_v36  ;;  %v5002_v10 = vpop.f32.mrb[83].mxu0 }
0x13ae   :  { %v5045_v11 = vmul.f32 %v5002_v10, %v11549_v61  ;;  %8201 = vmatpush3.bf16.msra.mxu1 %v8200_v47 }
0x13af   :  { %8202 = vmatprep.subr.bf16.mxu1 %v12321_v33 }
0x13b0   :  { %v8203_v37 = vpack.c.bf16 %v5046_v14, %v5045_v11  ;;  %v7357_v23 = vpop.f32.mrb[84].mxu0 }
0x13b1   :  { %v5048_v6 = vmul.f32 %v7357_v23, %v11565_v5  ;;  %v5012_v29 = vpop.f32.mrb[85].mxu0 }
0x13b2   :  { %v5047_v41 = vmul.f32 %v5012_v29, %v11563_v22  ;;  %8204 = vmatpush3.bf16.msra.mxu1 %v8203_v37 }
0x13b3   :  { %8205 = vmatprep.subr.bf16.mxu1 %v12321_v33 }
0x13b4   :  { %v8206_v45 = vpack.c.bf16 %v5048_v6, %v5047_v41  ;;  %v7360_v1 = vpop.f32.mrb[86].mxu0  ;;  %v5081_v6 = vpop.permute.xlu0 %5080 }
0x13b5   :  { %v5050_v36 = vmul.f32 %v7360_v1, %v11589_v20  ;;  %v5022_v56 = vpop.f32.mrb[87].mxu0  ;;  %v11749_v20 = vld [vmem:[%s12236_s1 + $0x640] sm:$0xff] }
0x13b6   :  { %v5049_v61 = vmul.f32 %v5022_v56, %v11577_v54  ;;  %8207 = vmatpush3.bf16.msra.mxu1 %v8206_v45  ;;  %v5183_v54 = vld [vmem:[%s12236_s1 + $0x630] sm:$0xff]  ;;  %v5789_v1 = vld [vmem:[%s12234_s2 + $0x1c20] sm:$0xff] }
0x13b7   :  { %8208 = vmatprep.subr.bf16.mxu1 %v12321_v33  ;;  %7413 = vmatprep.mubr.msk.f32.mxu0 %vm5363_vm9, %v5183_v54 }
0x13b8   :  { %v8209_v31 = vpack.c.bf16 %v5050_v36, %v5049_v61  ;;  %v7363_v34 = vpop.f32.mrb[88].mxu0  ;;  %v5790_v36 = vld [vmem:[%s12234_s2 + $0x1c50] sm:$0xff]  ;;  %v5791_v61 = vld [vmem:[%s12234_s2 + $0x1c80] sm:$0xff] }
0x13b9   :  { %v5052_v5 = vmul.f32 %v7363_v34, %v11598_v17  ;;  %v5032_v21 = vpop.f32.mrb[89].mxu0  ;;  %v11755_v17 = vld [vmem:[%s12236_s1 + $0x650] sm:$0xff]  ;;  %v8222_v56 = vpack.c.bf16 %v5790_v36, %v5789_v1 }
0x13ba   :  { %v5051_v22 = vmul.f32 %v5032_v21, %v11594_v44  ;;  %8210 = vmatpush3.bf16.msra.mxu1 %v8209_v31  ;;  %v8459_v44 = vmov 40   ;;  %v5792_v31 = vld [vmem:[%s12234_s2 + $0x1cb0] sm:$0xff] }
0x13bb   :  { %8211 = vmatprep.subr.bf16.mxu1 %v12321_v33  ;;  %8435 = vset.pattern.permute.xlu1 %v8459_v44  ;;  %v8226_v34 = vpack.c.bf16 %v5792_v31, %v5791_v61 }
0x13bc   :  { %v8212_v32 = vpack.c.bf16 %v5052_v5, %v5051_v22  ;;  %8436 = vset.pattern.permute.xlu0 %v8459_v44  ;;  %5215 = vperm.xlu1 %8435, %v5183_v54  }
0x13bd   :  { %5220 = vperm.xlu0 %8436, %v11749_v20  }
0x13be   :  { %8213 = vmatpush3.bf16.msra.mxu1 %v8212_v32 }
0x13bf   :  { %8223 = vmatprep.subr.bf16.mxu1 %v8222_v56 }
0x13c0   :  { %5225 = vperm.xlu1 %8435, %v11755_v17  }
0x13c1   :  { %7389 = vmatmul.mubr.msk.f32.vlgmr.msra.gmra.mrb[104].mxu1 %vm4532_vm8, %v5053_v26  ;;  %v11902_v26 = vld [vmem:[%s12236_s1 + $0x7f0] sm:$0xff] }
0x13c2   :  { %7391 = vmatprep.mubr.msk.f32.mxu1 %vm8446_vm0, %v12319_v57  ;;  %8225 = vmatpush3.bf16.msra.mxu1 %v8222_v56 }
0x13c3   :  { %8227 = vmatprep.subr.bf16.mxu1 %v8226_v34 }
0x13c4   :  { %5230 = vperm.xlu1 %8435, %v11767_v50  }
0x13c5   :  { %7392 = vmatmul.mubr.msk.f32.gmra.mrb[106].mxu1 %vm4532_vm8, %v5054_v16  ;;  %v5210_v16 = vld [vmem:[%s12236_s1 + $0x7e0] sm:$0xff] }
0x13c6   :  { %7394 = vmatprep.mubr.msk.f32.mxu1 %vm8446_vm0, %v12319_v57  ;;  %8229 = vmatpush3.bf16.msra.mxu1 %v8226_v34 }
0x13c8   :  { %5240 = vperm.xlu1 %8435, %v11779_v38  }
0x13c9   :  { %7395 = vmatmul.mubr.msk.f32.gmra.mrb[108].mxu1 %vm4532_vm8, %v5055_v40  ;;  %v5212_v40 = vld [vmem:[%s12236_s1 + $0x800] sm:$0xff] }
0x13ca   :  { %7397 = vmatprep.mubr.msk.f32.mxu1 %vm8446_vm0, %v12319_v57 }
0x13cc   :  { %5250 = vperm.xlu1 %8435, %v11791_v51  }
0x13cd   :  { %7398 = vmatmul.mubr.msk.f32.gmra.mrb[110].mxu1 %vm4532_vm8, %v5056_v2  ;;  %v5061_v2 = vpop.permute.xlu1 %5060 }
0x13ce   :  { %7400 = vmatprep.mubr.msk.f32.mxu1 %vm8446_vm0, %v12319_v57  ;;  %v11760_v57 = vld [vmem:[%s12236_s1 + $0x670] sm:$0xff] }
0x13cf   :  { %5235 = vperm.xlu0 %8436, %v11760_v57  }
0x13d0   :  { %5260 = vperm.xlu1 %8435, %v11803_v49  }
0x13d1   :  { %7401 = vmatmul.mubr.msk.f32.gmra.mrb[112].mxu1 %vm4532_vm8, %v5057_v15  ;;  %v5071_v58 = vpop.permute.xlu1 %5070 }
0x13d3   :  { %5245 = vperm.xlu0 %8436, %v11772_v59  }
0x13d4   :  { %5270 = vperm.xlu1 %8435, %v11815_v55  }
0x13d5   :  { %v5076_v60 = vpop.permute.xlu1 %5075 }
0x13d7   :  { %5255 = vperm.xlu0 %8436, %v11784_v7  }
0x13d8   :  { %5280 = vperm.xlu1 %8435, %v11827_v27  }
0x13db   :  { %5265 = vperm.xlu0 %8436, %v11796_v0  }
0x13dc   :  { %5290 = vperm.xlu1 %8435, %v11839_v8  }
0x13df   :  { %5275 = vperm.xlu0 %8436, %v11808_v24  }
0x13e0   :  { %5300 = vperm.xlu1 %8435, %v11851_v39  }
0x13e3   :  { %5285 = vperm.xlu0 %8436, %v11820_v53  }
0x13e4   :  { %5310 = vperm.xlu1 %8435, %v11863_v13  }
0x13e7   :  { %5295 = vperm.xlu0 %8436, %v11832_v28  }
0x13e8   :  { %5320 = vperm.xlu1 %8435, %v11875_v62  }
0x13eb   :  { %5305 = vperm.xlu0 %8436, %v11844_v48  }
0x13ec   :  { %5330 = vperm.xlu1 %8435, %v11887_v18  }
0x13ef   :  { %5315 = vperm.xlu0 %8436, %v11856_v4  }
0x13f0   :  { %5340 = vperm.xlu1 %8435, %v5208_v46  }
0x13f3   :  { %5325 = vperm.xlu0 %8436, %v11868_v25  }
0x13f4   :  { %5350 = vperm.xlu1 %8435, %v5210_v16  }
0x13f7   :  { %5335 = vperm.xlu0 %8436, %v11880_v43  }
0x13f8   :  { %5360 = vperm.xlu1 %8435, %v5212_v40  }
0x13fb   :  { %5345 = vperm.xlu0 %8436, %v11892_v3  }
0x13ff   :  { %5355 = vperm.xlu0 %8436, %v11902_v26  }
0x143b   :  { %v5216_v5 = vpop.permute.xlu1 %5215 }
0x143c   :  { %v5221_v32 = vpop.permute.xlu0 %5220 }
0x143f   :  { %v5226_v21 = vpop.permute.xlu1 %5225 }
0x1443   :  { %v5231_v22 = vpop.permute.xlu1 %5230 }
0x1447   :  { %v5241_v54 = vpop.permute.xlu1 %5240 }
0x144b   :  { %v5251_v44 = vpop.permute.xlu1 %5250 }
0x1494   :  { %v5159_v15 = vpop.f32.mrb[104].mxu1 }
0x1495   :  { %v7390_v9 = vpop.f32.mrb[105].mxu1  ;;  %v5160_v35 = vadd.f32 %v5159_v15, %v5061_v2 }
0x1498   :  { %v5164_v52 = vpop.f32.mrb[106].mxu1 }
0x1499   :  { %v5165_v42 = vadd.f32 %v5164_v52, %v5066_v19  ;;  %v7393_v12 = vpop.f32.mrb[107].mxu1 }
0x149b   :  { %v8214_v30 = vpack.c.bf16 %v5165_v42, %v5160_v35 }
0x149c   :  { %v5169_v63 = vpop.f32.mrb[108].mxu1 }
0x149d   :  { %v7396_v47 = vpop.f32.mrb[109].mxu1  ;;  %8215 = vmatprep.subr.bf16.mxu0 %v8214_v30  ;;  %v5170_v10 = vadd.f32 %v5169_v63, %v5071_v58 }
0x149e   :  { %8217 = vmatpush3.bf16.msra.mxu0 %v8214_v30 }
0x14a0   :  { %v5174_v14 = vpop.f32.mrb[110].mxu1 }
0x14a1   :  { %v5175_v11 = vadd.f32 %v5174_v14, %v5076_v60  ;;  %v7399_v37 = vpop.f32.mrb[111].mxu1 }
0x14a3   :  { %v8218_v23 = vpack.c.bf16 %v5175_v11, %v5170_v10 }
0x14a4   :  { %v5179_v29 = vpop.f32.mrb[112].mxu1 }
0x14a5   :  { %8219 = vmatprep.subr.bf16.mxu0 %v8218_v23  ;;  %v5180_v41 = vadd.f32 %v5179_v29, %v5081_v6  ;;  %v7402_v45 = vpop.f32.mrb[113].mxu1 }
0x14a6   :  { %8221 = vmatpush3.bf16.msra.mxu0 %v8218_v23 }
0x14a7   :  { %7411 = vmatprep.subr.mxu0 %v5180_v41 }
0x14aa   :  { %7412 = vmatpush3.msra.mxu0 %v5180_v41 }
0x14ab   :  { %7414 = vmatmul.mubr.msk.f32.vlgmr.msra.gmra.mrb[90].mxu0 %vm5363_vm9, %v11749_v20  ;;  %8230 = vmatprep.subr.bf16.mxu0 %v12321_v33  ;;  %v5236_v20 = vpop.permute.xlu0 %5235 }
0x14ac   :  { %7416 = vmatprep.mubr.msk.f32.mxu0 %vm5363_vm9, %v11755_v17 }
0x14af   :  { %7417 = vmatmul.mubr.msk.f32.gmra.mrb[92].mxu0 %vm5363_vm9, %v11767_v50  ;;  %v5246_v17 = vpop.permute.xlu0 %5245 }
0x14b0   :  { %7419 = vmatprep.mubr.msk.f32.mxu0 %vm5363_vm9, %v11760_v57  ;;  %v5261_v57 = vpop.permute.xlu1 %5260 }
0x14b3   :  { %7420 = vmatmul.mubr.msk.f32.gmra.mrb[94].mxu0 %vm5363_vm9, %v11779_v38  ;;  %v5256_v50 = vpop.permute.xlu0 %5255 }
0x14b4   :  { %7422 = vmatprep.mubr.msk.f32.mxu0 %vm5363_vm9, %v11772_v59 }
0x14b7   :  { %7423 = vmatmul.mubr.msk.f32.gmra.mrb[96].mxu0 %vm5363_vm9, %v11791_v51  ;;  %v11979_v51 = vpop.permute.xlu1 %5270 }
0x14b8   :  { %7425 = vmatprep.mubr.msk.f32.mxu0 %vm5363_vm9, %v11784_v7 }
0x14bb   :  { %7426 = vmatmul.mubr.msk.f32.gmra.mrb[98].mxu0 %vm5363_vm9, %v11803_v49 }
0x14bc   :  { %7428 = vmatprep.mubr.msk.f32.mxu0 %vm5363_vm9, %v11796_v0 }
0x14bf   :  { %7429 = vmatmul.mubr.msk.f32.gmra.mrb[100].mxu0 %vm5363_vm9, %v11815_v55 }
0x14c0   :  { %7431 = vmatprep.mubr.msk.f32.mxu0 %vm5363_vm9, %v11808_v24  ;;  %v11981_v24 = vpop.permute.xlu0 %5265 }
0x14c3   :  { %7432 = vmatmul.mubr.msk.f32.gmra.mrb[102].mxu0 %vm5363_vm9, %v11827_v27 }
0x14c4   :  { %7434 = vmatprep.mubr.msk.f32.mxu0 %vm5363_vm9, %v11820_v53 }
0x14c7   :  { %7435 = vmatmul.mubr.msk.f32.gmra.mrb[104].mxu0 %vm5363_vm9, %v11839_v8 }
0x14c8   :  { %7437 = vmatprep.mubr.msk.f32.mxu0 %vm5363_vm9, %v11832_v28 }
0x14cb   :  { %7438 = vmatmul.mubr.msk.f32.gmra.mrb[106].mxu0 %vm5363_vm9, %v11851_v39 }
0x14cc   :  { %7440 = vmatprep.mubr.msk.f32.mxu0 %vm5363_vm9, %v11844_v48 }
0x14cf   :  { %7441 = vmatmul.mubr.msk.f32.gmra.mrb[108].mxu0 %vm5363_vm9, %v11863_v13 }
0x14d0   :  { %7443 = vmatprep.mubr.msk.f32.mxu0 %vm5363_vm9, %v11856_v4 }
0x14d3   :  { %7444 = vmatmul.mubr.msk.f32.gmra.mrb[110].mxu0 %vm5363_vm9, %v11875_v62  ;;  %v11983_v62 = vpop.permute.xlu1 %5280 }
0x14d4   :  { %7446 = vmatprep.mubr.msk.f32.mxu0 %vm5363_vm9, %v11868_v25 }
0x14d7   :  { %7447 = vmatmul.mubr.msk.f32.gmra.mrb[112].mxu0 %vm5363_vm9, %v11887_v18  ;;  %v11987_v11 = vpop.permute.xlu1 %5290 }
0x14d8   :  { %7449 = vmatprep.mubr.msk.f32.mxu0 %vm5363_vm9, %v11880_v43 }
0x14db   :  { %7450 = vmatmul.mubr.msk.f32.gmra.mrb[114].mxu0 %vm5363_vm9, %v5208_v46 }
0x14dc   :  { %7452 = vmatprep.mubr.msk.f32.mxu0 %vm5363_vm9, %v11892_v3 }
0x14df   :  { %7453 = vmatmul.mubr.msk.f32.gmra.mrb[116].mxu0 %vm5363_vm9, %v5210_v16  ;;  %v11985_v16 = vpop.permute.xlu0 %5275 }
0x14e0   :  { %7455 = vmatprep.mubr.msk.f32.mxu0 %vm5363_vm9, %v11902_v26 }
0x14e3   :  { %7456 = vmatmul.mubr.msk.f32.gmra.mrb[118].mxu0 %vm5363_vm9, %v5212_v40  ;;  %v11990_v41 = vpop.permute.xlu0 %5285 }
0x157e   :  { %v7415_v59 = vpop.f32.mrb[90].mxu0 }
0x157f   :  { %v5496_v38 = vadd.f32 %v7415_v59, %v5221_v32  ;;  %v5490_v7 = vpop.f32.mrb[91].mxu0  ;;  %v5301_v59 = vpop.permute.xlu1 %5300 }
0x1580   :  { %v5491_v0 = vadd.f32 %v5490_v7, %v5216_v5 }
0x1581   :  { %v5640_v49 = vadd.f32 3.0, %v5496_v38 }
0x1582   :  { %v5639_v55 = vadd.f32 3.0, %v5491_v0  ;;  %v7418_v53 = vpop.f32.mrb[92].mxu0 }
0x1583   :  { %v5670_v27 = vmax.f32 %v5640_v49, 0.0  ;;  %v5506_v28 = vadd.f32 %v7418_v53, %v5231_v22  ;;  %v5500_v8 = vpop.f32.mrb[93].mxu0 }
0x1584   :  { %v5669_v48 = vmax.f32 %v5639_v55, 0.0  ;;  %v5501_v39 = vadd.f32 %v5500_v8, %v5226_v21 }
0x1585   :  { %v5700_v4 = vmin.f32 %v5670_v27, 6.0  ;;  %v5642_v13 = vadd.f32 3.0, %v5506_v28  ;;  %v5296_v27 = vpop.permute.xlu0 %5295 }
0x1586   :  { %v5699_v25 = vmin.f32 %v5669_v48, 6.0  ;;  %v5641_v43 = vadd.f32 3.0, %v5501_v39  ;;  %v7421_v18 = vpop.f32.mrb[94].mxu0 }
0x1587   :  { %v5730_v3 = vmul.f32 0.16666667, %v5700_v4  ;;  %v5672_v46 = vmax.f32 %v5642_v13, 0.0  ;;  %v5516_v26 = vadd.f32 %v7421_v18, %v5241_v54  ;;  %v5510_v40 = vpop.f32.mrb[95].mxu0 }
0x1588   :  { %v5729_v2 = vmul.f32 0.16666667, %v5699_v25  ;;  %v5671_v15 = vmax.f32 %v5641_v43, 0.0  ;;  %v5511_v9 = vadd.f32 %v5510_v40, %v5236_v20 }
0x1589   :  { %v5702_v19 = vmin.f32 %v5672_v46, 6.0  ;;  %v5644_v52 = vadd.f32 3.0, %v5516_v26  ;;  %v5760_v30 = vmul.f32 %v5730_v3, %v5496_v38 }
0x158a   :  { %v5759_v35 = vmul.f32 %v5729_v2, %v5491_v0  ;;  %v5701_v42 = vmin.f32 %v5671_v15, 6.0  ;;  %v5643_v12 = vadd.f32 3.0, %v5511_v9  ;;  %v7424_v58 = vpop.f32.mrb[96].mxu0  ;;  %v5311_v2 = vpop.permute.xlu1 %5310 }
0x158b   :  { %v5732_v63 = vmul.f32 0.16666667, %v5702_v19  ;;  %v5674_v47 = vmax.f32 %v5644_v52, 0.0  ;;  %v5526_v60 = vadd.f32 %v7424_v58, %v5251_v44  ;;  %v5520_v14 = vpop.f32.mrb[97].mxu0  ;;  %v5306_v52 = vpop.permute.xlu0 %5305 }
0x158c   :  { %v5731_v10 = vmul.f32 0.16666667, %v5701_v42  ;;  %v5673_v37 = vmax.f32 %v5643_v12, 0.0  ;;  %v5521_v23 = vadd.f32 %v5520_v14, %v5246_v17  ;;  %7466 = vmatprep.mubr.msk.f32.mxu1 %vm4355_vm7, %v5759_v35 }
0x158d   :  { %v5704_v6 = vmin.f32 %v5674_v47, 6.0  ;;  %v5646_v29 = vadd.f32 3.0, %v5526_v60  ;;  %7467 = vmatmul.mubr.msk.f32.vlgmr.msra.gmra.mrb[114].mxu1 %vm4355_vm7, %v5760_v30  ;;  %v5762_v61 = vmul.f32 %v5732_v63, %v5506_v28 }
0x158e   :  { %v5761_v45 = vmul.f32 %v5731_v10, %v5501_v39  ;;  %v5703_v1 = vmin.f32 %v5673_v37, 6.0  ;;  %v5645_v36 = vadd.f32 3.0, %v5521_v23  ;;  %v7427_v56 = vpop.f32.mrb[98].mxu0 }
0x158f   :  { %v5734_v31 = vmul.f32 0.16666667, %v5704_v6  ;;  %v5676_v34 = vmax.f32 %v5646_v29, 0.0  ;;  %v5536_v5 = vadd.f32 %v7427_v56, %v5261_v57  ;;  %v5530_v21 = vpop.f32.mrb[99].mxu0  ;;  %v5321_v29 = vpop.permute.xlu1 %5320 }
0x1590   :  { %v5733_v22 = vmul.f32 0.16666667, %v5703_v1  ;;  %v5675_v32 = vmax.f32 %v5645_v36, 0.0  ;;  %v5531_v54 = vadd.f32 %v5530_v21, %v5256_v50  ;;  %7469 = vmatprep.mubr.msk.f32.mxu1 %vm4355_vm7, %v5761_v45 }
0x1591   :  { %v5706_v20 = vmin.f32 %v5676_v34, 6.0  ;;  %v5648_v44 = vadd.f32 3.0, %v5536_v5  ;;  %7470 = vmatmul.mubr.msk.f32.gmra.mrb[116].mxu1 %vm4355_vm7, %v5762_v61  ;;  %v5764_v49 = vmul.f32 %v5734_v31, %v5516_v26  ;;  %v5316_v34 = vpop.permute.xlu0 %5315 }
0x1592   :  { %v5763_v17 = vmul.f32 %v5733_v22, %v5511_v9  ;;  %v5705_v38 = vmin.f32 %v5675_v32, 6.0  ;;  %v5647_v7 = vadd.f32 3.0, %v5531_v54  ;;  %v7430_v0 = vpop.f32.mrb[100].mxu0 }
0x1593   :  { %v5736_v55 = vmul.f32 0.16666667, %v5706_v20  ;;  %v5678_v53 = vmax.f32 %v5648_v44, 0.0  ;;  %v5546_v57 = vadd.f32 %v7430_v0, %v11979_v51  ;;  %v5540_v28 = vpop.f32.mrb[101].mxu0 }
0x1594   :  { %v5735_v8 = vmul.f32 0.16666667, %v5705_v38  ;;  %v5677_v50 = vmax.f32 %v5647_v7, 0.0  ;;  %v5541_v48 = vadd.f32 %v5540_v28, %v11981_v24  ;;  %7472 = vmatprep.mubr.msk.f32.mxu1 %vm4355_vm7, %v5763_v17 }
0x1595   :  { %v5708_v39 = vmin.f32 %v5678_v53, 6.0  ;;  %v5650_v4 = vadd.f32 3.0, %v5546_v57  ;;  %7473 = vmatmul.mubr.msk.f32.gmra.mrb[118].mxu1 %vm4355_vm7, %v5764_v49  ;;  %v5766_v3 = vmul.f32 %v5736_v55, %v5526_v60 }
0x1596   :  { %v5765_v13 = vmul.f32 %v5735_v8, %v5521_v23  ;;  %v5707_v25 = vmin.f32 %v5677_v50, 6.0  ;;  %v5649_v43 = vadd.f32 3.0, %v5541_v48  ;;  %v7433_v18 = vpop.f32.mrb[102].mxu0 }
0x1597   :  { %v5738_v46 = vmul.f32 0.16666667, %v5708_v39  ;;  %v5680_v26 = vmax.f32 %v5650_v4, 0.0  ;;  %v5556_v51 = vadd.f32 %v7433_v18, %v11983_v62  ;;  %v5550_v40 = vpop.f32.mrb[103].mxu0 }
0x1598   :  { %v5737_v15 = vmul.f32 0.16666667, %v5707_v25  ;;  %v5679_v9 = vmax.f32 %v5649_v43, 0.0  ;;  %v5551_v24 = vadd.f32 %v5550_v40, %v11985_v16  ;;  %7475 = vmatprep.mubr.msk.f32.mxu1 %vm4355_vm7, %v5765_v13 }
0x1599   :  { %v5710_v19 = vmin.f32 %v5680_v26, 6.0  ;;  %v5652_v35 = vadd.f32 3.0, %v5556_v51  ;;  %7476 = vmatmul.mubr.msk.f32.gmra.mrb[120].mxu1 %vm4355_vm7, %v5766_v3  ;;  %v5768_v63 = vmul.f32 %v5738_v46, %v5536_v5 }
0x159a   :  { %v5767_v42 = vmul.f32 %v5737_v15, %v5531_v54  ;;  %v5709_v12 = vmin.f32 %v5679_v9, 6.0  ;;  %v5651_v58 = vadd.f32 3.0, %v5551_v24  ;;  %v7436_v30 = vpop.f32.mrb[104].mxu0 }
0x159b   :  { %v5740_v47 = vmul.f32 0.16666667, %v5710_v19  ;;  %v5682_v62 = vmax.f32 %v5652_v35, 0.0  ;;  %v5566_v60 = vadd.f32 %v7436_v30, %v11987_v11  ;;  %v5560_v14 = vpop.f32.mrb[105].mxu0 }
0x159c   :  { %v5739_v10 = vmul.f32 0.16666667, %v5709_v12  ;;  %v5681_v37 = vmax.f32 %v5651_v58, 0.0  ;;  %v5561_v16 = vadd.f32 %v5560_v14, %v11990_v41  ;;  %7478 = vmatprep.mubr.msk.f32.mxu1 %vm4355_vm7, %v5767_v42 }
0x159d   :  { %v5712_v23 = vmin.f32 %v5682_v62, 6.0  ;;  %v5654_v6 = vadd.f32 3.0, %v5566_v60  ;;  %7479 = vmatmul.mubr.msk.f32.gmra.mrb[122].mxu1 %vm4355_vm7, %v5768_v63  ;;  %v5770_v61 = vmul.f32 %v5740_v47, %v5546_v57 }
0x159e   :  { %v5769_v45 = vmul.f32 %v5739_v10, %v5541_v48  ;;  %v5711_v1 = vmin.f32 %v5681_v37, 6.0  ;;  %v5653_v36 = vadd.f32 3.0, %v5561_v16  ;;  %v7439_v56 = vpop.f32.mrb[106].mxu0 }
0x159f   :  { %v5742_v31 = vmul.f32 0.16666667, %v5712_v23  ;;  %v5684_v11 = vmax.f32 %v5654_v6, 0.0  ;;  %v5576_v5 = vadd.f32 %v7439_v56, %v5301_v59  ;;  %v5570_v21 = vpop.f32.mrb[107].mxu0  ;;  %v5331_v59 = vpop.permute.xlu1 %5330 }
0x15a0   :  { %v5741_v22 = vmul.f32 0.16666667, %v5711_v1  ;;  %v5683_v32 = vmax.f32 %v5653_v36, 0.0  ;;  %v5571_v41 = vadd.f32 %v5570_v21, %v5296_v27  ;;  %7481 = vmatprep.mubr.msk.f32.mxu1 %vm4355_vm7, %v5769_v45  ;;  %v5326_v27 = vpop.permute.xlu0 %5325 }
0x15a1   :  { %v5714_v54 = vmin.f32 %v5684_v11, 6.0  ;;  %v5656_v20 = vadd.f32 3.0, %v5576_v5  ;;  %7482 = vmatmul.mubr.msk.f32.gmra.mrb[124].mxu1 %vm4355_vm7, %v5770_v61  ;;  %v5772_v0 = vmul.f32 %v5742_v31, %v5556_v51 }
0x15a2   :  { %v5771_v44 = vmul.f32 %v5741_v22, %v5551_v24  ;;  %v5713_v17 = vmin.f32 %v5683_v32, 6.0  ;;  %v5655_v38 = vadd.f32 3.0, %v5571_v41  ;;  %v7442_v7 = vpop.f32.mrb[108].mxu0 }
0x15a3   :  { %v5744_v49 = vmul.f32 0.16666667, %v5714_v54  ;;  %v5686_v55 = vmax.f32 %v5656_v20, 0.0  ;;  %v5586_v53 = vadd.f32 %v7442_v7, %v5311_v2  ;;  %v5580_v57 = vpop.f32.mrb[109].mxu0  ;;  %v5341_v19 = vpop.permute.xlu1 %5340 }
0x15a4   :  { %v5743_v28 = vmul.f32 0.16666667, %v5713_v17  ;;  %v5685_v8 = vmax.f32 %v5655_v38, 0.0  ;;  %v5581_v50 = vadd.f32 %v5580_v57, %v5306_v52  ;;  %7484 = vmatprep.mubr.msk.f32.mxu1 %vm4355_vm7, %v5771_v44  ;;  %v5336_v30 = vpop.permute.xlu0 %5335 }
0x15a5   :  { %v5716_v48 = vmin.f32 %v5686_v55, 6.0  ;;  %v5658_v39 = vadd.f32 3.0, %v5586_v53  ;;  %7485 = vmatmul.mubr.msk.f32.gmra.mrb[126].mxu1 %vm4355_vm7, %v5772_v0  ;;  %v5774_v18 = vmul.f32 %v5744_v49, %v5566_v60 }
0x15a6   :  { %v5773_v4 = vmul.f32 %v5743_v28, %v5561_v16  ;;  %v5715_v13 = vmin.f32 %v5685_v8, 6.0  ;;  %v5657_v25 = vadd.f32 3.0, %v5581_v50  ;;  %v7445_v43 = vpop.f32.mrb[110].mxu0 }
0x15a7   :  { %v5746_v3 = vmul.f32 0.16666667, %v5716_v48  ;;  %v5688_v46 = vmax.f32 %v5658_v39, 0.0  ;;  %v5596_v26 = vadd.f32 %v7445_v43, %v5321_v29  ;;  %v5590_v51 = vpop.f32.mrb[111].mxu0  ;;  %v5351_v11 = vpop.permute.xlu1 %5350 }
0x15a8   :  { %v5745_v40 = vmul.f32 0.16666667, %v5715_v13  ;;  %v5687_v2 = vmax.f32 %v5657_v25, 0.0  ;;  %v5591_v15 = vadd.f32 %v5590_v51, %v5316_v34  ;;  %7487 = vmatprep.mubr.msk.f32.mxu1 %vm4355_vm7, %v5773_v4  ;;  %v5346_v32 = vpop.permute.xlu0 %5345 }
0x15a9   :  { %v5718_v9 = vmin.f32 %v5688_v46, 6.0  ;;  %v5660_v24 = vadd.f32 3.0, %v5596_v26  ;;  %7488 = vmatmul.mubr.msk.f32.gmra.mrb[128].mxu1 %vm4355_vm7, %v5774_v18  ;;  %v5776_v58 = vmul.f32 %v5746_v3, %v5576_v5 }
0x15aa   :  { %v5775_v52 = vmul.f32 %v5745_v40, %v5571_v41  ;;  %v5717_v35 = vmin.f32 %v5687_v2, 6.0  ;;  %v5659_v42 = vadd.f32 3.0, %v5591_v15  ;;  %v7448_v12 = vpop.f32.mrb[112].mxu0 }
0x15ab   :  { %v5748_v63 = vmul.f32 0.16666667, %v5718_v9  ;;  %v5690_v47 = vmax.f32 %v5660_v24, 0.0  ;;  %v5606_v62 = vadd.f32 %v7448_v12, %v5331_v59  ;;  %v5600_v60 = vpop.f32.mrb[113].mxu0 }
0x15ac   :  { %v5747_v14 = vmul.f32 0.16666667, %v5717_v35  ;;  %v5689_v10 = vmax.f32 %v5659_v42, 0.0  ;;  %v5601_v37 = vadd.f32 %v5600_v60, %v5326_v27  ;;  %7490 = vmatprep.mubr.msk.f32.mxu1 %vm4355_vm7, %v5775_v52  ;;  %v5361_v27 = vpop.permute.xlu1 %5360  ;;  %v5356_v25 = vpop.permute.xlu0 %5355 }
0x15ad   :  { %v5720_v16 = vmin.f32 %v5690_v47, 6.0  ;;  %v5662_v23 = vadd.f32 3.0, %v5606_v62  ;;  %7491 = vmatmul.mubr.msk.f32.gmra.mrb[130].mxu1 %vm4355_vm7, %v5776_v58  ;;  %v5778_v36 = vmul.f32 %v5748_v63, %v5586_v53 }
0x15ae   :  { %v5777_v6 = vmul.f32 %v5747_v14, %v5581_v50  ;;  %v5719_v29 = vmin.f32 %v5689_v10, 6.0  ;;  %v5661_v45 = vadd.f32 3.0, %v5601_v37  ;;  %v7451_v1 = vpop.f32.mrb[114].mxu0 }
0x15af   :  { %v5750_v56 = vmul.f32 0.16666667, %v5720_v16  ;;  %v5692_v61 = vmax.f32 %v5662_v23, 0.0  ;;  %v5616_v31 = vadd.f32 %v7451_v1, %v5341_v19  ;;  %v5610_v34 = vpop.f32.mrb[115].mxu0  ;;  %v6099_v23 = vld [vmem:[%s12236_s1 + $0x818] sm:$0xff] }
0x15b0   :  { %v5749_v5 = vmul.f32 0.16666667, %v5719_v29  ;;  %v5691_v21 = vmax.f32 %v5661_v45, 0.0  ;;  %v5611_v22 = vadd.f32 %v5610_v34, %v5336_v30  ;;  %7493 = vmatprep.mubr.msk.f32.mxu1 %vm4355_vm7, %v5777_v6  ;;  %6736 = vmatprep.mubr.msk.f32.mxu0 %vm6210_vm10, %v6099_v23  ;;  %v12034_v6 = vld [vmem:[%s12236_s1 + $0x828] sm:$0xff]  ;;  %v8460_v29 = vmov 112   ;;  %v12040_v1 = vld [vmem:[%s12236_s1 + $0x838] sm:$0xff] }
0x15b1   :  { %v5722_v41 = vmin.f32 %v5692_v61, 6.0  ;;  %v5664_v54 = vadd.f32 3.0, %v5616_v31  ;;  %7494 = vmatmul.mubr.msk.f32.gmra.mrb[132].mxu1 %vm4355_vm7, %v5778_v36  ;;  %v5780_v7 = vmul.f32 %v5750_v56, %v5596_v26  ;;  %8438 = vset.pattern.permute.xlu1 %v8460_v29  ;;  %v12045_v36 = vld [vmem:[%s12236_s1 + $0x848] sm:$0xff]  ;;  %v12052_v34 = vld [vmem:[%s12236_s1 + $0x858] sm:$0xff] }
0x15b2   :  { %v5779_v20 = vmul.f32 %v5749_v5, %v5591_v15  ;;  %v5721_v44 = vmin.f32 %v5691_v21, 6.0  ;;  %v5663_v17 = vadd.f32 3.0, %v5611_v22  ;;  %v7454_v38 = vpop.f32.mrb[116].mxu0  ;;  %8437 = vset.pattern.permute.xlu0 %v8460_v29  ;;  %6137 = vperm.xlu1 %8438, %v12034_v6   ;;  %v12058_v5 = vld [vmem:[%s12236_s1 + $0x868] sm:$0xff]  ;;  %v6100_v29 = vld [vmem:[%s12236_s1 + $0x820] sm:$0xff] }
0x15b3   :  { %v5752_v0 = vmul.f32 0.16666667, %v5722_v41  ;;  %v5694_v49 = vmax.f32 %v5664_v54, 0.0  ;;  %v5626_v55 = vadd.f32 %v7454_v38, %v5351_v11  ;;  %v5620_v53 = vpop.f32.mrb[117].mxu0  ;;  %6132 = vperm.xlu0 %8437, %v6099_v23   ;;  %v12071_v54 = vld [vmem:[%s12236_s1 + $0x888] sm:$0xff]  ;;  %v6098_v23 = vld [vmem:[%s12236_s1 + $0x810] sm:$0xff] }
0x15b4   :  { %v5751_v57 = vmul.f32 0.16666667, %v5721_v44  ;;  %v5693_v59 = vmax.f32 %v5663_v17, 0.0  ;;  %v5621_v28 = vadd.f32 %v5620_v53, %v5346_v32  ;;  %7496 = vmatprep.mubr.msk.f32.mxu1 %vm4355_vm7, %v5779_v20  ;;  %v12065_v32 = vld [vmem:[%s12236_s1 + $0x878] sm:$0xff] }
0x15b5   :  { %v5724_v8 = vmin.f32 %v5694_v49, 6.0  ;;  %v5666_v50 = vadd.f32 3.0, %v5626_v55  ;;  %7497 = vmatmul.mubr.msk.f32.gmra.mrb[134].mxu1 %vm4355_vm7, %v5780_v7  ;;  %v5782_v43 = vmul.f32 %v5752_v0, %v5606_v62  ;;  %v12078_v17 = vld [vmem:[%s12236_s1 + $0x898] sm:$0xff]  ;;  %v12084_v7 = vld [vmem:[%s12236_s1 + $0x8a8] sm:$0xff] }
0x15b6   :  { %v5781_v48 = vmul.f32 %v5751_v57, %v5601_v37  ;;  %v5723_v39 = vmin.f32 %v5693_v59, 6.0  ;;  %v5665_v4 = vadd.f32 3.0, %v5621_v28  ;;  %v7457_v13 = vpop.f32.mrb[118].mxu0  ;;  %6142 = vperm.xlu1 %8438, %v12040_v1   ;;  %v12097_v57 = vld [vmem:[%s12236_s1 + $0x8c8] sm:$0xff] }
0x15b7   :  { %v5754_v18 = vmul.f32 0.16666667, %v5724_v8  ;;  %v5696_v3 = vmax.f32 %v5666_v50, 0.0  ;;  %v5636_v46 = vadd.f32 %v7457_v13, %v5361_v27  ;;  %v5630_v26 = vpop.f32.mrb[119].mxu0  ;;  %6147 = vperm.xlu0 %8437, %v12045_v36   ;;  %v12104_v8 = vld [vmem:[%s12236_s1 + $0x8d8] sm:$0xff]  ;;  %v12110_v27 = vld [vmem:[%s12236_s1 + $0x8e8] sm:$0xff] }
0x15b8   :  { %v5753_v51 = vmul.f32 0.16666667, %v5723_v39  ;;  %v5695_v40 = vmax.f32 %v5665_v4, 0.0  ;;  %v5631_v2 = vadd.f32 %v5630_v26, %v5356_v25  ;;  %7499 = vmatprep.mubr.msk.f32.mxu1 %vm4355_vm7, %v5781_v48  ;;  %v12117_v4 = vld [vmem:[%s12236_s1 + $0x8f8] sm:$0xff]  ;;  %v12123_v25 = vld [vmem:[%s12236_s1 + $0x908] sm:$0xff] }
0x15b9   :  { %v5726_v15 = vmin.f32 %v5696_v3, 6.0  ;;  %v5668_v9 = vadd.f32 3.0, %v5636_v46  ;;  %7500 = vmatmul.mubr.msk.f32.gmra.mrb[136].mxu1 %vm4355_vm7, %v5782_v43  ;;  %v5784_v35 = vmul.f32 %v5754_v18, %v5616_v31 }
0x15ba   :  { %v5783_v24 = vmul.f32 %v5753_v51, %v5611_v22  ;;  %v5725_v19 = vmin.f32 %v5695_v40, 6.0  ;;  %v5667_v52 = vadd.f32 3.0, %v5631_v2  ;;  %6152 = vperm.xlu1 %8438, %v12052_v34  }
0x15bb   :  { %v5756_v42 = vmul.f32 0.16666667, %v5726_v15  ;;  %v5698_v12 = vmax.f32 %v5668_v9, 0.0  ;;  %6157 = vperm.xlu0 %8437, %v12058_v5  }
0x15bc   :  { %v5755_v58 = vmul.f32 0.16666667, %v5725_v19  ;;  %v5697_v30 = vmax.f32 %v5667_v52, 0.0  ;;  %7502 = vmatprep.mubr.msk.f32.mxu1 %vm4355_vm7, %v5783_v24 }
0x15bd   :  { %v5728_v63 = vmin.f32 %v5698_v12, 6.0  ;;  %7503 = vmatmul.mubr.msk.f32.gmra.mrb[138].mxu1 %vm4355_vm7, %v5784_v35  ;;  %v5786_v60 = vmul.f32 %v5756_v42, %v5626_v55  ;;  %v12091_v55 = vld [vmem:[%s12236_s1 + $0x8b8] sm:$0xff] }
0x15be   :  { %v5785_v47 = vmul.f32 %v5755_v58, %v5621_v28  ;;  %v5727_v62 = vmin.f32 %v5697_v30, 6.0  ;;  %6162 = vperm.xlu1 %8438, %v12065_v32  }
0x15bf   :  { %v5758_v14 = vmul.f32 0.16666667, %v5728_v63  ;;  %6167 = vperm.xlu0 %8437, %v12071_v54  }
0x15c0   :  { %v5757_v10 = vmul.f32 0.16666667, %v5727_v62  ;;  %7505 = vmatprep.mubr.msk.f32.mxu1 %vm4355_vm7, %v5785_v47 }
0x15c1   :  { %7506 = vmatmul.mubr.msk.f32.gmra.mrb[140].mxu1 %vm4355_vm7, %v5786_v60  ;;  %v5788_v16 = vmul.f32 %v5758_v14, %v5636_v46  ;;  %v12322_v46 = vmov 0  }
0x15c2   :  { %v5787_v37 = vmul.f32 %v5757_v10, %v5631_v2  ;;  %6172 = vperm.xlu1 %8438, %v12078_v17  }
0x15c3   :  { %6177 = vperm.xlu0 %8437, %v12084_v7  }
0x15c4   :  { %7508 = vmatprep.mubr.msk.f32.mxu1 %vm4355_vm7, %v5787_v37 }
0x15c5   :  { %7509 = vmatmul.mubr.msk.f32.gmra.mrb[142].mxu1 %vm4355_vm7, %v5788_v16 }
0x15c6   :  { %6182 = vperm.xlu1 %8438, %v12091_v55  }
0x15c7   :  { %6187 = vperm.xlu0 %8437, %v12097_v57  }
0x15ca   :  { %6192 = vperm.xlu1 %8438, %v12104_v8  }
0x15cb   :  { %6197 = vperm.xlu0 %8437, %v12110_v27  }
0x15ce   :  { %6202 = vperm.xlu1 %8438, %v12117_v4  }
0x15cf   :  { %6207 = vperm.xlu0 %8437, %v12123_v25  }
0x15d2   :  { %8439 = vset.pattern.permute.xlu1 %v12322_v46 }
0x15d3   :  { %8440 = vset.pattern.permute.xlu0 %v12322_v46 }
0x1660   :  { %v7468_v45 = vpop.f32.mrb[114].mxu1 }
0x1661   :  { %v5949_v56 = vpop.f32.mrb[115].mxu1 }
0x1662   :  { %v8231_v61 = vpack.c.bf16 %v7468_v45, %v5949_v56  ;;  %v6106_v45 = vld [vmem:[%s12236_s1 + $0x850] sm:$0xff]  ;;  %v6112_v56 = vld [vmem:[%s12236_s1 + $0x880] sm:$0xff] }
0x1664   :  { %v7471_v31 = vpop.f32.mrb[116].mxu1  ;;  %8232 = vmatpush1.bf16.msra.mxu0 %v8231_v61  ;;  %v6114_v61 = vld [vmem:[%s12236_s1 + $0x890] sm:$0xff] }
0x1665   :  { %v5959_v11 = vpop.f32.mrb[117].mxu1  ;;  %8233 = vmatprep.subr.bf16.mxu0 %v12321_v33 }
0x1666   :  { %v8234_v21 = vpack.c.bf16 %v7471_v31, %v5959_v11  ;;  %v6116_v31 = vld [vmem:[%s12236_s1 + $0x8a0] sm:$0xff] }
0x1667   :  { %v6120_v11 = vld [vmem:[%s12236_s1 + $0x8c0] sm:$0xff] }
0x1668   :  { %v7474_v22 = vpop.f32.mrb[118].mxu1  ;;  %8235 = vmatpush1.bf16.msra.mxu0 %v8234_v21  ;;  %v6124_v21 = vld [vmem:[%s12236_s1 + $0x8e0] sm:$0xff] }
0x1669   :  { %v5969_v41 = vpop.f32.mrb[119].mxu1  ;;  %8236 = vmatprep.subr.bf16.mxu0 %v12321_v33 }
0x166a   :  { %v8237_v20 = vpack.c.bf16 %v7474_v22, %v5969_v41  ;;  %v6126_v22 = vld [vmem:[%s12236_s1 + $0x8f0] sm:$0xff] }
0x166b   :  { %v6468_v41 = vld [vmem:[%s12236_s1 + $0x910] sm:$0xff] }
0x166c   :  { %v7477_v44 = vpop.f32.mrb[120].mxu1  ;;  %8238 = vmatpush1.bf16.msra.mxu0 %v8237_v20  ;;  %7543 = vmatprep.mubr.f32.mxu1 %v6468_v41  ;;  %v6471_v20 = vld [vmem:[%s12236_s1 + $0x928] sm:$0x3] }
0x166d   :  { %v5979_v38 = vpop.f32.mrb[121].mxu1  ;;  %8239 = vmatprep.subr.bf16.mxu0 %v12321_v33  ;;  %6479 = vperm.xlu0 %8440, %v6471_v20  }
0x166e   :  { %v8240_v0 = vpack.c.bf16 %v7477_v44, %v5979_v38  ;;  %v6133_v44 = vpop.permute.xlu0 %6132 }
0x1670   :  { %v7480_v49 = vpop.f32.mrb[122].mxu1  ;;  %8241 = vmatpush1.bf16.msra.mxu0 %v8240_v0 }
0x1671   :  { %v5989_v53 = vpop.f32.mrb[123].mxu1  ;;  %8242 = vmatprep.subr.bf16.mxu0 %v12321_v33 }
0x1672   :  { %v8243_v59 = vpack.c.bf16 %v7480_v49, %v5989_v53 }
0x1674   :  { %v7483_v28 = vpop.f32.mrb[124].mxu1  ;;  %8244 = vmatpush1.bf16.msra.mxu0 %v8243_v59 }
0x1675   :  { %v5999_v50 = vpop.f32.mrb[125].mxu1  ;;  %8245 = vmatprep.subr.bf16.mxu0 %v12321_v33 }
0x1676   :  { %v8246_v48 = vpack.c.bf16 %v7483_v28, %v5999_v50 }
0x1678   :  { %v7486_v39 = vpop.f32.mrb[126].mxu1  ;;  %8247 = vmatpush1.bf16.msra.mxu0 %v8246_v48 }
0x1679   :  { %v6009_v13 = vpop.f32.mrb[127].mxu1  ;;  %8248 = vmatprep.subr.bf16.mxu0 %v12321_v33 }
0x167a   :  { %v8249_v43 = vpack.c.bf16 %v7486_v39, %v6009_v13 }
0x167c   :  { %v7489_v18 = vpop.f32.mrb[128].mxu1  ;;  %8250 = vmatpush1.bf16.msra.mxu0 %v8249_v43 }
0x167d   :  { %v6019_v3 = vpop.f32.mrb[129].mxu1  ;;  %8251 = vmatprep.subr.bf16.mxu0 %v12321_v33 }
0x167e   :  { %v8252_v26 = vpack.c.bf16 %v7489_v18, %v6019_v3  ;;  %v6148_v18 = vpop.permute.xlu0 %6147 }
0x1680   :  { %v7492_v51 = vpop.f32.mrb[130].mxu1  ;;  %8253 = vmatpush1.bf16.msra.mxu0 %v8252_v26 }
0x1681   :  { %v6029_v40 = vpop.f32.mrb[131].mxu1  ;;  %8254 = vmatprep.subr.bf16.mxu0 %v12321_v33 }
0x1682   :  { %v8255_v2 = vpack.c.bf16 %v7492_v51, %v6029_v40 }
0x1684   :  { %v7495_v15 = vpop.f32.mrb[132].mxu1  ;;  %8256 = vmatpush1.bf16.msra.mxu0 %v8255_v2 }
0x1685   :  { %v6039_v9 = vpop.f32.mrb[133].mxu1  ;;  %8257 = vmatprep.subr.bf16.mxu0 %v12321_v33 }
0x1686   :  { %v8258_v24 = vpack.c.bf16 %v7495_v15, %v6039_v9 }
0x1688   :  { %v7498_v19 = vpop.f32.mrb[134].mxu1  ;;  %8259 = vmatpush1.bf16.msra.mxu0 %v8258_v24 }
0x1689   :  { %v6049_v52 = vpop.f32.mrb[135].mxu1  ;;  %8260 = vmatprep.subr.bf16.mxu0 %v12321_v33 }
0x168a   :  { %v8261_v35 = vpack.c.bf16 %v7498_v19, %v6049_v52 }
0x168c   :  { %v7501_v42 = vpop.f32.mrb[136].mxu1  ;;  %8262 = vmatpush1.bf16.msra.mxu0 %v8261_v35 }
0x168d   :  { %v6059_v12 = vpop.f32.mrb[137].mxu1  ;;  %8263 = vmatprep.subr.bf16.mxu0 %v12321_v33 }
0x168e   :  { %v8264_v58 = vpack.c.bf16 %v7501_v42, %v6059_v12 }
0x1690   :  { %v7504_v30 = vpop.f32.mrb[138].mxu1  ;;  %8265 = vmatpush1.bf16.msra.mxu0 %v8264_v58 }
0x1691   :  { %v6069_v63 = vpop.f32.mrb[139].mxu1  ;;  %8266 = vmatprep.subr.bf16.mxu0 %v12321_v33 }
0x1692   :  { %v8267_v47 = vpack.c.bf16 %v7504_v30, %v6069_v63 }
0x1694   :  { %v7507_v62 = vpop.f32.mrb[140].mxu1  ;;  %8268 = vmatpush1.bf16.msra.mxu0 %v8267_v47 }
0x1695   :  { %v6079_v60 = vpop.f32.mrb[141].mxu1  ;;  %8269 = vmatprep.subr.bf16.mxu0 %v12321_v33 }
0x1696   :  { %v8270_v14 = vpack.c.bf16 %v7507_v62, %v6079_v60  ;;  %v6158_v62 = vpop.permute.xlu0 %6157 }
0x1698   :  { %v7510_v10 = vpop.f32.mrb[142].mxu1  ;;  %8271 = vmatpush1.bf16.msra.mxu0 %v8270_v14 }
0x1699   :  { %v6089_v37 = vpop.f32.mrb[143].mxu1  ;;  %8272 = vmatprep.subr.bf16.mxu0 %v12321_v33  ;;  %v6102_v33 = vld [vmem:[%s12236_s1 + $0x830] sm:$0xff] }
0x169a   :  { %v8273_v16 = vpack.c.bf16 %v7510_v10, %v6089_v37 }
0x169c   :  { %8274 = vmatpush1.bf16.msra.mxu0 %v8273_v16 }
0x169f   :  { %6308 = vmatmul.mubr.f32.vlgmr.msra.gmra.mrb[120].mxu0 %v6098_v23 }
0x16a0   :  { %6737 = vmatprep.mubr.msk.f32.mxu0 %vm6210_vm10, %v12034_v6  ;;  %v6104_v6 = vld [vmem:[%s12236_s1 + $0x840] sm:$0xff] }
0x16a3   :  { %6313 = vmatmul.mubr.f32.gmra.mrb[122].mxu0 %v6100_v29 }
0x16a4   :  { %6738 = vmatprep.mubr.msk.f32.mxu0 %vm6210_vm10, %v12040_v1  ;;  %v6108_v1 = vld [vmem:[%s12236_s1 + $0x860] sm:$0xff] }
0x16a7   :  { %6318 = vmatmul.mubr.f32.gmra.mrb[124].mxu0 %v6102_v33 }
0x16a8   :  { %6739 = vmatprep.mubr.msk.f32.mxu0 %vm6210_vm10, %v12045_v36  ;;  %v6110_v36 = vld [vmem:[%s12236_s1 + $0x870] sm:$0xff] }
0x16ab   :  { %6323 = vmatmul.mubr.f32.gmra.mrb[126].mxu0 %v6104_v6 }
0x16ac   :  { %6740 = vmatprep.mubr.msk.f32.mxu0 %vm6210_vm10, %v12052_v34  ;;  %v6118_v34 = vld [vmem:[%s12236_s1 + $0x8b0] sm:$0xff] }
0x16af   :  { %6328 = vmatmul.mubr.f32.gmra.mrb[128].mxu0 %v6106_v45 }
0x16b0   :  { %6741 = vmatprep.mubr.msk.f32.mxu0 %vm6210_vm10, %v12058_v5  ;;  %v6122_v5 = vld [vmem:[%s12236_s1 + $0x8d0] sm:$0xff] }
0x16b3   :  { %6333 = vmatmul.mubr.f32.gmra.mrb[130].mxu0 %v6108_v1 }
0x16b4   :  { %6742 = vmatprep.mubr.msk.f32.mxu0 %vm6210_vm10, %v12065_v32  ;;  %v6128_v32 = vld [vmem:[%s12236_s1 + $0x900] sm:$0xff] }
0x16b7   :  { %6338 = vmatmul.mubr.f32.gmra.mrb[132].mxu0 %v6110_v36 }
0x16b8   :  { %6743 = vmatprep.mubr.msk.f32.mxu0 %vm6210_vm10, %v12071_v54  ;;  %v6469_v54 = vld [vmem:[%s12236_s1 + $0x918] sm:$0xff] }
0x16b9   :  { %6474 = vperm.xlu1 %8439, %v6469_v54  }
0x16bb   :  { %6343 = vmatmul.mubr.f32.gmra.mrb[134].mxu0 %v6112_v56 }
0x16bc   :  { %6744 = vmatprep.mubr.msk.f32.mxu0 %vm6210_vm10, %v12078_v17  ;;  %v6138_v17 = vpop.permute.xlu1 %6137 }
0x16bf   :  { %6348 = vmatmul.mubr.f32.gmra.mrb[136].mxu0 %v6114_v61 }
0x16c0   :  { %6745 = vmatprep.mubr.msk.f32.mxu0 %vm6210_vm10, %v12084_v7  ;;  %v6143_v28 = vpop.permute.xlu1 %6142 }
0x16c3   :  { %6353 = vmatmul.mubr.f32.gmra.mrb[138].mxu0 %v6116_v31 }
0x16c4   :  { %6746 = vmatprep.mubr.msk.f32.mxu0 %vm6210_vm10, %v12091_v55  ;;  %v6153_v19 = vpop.permute.xlu1 %6152 }
0x16c7   :  { %6358 = vmatmul.mubr.f32.gmra.mrb[140].mxu0 %v6118_v34 }
0x16c8   :  { %6747 = vmatprep.mubr.msk.f32.mxu0 %vm6210_vm10, %v12097_v57  ;;  %v6163_v45 = vpop.permute.xlu1 %6162 }
0x16cb   :  { %6363 = vmatmul.mubr.f32.gmra.mrb[142].mxu0 %v6120_v11 }
0x16cc   :  { %6748 = vmatprep.mubr.msk.f32.mxu0 %vm6210_vm10, %v12104_v8 }
0x16cf   :  { %6368 = vmatmul.mubr.f32.gmra.mrb[144].mxu0 %v6122_v5 }
0x16d0   :  { %6749 = vmatprep.mubr.msk.f32.mxu0 %vm6210_vm10, %v12110_v27 }
0x16d3   :  { %6373 = vmatmul.mubr.f32.gmra.mrb[146].mxu0 %v6124_v21  ;;  %v6168_v21 = vpop.permute.xlu0 %6167 }
0x16d4   :  { %6750 = vmatprep.mubr.msk.f32.mxu0 %vm6210_vm10, %v12117_v4 }
0x16d7   :  { %6378 = vmatmul.mubr.f32.gmra.mrb[148].mxu0 %v6126_v22 }
0x16d8   :  { %6751 = vmatprep.mubr.msk.f32.mxu0 %vm6210_vm10, %v12123_v25 }
0x16db   :  { %6383 = vmatmul.mubr.f32.gmra.mrb[150].mxu0 %v6128_v32 }
0x1772   :  { %v6309_v38 = vpop.f32.mrb[120].mxu0 }
0x1773   :  { %v6310_v7 = vadd.f32 %v6309_v38, %v6133_v44  ;;  %v6311_v0 = vpop.f32.mrb[121].mxu0 }
0x1774   :  { %v6173_v0 = vpop.permute.xlu1 %6172 }
0x1775   :  { %v6388_v49 = vadd.f32 3.0, %v6310_v7 }
0x1776   :  { %v6314_v55 = vpop.f32.mrb[122].mxu0 }
0x1777   :  { %v6404_v53 = vmax.f32 %v6388_v49, 0.0  ;;  %v6315_v57 = vadd.f32 %v6314_v55, %v6138_v17  ;;  %v6316_v59 = vpop.f32.mrb[123].mxu0 }
0x1779   :  { %v6420_v8 = vmin.f32 %v6404_v53, 6.0  ;;  %v6389_v50 = vadd.f32 3.0, %v6315_v57 }
0x177a   :  { %v6319_v27 = vpop.f32.mrb[124].mxu0 }
0x177b   :  { %v6405_v48 = vmax.f32 %v6389_v50, 0.0  ;;  %v6320_v39 = vadd.f32 %v6319_v27, %v6143_v28  ;;  %v6321_v4 = vpop.f32.mrb[125].mxu0  ;;  %v6436_v13 = vmul.f32 0.16666667, %v6420_v8  ;;  %v6178_v27 = vpop.permute.xlu0 %6177 }
0x177d   :  { %v6421_v25 = vmin.f32 %v6405_v48, 6.0  ;;  %v6390_v43 = vadd.f32 3.0, %v6320_v39  ;;  %v6452_v2 = vmul.f32 %v6436_v13, %v6310_v7 }
0x177e   :  { %v6324_v3 = vpop.f32.mrb[126].mxu0 }
0x177f   :  { %v6437_v46 = vmul.f32 0.16666667, %v6421_v25  ;;  %v6406_v26 = vmax.f32 %v6390_v43, 0.0  ;;  %v6325_v51 = vadd.f32 %v6324_v3, %v6148_v18  ;;  %v6326_v40 = vpop.f32.mrb[127].mxu0 }
0x1781   :  { %v6453_v15 = vmul.f32 %v6437_v46, %v6315_v57  ;;  %v6422_v9 = vmin.f32 %v6406_v26, 6.0  ;;  %v6391_v24 = vadd.f32 3.0, %v6325_v51  ;;  %v6183_v26 = vpop.permute.xlu1 %6182 }
0x1782   :  { %v6329_v52 = vpop.f32.mrb[128].mxu0 }
0x1783   :  { %v6407_v35 = vmax.f32 %v6391_v24, 0.0  ;;  %v6330_v42 = vadd.f32 %v6329_v52, %v6153_v19  ;;  %v6331_v12 = vpop.f32.mrb[129].mxu0  ;;  %v8275_v58 = vpack.c.bf16 %v6453_v15, %v6452_v2  ;;  %v6438_v30 = vmul.f32 0.16666667, %v6422_v9 }
0x1785   :  { %v6423_v63 = vmin.f32 %v6407_v35, 6.0  ;;  %v6392_v47 = vadd.f32 3.0, %v6330_v42  ;;  %8276 = vmatprep.subr.bf16.mxu1 %v8275_v58  ;;  %v6454_v23 = vmul.f32 %v6438_v30, %v6320_v39  ;;  %v6188_v35 = vpop.permute.xlu0 %6187 }
0x1786   :  { %v6334_v60 = vpop.f32.mrb[130].mxu0  ;;  %8278 = vmatpush3.bf16.msra.mxu1 %v8275_v58 }
0x1787   :  { %v6439_v14 = vmul.f32 0.16666667, %v6423_v63  ;;  %v6408_v10 = vmax.f32 %v6392_v47, 0.0  ;;  %v6335_v37 = vadd.f32 %v6334_v60, %v6158_v62  ;;  %v6336_v16 = vpop.f32.mrb[131].mxu0 }
0x1789   :  { %v6455_v29 = vmul.f32 %v6439_v14, %v6325_v51  ;;  %v6424_v33 = vmin.f32 %v6408_v10, 6.0  ;;  %v6393_v6 = vadd.f32 3.0, %v6335_v37  ;;  %v6193_v10 = vpop.permute.xlu1 %6192 }
0x178a   :  { %v6339_v1 = vpop.f32.mrb[132].mxu0 }
0x178b   :  { %v6409_v36 = vmax.f32 %v6393_v6, 0.0  ;;  %v6340_v56 = vadd.f32 %v6339_v1, %v6163_v45  ;;  %v6341_v61 = vpop.f32.mrb[133].mxu0  ;;  %v8279_v31 = vpack.c.bf16 %v6455_v29, %v6454_v23  ;;  %v6440_v34 = vmul.f32 0.16666667, %v6424_v33 }
0x178d   :  { %v6425_v11 = vmin.f32 %v6409_v36, 6.0  ;;  %v6394_v5 = vadd.f32 3.0, %v6340_v56  ;;  %8280 = vmatprep.subr.bf16.mxu1 %v8279_v31  ;;  %v6456_v44 = vmul.f32 %v6440_v34, %v6330_v42  ;;  %v6198_v36 = vpop.permute.xlu0 %6197 }
0x178e   :  { %v6344_v22 = vpop.f32.mrb[134].mxu0  ;;  %8282 = vmatpush3.bf16.msra.mxu1 %v8279_v31 }
0x178f   :  { %v6441_v32 = vmul.f32 0.16666667, %v6425_v11  ;;  %v6410_v41 = vmax.f32 %v6394_v5, 0.0  ;;  %v6345_v54 = vadd.f32 %v6344_v22, %v6168_v21  ;;  %v6346_v20 = vpop.f32.mrb[135].mxu0 }
0x1791   :  { %v6457_v17 = vmul.f32 %v6441_v32, %v6335_v37  ;;  %v6426_v38 = vmin.f32 %v6410_v41, 6.0  ;;  %v6395_v7 = vadd.f32 3.0, %v6345_v54  ;;  %v6203_v41 = vpop.permute.xlu1 %6202 }
0x1792   :  { %v6349_v49 = vpop.f32.mrb[136].mxu0 }
0x1793   :  { %v6411_v55 = vmax.f32 %v6395_v7, 0.0  ;;  %v6350_v53 = vadd.f32 %v6349_v49, %v6173_v0  ;;  %v6351_v57 = vpop.f32.mrb[137].mxu0  ;;  %v8283_v59 = vpack.c.bf16 %v6457_v17, %v6456_v44  ;;  %v6442_v28 = vmul.f32 0.16666667, %v6426_v38 }
0x1795   :  { %v6427_v8 = vmin.f32 %v6411_v55, 6.0  ;;  %v6396_v50 = vadd.f32 3.0, %v6350_v53  ;;  %8284 = vmatprep.subr.bf16.mxu1 %v8283_v59  ;;  %v6458_v43 = vmul.f32 %v6442_v28, %v6340_v56  ;;  %v6208_v55 = vpop.permute.xlu0 %6207 }
0x1796   :  { %v6354_v48 = vpop.f32.mrb[138].mxu0  ;;  %8286 = vmatpush3.bf16.msra.mxu1 %v8283_v59 }
0x1797   :  { %v6443_v39 = vmul.f32 0.16666667, %v6427_v8  ;;  %v6412_v4 = vmax.f32 %v6396_v50, 0.0  ;;  %v6355_v13 = vadd.f32 %v6354_v48, %v6178_v27  ;;  %v6356_v25 = vpop.f32.mrb[139].mxu0 }
0x1799   :  { %v6459_v18 = vmul.f32 %v6443_v39, %v6345_v54  ;;  %v6428_v3 = vmin.f32 %v6412_v4, 6.0  ;;  %v6397_v46 = vadd.f32 3.0, %v6355_v13 }
0x179a   :  { %v6359_v51 = vpop.f32.mrb[140].mxu0 }
0x179b   :  { %v6413_v40 = vmax.f32 %v6397_v46, 0.0  ;;  %v6360_v2 = vadd.f32 %v6359_v51, %v6183_v26  ;;  %v6361_v15 = vpop.f32.mrb[141].mxu0  ;;  %v8287_v9 = vpack.c.bf16 %v6459_v18, %v6458_v43  ;;  %v6444_v24 = vmul.f32 0.16666667, %v6428_v3  ;;  %v6470_v51 = vld [vmem:[%s12236_s1 + $0x920] sm:$0x3] }
0x179d   :  { %v6429_v19 = vmin.f32 %v6413_v40, 6.0  ;;  %v6398_v52 = vadd.f32 3.0, %v6360_v2  ;;  %8288 = vmatprep.subr.bf16.mxu1 %v8287_v9  ;;  %v6460_v47 = vmul.f32 %v6444_v24, %v6350_v53  ;;  %v6480_v40 = vpop.permute.xlu0 %6479 }
0x179e   :  { %v6364_v42 = vpop.f32.mrb[142].mxu0  ;;  %8290 = vmatpush3.bf16.msra.mxu1 %v8287_v9 }
0x179f   :  { %v6445_v12 = vmul.f32 0.16666667, %v6429_v19  ;;  %v6414_v58 = vmax.f32 %v6398_v52, 0.0  ;;  %v6365_v30 = vadd.f32 %v6364_v42, %v6188_v35  ;;  %v6366_v63 = vpop.f32.mrb[143].mxu0 }
0x17a1   :  { %v6461_v62 = vmul.f32 %v6445_v12, %v6355_v13  ;;  %v6430_v60 = vmin.f32 %v6414_v58, 6.0  ;;  %v6399_v14 = vadd.f32 3.0, %v6365_v30 }
0x17a2   :  { %v6369_v37 = vpop.f32.mrb[144].mxu0 }
0x17a3   :  { %v6415_v16 = vmax.f32 %v6399_v14, 0.0  ;;  %v6370_v23 = vadd.f32 %v6369_v37, %v6193_v10  ;;  %v6371_v29 = vpop.f32.mrb[145].mxu0  ;;  %v8291_v33 = vpack.c.bf16 %v6461_v62, %v6460_v47  ;;  %v6446_v6 = vmul.f32 0.16666667, %v6430_v60 }
0x17a5   :  { %v6431_v45 = vmin.f32 %v6415_v16, 6.0  ;;  %v6400_v1 = vadd.f32 3.0, %v6370_v23  ;;  %8292 = vmatprep.subr.bf16.mxu1 %v8291_v33  ;;  %v6462_v5 = vmul.f32 %v6446_v6, %v6360_v2  ;;  %v6475_v2 = vpop.permute.xlu1 %6474 }
0x17a6   :  { %v6374_v56 = vpop.f32.mrb[146].mxu0  ;;  %8294 = vmatpush3.bf16.msra.mxu1 %v8291_v33 }
0x17a7   :  { %v6447_v61 = vmul.f32 0.16666667, %v6431_v45  ;;  %v6416_v31 = vmax.f32 %v6400_v1, 0.0  ;;  %v6375_v34 = vadd.f32 %v6374_v56, %v6198_v36  ;;  %v6376_v11 = vpop.f32.mrb[147].mxu0 }
0x17a9   :  { %v6463_v21 = vmul.f32 %v6447_v61, %v6365_v30  ;;  %v6432_v22 = vmin.f32 %v6416_v31, 6.0  ;;  %v6401_v32 = vadd.f32 3.0, %v6375_v34 }
0x17aa   :  { %v6379_v54 = vpop.f32.mrb[148].mxu0 }
0x17ab   :  { %v6417_v20 = vmax.f32 %v6401_v32, 0.0  ;;  %v6380_v44 = vadd.f32 %v6379_v54, %v6203_v41  ;;  %v6381_v17 = vpop.f32.mrb[149].mxu0  ;;  %v8295_v38 = vpack.c.bf16 %v6463_v21, %v6462_v5  ;;  %v6448_v7 = vmul.f32 0.16666667, %v6432_v22 }
0x17ad   :  { %v6433_v0 = vmin.f32 %v6417_v20, 6.0  ;;  %v6402_v49 = vadd.f32 3.0, %v6380_v44  ;;  %8296 = vmatprep.subr.bf16.mxu1 %v8295_v38  ;;  %v6464_v50 = vmul.f32 %v6448_v7, %v6370_v23 }
0x17ae   :  { %v6384_v53 = vpop.f32.mrb[150].mxu0  ;;  %8298 = vmatpush3.bf16.msra.mxu1 %v8295_v38 }
0x17af   :  { %v6449_v57 = vmul.f32 0.16666667, %v6433_v0  ;;  %v6418_v59 = vmax.f32 %v6402_v49, 0.0  ;;  %v6385_v28 = vadd.f32 %v6384_v53, %v6208_v55  ;;  %v6386_v8 = vpop.f32.mrb[151].mxu0 }
0x17b1   :  { %v6465_v27 = vmul.f32 %v6449_v57, %v6375_v34  ;;  %v6434_v48 = vmin.f32 %v6418_v59, 6.0  ;;  %v6403_v39 = vadd.f32 3.0, %v6385_v28 }
0x17b3   :  { %v6419_v4 = vmax.f32 %v6403_v39, 0.0  ;;  %v8299_v13 = vpack.c.bf16 %v6465_v27, %v6464_v50  ;;  %v6450_v25 = vmul.f32 0.16666667, %v6434_v48 }
0x17b5   :  { %v6435_v43 = vmin.f32 %v6419_v4, 6.0  ;;  %8300 = vmatprep.subr.bf16.mxu1 %v8299_v13  ;;  %v6466_v3 = vmul.f32 %v6450_v25, %v6380_v44 }
0x17b6   :  { %8302 = vmatpush3.bf16.msra.mxu1 %v8299_v13 }
0x17b7   :  { %v6451_v18 = vmul.f32 0.16666667, %v6435_v43 }
0x17b9   :  { %v6467_v46 = vmul.f32 %v6451_v18, %v6385_v28 }
0x17bb   :  { %v8303_v26 = vpack.c.bf16 %v6467_v46, %v6466_v3 }
0x17bd   :  { %8304 = vmatprep.subr.bf16.mxu1 %v8303_v26 }
0x17be   :  { %8306 = vmatpush3.bf16.msra.mxu1 %v8303_v26 }
0x17c1   :  { %7544 = vmatmul.mubr.f32.vlgmr.msra.gmra.mrb[144].mxu1 %v6470_v51 }
0x1894   :  { %v7545_v15 = vpop.f32.mrb[144].mxu1 }
0x1895   :  { %v6554_v9 = vadd.f32 %v7545_v15, %v6480_v40  ;;  %v6548_v24 = vpop.f32.mrb[145].mxu1 }
0x1896   :  { %v6549_v19 = vadd.f32 %v6548_v24, %v6475_v2 }
0x1897   :  { %6559 = vst.msk [vmem:[%s12237_s3 + $0x8] sm:$0x3] %vm6558_vm11, %v6554_v9 }
0x1898   :  { %6557 = vst.msk [vmem:[%s12237_s3] sm:$0xff] %vm1431_vm2, %v6549_v19 }

</bundles_post_ra>
